<compile_context>
chip_gen: v5e
topology: v5e:2x2
jax: 0.10.0
libtpu: 0.0.40
codegen_flags: <defaults>
</compile_context>

<pallas_src>
import functools
import math

import jax
import jax.numpy as jnp
import numpy as np
from jax.experimental import pallas as pl
from jax.experimental.pallas import tpu as pltpu


# ---------------------------------------------------------------------------
# in-kernel helpers
# ---------------------------------------------------------------------------
def _shift_lanes_zero(x, off):
    """out[:, p] = x[:, p + off] if 0 <= p + off < N else 0  (static off)."""
    n = x.shape[-1]
    if off == 0:
        return x
    if off > 0:
        pad = jnp.zeros((x.shape[0], off), x.dtype)
        return jnp.concatenate([x[:, off:], pad], axis=-1)
    pad = jnp.zeros((x.shape[0], -off), x.dtype)
    return jnp.concatenate([pad, x[:, :n + off]], axis=-1)


def _gelu_layernorm(y, gamma_col, beta_col, eps):
    """GELU then per-pixel LayerNorm over channels.  y: (C, N) channels-first."""
    # TODO(synk): nn.GELU default is the exact erf form; tanh approximation used here
    # (erf has no Mosaic lowering).
    y = jax.nn.gelu(y, approximate=True)
    c = y.shape[0]
    ones = jnp.full((1, c), 1.0 / c, dtype=jnp.float32)
    mu = jnp.dot(ones, y, preferred_element_type=jnp.float32)          # (1, N)
    d = y - mu
    var = jnp.dot(ones, d * d, preferred_element_type=jnp.float32)     # (1, N)
    return d * jax.lax.rsqrt(var + eps) * gamma_col + beta_col


# ---------------------------------------------------------------------------
# fused decoder kernel: all project_up blocks + up_final, one batch item / grid step
# ---------------------------------------------------------------------------
def _decoder_kernel(*refs, dims, eps):
    x_ref = refs[0]
    o_ref = refs[-1]
    pos = 1

    x = x_ref[0]                                    # (Cin, H*W), channels-first, f32
    for (H, W, _ci, Co) in dims:
        Wf = 2 * W
        Nf = 4 * H * W
        (w1_ref, b1_ref, g1_ref, be1_ref, s00_ref,
         w2_ref, b2_ref, g2_ref, be2_ref, col_ref) = refs[pos:pos + 10]
        pos += 10

        s00 = s00_ref[...]                          # (H*W, Nf) 0/1 scatter, group (0,0)
        up = jnp.zeros((Co, Nf), jnp.float32)       # 2x-upsampled map, VMEM resident

        # -- ConvTranspose2d(k=2,s=2) + GELU + LayerNorm, one (kh,kw) group at a time --
        for g, (kh, kw) in enumerate(((0, 0), (0, 1), (1, 0), (1, 1))):
            y = jnp.dot(w1_ref[g], x, preferred_element_type=jnp.float32) + b1_ref[...]
            z = _gelu_layernorm(y, g1_ref[...], be1_ref[...], eps)
            # depth_to_space: scatter coarse pixel (h,w) to fine lane 2h*Wf+2w, then
            # shift right by kh*Wf+kw (zero fill) to land on (2h+kh)*Wf + (2w+kw).
            zs = jnp.dot(z, s00, preferred_element_type=jnp.float32)   # (Co, Nf)
            up = up + _shift_lanes_zero(zs, -(kh * Wf + kw))

        # -- Conv2d(3x3, pad=1) via im2col (K = 9*Co) + GELU + LayerNorm --------------
        col = col_ref[...]                          # (1, Nf) int32: column of each pixel
        pieces = []
        for dh in (-1, 0, 1):
            for dw in (-1, 0, 1):
                piece = _shift_lanes_zero(up, dh * Wf + dw)   # row halo -> zero fill
                if dw == -1:                                   # column halo -> mask
                    piece = jnp.where(col >= 1, piece, 0.0)
                elif dw == 1:
                    piece = jnp.where(col <= Wf - 2, piece, 0.0)
                pieces.append(piece)
        im2col = jnp.concatenate(pieces, axis=0)    # (9*Co, Nf)
        y2 = jnp.dot(w2_ref[...], im2col, preferred_element_type=jnp.float32) + b2_ref[...]
        x = _gelu_layernorm(y2, g2_ref[...], be2_ref[...], eps)

    # -- up_final: ConvTranspose2d(k=4, s=4) as one (16*nc, C) x (C, N) matmul --------
    wf_ref, bf_ref = refs[pos], refs[pos + 1]
    yf = jnp.dot(wf_ref[...], x, preferred_element_type=jnp.float32) + bf_ref[...]
    o_ref[0] = yf.astype(o_ref.dtype)               # single lane-dense store


# ---------------------------------------------------------------------------
# wrapper: weight re-layout (from PyTorch layouts), constants, pallas_call, epilogue
# ---------------------------------------------------------------------------
def final_patch_expanding_forward(x_nchw, params, *, num_class):
    B, C0, H0, W0 = x_nchw.shape
    eps = 1e-5
    nc = num_class

    inputs = [x_nchw.reshape(B, C0, H0 * W0)]       # free reshape, channels-first
    in_specs = [pl.BlockSpec((1, C0, H0 * W0), lambda b: (b, 0, 0))]

    def add_full(arr):
        zeros = (0,) * arr.ndim
        in_specs.append(pl.BlockSpec(arr.shape, lambda b, _z=zeros: _z))
        inputs.append(arr)

    dims = []
    H, W, Ci = H0, W0, C0
    for blk in params["blocks"]:
        Co = blk["b1"].shape[0]
        N, Hf, Wf = H * W, 2 * H, 2 * W
        Nf = Hf * Wf
        dims.append((H, W, Ci, Co))

        # ConvTranspose2d(Ci, Co, 2, 2): PyTorch weight (Ci, Co, 2, 2) -> (4, Co, Ci)
        add_full(jnp.transpose(blk["w1"], (2, 3, 1, 0)).reshape(4, Co, Ci))
        add_full(blk["b1"].reshape(Co, 1))
        add_full(blk["gamma1"].reshape(Co, 1))
        add_full(blk["beta1"].reshape(Co, 1))

        # depth_to_space scatter matrix for group (0,0): S00[h*W+w, 2h*Wf+2w] = 1
        i = np.arange(N)
        s00 = np.zeros((N, Nf), np.float32)
        s00[i, (i // W) * 2 * Wf + (i % W) * 2] = 1.0
        add_full(jnp.asarray(s00))

        # Conv2d(Co, Co, 3, pad=1): PyTorch weight (Co, Co, 3, 3) -> (Co, 9*Co),
        # columns ordered (kh, kw, cin) to match the in-kernel im2col row order.
        add_full(jnp.transpose(blk["w2"], (0, 2, 3, 1)).reshape(Co, 9 * Co))
        add_full(blk["b2"].reshape(Co, 1))
        add_full(blk["gamma2"].reshape(Co, 1))
        add_full(blk["beta2"].reshape(Co, 1))

        # column index of every fine pixel (left/right edge masks for the 3x3 conv)
        add_full(jnp.asarray(np.tile(np.arange(Wf, dtype=np.int32), Hf)[None, :]))

        H, W, Ci = Hf, Wf, Co

    # up_final: ConvTranspose2d(C_last, nc, 4, 4): weight (C_last, nc, 4, 4) -> (16*nc, C_last)
    add_full(jnp.transpose(params["wf"], (2, 3, 1, 0)).reshape(16 * nc, Ci))
    add_full(jnp.tile(params["bf"], 16).reshape(16 * nc, 1))

    N_last = H * W
    out = pl.pallas_call(
        functools.partial(_decoder_kernel, dims=tuple(dims), eps=eps),
        out_shape=jax.ShapeDtypeStruct((B, 16 * nc, N_last), x_nchw.dtype),
        grid=(B,),
        in_specs=in_specs,
        out_specs=pl.BlockSpec((1, 16 * nc, N_last), lambda b: (b, 0, 0)),
        compiler_params=pltpu.CompilerParams(dimension_semantics=("parallel",)),
    )(*inputs)

    # (B, (kh, kw, class), H_last*W_last) -> NCHW (B, nc, 4*H_last, 4*W_last)
    out = out.reshape(B, 4, 4, nc, H, W)
    out = out.transpose(0, 3, 4, 1, 5, 2).reshape(B, nc, 4 * H, 4 * W)
    return out


# ---------------------------------------------------------------------------
# parameters (PyTorch-native layouts) and a pure-jnp reference for validation
# ---------------------------------------------------------------------------
def init_params(key, dim, num_class, patch_size):
    num_block = int(math.log2(patch_size[0])) - 2
    dim_list = [dim // (2 ** i) for i in range(num_block + 1)]
    keys = jax.random.split(key, 8 * num_block + 2)
    blocks, ki = [], 0
    for i in range(num_block):
        ci, co = dim_list[i], dim_list[i + 1]
        blocks.append({
            "w1": 0.05 * jax.random.normal(keys[ki + 0], (ci, co, 2, 2), jnp.float32),
            "b1": 0.02 * jax.random.normal(keys[ki + 1], (co,), jnp.float32),
            "gamma1": 1.0 + 0.1 * jax.random.normal(keys[ki + 2], (co,), jnp.float32),
            "beta1": 0.05 * jax.random.normal(keys[ki + 3], (co,), jnp.float32),
            "w2": 0.05 * jax.random.normal(keys[ki + 4], (co, co, 3, 3), jnp.float32),
            "b2": 0.02 * jax.random.normal(keys[ki + 5], (co,), jnp.float32),
            "gamma2": 1.0 + 0.1 * jax.random.normal(keys[ki + 6], (co,), jnp.float32),
            "beta2": 0.05 * jax.random.normal(keys[ki + 7], (co,), jnp.float32),
        })
        ki += 8
    return {
        "blocks": blocks,
        "wf": 0.05 * jax.random.normal(keys[ki], (dim_list[-1], num_class, 4, 4), jnp.float32),
        "bf": 0.02 * jax.random.normal(keys[ki + 1], (num_class,), jnp.float32),
    }


def reference_forward(x, params, *, num_class):
    """Plain-XLA reference of the PyTorch module (same tanh-GELU as the kernel)."""
    eps = 1e-5
    hi = jax.lax.Precision.HIGHEST

    def ln_c(v, g, b):
        mu = jnp.mean(v, axis=1, keepdims=True)
        var = jnp.mean((v - mu) ** 2, axis=1, keepdims=True)
        return (v - mu) * jax.lax.rsqrt(var + eps) * g[None, :, None, None] + b[None, :, None, None]

    def deconv(v, w, bias, k):
        t = jnp.einsum('bihw,iokl->bohkwl', v, w, precision=hi)
        bb, co, h, _, ww, _ = t.shape
        return t.reshape(bb, co, h * k, ww * k) + bias[None, :, None, None]

    def conv3(v, w, bias):
        y = jax.lax.conv_general_dilated(
            v, w, (1, 1), ((1, 1), (1, 1)),
            dimension_numbers=('NCHW', 'OIHW', 'NCHW'), precision=hi)
        return y + bias[None, :, None, None]

    for blk in params["blocks"]:
        x = deconv(x, blk["w1"], blk["b1"], 2)
        x = ln_c(jax.nn.gelu(x, approximate=True), blk["gamma1"], blk["beta1"])
        x = conv3(x, blk["w2"], blk["b2"])
        x = ln_c(jax.nn.gelu(x, approximate=True), blk["gamma2"], blk["beta2"])
    return deconv(x, params["wf"], params["bf"], 4)


if __name__ == "__main__":
    B, dim, H, W = 2, 32, 8, 8
    num_class = 4
    patch_size = (16, 16)      # num_block = 2: dims 32 -> 16 -> 8, total upsample x16

    key = jax.random.PRNGKey(0)
    kx, kp = jax.random.split(key)
    x = jax.random.normal(kx, (B, dim, H, W), jnp.float32)     # NCHW, as in PyTorch
    params = init_params(kp, dim, num_class, patch_size)

    fwd = jax.jit(functools.partial(final_patch_expanding_forward, num_class=num_class))
    out = jax.block_until_ready(fwd(x, params))

    expected = (B, num_class, H * patch_size[0], W * patch_size[1])
    assert out.shape == expected and out.dtype == jnp.float32, (out.shape, out.dtype)

    ref = reference_forward(x, params, num_class=num_class)
    err = float(jnp.max(jnp.abs(out - ref)))
    assert err < 2e-3, f"max abs error vs reference: {err}"
    print("KERNEL_OK")
</pallas_src>

<mosaic_0001>
module attributes {stable_mosaic.version = 11 : i64} {
  func.func @_decoder_kernel(%arg0: i32, %arg1: memref<1x32x64xf32, #tpu.memory_space<vmem>>, %arg2: memref<4x16x32xf32, #tpu.memory_space<vmem>>, %arg3: memref<16x1xf32, #tpu.memory_space<vmem>>, %arg4: memref<16x1xf32, #tpu.memory_space<vmem>>, %arg5: memref<16x1xf32, #tpu.memory_space<vmem>>, %arg6: memref<64x256xf32, #tpu.memory_space<vmem>>, %arg7: memref<16x144xf32, #tpu.memory_space<vmem>>, %arg8: memref<16x1xf32, #tpu.memory_space<vmem>>, %arg9: memref<16x1xf32, #tpu.memory_space<vmem>>, %arg10: memref<16x1xf32, #tpu.memory_space<vmem>>, %arg11: memref<1x256xi32, #tpu.memory_space<vmem>>, %arg12: memref<4x8x16xf32, #tpu.memory_space<vmem>>, %arg13: memref<8x1xf32, #tpu.memory_space<vmem>>, %arg14: memref<8x1xf32, #tpu.memory_space<vmem>>, %arg15: memref<8x1xf32, #tpu.memory_space<vmem>>, %arg16: memref<256x1024xf32, #tpu.memory_space<vmem>>, %arg17: memref<8x72xf32, #tpu.memory_space<vmem>>, %arg18: memref<8x1xf32, #tpu.memory_space<vmem>>, %arg19: memref<8x1xf32, #tpu.memory_space<vmem>>, %arg20: memref<8x1xf32, #tpu.memory_space<vmem>>, %arg21: memref<1x1024xi32, #tpu.memory_space<vmem>>, %arg22: memref<64x8xf32, #tpu.memory_space<vmem>>, %arg23: memref<64x1xf32, #tpu.memory_space<vmem>>, %arg24: memref<1x64x1024xf32, #tpu.memory_space<vmem>>) attributes {dimension_semantics = [#tpu.dimension_semantics<parallel>], iteration_bounds = array<i64: 2>, scalar_prefetch = 0 : i64, scratch_operands = 0 : i64, tpu.core_type = #tpu.core_type<tc>, window_params = [{transform_indices = @transform_0, window_bounds = array<i64: 1, 32, 64>}, {pipeline_mode = #tpu.pipeline_mode<synchronous>, transform_indices = @transform_1, window_bounds = array<i64: 4, 16, 32>}, {pipeline_mode = #tpu.pipeline_mode<synchronous>, transform_indices = @transform_2, window_bounds = array<i64: 16, 1>}, {pipeline_mode = #tpu.pipeline_mode<synchronous>, transform_indices = @transform_3, window_bounds = array<i64: 16, 1>}, {pipeline_mode = #tpu.pipeline_mode<synchronous>, transform_indices = @transform_4, window_bounds = array<i64: 16, 1>}, {pipeline_mode = #tpu.pipeline_mode<synchronous>, transform_indices = @transform_5, window_bounds = array<i64: 64, 256>}, {pipeline_mode = #tpu.pipeline_mode<synchronous>, transform_indices = @transform_6, window_bounds = array<i64: 16, 144>}, {pipeline_mode = #tpu.pipeline_mode<synchronous>, transform_indices = @transform_7, window_bounds = array<i64: 16, 1>}, {pipeline_mode = #tpu.pipeline_mode<synchronous>, transform_indices = @transform_8, window_bounds = array<i64: 16, 1>}, {pipeline_mode = #tpu.pipeline_mode<synchronous>, transform_indices = @transform_9, window_bounds = array<i64: 16, 1>}, {pipeline_mode = #tpu.pipeline_mode<synchronous>, transform_indices = @transform_10, window_bounds = array<i64: 1, 256>}, {pipeline_mode = #tpu.pipeline_mode<synchronous>, transform_indices = @transform_11, window_bounds = array<i64: 4, 8, 16>}, {pipeline_mode = #tpu.pipeline_mode<synchronous>, transform_indices = @transform_12, window_bounds = array<i64: 8, 1>}, {pipeline_mode = #tpu.pipeline_mode<synchronous>, transform_indices = @transform_13, window_bounds = array<i64: 8, 1>}, {pipeline_mode = #tpu.pipeline_mode<synchronous>, transform_indices = @transform_14, window_bounds = array<i64: 8, 1>}, {pipeline_mode = #tpu.pipeline_mode<synchronous>, transform_indices = @transform_15, window_bounds = array<i64: 256, 1024>}, {pipeline_mode = #tpu.pipeline_mode<synchronous>, transform_indices = @transform_16, window_bounds = array<i64: 8, 72>}, {pipeline_mode = #tpu.pipeline_mode<synchronous>, transform_indices = @transform_17, window_bounds = array<i64: 8, 1>}, {pipeline_mode = #tpu.pipeline_mode<synchronous>, transform_indices = @transform_18, window_bounds = array<i64: 8, 1>}, {pipeline_mode = #tpu.pipeline_mode<synchronous>, transform_indices = @transform_19, window_bounds = array<i64: 8, 1>}, {pipeline_mode = #tpu.pipeline_mode<synchronous>, transform_indices = @transform_20, window_bounds = array<i64: 1, 1024>}, {pipeline_mode = #tpu.pipeline_mode<synchronous>, transform_indices = @transform_21, window_bounds = array<i64: 64, 8>}, {pipeline_mode = #tpu.pipeline_mode<synchronous>, transform_indices = @transform_22, window_bounds = array<i64: 64, 1>}, {transform_indices = @transform_23, window_bounds = array<i64: 1, 64, 1024>}]} {
    %c0 = arith.constant 0 : index
    %c0_0 = arith.constant 0 : index
    %c0_1 = arith.constant 0 : index
    %0 = vector.load %arg1[%c0, %c0_0, %c0_1] : memref<1x32x64xf32, #tpu.memory_space<vmem>>, vector<1x32x64xf32>
    %1 = vector.shape_cast %0 : vector<1x32x64xf32> to vector<32x64xf32>
    %c0_2 = arith.constant 0 : index
    %c0_3 = arith.constant 0 : index
    %2 = vector.load %arg6[%c0_2, %c0_3] : memref<64x256xf32, #tpu.memory_space<vmem>>, vector<64x256xf32>
    %cst = arith.constant 0.000000e+00 : f32
    %3 = vector.broadcast %cst : f32 to vector<16x256xf32>
    %c0_4 = arith.constant 0 : index
    %c0_5 = arith.constant 0 : index
    %c0_6 = arith.constant 0 : index
    %4 = vector.load %arg2[%c0_4, %c0_5, %c0_6] : memref<4x16x32xf32, #tpu.memory_space<vmem>>, vector<1x16x32xf32>
    %5 = vector.shape_cast %4 : vector<1x16x32xf32> to vector<16x32xf32>
    %cst_7 = arith.constant dense<0.000000e+00> : vector<16x64xf32>
    %6 = tpu.matmul %5, %1, %cst_7 {dimension_numbers = #tpu.dot_dimension_numbers<[1], [0], [0], [1], [0, 0, 1, 1], [], []>} : vector<16x32xf32>, vector<32x64xf32>, vector<16x64xf32> -> vector<16x64xf32>
    %c0_8 = arith.constant 0 : index
    %c0_9 = arith.constant 0 : index
    %7 = vector.load %arg3[%c0_8, %c0_9] : memref<16x1xf32, #tpu.memory_space<vmem>>, vector<16x1xf32>
    %8 = vector.broadcast %7 : vector<16x1xf32> to vector<16x64xf32>
    %9 = arith.addf %6, %8 : vector<16x64xf32>
    %c0_10 = arith.constant 0 : index
    %c0_11 = arith.constant 0 : index
    %10 = vector.load %arg4[%c0_10, %c0_11] : memref<16x1xf32, #tpu.memory_space<vmem>>, vector<16x1xf32>
    %c0_12 = arith.constant 0 : index
    %c0_13 = arith.constant 0 : index
    %11 = vector.load %arg5[%c0_12, %c0_13] : memref<16x1xf32, #tpu.memory_space<vmem>>, vector<16x1xf32>
    %12 = arith.mulf %9, %9 : vector<16x64xf32>
    %13 = arith.mulf %9, %12 : vector<16x64xf32>
    %cst_14 = arith.constant 4.471500e-02 : f32
    %14 = vector.broadcast %cst_14 : f32 to vector<16x64xf32>
    %15 = arith.mulf %14, %13 : vector<16x64xf32>
    %16 = arith.addf %9, %15 : vector<16x64xf32>
    %cst_15 = arith.constant 0.797884583 : f32
    %17 = vector.broadcast %cst_15 : f32 to vector<16x64xf32>
    %18 = arith.mulf %17, %16 : vector<16x64xf32>
    %19 = math.tanh %18 : vector<16x64xf32>
    %cst_16 = arith.constant 1.000000e+00 : f32
    %20 = vector.broadcast %cst_16 : f32 to vector<16x64xf32>
    %21 = arith.addf %20, %19 : vector<16x64xf32>
    %cst_17 = arith.constant 5.000000e-01 : f32
    %22 = vector.broadcast %cst_17 : f32 to vector<16x64xf32>
    %23 = arith.mulf %22, %21 : vector<16x64xf32>
    %24 = arith.mulf %9, %23 : vector<16x64xf32>
    %cst_18 = arith.constant 6.250000e-02 : f32
    %25 = vector.broadcast %cst_18 : f32 to vector<1x16xf32>
    %cst_19 = arith.constant dense<0.000000e+00> : vector<1x64xf32>
    %26 = tpu.matmul %25, %24, %cst_19 {dimension_numbers = #tpu.dot_dimension_numbers<[1], [0], [0], [1], [0, 0, 1, 1], [], []>} : vector<1x16xf32>, vector<16x64xf32>, vector<1x64xf32> -> vector<1x64xf32>
    %27 = vector.broadcast %26 : vector<1x64xf32> to vector<16x64xf32>
    %28 = arith.subf %24, %27 : vector<16x64xf32>
    %29 = arith.mulf %28, %28 : vector<16x64xf32>
    %cst_20 = arith.constant dense<0.000000e+00> : vector<1x64xf32>
    %30 = tpu.matmul %25, %29, %cst_20 {dimension_numbers = #tpu.dot_dimension_numbers<[1], [0], [0], [1], [0, 0, 1, 1], [], []>} : vector<1x16xf32>, vector<16x64xf32>, vector<1x64xf32> -> vector<1x64xf32>
    %cst_21 = arith.constant 9.99999974E-6 : f32
    %31 = vector.broadcast %cst_21 : f32 to vector<1x64xf32>
    %32 = arith.addf %30, %31 : vector<1x64xf32>
    %33 = math.rsqrt %32 : vector<1x64xf32>
    %34 = vector.broadcast %33 : vector<1x64xf32> to vector<16x64xf32>
    %35 = arith.mulf %28, %34 : vector<16x64xf32>
    %36 = vector.broadcast %10 : vector<16x1xf32> to vector<16x64xf32>
    %37 = arith.mulf %35, %36 : vector<16x64xf32>
    %38 = vector.broadcast %11 : vector<16x1xf32> to vector<16x64xf32>
    %39 = arith.addf %37, %38 : vector<16x64xf32>
    %cst_22 = arith.constant dense<0.000000e+00> : vector<16x256xf32>
    %40 = tpu.matmul %39, %2, %cst_22 {dimension_numbers = #tpu.dot_dimension_numbers<[1], [0], [0], [1], [0, 0, 1, 1], [], []>} : vector<16x64xf32>, vector<64x256xf32>, vector<16x256xf32> -> vector<16x256xf32>
    %41 = arith.addf %3, %40 : vector<16x256xf32>
    %c1 = arith.constant 1 : index
    %c0_23 = arith.constant 0 : index
    %c0_24 = arith.constant 0 : index
    %42 = vector.load %arg2[%c1, %c0_23, %c0_24] : memref<4x16x32xf32, #tpu.memory_space<vmem>>, vector<1x16x32xf32>
    %43 = vector.shape_cast %42 : vector<1x16x32xf32> to vector<16x32xf32>
    %cst_25 = arith.constant dense<0.000000e+00> : vector<16x64xf32>
    %44 = tpu.matmul %43, %1, %cst_25 {dimension_numbers = #tpu.dot_dimension_numbers<[1], [0], [0], [1], [0, 0, 1, 1], [], []>} : vector<16x32xf32>, vector<32x64xf32>, vector<16x64xf32> -> vector<16x64xf32>
    %c0_26 = arith.constant 0 : index
    %c0_27 = arith.constant 0 : index
    %45 = vector.load %arg3[%c0_26, %c0_27] : memref<16x1xf32, #tpu.memory_space<vmem>>, vector<16x1xf32>
    %46 = vector.broadcast %45 : vector<16x1xf32> to vector<16x64xf32>
    %47 = arith.addf %44, %46 : vector<16x64xf32>
    %c0_28 = arith.constant 0 : index
    %c0_29 = arith.constant 0 : index
    %48 = vector.load %arg4[%c0_28, %c0_29] : memref<16x1xf32, #tpu.memory_space<vmem>>, vector<16x1xf32>
    %c0_30 = arith.constant 0 : index
    %c0_31 = arith.constant 0 : index
    %49 = vector.load %arg5[%c0_30, %c0_31] : memref<16x1xf32, #tpu.memory_space<vmem>>, vector<16x1xf32>
    %50 = arith.mulf %47, %47 : vector<16x64xf32>
    %51 = arith.mulf %47, %50 : vector<16x64xf32>
    %cst_32 = arith.constant 4.471500e-02 : f32
    %52 = vector.broadcast %cst_32 : f32 to vector<16x64xf32>
    %53 = arith.mulf %52, %51 : vector<16x64xf32>
    %54 = arith.addf %47, %53 : vector<16x64xf32>
    %cst_33 = arith.constant 0.797884583 : f32
    %55 = vector.broadcast %cst_33 : f32 to vector<16x64xf32>
    %56 = arith.mulf %55, %54 : vector<16x64xf32>
    %57 = math.tanh %56 : vector<16x64xf32>
    %cst_34 = arith.constant 1.000000e+00 : f32
    %58 = vector.broadcast %cst_34 : f32 to vector<16x64xf32>
    %59 = arith.addf %58, %57 : vector<16x64xf32>
    %cst_35 = arith.constant 5.000000e-01 : f32
    %60 = vector.broadcast %cst_35 : f32 to vector<16x64xf32>
    %61 = arith.mulf %60, %59 : vector<16x64xf32>
    %62 = arith.mulf %47, %61 : vector<16x64xf32>
    %cst_36 = arith.constant 6.250000e-02 : f32
    %63 = vector.broadcast %cst_36 : f32 to vector<1x16xf32>
    %cst_37 = arith.constant dense<0.000000e+00> : vector<1x64xf32>
    %64 = tpu.matmul %63, %62, %cst_37 {dimension_numbers = #tpu.dot_dimension_numbers<[1], [0], [0], [1], [0, 0, 1, 1], [], []>} : vector<1x16xf32>, vector<16x64xf32>, vector<1x64xf32> -> vector<1x64xf32>
    %65 = vector.broadcast %64 : vector<1x64xf32> to vector<16x64xf32>
    %66 = arith.subf %62, %65 : vector<16x64xf32>
    %67 = arith.mulf %66, %66 : vector<16x64xf32>
    %cst_38 = arith.constant dense<0.000000e+00> : vector<1x64xf32>
    %68 = tpu.matmul %63, %67, %cst_38 {dimension_numbers = #tpu.dot_dimension_numbers<[1], [0], [0], [1], [0, 0, 1, 1], [], []>} : vector<1x16xf32>, vector<16x64xf32>, vector<1x64xf32> -> vector<1x64xf32>
    %cst_39 = arith.constant 9.99999974E-6 : f32
    %69 = vector.broadcast %cst_39 : f32 to vector<1x64xf32>
    %70 = arith.addf %68, %69 : vector<1x64xf32>
    %71 = math.rsqrt %70 : vector<1x64xf32>
    %72 = vector.broadcast %71 : vector<1x64xf32> to vector<16x64xf32>
    %73 = arith.mulf %66, %72 : vector<16x64xf32>
    %74 = vector.broadcast %48 : vector<16x1xf32> to vector<16x64xf32>
    %75 = arith.mulf %73, %74 : vector<16x64xf32>
    %76 = vector.broadcast %49 : vector<16x1xf32> to vector<16x64xf32>
    %77 = arith.addf %75, %76 : vector<16x64xf32>
    %cst_40 = arith.constant dense<0.000000e+00> : vector<16x256xf32>
    %78 = tpu.matmul %77, %2, %cst_40 {dimension_numbers = #tpu.dot_dimension_numbers<[1], [0], [0], [1], [0, 0, 1, 1], [], []>} : vector<16x64xf32>, vector<64x256xf32>, vector<16x256xf32> -> vector<16x256xf32>
    %cst_41 = arith.constant 0.000000e+00 : f32
    %79 = vector.broadcast %cst_41 : f32 to vector<16x1xf32>
    %80 = vector.extract_strided_slice %78 {offsets = [0, 0], sizes = [16, 255], strides = [1, 1]} : vector<16x256xf32> to vector<16x255xf32>
    %81 = tpu.concatenate %79, %80 in 1 : vector<16x1xf32>, vector<16x255xf32> -> vector<16x256xf32>
    %82 = arith.addf %41, %81 : vector<16x256xf32>
    %c2 = arith.constant 2 : index
    %c0_42 = arith.constant 0 : index
    %c0_43 = arith.constant 0 : index
    %83 = vector.load %arg2[%c2, %c0_42, %c0_43] : memref<4x16x32xf32, #tpu.memory_space<vmem>>, vector<1x16x32xf32>
    %84 = vector.shape_cast %83 : vector<1x16x32xf32> to vector<16x32xf32>
    %cst_44 = arith.constant dense<0.000000e+00> : vector<16x64xf32>
    %85 = tpu.matmul %84, %1, %cst_44 {dimension_numbers = #tpu.dot_dimension_numbers<[1], [0], [0], [1], [0, 0, 1, 1], [], []>} : vector<16x32xf32>, vector<32x64xf32>, vector<16x64xf32> -> vector<16x64xf32>
    %c0_45 = arith.constant 0 : index
    %c0_46 = arith.constant 0 : index
    %86 = vector.load %arg3[%c0_45, %c0_46] : memref<16x1xf32, #tpu.memory_space<vmem>>, vector<16x1xf32>
    %87 = vector.broadcast %86 : vector<16x1xf32> to vector<16x64xf32>
    %88 = arith.addf %85, %87 : vector<16x64xf32>
    %c0_47 = arith.constant 0 : index
    %c0_48 = arith.constant 0 : index
    %89 = vector.load %arg4[%c0_47, %c0_48] : memref<16x1xf32, #tpu.memory_space<vmem>>, vector<16x1xf32>
    %c0_49 = arith.constant 0 : index
    %c0_50 = arith.constant 0 : index
    %90 = vector.load %arg5[%c0_49, %c0_50] : memref<16x1xf32, #tpu.memory_space<vmem>>, vector<16x1xf32>
    %91 = arith.mulf %88, %88 : vector<16x64xf32>
    %92 = arith.mulf %88, %91 : vector<16x64xf32>
    %cst_51 = arith.constant 4.471500e-02 : f32
    %93 = vector.broadcast %cst_51 : f32 to vector<16x64xf32>
    %94 = arith.mulf %93, %92 : vector<16x64xf32>
    %95 = arith.addf %88, %94 : vector<16x64xf32>
    %cst_52 = arith.constant 0.797884583 : f32
    %96 = vector.broadcast %cst_52 : f32 to vector<16x64xf32>
    %97 = arith.mulf %96, %95 : vector<16x64xf32>
    %98 = math.tanh %97 : vector<16x64xf32>
    %cst_53 = arith.constant 1.000000e+00 : f32
    %99 = vector.broadcast %cst_53 : f32 to vector<16x64xf32>
    %100 = arith.addf %99, %98 : vector<16x64xf32>
    %cst_54 = arith.constant 5.000000e-01 : f32
    %101 = vector.broadcast %cst_54 : f32 to vector<16x64xf32>
    %102 = arith.mulf %101, %100 : vector<16x64xf32>
    %103 = arith.mulf %88, %102 : vector<16x64xf32>
    %cst_55 = arith.constant 6.250000e-02 : f32
    %104 = vector.broadcast %cst_55 : f32 to vector<1x16xf32>
    %cst_56 = arith.constant dense<0.000000e+00> : vector<1x64xf32>
    %105 = tpu.matmul %104, %103, %cst_56 {dimension_numbers = #tpu.dot_dimension_numbers<[1], [0], [0], [1], [0, 0, 1, 1], [], []>} : vector<1x16xf32>, vector<16x64xf32>, vector<1x64xf32> -> vector<1x64xf32>
    %106 = vector.broadcast %105 : vector<1x64xf32> to vector<16x64xf32>
    %107 = arith.subf %103, %106 : vector<16x64xf32>
    %108 = arith.mulf %107, %107 : vector<16x64xf32>
    %cst_57 = arith.constant dense<0.000000e+00> : vector<1x64xf32>
    %109 = tpu.matmul %104, %108, %cst_57 {dimension_numbers = #tpu.dot_dimension_numbers<[1], [0], [0], [1], [0, 0, 1, 1], [], []>} : vector<1x16xf32>, vector<16x64xf32>, vector<1x64xf32> -> vector<1x64xf32>
    %cst_58 = arith.constant 9.99999974E-6 : f32
    %110 = vector.broadcast %cst_58 : f32 to vector<1x64xf32>
    %111 = arith.addf %109, %110 : vector<1x64xf32>
    %112 = math.rsqrt %111 : vector<1x64xf32>
    %113 = vector.broadcast %112 : vector<1x64xf32> to vector<16x64xf32>
    %114 = arith.mulf %107, %113 : vector<16x64xf32>
    %115 = vector.broadcast %89 : vector<16x1xf32> to vector<16x64xf32>
    %116 = arith.mulf %114, %115 : vector<16x64xf32>
    %117 = vector.broadcast %90 : vector<16x1xf32> to vector<16x64xf32>
    %118 = arith.addf %116, %117 : vector<16x64xf32>
    %cst_59 = arith.constant dense<0.000000e+00> : vector<16x256xf32>
    %119 = tpu.matmul %118, %2, %cst_59 {dimension_numbers = #tpu.dot_dimension_numbers<[1], [0], [0], [1], [0, 0, 1, 1], [], []>} : vector<16x64xf32>, vector<64x256xf32>, vector<16x256xf32> -> vector<16x256xf32>
    %cst_60 = arith.constant 0.000000e+00 : f32
    %120 = vector.broadcast %cst_60 : f32 to vector<16x16xf32>
    %121 = vector.extract_strided_slice %119 {offsets = [0, 0], sizes = [16, 240], strides = [1, 1]} : vector<16x256xf32> to vector<16x240xf32>
    %122 = tpu.concatenate %120, %121 in 1 : vector<16x16xf32>, vector<16x240xf32> -> vector<16x256xf32>
    %123 = arith.addf %82, %122 : vector<16x256xf32>
    %c3 = arith.constant 3 : index
    %c0_61 = arith.constant 0 : index
    %c0_62 = arith.constant 0 : index
    %124 = vector.load %arg2[%c3, %c0_61, %c0_62] : memref<4x16x32xf32, #tpu.memory_space<vmem>>, vector<1x16x32xf32>
    %125 = vector.shape_cast %124 : vector<1x16x32xf32> to vector<16x32xf32>
    %cst_63 = arith.constant dense<0.000000e+00> : vector<16x64xf32>
    %126 = tpu.matmul %125, %1, %cst_63 {dimension_numbers = #tpu.dot_dimension_numbers<[1], [0], [0], [1], [0, 0, 1, 1], [], []>} : vector<16x32xf32>, vector<32x64xf32>, vector<16x64xf32> -> vector<16x64xf32>
    %c0_64 = arith.constant 0 : index
    %c0_65 = arith.constant 0 : index
    %127 = vector.load %arg3[%c0_64, %c0_65] : memref<16x1xf32, #tpu.memory_space<vmem>>, vector<16x1xf32>
    %128 = vector.broadcast %127 : vector<16x1xf32> to vector<16x64xf32>
    %129 = arith.addf %126, %128 : vector<16x64xf32>
    %c0_66 = arith.constant 0 : index
    %c0_67 = arith.constant 0 : index
    %130 = vector.load %arg4[%c0_66, %c0_67] : memref<16x1xf32, #tpu.memory_space<vmem>>, vector<16x1xf32>
    %c0_68 = arith.constant 0 : index
    %c0_69 = arith.constant 0 : index
    %131 = vector.load %arg5[%c0_68, %c0_69] : memref<16x1xf32, #tpu.memory_space<vmem>>, vector<16x1xf32>
    %132 = arith.mulf %129, %129 : vector<16x64xf32>
    %133 = arith.mulf %129, %132 : vector<16x64xf32>
    %cst_70 = arith.constant 4.471500e-02 : f32
    %134 = vector.broadcast %cst_70 : f32 to vector<16x64xf32>
    %135 = arith.mulf %134, %133 : vector<16x64xf32>
    %136 = arith.addf %129, %135 : vector<16x64xf32>
    %cst_71 = arith.constant 0.797884583 : f32
    %137 = vector.broadcast %cst_71 : f32 to vector<16x64xf32>
    %138 = arith.mulf %137, %136 : vector<16x64xf32>
    %139 = math.tanh %138 : vector<16x64xf32>
    %cst_72 = arith.constant 1.000000e+00 : f32
    %140 = vector.broadcast %cst_72 : f32 to vector<16x64xf32>
    %141 = arith.addf %140, %139 : vector<16x64xf32>
    %cst_73 = arith.constant 5.000000e-01 : f32
    %142 = vector.broadcast %cst_73 : f32 to vector<16x64xf32>
    %143 = arith.mulf %142, %141 : vector<16x64xf32>
    %144 = arith.mulf %129, %143 : vector<16x64xf32>
    %cst_74 = arith.constant 6.250000e-02 : f32
    %145 = vector.broadcast %cst_74 : f32 to vector<1x16xf32>
    %cst_75 = arith.constant dense<0.000000e+00> : vector<1x64xf32>
    %146 = tpu.matmul %145, %144, %cst_75 {dimension_numbers = #tpu.dot_dimension_numbers<[1], [0], [0], [1], [0, 0, 1, 1], [], []>} : vector<1x16xf32>, vector<16x64xf32>, vector<1x64xf32> -> vector<1x64xf32>
    %147 = vector.broadcast %146 : vector<1x64xf32> to vector<16x64xf32>
    %148 = arith.subf %144, %147 : vector<16x64xf32>
    %149 = arith.mulf %148, %148 : vector<16x64xf32>
    %cst_76 = arith.constant dense<0.000000e+00> : vector<1x64xf32>
    %150 = tpu.matmul %145, %149, %cst_76 {dimension_numbers = #tpu.dot_dimension_numbers<[1], [0], [0], [1], [0, 0, 1, 1], [], []>} : vector<1x16xf32>, vector<16x64xf32>, vector<1x64xf32> -> vector<1x64xf32>
    %cst_77 = arith.constant 9.99999974E-6 : f32
    %151 = vector.broadcast %cst_77 : f32 to vector<1x64xf32>
    %152 = arith.addf %150, %151 : vector<1x64xf32>
    %153 = math.rsqrt %152 : vector<1x64xf32>
    %154 = vector.broadcast %153 : vector<1x64xf32> to vector<16x64xf32>
    %155 = arith.mulf %148, %154 : vector<16x64xf32>
    %156 = vector.broadcast %130 : vector<16x1xf32> to vector<16x64xf32>
    %157 = arith.mulf %155, %156 : vector<16x64xf32>
    %158 = vector.broadcast %131 : vector<16x1xf32> to vector<16x64xf32>
    %159 = arith.addf %157, %158 : vector<16x64xf32>
    %cst_78 = arith.constant dense<0.000000e+00> : vector<16x256xf32>
    %160 = tpu.matmul %159, %2, %cst_78 {dimension_numbers = #tpu.dot_dimension_numbers<[1], [0], [0], [1], [0, 0, 1, 1], [], []>} : vector<16x64xf32>, vector<64x256xf32>, vector<16x256xf32> -> vector<16x256xf32>
    %cst_79 = arith.constant 0.000000e+00 : f32
    %161 = vector.broadcast %cst_79 : f32 to vector<16x17xf32>
    %162 = vector.extract_strided_slice %160 {offsets = [0, 0], sizes = [16, 239], strides = [1, 1]} : vector<16x256xf32> to vector<16x239xf32>
    %163 = tpu.concatenate %161, %162 in 1 : vector<16x17xf32>, vector<16x239xf32> -> vector<16x256xf32>
    %164 = arith.addf %123, %163 : vector<16x256xf32>
    %c0_80 = arith.constant 0 : index
    %c0_81 = arith.constant 0 : index
    %165 = vector.load %arg11[%c0_80, %c0_81] : memref<1x256xi32, #tpu.memory_space<vmem>>, vector<1x256xi32>
    %cst_82 = arith.constant 0.000000e+00 : f32
    %166 = vector.broadcast %cst_82 : f32 to vector<16x17xf32>
    %167 = vector.extract_strided_slice %164 {offsets = [0, 0], sizes = [16, 239], strides = [1, 1]} : vector<16x256xf32> to vector<16x239xf32>
    %168 = tpu.concatenate %166, %167 in 1 : vector<16x17xf32>, vector<16x239xf32> -> vector<16x256xf32>
    %c1_i32 = arith.constant 1 : i32
    %169 = vector.broadcast %c1_i32 : i32 to vector<1x256xi32>
    %170 = arith.cmpi sge, %165, %169 : vector<1x256xi32>
    %cst_83 = arith.constant 0.000000e+00 : f32
    %171 = vector.shape_cast %170 : vector<1x256xi1> to vector<1x256xi1>
    %172 = vector.broadcast %171 : vector<1x256xi1> to vector<16x256xi1>
    %173 = vector.broadcast %cst_83 : f32 to vector<16x256xf32>
    %174 = arith.select %172, %168, %173 : vector<16x256xi1>, vector<16x256xf32>
    %cst_84 = arith.constant 0.000000e+00 : f32
    %175 = vector.broadcast %cst_84 : f32 to vector<16x16xf32>
    %176 = vector.extract_strided_slice %164 {offsets = [0, 0], sizes = [16, 240], strides = [1, 1]} : vector<16x256xf32> to vector<16x240xf32>
    %177 = tpu.concatenate %175, %176 in 1 : vector<16x16xf32>, vector<16x240xf32> -> vector<16x256xf32>
    %cst_85 = arith.constant 0.000000e+00 : f32
    %178 = vector.broadcast %cst_85 : f32 to vector<16x15xf32>
    %179 = vector.extract_strided_slice %164 {offsets = [0, 0], sizes = [16, 241], strides = [1, 1]} : vector<16x256xf32> to vector<16x241xf32>
    %180 = tpu.concatenate %178, %179 in 1 : vector<16x15xf32>, vector<16x241xf32> -> vector<16x256xf32>
    %c14_i32 = arith.constant 14 : i32
    %181 = vector.broadcast %c14_i32 : i32 to vector<1x256xi32>
    %182 = arith.cmpi sle, %165, %181 : vector<1x256xi32>
    %cst_86 = arith.constant 0.000000e+00 : f32
    %183 = vector.shape_cast %182 : vector<1x256xi1> to vector<1x256xi1>
    %184 = vector.broadcast %183 : vector<1x256xi1> to vector<16x256xi1>
    %185 = vector.broadcast %cst_86 : f32 to vector<16x256xf32>
    %186 = arith.select %184, %180, %185 : vector<16x256xi1>, vector<16x256xf32>
    %cst_87 = arith.constant 0.000000e+00 : f32
    %187 = vector.broadcast %cst_87 : f32 to vector<16x1xf32>
    %188 = vector.extract_strided_slice %164 {offsets = [0, 0], sizes = [16, 255], strides = [1, 1]} : vector<16x256xf32> to vector<16x255xf32>
    %189 = tpu.concatenate %187, %188 in 1 : vector<16x1xf32>, vector<16x255xf32> -> vector<16x256xf32>
    %c1_i32_88 = arith.constant 1 : i32
    %190 = vector.broadcast %c1_i32_88 : i32 to vector<1x256xi32>
    %191 = arith.cmpi sge, %165, %190 : vector<1x256xi32>
    %cst_89 = arith.constant 0.000000e+00 : f32
    %192 = vector.shape_cast %191 : vector<1x256xi1> to vector<1x256xi1>
    %193 = vector.broadcast %192 : vector<1x256xi1> to vector<16x256xi1>
    %194 = vector.broadcast %cst_89 : f32 to vector<16x256xf32>
    %195 = arith.select %193, %189, %194 : vector<16x256xi1>, vector<16x256xf32>
    %cst_90 = arith.constant 0.000000e+00 : f32
    %196 = vector.broadcast %cst_90 : f32 to vector<16x1xf32>
    %197 = vector.extract_strided_slice %164 {offsets = [0, 1], sizes = [16, 255], strides = [1, 1]} : vector<16x256xf32> to vector<16x255xf32>
    %198 = tpu.concatenate %197, %196 in 1 : vector<16x255xf32>, vector<16x1xf32> -> vector<16x256xf32>
    %c14_i32_91 = arith.constant 14 : i32
    %199 = vector.broadcast %c14_i32_91 : i32 to vector<1x256xi32>
    %200 = arith.cmpi sle, %165, %199 : vector<1x256xi32>
    %cst_92 = arith.constant 0.000000e+00 : f32
    %201 = vector.shape_cast %200 : vector<1x256xi1> to vector<1x256xi1>
    %202 = vector.broadcast %201 : vector<1x256xi1> to vector<16x256xi1>
    %203 = vector.broadcast %cst_92 : f32 to vector<16x256xf32>
    %204 = arith.select %202, %198, %203 : vector<16x256xi1>, vector<16x256xf32>
    %cst_93 = arith.constant 0.000000e+00 : f32
    %205 = vector.broadcast %cst_93 : f32 to vector<16x15xf32>
    %206 = vector.extract_strided_slice %164 {offsets = [0, 15], sizes = [16, 241], strides = [1, 1]} : vector<16x256xf32> to vector<16x241xf32>
    %207 = tpu.concatenate %206, %205 in 1 : vector<16x241xf32>, vector<16x15xf32> -> vector<16x256xf32>
    %c1_i32_94 = arith.constant 1 : i32
    %208 = vector.broadcast %c1_i32_94 : i32 to vector<1x256xi32>
    %209 = arith.cmpi sge, %165, %208 : vector<1x256xi32>
    %cst_95 = arith.constant 0.000000e+00 : f32
    %210 = vector.shape_cast %209 : vector<1x256xi1> to vector<1x256xi1>
    %211 = vector.broadcast %210 : vector<1x256xi1> to vector<16x256xi1>
    %212 = vector.broadcast %cst_95 : f32 to vector<16x256xf32>
    %213 = arith.select %211, %207, %212 : vector<16x256xi1>, vector<16x256xf32>
    %cst_96 = arith.constant 0.000000e+00 : f32
    %214 = vector.broadcast %cst_96 : f32 to vector<16x16xf32>
    %215 = vector.extract_strided_slice %164 {offsets = [0, 16], sizes = [16, 240], strides = [1, 1]} : vector<16x256xf32> to vector<16x240xf32>
    %216 = tpu.concatenate %215, %214 in 1 : vector<16x240xf32>, vector<16x16xf32> -> vector<16x256xf32>
    %cst_97 = arith.constant 0.000000e+00 : f32
    %217 = vector.broadcast %cst_97 : f32 to vector<16x17xf32>
    %218 = vector.extract_strided_slice %164 {offsets = [0, 17], sizes = [16, 239], strides = [1, 1]} : vector<16x256xf32> to vector<16x239xf32>
    %219 = tpu.concatenate %218, %217 in 1 : vector<16x239xf32>, vector<16x17xf32> -> vector<16x256xf32>
    %c14_i32_98 = arith.constant 14 : i32
    %220 = vector.broadcast %c14_i32_98 : i32 to vector<1x256xi32>
    %221 = arith.cmpi sle, %165, %220 : vector<1x256xi32>
    %cst_99 = arith.constant 0.000000e+00 : f32
    %222 = vector.shape_cast %221 : vector<1x256xi1> to vector<1x256xi1>
    %223 = vector.broadcast %222 : vector<1x256xi1> to vector<16x256xi1>
    %224 = vector.broadcast %cst_99 : f32 to vector<16x256xf32>
    %225 = arith.select %223, %219, %224 : vector<16x256xi1>, vector<16x256xf32>
    %226 = tpu.concatenate %174, %177, %186, %195, %164, %204, %213, %216, %225 in 0 : vector<16x256xf32>, vector<16x256xf32>, vector<16x256xf32>, vector<16x256xf32>, vector<16x256xf32>, vector<16x256xf32>, vector<16x256xf32>, vector<16x256xf32>, vector<16x256xf32> -> vector<144x256xf32>
    %c0_100 = arith.constant 0 : index
    %c0_101 = arith.constant 0 : index
    %227 = vector.load %arg7[%c0_100, %c0_101] : memref<16x144xf32, #tpu.memory_space<vmem>>, vector<16x144xf32>
    %cst_102 = arith.constant dense<0.000000e+00> : vector<16x256xf32>
    %228 = tpu.matmul %227, %226, %cst_102 {dimension_numbers = #tpu.dot_dimension_numbers<[1], [0], [0], [1], [0, 0, 1, 1], [], []>} : vector<16x144xf32>, vector<144x256xf32>, vector<16x256xf32> -> vector<16x256xf32>
    %c0_103 = arith.constant 0 : index
    %c0_104 = arith.constant 0 : index
    %229 = vector.load %arg8[%c0_103, %c0_104] : memref<16x1xf32, #tpu.memory_space<vmem>>, vector<16x1xf32>
    %230 = vector.broadcast %229 : vector<16x1xf32> to vector<16x256xf32>
    %231 = arith.addf %228, %230 : vector<16x256xf32>
    %c0_105 = arith.constant 0 : index
    %c0_106 = arith.constant 0 : index
    %232 = vector.load %arg9[%c0_105, %c0_106] : memref<16x1xf32, #tpu.memory_space<vmem>>, vector<16x1xf32>
    %c0_107 = arith.constant 0 : index
    %c0_108 = arith.constant 0 : index
    %233 = vector.load %arg10[%c0_107, %c0_108] : memref<16x1xf32, #tpu.memory_space<vmem>>, vector<16x1xf32>
    %234 = arith.mulf %231, %231 : vector<16x256xf32>
    %235 = arith.mulf %231, %234 : vector<16x256xf32>
    %cst_109 = arith.constant 4.471500e-02 : f32
    %236 = vector.broadcast %cst_109 : f32 to vector<16x256xf32>
    %237 = arith.mulf %236, %235 : vector<16x256xf32>
    %238 = arith.addf %231, %237 : vector<16x256xf32>
    %cst_110 = arith.constant 0.797884583 : f32
    %239 = vector.broadcast %cst_110 : f32 to vector<16x256xf32>
    %240 = arith.mulf %239, %238 : vector<16x256xf32>
    %241 = math.tanh %240 : vector<16x256xf32>
    %cst_111 = arith.constant 1.000000e+00 : f32
    %242 = vector.broadcast %cst_111 : f32 to vector<16x256xf32>
    %243 = arith.addf %242, %241 : vector<16x256xf32>
    %cst_112 = arith.constant 5.000000e-01 : f32
    %244 = vector.broadcast %cst_112 : f32 to vector<16x256xf32>
    %245 = arith.mulf %244, %243 : vector<16x256xf32>
    %246 = arith.mulf %231, %245 : vector<16x256xf32>
    %cst_113 = arith.constant 6.250000e-02 : f32
    %247 = vector.broadcast %cst_113 : f32 to vector<1x16xf32>
    %cst_114 = arith.constant dense<0.000000e+00> : vector<1x256xf32>
    %248 = tpu.matmul %247, %246, %cst_114 {dimension_numbers = #tpu.dot_dimension_numbers<[1], [0], [0], [1], [0, 0, 1, 1], [], []>} : vector<1x16xf32>, vector<16x256xf32>, vector<1x256xf32> -> vector<1x256xf32>
    %249 = vector.broadcast %248 : vector<1x256xf32> to vector<16x256xf32>
    %250 = arith.subf %246, %249 : vector<16x256xf32>
    %251 = arith.mulf %250, %250 : vector<16x256xf32>
    %cst_115 = arith.constant dense<0.000000e+00> : vector<1x256xf32>
    %252 = tpu.matmul %247, %251, %cst_115 {dimension_numbers = #tpu.dot_dimension_numbers<[1], [0], [0], [1], [0, 0, 1, 1], [], []>} : vector<1x16xf32>, vector<16x256xf32>, vector<1x256xf32> -> vector<1x256xf32>
    %cst_116 = arith.constant 9.99999974E-6 : f32
    %253 = vector.broadcast %cst_116 : f32 to vector<1x256xf32>
    %254 = arith.addf %252, %253 : vector<1x256xf32>
    %255 = math.rsqrt %254 : vector<1x256xf32>
    %256 = vector.broadcast %255 : vector<1x256xf32> to vector<16x256xf32>
    %257 = arith.mulf %250, %256 : vector<16x256xf32>
    %258 = vector.broadcast %232 : vector<16x1xf32> to vector<16x256xf32>
    %259 = arith.mulf %257, %258 : vector<16x256xf32>
    %260 = vector.broadcast %233 : vector<16x1xf32> to vector<16x256xf32>
    %261 = arith.addf %259, %260 : vector<16x256xf32>
    %c0_117 = arith.constant 0 : index
    %c0_118 = arith.constant 0 : index
    %262 = vector.load %arg16[%c0_117, %c0_118] : memref<256x1024xf32, #tpu.memory_space<vmem>>, vector<256x1024xf32>
    %cst_119 = arith.constant 0.000000e+00 : f32
    %263 = vector.broadcast %cst_119 : f32 to vector<8x1024xf32>
    %c0_120 = arith.constant 0 : index
    %c0_121 = arith.constant 0 : index
    %c0_122 = arith.constant 0 : index
    %264 = vector.load %arg12[%c0_120, %c0_121, %c0_122] : memref<4x8x16xf32, #tpu.memory_space<vmem>>, vector<1x8x16xf32>
    %265 = vector.shape_cast %264 : vector<1x8x16xf32> to vector<8x16xf32>
    %cst_123 = arith.constant dense<0.000000e+00> : vector<8x256xf32>
    %266 = tpu.matmul %265, %261, %cst_123 {dimension_numbers = #tpu.dot_dimension_numbers<[1], [0], [0], [1], [0, 0, 1, 1], [], []>} : vector<8x16xf32>, vector<16x256xf32>, vector<8x256xf32> -> vector<8x256xf32>
    %c0_124 = arith.constant 0 : index
    %c0_125 = arith.constant 0 : index
    %267 = vector.load %arg13[%c0_124, %c0_125] : memref<8x1xf32, #tpu.memory_space<vmem>>, vector<8x1xf32>
    %268 = vector.broadcast %267 : vector<8x1xf32> to vector<8x256xf32>
    %269 = arith.addf %266, %268 : vector<8x256xf32>
    %c0_126 = arith.constant 0 : index
    %c0_127 = arith.constant 0 : index
    %270 = vector.load %arg14[%c0_126, %c0_127] : memref<8x1xf32, #tpu.memory_space<vmem>>, vector<8x1xf32>
    %c0_128 = arith.constant 0 : index
    %c0_129 = arith.constant 0 : index
    %271 = vector.load %arg15[%c0_128, %c0_129] : memref<8x1xf32, #tpu.memory_space<vmem>>, vector<8x1xf32>
    %272 = arith.mulf %269, %269 : vector<8x256xf32>
    %273 = arith.mulf %269, %272 : vector<8x256xf32>
    %cst_130 = arith.constant 4.471500e-02 : f32
    %274 = vector.broadcast %cst_130 : f32 to vector<8x256xf32>
    %275 = arith.mulf %274, %273 : vector<8x256xf32>
    %276 = arith.addf %269, %275 : vector<8x256xf32>
    %cst_131 = arith.constant 0.797884583 : f32
    %277 = vector.broadcast %cst_131 : f32 to vector<8x256xf32>
    %278 = arith.mulf %277, %276 : vector<8x256xf32>
    %279 = math.tanh %278 : vector<8x256xf32>
    %cst_132 = arith.constant 1.000000e+00 : f32
    %280 = vector.broadcast %cst_132 : f32 to vector<8x256xf32>
    %281 = arith.addf %280, %279 : vector<8x256xf32>
    %cst_133 = arith.constant 5.000000e-01 : f32
    %282 = vector.broadcast %cst_133 : f32 to vector<8x256xf32>
    %283 = arith.mulf %282, %281 : vector<8x256xf32>
    %284 = arith.mulf %269, %283 : vector<8x256xf32>
    %cst_134 = arith.constant 1.250000e-01 : f32
    %285 = vector.broadcast %cst_134 : f32 to vector<1x8xf32>
    %cst_135 = arith.constant dense<0.000000e+00> : vector<1x256xf32>
    %286 = tpu.matmul %285, %284, %cst_135 {dimension_numbers = #tpu.dot_dimension_numbers<[1], [0], [0], [1], [0, 0, 1, 1], [], []>} : vector<1x8xf32>, vector<8x256xf32>, vector<1x256xf32> -> vector<1x256xf32>
    %287 = vector.broadcast %286 : vector<1x256xf32> to vector<8x256xf32>
    %288 = arith.subf %284, %287 : vector<8x256xf32>
    %289 = arith.mulf %288, %288 : vector<8x256xf32>
    %cst_136 = arith.constant dense<0.000000e+00> : vector<1x256xf32>
    %290 = tpu.matmul %285, %289, %cst_136 {dimension_numbers = #tpu.dot_dimension_numbers<[1], [0], [0], [1], [0, 0, 1, 1], [], []>} : vector<1x8xf32>, vector<8x256xf32>, vector<1x256xf32> -> vector<1x256xf32>
    %cst_137 = arith.constant 9.99999974E-6 : f32
    %291 = vector.broadcast %cst_137 : f32 to vector<1x256xf32>
    %292 = arith.addf %290, %291 : vector<1x256xf32>
    %293 = math.rsqrt %292 : vector<1x256xf32>
    %294 = vector.broadcast %293 : vector<1x256xf32> to vector<8x256xf32>
    %295 = arith.mulf %288, %294 : vector<8x256xf32>
    %296 = vector.broadcast %270 : vector<8x1xf32> to vector<8x256xf32>
    %297 = arith.mulf %295, %296 : vector<8x256xf32>
    %298 = vector.broadcast %271 : vector<8x1xf32> to vector<8x256xf32>
    %299 = arith.addf %297, %298 : vector<8x256xf32>
    %cst_138 = arith.constant dense<0.000000e+00> : vector<8x1024xf32>
    %300 = tpu.matmul %299, %262, %cst_138 {dimension_numbers = #tpu.dot_dimension_numbers<[1], [0], [0], [1], [0, 0, 1, 1], [], []>} : vector<8x256xf32>, vector<256x1024xf32>, vector<8x1024xf32> -> vector<8x1024xf32>
    %301 = arith.addf %263, %300 : vector<8x1024xf32>
    %c1_139 = arith.constant 1 : index
    %c0_140 = arith.constant 0 : index
    %c0_141 = arith.constant 0 : index
    %302 = vector.load %arg12[%c1_139, %c0_140, %c0_141] : memref<4x8x16xf32, #tpu.memory_space<vmem>>, vector<1x8x16xf32>
    %303 = vector.shape_cast %302 : vector<1x8x16xf32> to vector<8x16xf32>
    %cst_142 = arith.constant dense<0.000000e+00> : vector<8x256xf32>
    %304 = tpu.matmul %303, %261, %cst_142 {dimension_numbers = #tpu.dot_dimension_numbers<[1], [0], [0], [1], [0, 0, 1, 1], [], []>} : vector<8x16xf32>, vector<16x256xf32>, vector<8x256xf32> -> vector<8x256xf32>
    %c0_143 = arith.constant 0 : index
    %c0_144 = arith.constant 0 : index
    %305 = vector.load %arg13[%c0_143, %c0_144] : memref<8x1xf32, #tpu.memory_space<vmem>>, vector<8x1xf32>
    %306 = vector.broadcast %305 : vector<8x1xf32> to vector<8x256xf32>
    %307 = arith.addf %304, %306 : vector<8x256xf32>
    %c0_145 = arith.constant 0 : index
    %c0_146 = arith.constant 0 : index
    %308 = vector.load %arg14[%c0_145, %c0_146] : memref<8x1xf32, #tpu.memory_space<vmem>>, vector<8x1xf32>
    %c0_147 = arith.constant 0 : index
    %c0_148 = arith.constant 0 : index
    %309 = vector.load %arg15[%c0_147, %c0_148] : memref<8x1xf32, #tpu.memory_space<vmem>>, vector<8x1xf32>
    %310 = arith.mulf %307, %307 : vector<8x256xf32>
    %311 = arith.mulf %307, %310 : vector<8x256xf32>
    %cst_149 = arith.constant 4.471500e-02 : f32
    %312 = vector.broadcast %cst_149 : f32 to vector<8x256xf32>
    %313 = arith.mulf %312, %311 : vector<8x256xf32>
    %314 = arith.addf %307, %313 : vector<8x256xf32>
    %cst_150 = arith.constant 0.797884583 : f32
    %315 = vector.broadcast %cst_150 : f32 to vector<8x256xf32>
    %316 = arith.mulf %315, %314 : vector<8x256xf32>
    %317 = math.tanh %316 : vector<8x256xf32>
    %cst_151 = arith.constant 1.000000e+00 : f32
    %318 = vector.broadcast %cst_151 : f32 to vector<8x256xf32>
    %319 = arith.addf %318, %317 : vector<8x256xf32>
    %cst_152 = arith.constant 5.000000e-01 : f32
    %320 = vector.broadcast %cst_152 : f32 to vector<8x256xf32>
    %321 = arith.mulf %320, %319 : vector<8x256xf32>
    %322 = arith.mulf %307, %321 : vector<8x256xf32>
    %cst_153 = arith.constant 1.250000e-01 : f32
    %323 = vector.broadcast %cst_153 : f32 to vector<1x8xf32>
    %cst_154 = arith.constant dense<0.000000e+00> : vector<1x256xf32>
    %324 = tpu.matmul %323, %322, %cst_154 {dimension_numbers = #tpu.dot_dimension_numbers<[1], [0], [0], [1], [0, 0, 1, 1], [], []>} : vector<1x8xf32>, vector<8x256xf32>, vector<1x256xf32> -> vector<1x256xf32>
    %325 = vector.broadcast %324 : vector<1x256xf32> to vector<8x256xf32>
    %326 = arith.subf %322, %325 : vector<8x256xf32>
    %327 = arith.mulf %326, %326 : vector<8x256xf32>
    %cst_155 = arith.constant dense<0.000000e+00> : vector<1x256xf32>
    %328 = tpu.matmul %323, %327, %cst_155 {dimension_numbers = #tpu.dot_dimension_numbers<[1], [0], [0], [1], [0, 0, 1, 1], [], []>} : vector<1x8xf32>, vector<8x256xf32>, vector<1x256xf32> -> vector<1x256xf32>
    %cst_156 = arith.constant 9.99999974E-6 : f32
    %329 = vector.broadcast %cst_156 : f32 to vector<1x256xf32>
    %330 = arith.addf %328, %329 : vector<1x256xf32>
    %331 = math.rsqrt %330 : vector<1x256xf32>
    %332 = vector.broadcast %331 : vector<1x256xf32> to vector<8x256xf32>
    %333 = arith.mulf %326, %332 : vector<8x256xf32>
    %334 = vector.broadcast %308 : vector<8x1xf32> to vector<8x256xf32>
    %335 = arith.mulf %333, %334 : vector<8x256xf32>
    %336 = vector.broadcast %309 : vector<8x1xf32> to vector<8x256xf32>
    %337 = arith.addf %335, %336 : vector<8x256xf32>
    %cst_157 = arith.constant dense<0.000000e+00> : vector<8x1024xf32>
    %338 = tpu.matmul %337, %262, %cst_157 {dimension_numbers = #tpu.dot_dimension_numbers<[1], [0], [0], [1], [0, 0, 1, 1], [], []>} : vector<8x256xf32>, vector<256x1024xf32>, vector<8x1024xf32> -> vector<8x1024xf32>
    %cst_158 = arith.constant 0.000000e+00 : f32
    %339 = vector.broadcast %cst_158 : f32 to vector<8x1xf32>
    %340 = vector.extract_strided_slice %338 {offsets = [0, 0], sizes = [8, 1023], strides = [1, 1]} : vector<8x1024xf32> to vector<8x1023xf32>
    %341 = tpu.concatenate %339, %340 in 1 : vector<8x1xf32>, vector<8x1023xf32> -> vector<8x1024xf32>
    %342 = arith.addf %301, %341 : vector<8x1024xf32>
    %c2_159 = arith.constant 2 : index
    %c0_160 = arith.constant 0 : index
    %c0_161 = arith.constant 0 : index
    %343 = vector.load %arg12[%c2_159, %c0_160, %c0_161] : memref<4x8x16xf32, #tpu.memory_space<vmem>>, vector<1x8x16xf32>
    %344 = vector.shape_cast %343 : vector<1x8x16xf32> to vector<8x16xf32>
    %cst_162 = arith.constant dense<0.000000e+00> : vector<8x256xf32>
    %345 = tpu.matmul %344, %261, %cst_162 {dimension_numbers = #tpu.dot_dimension_numbers<[1], [0], [0], [1], [0, 0, 1, 1], [], []>} : vector<8x16xf32>, vector<16x256xf32>, vector<8x256xf32> -> vector<8x256xf32>
    %c0_163 = arith.constant 0 : index
    %c0_164 = arith.constant 0 : index
    %346 = vector.load %arg13[%c0_163, %c0_164] : memref<8x1xf32, #tpu.memory_space<vmem>>, vector<8x1xf32>
    %347 = vector.broadcast %346 : vector<8x1xf32> to vector<8x256xf32>
    %348 = arith.addf %345, %347 : vector<8x256xf32>
    %c0_165 = arith.constant 0 : index
    %c0_166 = arith.constant 0 : index
    %349 = vector.load %arg14[%c0_165, %c0_166] : memref<8x1xf32, #tpu.memory_space<vmem>>, vector<8x1xf32>
    %c0_167 = arith.constant 0 : index
    %c0_168 = arith.constant 0 : index
    %350 = vector.load %arg15[%c0_167, %c0_168] : memref<8x1xf32, #tpu.memory_space<vmem>>, vector<8x1xf32>
    %351 = arith.mulf %348, %348 : vector<8x256xf32>
    %352 = arith.mulf %348, %351 : vector<8x256xf32>
    %cst_169 = arith.constant 4.471500e-02 : f32
    %353 = vector.broadcast %cst_169 : f32 to vector<8x256xf32>
    %354 = arith.mulf %353, %352 : vector<8x256xf32>
    %355 = arith.addf %348, %354 : vector<8x256xf32>
    %cst_170 = arith.constant 0.797884583 : f32
    %356 = vector.broadcast %cst_170 : f32 to vector<8x256xf32>
    %357 = arith.mulf %356, %355 : vector<8x256xf32>
    %358 = math.tanh %357 : vector<8x256xf32>
    %cst_171 = arith.constant 1.000000e+00 : f32
    %359 = vector.broadcast %cst_171 : f32 to vector<8x256xf32>
    %360 = arith.addf %359, %358 : vector<8x256xf32>
    %cst_172 = arith.constant 5.000000e-01 : f32
    %361 = vector.broadcast %cst_172 : f32 to vector<8x256xf32>
    %362 = arith.mulf %361, %360 : vector<8x256xf32>
    %363 = arith.mulf %348, %362 : vector<8x256xf32>
    %cst_173 = arith.constant 1.250000e-01 : f32
    %364 = vector.broadcast %cst_173 : f32 to vector<1x8xf32>
    %cst_174 = arith.constant dense<0.000000e+00> : vector<1x256xf32>
    %365 = tpu.matmul %364, %363, %cst_174 {dimension_numbers = #tpu.dot_dimension_numbers<[1], [0], [0], [1], [0, 0, 1, 1], [], []>} : vector<1x8xf32>, vector<8x256xf32>, vector<1x256xf32> -> vector<1x256xf32>
    %366 = vector.broadcast %365 : vector<1x256xf32> to vector<8x256xf32>
    %367 = arith.subf %363, %366 : vector<8x256xf32>
    %368 = arith.mulf %367, %367 : vector<8x256xf32>
    %cst_175 = arith.constant dense<0.000000e+00> : vector<1x256xf32>
    %369 = tpu.matmul %364, %368, %cst_175 {dimension_numbers = #tpu.dot_dimension_numbers<[1], [0], [0], [1], [0, 0, 1, 1], [], []>} : vector<1x8xf32>, vector<8x256xf32>, vector<1x256xf32> -> vector<1x256xf32>
    %cst_176 = arith.constant 9.99999974E-6 : f32
    %370 = vector.broadcast %cst_176 : f32 to vector<1x256xf32>
    %371 = arith.addf %369, %370 : vector<1x256xf32>
    %372 = math.rsqrt %371 : vector<1x256xf32>
    %373 = vector.broadcast %372 : vector<1x256xf32> to vector<8x256xf32>
    %374 = arith.mulf %367, %373 : vector<8x256xf32>
    %375 = vector.broadcast %349 : vector<8x1xf32> to vector<8x256xf32>
    %376 = arith.mulf %374, %375 : vector<8x256xf32>
    %377 = vector.broadcast %350 : vector<8x1xf32> to vector<8x256xf32>
    %378 = arith.addf %376, %377 : vector<8x256xf32>
    %cst_177 = arith.constant dense<0.000000e+00> : vector<8x1024xf32>
    %379 = tpu.matmul %378, %262, %cst_177 {dimension_numbers = #tpu.dot_dimension_numbers<[1], [0], [0], [1], [0, 0, 1, 1], [], []>} : vector<8x256xf32>, vector<256x1024xf32>, vector<8x1024xf32> -> vector<8x1024xf32>
    %cst_178 = arith.constant 0.000000e+00 : f32
    %380 = vector.broadcast %cst_178 : f32 to vector<8x32xf32>
    %381 = vector.extract_strided_slice %379 {offsets = [0, 0], sizes = [8, 992], strides = [1, 1]} : vector<8x1024xf32> to vector<8x992xf32>
    %382 = tpu.concatenate %380, %381 in 1 : vector<8x32xf32>, vector<8x992xf32> -> vector<8x1024xf32>
    %383 = arith.addf %342, %382 : vector<8x1024xf32>
    %c3_179 = arith.constant 3 : index
    %c0_180 = arith.constant 0 : index
    %c0_181 = arith.constant 0 : index
    %384 = vector.load %arg12[%c3_179, %c0_180, %c0_181] : memref<4x8x16xf32, #tpu.memory_space<vmem>>, vector<1x8x16xf32>
    %385 = vector.shape_cast %384 : vector<1x8x16xf32> to vector<8x16xf32>
    %cst_182 = arith.constant dense<0.000000e+00> : vector<8x256xf32>
    %386 = tpu.matmul %385, %261, %cst_182 {dimension_numbers = #tpu.dot_dimension_numbers<[1], [0], [0], [1], [0, 0, 1, 1], [], []>} : vector<8x16xf32>, vector<16x256xf32>, vector<8x256xf32> -> vector<8x256xf32>
    %c0_183 = arith.constant 0 : index
    %c0_184 = arith.constant 0 : index
    %387 = vector.load %arg13[%c0_183, %c0_184] : memref<8x1xf32, #tpu.memory_space<vmem>>, vector<8x1xf32>
    %388 = vector.broadcast %387 : vector<8x1xf32> to vector<8x256xf32>
    %389 = arith.addf %386, %388 : vector<8x256xf32>
    %c0_185 = arith.constant 0 : index
    %c0_186 = arith.constant 0 : index
    %390 = vector.load %arg14[%c0_185, %c0_186] : memref<8x1xf32, #tpu.memory_space<vmem>>, vector<8x1xf32>
    %c0_187 = arith.constant 0 : index
    %c0_188 = arith.constant 0 : index
    %391 = vector.load %arg15[%c0_187, %c0_188] : memref<8x1xf32, #tpu.memory_space<vmem>>, vector<8x1xf32>
    %392 = arith.mulf %389, %389 : vector<8x256xf32>
    %393 = arith.mulf %389, %392 : vector<8x256xf32>
    %cst_189 = arith.constant 4.471500e-02 : f32
    %394 = vector.broadcast %cst_189 : f32 to vector<8x256xf32>
    %395 = arith.mulf %394, %393 : vector<8x256xf32>
    %396 = arith.addf %389, %395 : vector<8x256xf32>
    %cst_190 = arith.constant 0.797884583 : f32
    %397 = vector.broadcast %cst_190 : f32 to vector<8x256xf32>
    %398 = arith.mulf %397, %396 : vector<8x256xf32>
    %399 = math.tanh %398 : vector<8x256xf32>
    %cst_191 = arith.constant 1.000000e+00 : f32
    %400 = vector.broadcast %cst_191 : f32 to vector<8x256xf32>
    %401 = arith.addf %400, %399 : vector<8x256xf32>
    %cst_192 = arith.constant 5.000000e-01 : f32
    %402 = vector.broadcast %cst_192 : f32 to vector<8x256xf32>
    %403 = arith.mulf %402, %401 : vector<8x256xf32>
    %404 = arith.mulf %389, %403 : vector<8x256xf32>
    %cst_193 = arith.constant 1.250000e-01 : f32
    %405 = vector.broadcast %cst_193 : f32 to vector<1x8xf32>
    %cst_194 = arith.constant dense<0.000000e+00> : vector<1x256xf32>
    %406 = tpu.matmul %405, %404, %cst_194 {dimension_numbers = #tpu.dot_dimension_numbers<[1], [0], [0], [1], [0, 0, 1, 1], [], []>} : vector<1x8xf32>, vector<8x256xf32>, vector<1x256xf32> -> vector<1x256xf32>
    %407 = vector.broadcast %406 : vector<1x256xf32> to vector<8x256xf32>
    %408 = arith.subf %404, %407 : vector<8x256xf32>
    %409 = arith.mulf %408, %408 : vector<8x256xf32>
    %cst_195 = arith.constant dense<0.000000e+00> : vector<1x256xf32>
    %410 = tpu.matmul %405, %409, %cst_195 {dimension_numbers = #tpu.dot_dimension_numbers<[1], [0], [0], [1], [0, 0, 1, 1], [], []>} : vector<1x8xf32>, vector<8x256xf32>, vector<1x256xf32> -> vector<1x256xf32>
    %cst_196 = arith.constant 9.99999974E-6 : f32
    %411 = vector.broadcast %cst_196 : f32 to vector<1x256xf32>
    %412 = arith.addf %410, %411 : vector<1x256xf32>
    %413 = math.rsqrt %412 : vector<1x256xf32>
    %414 = vector.broadcast %413 : vector<1x256xf32> to vector<8x256xf32>
    %415 = arith.mulf %408, %414 : vector<8x256xf32>
    %416 = vector.broadcast %390 : vector<8x1xf32> to vector<8x256xf32>
    %417 = arith.mulf %415, %416 : vector<8x256xf32>
    %418 = vector.broadcast %391 : vector<8x1xf32> to vector<8x256xf32>
    %419 = arith.addf %417, %418 : vector<8x256xf32>
    %cst_197 = arith.constant dense<0.000000e+00> : vector<8x1024xf32>
    %420 = tpu.matmul %419, %262, %cst_197 {dimension_numbers = #tpu.dot_dimension_numbers<[1], [0], [0], [1], [0, 0, 1, 1], [], []>} : vector<8x256xf32>, vector<256x1024xf32>, vector<8x1024xf32> -> vector<8x1024xf32>
    %cst_198 = arith.constant 0.000000e+00 : f32
    %421 = vector.broadcast %cst_198 : f32 to vector<8x33xf32>
    %422 = vector.extract_strided_slice %420 {offsets = [0, 0], sizes = [8, 991], strides = [1, 1]} : vector<8x1024xf32> to vector<8x991xf32>
    %423 = tpu.concatenate %421, %422 in 1 : vector<8x33xf32>, vector<8x991xf32> -> vector<8x1024xf32>
    %424 = arith.addf %383, %423 : vector<8x1024xf32>
    %c0_199 = arith.constant 0 : index
    %c0_200 = arith.constant 0 : index
    %425 = vector.load %arg21[%c0_199, %c0_200] : memref<1x1024xi32, #tpu.memory_space<vmem>>, vector<1x1024xi32>
    %cst_201 = arith.constant 0.000000e+00 : f32
    %426 = vector.broadcast %cst_201 : f32 to vector<8x33xf32>
    %427 = vector.extract_strided_slice %424 {offsets = [0, 0], sizes = [8, 991], strides = [1, 1]} : vector<8x1024xf32> to vector<8x991xf32>
    %428 = tpu.concatenate %426, %427 in 1 : vector<8x33xf32>, vector<8x991xf32> -> vector<8x1024xf32>
    %c1_i32_202 = arith.constant 1 : i32
    %429 = vector.broadcast %c1_i32_202 : i32 to vector<1x1024xi32>
    %430 = arith.cmpi sge, %425, %429 : vector<1x1024xi32>
    %cst_203 = arith.constant 0.000000e+00 : f32
    %431 = vector.shape_cast %430 : vector<1x1024xi1> to vector<1x1024xi1>
    %432 = vector.broadcast %431 : vector<1x1024xi1> to vector<8x1024xi1>
    %433 = vector.broadcast %cst_203 : f32 to vector<8x1024xf32>
    %434 = arith.select %432, %428, %433 : vector<8x1024xi1>, vector<8x1024xf32>
    %cst_204 = arith.constant 0.000000e+00 : f32
    %435 = vector.broadcast %cst_204 : f32 to vector<8x32xf32>
    %436 = vector.extract_strided_slice %424 {offsets = [0, 0], sizes = [8, 992], strides = [1, 1]} : vector<8x1024xf32> to vector<8x992xf32>
    %437 = tpu.concatenate %435, %436 in 1 : vector<8x32xf32>, vector<8x992xf32> -> vector<8x1024xf32>
    %cst_205 = arith.constant 0.000000e+00 : f32
    %438 = vector.broadcast %cst_205 : f32 to vector<8x31xf32>
    %439 = vector.extract_strided_slice %424 {offsets = [0, 0], sizes = [8, 993], strides = [1, 1]} : vector<8x1024xf32> to vector<8x993xf32>
    %440 = tpu.concatenate %438, %439 in 1 : vector<8x31xf32>, vector<8x993xf32> -> vector<8x1024xf32>
    %c30_i32 = arith.constant 30 : i32
    %441 = vector.broadcast %c30_i32 : i32 to vector<1x1024xi32>
    %442 = arith.cmpi sle, %425, %441 : vector<1x1024xi32>
    %cst_206 = arith.constant 0.000000e+00 : f32
    %443 = vector.shape_cast %442 : vector<1x1024xi1> to vector<1x1024xi1>
    %444 = vector.broadcast %443 : vector<1x1024xi1> to vector<8x1024xi1>
    %445 = vector.broadcast %cst_206 : f32 to vector<8x1024xf32>
    %446 = arith.select %444, %440, %445 : vector<8x1024xi1>, vector<8x1024xf32>
    %cst_207 = arith.constant 0.000000e+00 : f32
    %447 = vector.broadcast %cst_207 : f32 to vector<8x1xf32>
    %448 = vector.extract_strided_slice %424 {offsets = [0, 0], sizes = [8, 1023], strides = [1, 1]} : vector<8x1024xf32> to vector<8x1023xf32>
    %449 = tpu.concatenate %447, %448 in 1 : vector<8x1xf32>, vector<8x1023xf32> -> vector<8x1024xf32>
    %c1_i32_208 = arith.constant 1 : i32
    %450 = vector.broadcast %c1_i32_208 : i32 to vector<1x1024xi32>
    %451 = arith.cmpi sge, %425, %450 : vector<1x1024xi32>
    %cst_209 = arith.constant 0.000000e+00 : f32
    %452 = vector.shape_cast %451 : vector<1x1024xi1> to vector<1x1024xi1>
    %453 = vector.broadcast %452 : vector<1x1024xi1> to vector<8x1024xi1>
    %454 = vector.broadcast %cst_209 : f32 to vector<8x1024xf32>
    %455 = arith.select %453, %449, %454 : vector<8x1024xi1>, vector<8x1024xf32>
    %cst_210 = arith.constant 0.000000e+00 : f32
    %456 = vector.broadcast %cst_210 : f32 to vector<8x1xf32>
    %457 = vector.extract_strided_slice %424 {offsets = [0, 1], sizes = [8, 1023], strides = [1, 1]} : vector<8x1024xf32> to vector<8x1023xf32>
    %458 = tpu.concatenate %457, %456 in 1 : vector<8x1023xf32>, vector<8x1xf32> -> vector<8x1024xf32>
    %c30_i32_211 = arith.constant 30 : i32
    %459 = vector.broadcast %c30_i32_211 : i32 to vector<1x1024xi32>
    %460 = arith.cmpi sle, %425, %459 : vector<1x1024xi32>
    %cst_212 = arith.constant 0.000000e+00 : f32
    %461 = vector.shape_cast %460 : vector<1x1024xi1> to vector<1x1024xi1>
    %462 = vector.broadcast %461 : vector<1x1024xi1> to vector<8x1024xi1>
    %463 = vector.broadcast %cst_212 : f32 to vector<8x1024xf32>
    %464 = arith.select %462, %458, %463 : vector<8x1024xi1>, vector<8x1024xf32>
    %cst_213 = arith.constant 0.000000e+00 : f32
    %465 = vector.broadcast %cst_213 : f32 to vector<8x31xf32>
    %466 = vector.extract_strided_slice %424 {offsets = [0, 31], sizes = [8, 993], strides = [1, 1]} : vector<8x1024xf32> to vector<8x993xf32>
    %467 = tpu.concatenate %466, %465 in 1 : vector<8x993xf32>, vector<8x31xf32> -> vector<8x1024xf32>
    %c1_i32_214 = arith.constant 1 : i32
    %468 = vector.broadcast %c1_i32_214 : i32 to vector<1x1024xi32>
    %469 = arith.cmpi sge, %425, %468 : vector<1x1024xi32>
    %cst_215 = arith.constant 0.000000e+00 : f32
    %470 = vector.shape_cast %469 : vector<1x1024xi1> to vector<1x1024xi1>
    %471 = vector.broadcast %470 : vector<1x1024xi1> to vector<8x1024xi1>
    %472 = vector.broadcast %cst_215 : f32 to vector<8x1024xf32>
    %473 = arith.select %471, %467, %472 : vector<8x1024xi1>, vector<8x1024xf32>
    %cst_216 = arith.constant 0.000000e+00 : f32
    %474 = vector.broadcast %cst_216 : f32 to vector<8x32xf32>
    %475 = vector.extract_strided_slice %424 {offsets = [0, 32], sizes = [8, 992], strides = [1, 1]} : vector<8x1024xf32> to vector<8x992xf32>
    %476 = tpu.concatenate %475, %474 in 1 : vector<8x992xf32>, vector<8x32xf32> -> vector<8x1024xf32>
    %cst_217 = arith.constant 0.000000e+00 : f32
    %477 = vector.broadcast %cst_217 : f32 to vector<8x33xf32>
    %478 = vector.extract_strided_slice %424 {offsets = [0, 33], sizes = [8, 991], strides = [1, 1]} : vector<8x1024xf32> to vector<8x991xf32>
    %479 = tpu.concatenate %478, %477 in 1 : vector<8x991xf32>, vector<8x33xf32> -> vector<8x1024xf32>
    %c30_i32_218 = arith.constant 30 : i32
    %480 = vector.broadcast %c30_i32_218 : i32 to vector<1x1024xi32>
    %481 = arith.cmpi sle, %425, %480 : vector<1x1024xi32>
    %cst_219 = arith.constant 0.000000e+00 : f32
    %482 = vector.shape_cast %481 : vector<1x1024xi1> to vector<1x1024xi1>
    %483 = vector.broadcast %482 : vector<1x1024xi1> to vector<8x1024xi1>
    %484 = vector.broadcast %cst_219 : f32 to vector<8x1024xf32>
    %485 = arith.select %483, %479, %484 : vector<8x1024xi1>, vector<8x1024xf32>
    %486 = tpu.concatenate %434, %437, %446, %455, %424, %464, %473, %476, %485 in 0 : vector<8x1024xf32>, vector<8x1024xf32>, vector<8x1024xf32>, vector<8x1024xf32>, vector<8x1024xf32>, vector<8x1024xf32>, vector<8x1024xf32>, vector<8x1024xf32>, vector<8x1024xf32> -> vector<72x1024xf32>
    %c0_220 = arith.constant 0 : index
    %c0_221 = arith.constant 0 : index
    %487 = vector.load %arg17[%c0_220, %c0_221] : memref<8x72xf32, #tpu.memory_space<vmem>>, vector<8x72xf32>
    %cst_222 = arith.constant dense<0.000000e+00> : vector<8x1024xf32>
    %488 = tpu.matmul %487, %486, %cst_222 {dimension_numbers = #tpu.dot_dimension_numbers<[1], [0], [0], [1], [0, 0, 1, 1], [], []>} : vector<8x72xf32>, vector<72x1024xf32>, vector<8x1024xf32> -> vector<8x1024xf32>
    %c0_223 = arith.constant 0 : index
    %c0_224 = arith.constant 0 : index
    %489 = vector.load %arg18[%c0_223, %c0_224] : memref<8x1xf32, #tpu.memory_space<vmem>>, vector<8x1xf32>
    %490 = vector.broadcast %489 : vector<8x1xf32> to vector<8x1024xf32>
    %491 = arith.addf %488, %490 : vector<8x1024xf32>
    %c0_225 = arith.constant 0 : index
    %c0_226 = arith.constant 0 : index
    %492 = vector.load %arg19[%c0_225, %c0_226] : memref<8x1xf32, #tpu.memory_space<vmem>>, vector<8x1xf32>
    %c0_227 = arith.constant 0 : index
    %c0_228 = arith.constant 0 : index
    %493 = vector.load %arg20[%c0_227, %c0_228] : memref<8x1xf32, #tpu.memory_space<vmem>>, vector<8x1xf32>
    %494 = arith.mulf %491, %491 : vector<8x1024xf32>
    %495 = arith.mulf %491, %494 : vector<8x1024xf32>
    %cst_229 = arith.constant 4.471500e-02 : f32
    %496 = vector.broadcast %cst_229 : f32 to vector<8x1024xf32>
    %497 = arith.mulf %496, %495 : vector<8x1024xf32>
    %498 = arith.addf %491, %497 : vector<8x1024xf32>
    %cst_230 = arith.constant 0.797884583 : f32
    %499 = vector.broadcast %cst_230 : f32 to vector<8x1024xf32>
    %500 = arith.mulf %499, %498 : vector<8x1024xf32>
    %501 = math.tanh %500 : vector<8x1024xf32>
    %cst_231 = arith.constant 1.000000e+00 : f32
    %502 = vector.broadcast %cst_231 : f32 to vector<8x1024xf32>
    %503 = arith.addf %502, %501 : vector<8x1024xf32>
    %cst_232 = arith.constant 5.000000e-01 : f32
    %504 = vector.broadcast %cst_232 : f32 to vector<8x1024xf32>
    %505 = arith.mulf %504, %503 : vector<8x1024xf32>
    %506 = arith.mulf %491, %505 : vector<8x1024xf32>
    %cst_233 = arith.constant 1.250000e-01 : f32
    %507 = vector.broadcast %cst_233 : f32 to vector<1x8xf32>
    %cst_234 = arith.constant dense<0.000000e+00> : vector<1x1024xf32>
    %508 = tpu.matmul %507, %506, %cst_234 {dimension_numbers = #tpu.dot_dimension_numbers<[1], [0], [0], [1], [0, 0, 1, 1], [], []>} : vector<1x8xf32>, vector<8x1024xf32>, vector<1x1024xf32> -> vector<1x1024xf32>
    %509 = vector.broadcast %508 : vector<1x1024xf32> to vector<8x1024xf32>
    %510 = arith.subf %506, %509 : vector<8x1024xf32>
    %511 = arith.mulf %510, %510 : vector<8x1024xf32>
    %cst_235 = arith.constant dense<0.000000e+00> : vector<1x1024xf32>
    %512 = tpu.matmul %507, %511, %cst_235 {dimension_numbers = #tpu.dot_dimension_numbers<[1], [0], [0], [1], [0, 0, 1, 1], [], []>} : vector<1x8xf32>, vector<8x1024xf32>, vector<1x1024xf32> -> vector<1x1024xf32>
    %cst_236 = arith.constant 9.99999974E-6 : f32
    %513 = vector.broadcast %cst_236 : f32 to vector<1x1024xf32>
    %514 = arith.addf %512, %513 : vector<1x1024xf32>
    %515 = math.rsqrt %514 : vector<1x1024xf32>
    %516 = vector.broadcast %515 : vector<1x1024xf32> to vector<8x1024xf32>
    %517 = arith.mulf %510, %516 : vector<8x1024xf32>
    %518 = vector.broadcast %492 : vector<8x1xf32> to vector<8x1024xf32>
    %519 = arith.mulf %517, %518 : vector<8x1024xf32>
    %520 = vector.broadcast %493 : vector<8x1xf32> to vector<8x1024xf32>
    %521 = arith.addf %519, %520 : vector<8x1024xf32>
    %c0_237 = arith.constant 0 : index
    %c0_238 = arith.constant 0 : index
    %522 = vector.load %arg22[%c0_237, %c0_238] : memref<64x8xf32, #tpu.memory_space<vmem>>, vector<64x8xf32>
    %cst_239 = arith.constant dense<0.000000e+00> : vector<64x1024xf32>
    %523 = tpu.matmul %522, %521, %cst_239 {dimension_numbers = #tpu.dot_dimension_numbers<[1], [0], [0], [1], [0, 0, 1, 1], [], []>} : vector<64x8xf32>, vector<8x1024xf32>, vector<64x1024xf32> -> vector<64x1024xf32>
    %c0_240 = arith.constant 0 : index
    %c0_241 = arith.constant 0 : index
    %524 = vector.load %arg23[%c0_240, %c0_241] : memref<64x1xf32, #tpu.memory_space<vmem>>, vector<64x1xf32>
    %525 = vector.broadcast %524 : vector<64x1xf32> to vector<64x1024xf32>
    %526 = arith.addf %523, %525 : vector<64x1024xf32>
    %c0_242 = arith.constant 0 : index
    %c0_243 = arith.constant 0 : index
    %c0_244 = arith.constant 0 : index
    %527 = vector.load %arg24[%c0_242, %c0_243, %c0_244] : memref<1x64x1024xf32, #tpu.memory_space<vmem>>, vector<1x64x1024xf32>
    %528 = vector.shape_cast %527 : vector<1x64x1024xf32> to vector<64x1024xf32>
    %529 = vector.shape_cast %526 : vector<64x1024xf32> to vector<1x64x1024xf32>
    tpu.vector_store %arg24[%c0_242, %c0_243, %c0_244], %529 {strides = array<i32>} : memref<1x64x1024xf32, #tpu.memory_space<vmem>>, vector<1x64x1024xf32>,
    return
  }
  func.func @transform_0(%arg0: i32) -> (i32, i32, i32) {
    %c0_i32 = arith.constant 0 : i32
    %c0_i32_0 = arith.constant 0 : i32
    %c0_i32_1 = arith.constant 0 : i32
    return %arg0, %c0_i32, %c0_i32_0 : i32, i32, i32
  }
  func.func @transform_1(%arg0: i32) -> (i32, i32, i32) {
    %c0_i32 = arith.constant 0 : i32
    %c0_i32_0 = arith.constant 0 : i32
    %c0_i32_1 = arith.constant 0 : i32
    %c0_i32_2 = arith.constant 0 : i32
    return %c0_i32, %c0_i32_0, %c0_i32_1 : i32, i32, i32
  }
  func.func @transform_2(%arg0: i32) -> (i32, i32) {
    %c0_i32 = arith.constant 0 : i32
    %c0_i32_0 = arith.constant 0 : i32
    %c0_i32_1 = arith.constant 0 : i32
    return %c0_i32, %c0_i32_0 : i32, i32
  }
  func.func @transform_3(%arg0: i32) -> (i32, i32) {
    %c0_i32 = arith.constant 0 : i32
    %c0_i32_0 = arith.constant 0 : i32
    %c0_i32_1 = arith.constant 0 : i32
    return %c0_i32, %c0_i32_0 : i32, i32
  }
  func.func @transform_4(%arg0: i32) -> (i32, i32) {
    %c0_i32 = arith.constant 0 : i32
    %c0_i32_0 = arith.constant 0 : i32
    %c0_i32_1 = arith.constant 0 : i32
    return %c0_i32, %c0_i32_0 : i32, i32
  }
  func.func @transform_5(%arg0: i32) -> (i32, i32) {
    %c0_i32 = arith.constant 0 : i32
    %c0_i32_0 = arith.constant 0 : i32
    %c0_i32_1 = arith.constant 0 : i32
    return %c0_i32, %c0_i32_0 : i32, i32
  }
  func.func @transform_6(%arg0: i32) -> (i32, i32) {
    %c0_i32 = arith.constant 0 : i32
    %c0_i32_0 = arith.constant 0 : i32
    %c0_i32_1 = arith.constant 0 : i32
    return %c0_i32, %c0_i32_0 : i32, i32
  }
  func.func @transform_7(%arg0: i32) -> (i32, i32) {
    %c0_i32 = arith.constant 0 : i32
    %c0_i32_0 = arith.constant 0 : i32
    %c0_i32_1 = arith.constant 0 : i32
    return %c0_i32, %c0_i32_0 : i32, i32
  }
  func.func @transform_8(%arg0: i32) -> (i32, i32) {
    %c0_i32 = arith.constant 0 : i32
    %c0_i32_0 = arith.constant 0 : i32
    %c0_i32_1 = arith.constant 0 : i32
    return %c0_i32, %c0_i32_0 : i32, i32
  }
  func.func @transform_9(%arg0: i32) -> (i32, i32) {
    %c0_i32 = arith.constant 0 : i32
    %c0_i32_0 = arith.constant 0 : i32
    %c0_i32_1 = arith.constant 0 : i32
    return %c0_i32, %c0_i32_0 : i32, i32
  }
  func.func @transform_10(%arg0: i32) -> (i32, i32) {
    %c0_i32 = arith.constant 0 : i32
    %c0_i32_0 = arith.constant 0 : i32
    %c0_i32_1 = arith.constant 0 : i32
    return %c0_i32, %c0_i32_0 : i32, i32
  }
  func.func @transform_11(%arg0: i32) -> (i32, i32, i32) {
    %c0_i32 = arith.constant 0 : i32
    %c0_i32_0 = arith.constant 0 : i32
    %c0_i32_1 = arith.constant 0 : i32
    %c0_i32_2 = arith.constant 0 : i32
    return %c0_i32, %c0_i32_0, %c0_i32_1 : i32, i32, i32
  }
  func.func @transform_12(%arg0: i32) -> (i32, i32) {
    %c0_i32 = arith.constant 0 : i32
    %c0_i32_0 = arith.constant 0 : i32
    %c0_i32_1 = arith.constant 0 : i32
    return %c0_i32, %c0_i32_0 : i32, i32
  }
  func.func @transform_13(%arg0: i32) -> (i32, i32) {
    %c0_i32 = arith.constant 0 : i32
    %c0_i32_0 = arith.constant 0 : i32
    %c0_i32_1 = arith.constant 0 : i32
    return %c0_i32, %c0_i32_0 : i32, i32
  }
  func.func @transform_14(%arg0: i32) -> (i32, i32) {
    %c0_i32 = arith.constant 0 : i32
    %c0_i32_0 = arith.constant 0 : i32
    %c0_i32_1 = arith.constant 0 : i32
    return %c0_i32, %c0_i32_0 : i32, i32
  }
  func.func @transform_15(%arg0: i32) -> (i32, i32) {
    %c0_i32 = arith.constant 0 : i32
    %c0_i32_0 = arith.constant 0 : i32
    %c0_i32_1 = arith.constant 0 : i32
    return %c0_i32, %c0_i32_0 : i32, i32
  }
  func.func @transform_16(%arg0: i32) -> (i32, i32) {
    %c0_i32 = arith.constant 0 : i32
    %c0_i32_0 = arith.constant 0 : i32
    %c0_i32_1 = arith.constant 0 : i32
    return %c0_i32, %c0_i32_0 : i32, i32
  }
  func.func @transform_17(%arg0: i32) -> (i32, i32) {
    %c0_i32 = arith.constant 0 : i32
    %c0_i32_0 = arith.constant 0 : i32
    %c0_i32_1 = arith.constant 0 : i32
    return %c0_i32, %c0_i32_0 : i32, i32
  }
  func.func @transform_18(%arg0: i32) -> (i32, i32) {
    %c0_i32 = arith.constant 0 : i32
    %c0_i32_0 = arith.constant 0 : i32
    %c0_i32_1 = arith.constant 0 : i32
    return %c0_i32, %c0_i32_0 : i32, i32
  }
  func.func @transform_19(%arg0: i32) -> (i32, i32) {
    %c0_i32 = arith.constant 0 : i32
    %c0_i32_0 = arith.constant 0 : i32
    %c0_i32_1 = arith.constant 0 : i32
    return %c0_i32, %c0_i32_0 : i32, i32
  }
  func.func @transform_20(%arg0: i32) -> (i32, i32) {
    %c0_i32 = arith.constant 0 : i32
    %c0_i32_0 = arith.constant 0 : i32
    %c0_i32_1 = arith.constant 0 : i32
    return %c0_i32, %c0_i32_0 : i32, i32
  }
  func.func @transform_21(%arg0: i32) -> (i32, i32) {
    %c0_i32 = arith.constant 0 : i32
    %c0_i32_0 = arith.constant 0 : i32
    %c0_i32_1 = arith.constant 0 : i32
    return %c0_i32, %c0_i32_0 : i32, i32
  }
  func.func @transform_22(%arg0: i32) -> (i32, i32) {
    %c0_i32 = arith.constant 0 : i32
    %c0_i32_0 = arith.constant 0 : i32
    %c0_i32_1 = arith.constant 0 : i32
    return %c0_i32, %c0_i32_0 : i32, i32
  }
  func.func @transform_23(%arg0: i32) -> (i32, i32, i32) {
    %c0_i32 = arith.constant 0 : i32
    %c0_i32_0 = arith.constant 0 : i32
    %c0_i32_1 = arith.constant 0 : i32
    return %arg0, %c0_i32, %c0_i32_0 : i32, i32, i32
  }
}

</mosaic_0001>

<bundles_post_ra>
// kernel: tile.8
= control target key start
LH: loop header
LB: loop body
LE: loop exit
PB: predicated region body
PF: predicated region fallthrough
CT: control target
= control target key end

     0   :  { %2 = vsyncpa [#allocation1], 0  ;;  %s51_s8 = smov [#allocation0]   ;;  %s71_s0 = inlined_call_operand.hbm [shape: f32[4], index: 0, kind: input, shape index: {}]   ;;  %s72_s1 = inlined_call_operand.vmem [shape: f32[16,4], index: 1, kind: output, shape index: {}]  }
   0x1   :  { %s8_s0 = sshll.u32 %s71_s0, 4  ;;  %s10_s9 = sshll.u32 %s51_s8, 4  ;;  %s9_s0 = int_to_ptr.hbm [resolvable:$true] %s8_s0  ;;  %s11_s9 = int_to_ptr.vmem [resolvable:$true] %s10_s9 }
   0x2   :  { %13 = dma.hbm_to_vmem [thread:$0]  %s9_s0, 16, %s11_s9, [#allocation1]  }
   0x3   :  { %49 = dma.done.wait [#allocation1], 16  }
   0x4   :  { %50 = vsyncadd [#allocation1], 4294967280  ;;  %v18_v0 = vld [vmem:[#allocation0] ss:$0 sm:$0xff] }
   0x5   :  { %19 = vst [vmem:[%s72_s1] sm:$0xff] %v18_v0 }
   0x6   :  { %23 = vst [vmem:[%s72_s1 + $0x8] sm:$0xff] %v18_v0 }
   0x7   :  { %22 = vsyncpa [#allocation1], 1 }

// kernel: tile.0
= control target key start
LH: loop header
LB: loop body
LE: loop exit
PB: predicated region body
PF: predicated region fallthrough
CT: control target
= control target key end

     0   :  { %vm3_vm0 = vcmask 7168   ;;  %s63_s8 = smov 126   ;;  %s64_s9 = smov 127   ;;  %s114_s0 = inlined_call_operand.vmem [shape: f32[16,4], index: 0, kind: input, shape index: {}]   ;;  %s115_s1 = inlined_call_operand.vmem [shape: f32[64,1], index: 1, kind: output, shape index: {}]  }
   0x1   :  { %v23_v0 = vld [vmem:[%s114_s0] sm:$0xff]   ;;  %v55_v1 = vld [vmem:[%s114_s0 + $0x8] sm:$0xff]   ;;  %s65_s13 = smov 125  }
   0x2   :  { %24 = vrot.lane.b32.xlu1 %v23_v0, %s63_s8  ;;  %11 = vrot.lane.b32.xlu0 %v23_v0, %s64_s9  ;;  %4 = vst.msk [vmem:[%s115_s1] ss:$4 sm:$0xff] %vm3_vm0, %v23_v0  }
   0x3   :  { %37 = vrot.lane.b32.xlu2 %v23_v0, %s65_s13  ;;  %50 = vst.msk [vmem:[%s115_s1 + $0x20] ss:$4 sm:$0xff] %vm3_vm0, %v55_v1  }
   0xa   :  { %31 = vrot.lane.b32.xlu1 %v55_v1, %s63_s8  ;;  %18 = vrot.lane.b32.xlu0 %v55_v1, %s64_s9 }
   0xb   :  { %44 = vrot.lane.b32.xlu2 %v55_v1, %s65_s13 }
  0x5d   :  { %v38_v2 = vpop.permute.xlu2 %37  }
  0x5e   :  { %57 = vst.msk [vmem:[%s115_s1 + $0x3] ss:$4 sm:$0xff] %vm3_vm0, %v38_v2  }
  0x65   :  { %v45_v3 = vpop.permute.xlu2 %44  }
  0x66   :  { %59 = vst.msk [vmem:[%s115_s1 + $0x23] ss:$4 sm:$0xff] %vm3_vm0, %v45_v3  }
  0x74   :  { %v25_v4 = vpop.permute.xlu1 %24   ;;  %v12_v5 = vpop.permute.xlu0 %11  }
  0x75   :  { %54 = vst.msk [vmem:[%s115_s1 + $0x2] ss:$4 sm:$0xff] %vm3_vm0, %v25_v4  }
  0x76   :  { %51 = vst.msk [vmem:[%s115_s1 + $0x1] ss:$4 sm:$0xff] %vm3_vm0, %v12_v5  }
  0x7c   :  { %v32_v6 = vpop.permute.xlu1 %31   ;;  %v19_v7 = vpop.permute.xlu0 %18  }
  0x7d   :  { %56 = vst.msk [vmem:[%s115_s1 + $0x22] ss:$4 sm:$0xff] %vm3_vm0, %v32_v6  }
  0x7e   :  { %53 = vst.msk [vmem:[%s115_s1 + $0x21] ss:$4 sm:$0xff] %vm3_vm0, %v19_v7  }

// kernel: final_patch_expanding_forward.1
= control target key start
LH: loop header
LB: loop body
LE: loop exit
PB: predicated region body
PF: predicated region fallthrough
CT: control target
= control target key end

     0   :  { %s10966_s0 = inlined_call_operand.vmem [shape: f32[2,32,64], index: 0, kind: input, shape index: {}]   ;;  %s10967_s1 = inlined_call_operand.vmem [shape: f32[4,16,32], index: 1, kind: input, shape index: {}]   ;;  %s10968_s2 = inlined_call_operand.vmem [shape: f32[16,1], index: 2, kind: input, shape index: {}]   ;;  %s10969_s3 = inlined_call_operand.vmem [shape: f32[16,1], index: 3, kind: input, shape index: {}]   ;;  %s10970_s4 = inlined_call_operand.vmem [shape: f32[16,1], index: 4, kind: input, shape index: {}]   ;;  %s10971_s5 = inlined_call_operand.hbm [shape: f32[64,256], index: 5, kind: input, shape index: {}]   ;;  %s10972_s6 = inlined_call_operand.vmem [shape: f32[16,144], index: 6, kind: input, shape index: {}]   ;;  %s10973_s7 = inlined_call_operand.vmem [shape: f32[16,1], index: 7, kind: input, shape index: {}]   ;;  %s10974_s8 = inlined_call_operand.vmem [shape: f32[16,1], index: 8, kind: input, shape index: {}]   ;;  %s10975_s9 = inlined_call_operand.vmem [shape: f32[16,1], index: 9, kind: input, shape index: {}]   ;;  %s10976_s10 = inlined_call_operand.hbm [shape: s32[1,256], index: 10, kind: input, shape index: {}]   ;;  %s10977_s11 = inlined_call_operand.vmem [shape: f32[4,8,16], index: 11, kind: input, shape index: {}]   ;;  %s10978_s12 = inlined_call_operand.vmem [shape: f32[8,1], index: 12, kind: input, shape index: {}]   ;;  %s10979_s13 = inlined_call_operand.vmem [shape: f32[8,1], index: 13, kind: input, shape index: {}]   ;;  %s10980_s14 = inlined_call_operand.vmem [shape: f32[8,1], index: 14, kind: input, shape index: {}]   ;;  %s10981_s15 = inlined_call_operand.hbm [shape: f32[256,1024], index: 15, kind: input, shape index: {}]   ;;  %s10982_s16 = inlined_call_operand.vmem [shape: f32[8,72], index: 16, kind: input, shape index: {}]   ;;  %s10983_s17 = inlined_call_operand.vmem [shape: f32[8,1], index: 17, kind: input, shape index: {}]   ;;  %s10984_s18 = inlined_call_operand.vmem [shape: f32[8,1], index: 18, kind: input, shape index: {}]   ;;  %s10985_s19 = inlined_call_operand.vmem [shape: f32[8,1], index: 19, kind: input, shape index: {}]   ;;  %s10986_s20 = inlined_call_operand.hbm [shape: s32[1,1024], index: 20, kind: input, shape index: {}]   ;;  %s10987_s21 = inlined_call_operand.vmem [shape: f32[64,8], index: 21, kind: input, shape index: {}]   ;;  %s10988_s22 = inlined_call_operand.vmem [shape: f32[64,1], index: 22, kind: input, shape index: {}]   ;;  %s10989_s23 = inlined_call_operand.vmem [shape: f32[2,64,1024], index: 23, kind: output, shape index: {}]  }
   0x1   :  { %11351 = sst [smem:[#allocation216_spill]] %s10966_s0 }
   0x2   :  { %11352 = sst [smem:[#allocation217_spill]] %s10967_s1 }
   0x3   :  { %11353 = sst [smem:[#allocation218_spill]] %s10968_s2 }
   0x4   :  { %11354 = sst [smem:[#allocation219_spill]] %s10969_s3 }
   0x5   :  { %11355 = sst [smem:[#allocation220_spill]] %s10970_s4 }
   0x6   :  { %11356 = sst [smem:[#allocation221_spill]] %s10971_s5 }
   0x7   :  { %11357 = sst [smem:[#allocation222_spill]] %s10972_s6 }
   0x8   :  { %11358 = sst [smem:[#allocation223_spill]] %s10973_s7 }
   0x9   :  { %11359 = sst [smem:[#allocation224_spill]] %s10976_s10 }
   0xa   :  { %11360 = sst [smem:[#allocation225_spill]] %s10987_s21 }
   0xb   :  { %11361 = sst [smem:[#allocation226_spill]] %s10989_s23 }
   0xc   :  { %28 = vsyncpa [#allocation3], 0 }
   0xd   :  { %29 = vsyncpa [#allocation5], 0 }
   0xe   :  { %30 = vsyncpa [#allocation8], 0  ;;  %s7172_s4 = smov 0  }
   0xf LB: > { %11362 = sst [smem:[#allocation12_spill]] %s7025_s4  ;;  %s7181_s5 = sadd.s32 4294967295, %s7025_s4   ;;  %s7025_s4 = sphi %s7172_s4, %s36_s4  }
  0x10   : > { %s11363_s10 = sld [smem:[#allocation224_spill]]  ;;  %p6069_p0 = scmp.ge.s32.totalorder %s7025_s4, 1 }
  0x11   : > { %p555_p1 = scmp.lt.s32.totalorder %s7025_s4, 3  ;;  %p6359_p2 = scmp.eq.s32.totalorder %s7181_s5, 0 }
  0x12   : > { %s7027_s26 = smov [#allocation4]   ;;  %s11365_s7 = sld [smem:[#allocation221_spill]] }
  0x13   : > { %p7186_p3 = pnand %p6069_p0, %p555_p1  ;;  %s607_s2 = sshll.u32 %s7027_s26, 4  ;;  %s608_s2 = int_to_ptr.vmem [resolvable:$true] %s607_s2 }
  0x14   : > { %s7028_s3 = smov [#allocation2]   ;;  %s628_s26 = sshll.u32 %s10981_s15, 4  ;;  %s629_s26 = int_to_ptr.hbm [resolvable:$true] %s628_s26 }
  0x15   : > { %p6346_p4 = pneg %p7186_p3  ;;  %s580_s0 = sshll.u32 %s7028_s3, 4  ;;  %s581_s0 = int_to_ptr.vmem [resolvable:$true] %s580_s0 }
  0x16   : > { %s605_s25 = sshll.u32 %s11363_s10, 4  ;;  %s7029_s6 = smov 256   ;;  %s606_s25 = int_to_ptr.hbm [resolvable:$true] %s605_s25 }
  0x17   : > { %p7197_p5 = pnand %p6359_p2, %p6346_p4  ;;  %s7030_s27 = smov 16  }
  0x18   : > { %s578_s28 = sshll.u32 %s11365_s7, 4  ;;  %s7031_s7 = smov [#allocation6]   ;;  %s579_s28 = int_to_ptr.hbm [resolvable:$true] %s578_s28 }
  0x19   : > { %6352 = dma.hbm_to_vmem [thread:$0]  (!%p7197_p5), %s606_s25, 32, %s608_s2, [#allocation5]  }
  0x1a   : > { %6349 = dma.hbm_to_vmem [thread:$0]  (!%p7197_p5), %s579_s28, 2048, %s581_s0, [#allocation3], %s7029_s6, %s7029_s6, %s7030_s27  }
  0x1b   : > { %s630_s10 = sshll.u32 %s7031_s7, 4  ;;  %s7032_s4 = smov 1024   ;;  %s631_s10 = int_to_ptr.vmem [resolvable:$true] %s630_s10 }
  0x1c   : > { %s7033_s23 = smov 64   ;;  %s655_s30 = sshll.u32 %s10986_s20, 4  ;;  %s656_s30 = int_to_ptr.hbm [resolvable:$true] %s655_s30 }
  0x1d   : > { %6355 = dma.hbm_to_vmem [thread:$0]  (!%p7197_p5), %s629_s26, 32768, %s631_s10, [#allocation5], %s7032_s4, %s7032_s4, %s7033_s23  }
  0x1e   : > { %s7034_s24 = smov [#allocation7]   ;;  %684 = sbr.rel (%p7186_p3) target bundleno = 5215 (0x145f), region = 112 }
  0x1f   : > { %s657_s25 = sshll.u32 %s7034_s24, 4  ;;  %s658_s25 = int_to_ptr.vmem [resolvable:$true] %s657_s25 }
  0x20   : > { %6358 = dma.hbm_to_vmem [thread:$0]  (!%p7197_p5), %s656_s30, 128, %s658_s25, [#allocation8]  }
  0x23   : > { %7012 = dma.done.wait (%p6359_p2), [#allocation3], 2048  }
  0x24   : > { %7014 = vsyncadd (%p6359_p2), [#allocation3], 4294965248 }
  0x25   : > { %7016 = dma.done.wait (%p6359_p2), [#allocation5], 32800  }
  0x26   : > { %7018 = vsyncadd (%p6359_p2), [#allocation5], 4294934496 }
  0x27   : > { %7020 = dma.done.wait (%p6359_p2), [#allocation8], 128  }
  0x28   : > { %7022 = vsyncadd (%p6359_p2), [#allocation8], 4294967168  ;;  %p764_p6 = scmp.lt.s32.totalorder %s7181_s5, 1  ;;  %v11000_v0 = vmov 0   ;;  %s11367_s4 = sld [smem:[#allocation216_spill]]  ;;  %vm808_vm0 = vcmask 261120  }
  0x29   : > { %6400 = vset.pattern.permute.xlu0 %v11000_v0  ;;  %6401 = vset.pattern.permute.xlu1 %v11000_v0  ;;  %s11368_s29 = sld [smem:[#allocation218_spill]]  ;;  %vm860_vm1 = vcmask 130048   ;;  %v7036_v55 = vmov 0.0625   ;;  %vm1058_vm7 = vcmask 523264   ;;  %s7037_s21 = smov 1   ;;  %vm1123_vm15 = vcmask 7168  }
  0x2a   : > { %s12134_s5 = smov (!%p764_p6, %s7181_s5), 1  ;;  %6402 = vset.pattern.permute.xlu2 %v11000_v0  ;;  %s11369_s6 = sld [smem:[#allocation217_spill]] }
  0x2b   : > { %s6328_s10 = sshll.u32 %s12134_s5, 5  ;;  %s11371_s27 = sld [smem:[#allocation220_spill]] }
  0x2c   : > { %s7038_s0 = smov 16   ;;  %s7039_s26 = smov 17  }
  0x2d   : > { %s10998_s7 = smov 127   ;;  %s7041_s3 = smov 113  }
  0x2e   : > { %s768_s1 = scalar_lea.vmem %s11367_s4, %s6328_s10  ;;  %s7042_s30 = smov 112  }
  0x2f   : > { %v7240_v1 = vld [vmem:[%s768_s1 + $0x18] sm:$0xff]  ;;  %v7242_v2 = vld [vmem:[%s768_s1 + $0x10] sm:$0xff]  ;;  %v7246_v3 = vld [vmem:[%s768_s1 + $0x8] sm:$0xff]  ;;  %s7043_s24 = smov 15   ;;  %s7044_s25 = smov 111  }
  0x30   : > { %827 = vmatpush.msra.mxu0 %v7240_v1  ;;  %967 = vmatpush.msra.mxu3 %v7240_v1  ;;  %v797_v4 = vld [vmem:[%s11368_s29 + $0x8] sm:$0xff]  ;;  %v7253_v5 = vld [vmem:[%s768_s1] sm:$0xff]  ;;  %v6088_v7 = vld [vmem:[%s11369_s6 + $0x10] sm:$0xff]  ;;  %s11370_s1 = sld [smem:[#allocation219_spill]]  ;;  %s7051_s10 = smov 96  }
  0x31   : > { %805 = vperm.xlu0 %6400, %v797_v4   ;;  %v794_v6 = vld [vmem:[%s11369_s6] sm:$0xff]  ;;  %v795_v9 = vld [vmem:[%s11369_s6 + $0x8] sm:$0xff]  ;;  %v6089_v10 = vld [vmem:[%s11369_s6 + $0x18] sm:$0xff]  ;;  %s11372_s4 = sld [smem:[#allocation223_spill]] }
  0x32   : > { %828 = vmatpush.msra.mxu0 %v7242_v2  ;;  %968 = vmatpush.msra.mxu3 %v7242_v2  ;;  %v796_v8 = vld [vmem:[%s11368_s29] sm:$0xff]  ;;  %v841_v61 = vld [vmem:[%s11371_s27 + $0x8] sm:$0xff] }
  0x33   : > { %v840_v60 = vld [vmem:[%s11371_s27] sm:$0xff] }
  0x34   : > { %829 = vmatpush.msra.mxu0 %v7246_v3  ;;  %969 = vmatpush.msra.mxu3 %v7246_v3 }
  0x36   : > { %830 = vmatpush.msra.mxu0 %v7253_v5  ;;  %970 = vmatpush.msra.mxu3 %v7253_v5  ;;  %v838_v58 = vld [vmem:[%s11370_s1] sm:$0xff]  ;;  %v839_v59 = vld [vmem:[%s11370_s1 + $0x8] sm:$0xff] }
  0x37   : > { %6084 = vmatmul.msk.f32.vlgmr.msra.gmra.mxu0 %vm808_vm0, %v794_v6  ;;  %6090 = vmatmul.msk.f32.vlgmr.msra.gmra.mxu3 %vm808_vm0, %v6088_v7  ;;  %s11373_s2 = smov %s11372_s4 }
  0x38   : > { %924 = vperm.xlu1 %6401, %v838_v58   ;;  %929 = vperm.xlu2 %6402, %v839_v59  }
  0x39   : > { %800 = vperm.xlu0 %6400, %v796_v8  }
  0x3f   : > { %6085 = vmatmul.msk.f32.gmra.mxu0 %vm808_vm0, %v795_v9  ;;  %6091 = vmatmul.msk.f32.gmra.mxu3 %vm808_vm0, %v6089_v10 }
  0x40   : > { %936 = vperm.xlu1 %6401, %v840_v60   ;;  %941 = vperm.xlu2 %6402, %v841_v61  }
  0xa3   : > { %v7278_v11 = vpop.permute.xlu0 %805 }
  0xab   : > { %v7280_v12 = vpop.permute.xlu0 %800 }
  0xb4   : > { %v832_v13 = vpop.f32.mrf.mxu0 }
  0xb5   : > { %v833_v14 = vadd.f32 %v832_v13, %v7280_v12 }
  0xb7   : > { %v842_v15 = vmul.f32 %v833_v14, %v833_v14 }
  0xb9   : > { %v844_v16 = vmul.f32 %v842_v15, %v833_v14 }
  0xba   : > { %v972_v17 = vpop.f32.mrf.mxu3 }
  0xbb   : > { %v973_v18 = vadd.f32 %v972_v17, %v7280_v12  ;;  %v846_v19 = vmul.f32 0.044715, %v844_v16  ;;  %v7322_v17 = vld [vmem:[#allocation2 + $0x70] sm:$0xff] }
  0xbc   : > { %v835_v20 = vpop.f32.mrf.mxu0  ;;  %1073 = vmatpush.msrb.mxu0 %v7322_v17 }
  0xbd   : > { %v978_v21 = vmul.f32 %v973_v18, %v973_v18  ;;  %v836_v22 = vadd.f32 %v835_v20, %v7278_v11  ;;  %v848_v23 = vadd.f32 %v846_v19, %v833_v14  ;;  %v7328_v19 = vld [vmem:[#allocation2 + $0x60] sm:$0xff]  ;;  %v7330_v20 = vld [vmem:[#allocation2 + $0x68] sm:$0xff] }
  0xbe   : > { %1074 = vmatpush.msrb.mxu0 %v7328_v19 }
  0xbf   : > { %v843_v24 = vmul.f32 %v836_v22, %v836_v22  ;;  %v980_v25 = vmul.f32 %v978_v21, %v973_v18  ;;  %v850_v27 = vmul.f32 0.7978846, %v848_v23  ;;  %v7336_v21 = vld [vmem:[#allocation2 + $0x50] sm:$0xff]  ;;  %v7344_v23 = vld [vmem:[#allocation2 + $0x40] sm:$0xff] }
  0xc0   : > { %1075 = vmatpush.msrb.mxu0 %v7336_v21 }
  0xc1   : > { %v845_v26 = vmul.f32 %v843_v24, %v836_v22  ;;  %v982_v28 = vmul.f32 0.044715, %v980_v25  ;;  %6443 = vtanh.f32 %v850_v27  ;;  %v7346_v24 = vld [vmem:[#allocation2 + $0x48] sm:$0xff]  ;;  %v7352_v25 = vld [vmem:[#allocation2 + $0x30] sm:$0xff]  ;;  %v7360_v27 = vld [vmem:[#allocation2 + $0x20] sm:$0xff] }
  0xc2   : > { %v975_v29 = vpop.f32.mrf.mxu3  ;;  %1076 = vmatpush.msrb.mxu0 %v7344_v23 }
  0xc3   : > { %v976_v30 = vadd.f32 %v975_v29, %v7278_v11  ;;  %v847_v31 = vmul.f32 0.044715, %v845_v26  ;;  %v984_v32 = vadd.f32 %v982_v28, %v973_v18  ;;  %v7354_v26 = vld [vmem:[#allocation2 + $0x38] sm:$0xff]  ;;  %v7362_v28 = vld [vmem:[#allocation2 + $0x28] sm:$0xff]  ;;  %v7368_v29 = vld [vmem:[#allocation2 + $0x10] sm:$0xff] }
  0xc4   : > { %1077 = vmatpush.msrb.mxu0 %v7352_v25 }
  0xc5   : > { %v979_v33 = vmul.f32 %v976_v30, %v976_v30  ;;  %v849_v34 = vadd.f32 %v847_v31, %v836_v22  ;;  %v986_v37 = vmul.f32 0.7978846, %v984_v32  ;;  %v7376_v31 = vld [vmem:[#allocation2] sm:$0xff]  ;;  %v7378_v32 = vld [vmem:[#allocation2 + $0x8] sm:$0xff] }
  0xc6   : > { %1078 = vmatpush.msrb.mxu0 %v7360_v27 }
  0xc7   : > { %v851_v35 = vmul.f32 0.7978846, %v849_v34  ;;  %v981_v36 = vmul.f32 %v979_v33, %v976_v30  ;;  %v6444_v39 = vpop.eup %6443 }
  0xc8   : > { %v854_v42 = vadd.f32 1.0, %v6444_v39  ;;  %1079 = vmatpush.msrb.mxu0 %v7368_v29 }
  0xc9   : > { %6445 = vtanh.f32 %v851_v35  ;;  %v983_v38 = vmul.f32 0.044715, %v981_v36 }
  0xca   : > { %6447 = vtanh.f32 %v986_v37  ;;  %v856_v47 = vmul.f32 0.5, %v854_v42  ;;  %1080 = vmatpush.msrb.mxu0 %v7376_v31 }
  0xcb   : > { %v985_v40 = vadd.f32 %v983_v38, %v976_v30 }
  0xcc   : > { %v858_v51 = vmul.f32 %v856_v47, %v833_v14  ;;  %1205 = vmatpush.msra.mxu0 %v7240_v1 }
  0xcd   : > { %v987_v41 = vmul.f32 0.7978846, %v985_v40 }
  0xce   : > { %1206 = vmatpush.msra.mxu0 %v7242_v2 }
  0xcf   : > { %v6446_v43 = vpop.eup %6445  ;;  %6449 = vtanh.f32 %v987_v41  ;;  %v7398_v41 = vpop.permute.xlu1 %924 }
  0xd0   : > { %v855_v44 = vadd.f32 1.0, %v6446_v43  ;;  %v6448_v45 = vpop.eup %6447  ;;  %1207 = vmatpush.msra.mxu0 %v7246_v3 }
  0xd1   : > { %v990_v49 = vadd.f32 1.0, %v6448_v45 }
  0xd2   : > { %v857_v46 = vmul.f32 0.5, %v855_v44  ;;  %1208 = vmatpush.msra.mxu0 %v7253_v5 }
  0xd3   : > { %v992_v54 = vmul.f32 0.5, %v990_v49 }
  0xd4   : > { %v859_v48 = vmul.f32 %v857_v46, %v836_v22  ;;  %v7338_v22 = vld [vmem:[#allocation2 + $0x58] sm:$0xff] }
  0xd5   : > { %v6450_v50 = vpop.eup %6449  ;;  %v994_v57 = vmul.f32 %v992_v54, %v973_v18  ;;  %v7324_v18 = vld [vmem:[#allocation2 + $0x78] sm:$0xff] }
  0xd6   : > { %878 = vmatpush.msra.mxu1 %v859_v48  ;;  %v991_v52 = vadd.f32 1.0, %v6450_v50  ;;  %1096 = vmatpush.msrb.mxu3 %v7324_v18  ;;  %v7400_v50 = vpop.permute.xlu2 %929 }
  0xd8   : > { %879 = vmatpush.msra.mxu1 %v858_v51  ;;  %v993_v53 = vmul.f32 0.5, %v991_v52  ;;  %1097 = vmatpush.msrb.mxu3 %v7330_v20 }
  0xd9   : > { %6086 = vmatmul.msk.f32.vlgmr.msra.gmra.mxu1 %vm860_vm1, %v7036_v55 }
  0xda   : > { %v995_v56 = vmul.f32 %v993_v53, %v976_v30  ;;  %1098 = vmatpush.msrb.mxu3 %v7338_v22  ;;  %v7370_v30 = vld [vmem:[#allocation2 + $0x18] sm:$0xff]  ;;  %v7403_v53 = vpop.permute.xlu1 %936 }
  0xdc   : > { %1010 = vmatpush.msrb.mxu1 %v995_v56  ;;  %1099 = vmatpush.msrb.mxu3 %v7346_v24 }
  0xde   : > { %1011 = vmatpush.msrb.mxu1 %v994_v57  ;;  %1100 = vmatpush.msrb.mxu3 %v7354_v26 }
  0xe0   : > { %1146 = vmatpush.msra.mxu1 %v7322_v17  ;;  %1101 = vmatpush.msrb.mxu3 %v7362_v28 }
  0xe1   : > { %6092 = vmatmul.msk.f32.vlgmr.msrb.gmra.mxu1 %vm860_vm1, %v7036_v55 }
  0xe2   : > { %1147 = vmatpush.msra.mxu1 %v7328_v19  ;;  %1102 = vmatpush.msrb.mxu3 %v7370_v30 }
  0xe4   : > { %1148 = vmatpush.msra.mxu1 %v7336_v21  ;;  %1103 = vmatpush.msrb.mxu3 %v7378_v32 }
  0xe6   : > { %1149 = vmatpush.msra.mxu1 %v7344_v23 }
  0xe8   : > { %1150 = vmatpush.msra.mxu1 %v7352_v25 }
  0xea   : > { %1151 = vmatpush.msra.mxu1 %v7360_v27 }
  0xec   : > { %1152 = vmatpush.msra.mxu1 %v7368_v29 }
  0xee   : > { %1153 = vmatpush.msra.mxu1 %v7376_v31 }
 0x156   : > { %v881_v62 = vpop.f32.mrf.mxu1 }
 0x157   : > { %v884_v63 = vperm.slane %v881_v62, 0 }
 0x159   : > { %v7302_v4 = vsub.f32 %v859_v48, %v884_v63  ;;  %v7304_v6 = vsub.f32 %v858_v51, %v884_v63  ;;  %v7414_v63 = vpop.permute.xlu2 %941 }
 0x15b   : > { %v888_v7 = vmul.f32 %v7302_v4, %v7302_v4  ;;  %v887_v8 = vmul.f32 %v7304_v6, %v7304_v6 }
 0x15d   : > { %903 = vmatpush.msra.mxu2 %v888_v7 }
 0x15e   : > { %v1013_v9 = vpop.f32.mrf.mxu1 }
 0x15f   : > { %v1016_v10 = vperm.slane %v1013_v9, 0  ;;  %904 = vmatpush.msra.mxu2 %v887_v8 }
 0x160   : > { %6087 = vmatmul.msk.f32.vlgmr.msra.gmra.mxu2 %vm860_vm1, %v7036_v55 }
 0x161   : > { %v7312_v13 = vsub.f32 %v995_v56, %v1016_v10  ;;  %v7314_v14 = vsub.f32 %v994_v57, %v1016_v10 }
 0x163   : > { %v1020_v15 = vmul.f32 %v7312_v13, %v7312_v13  ;;  %v1019_v16 = vmul.f32 %v7314_v14, %v7314_v14 }
 0x165   : > { %1035 = vmatpush.msrb.mxu2 %v1020_v15 }
 0x167   : > { %1036 = vmatpush.msrb.mxu2 %v1019_v16 }
 0x168   : > { %6093 = vmatmul.msk.f32.vlgmr.msrb.gmra.mxu2 %vm860_vm1, %v7036_v55 }
 0x169   : > { %1169 = vmatpush.msra.mxu2 %v7324_v18 }
 0x16b   : > { %1170 = vmatpush.msra.mxu2 %v7330_v20 }
 0x16d   : > { %1171 = vmatpush.msra.mxu2 %v7338_v22 }
 0x16f   : > { %1172 = vmatpush.msra.mxu2 %v7346_v24 }
 0x171   : > { %1173 = vmatpush.msra.mxu2 %v7354_v26 }
 0x173   : > { %1174 = vmatpush.msra.mxu2 %v7362_v28 }
 0x175   : > { %1175 = vmatpush.msra.mxu2 %v7370_v30 }
 0x177   : > { %1176 = vmatpush.msra.mxu2 %v7378_v32 }
 0x179   : > { %1310 = vmatpush.msrb.mxu2 %v7322_v17 }
 0x17b   : > { %1311 = vmatpush.msrb.mxu2 %v7328_v19 }
 0x17d   : > { %1312 = vmatpush.msrb.mxu2 %v7336_v21 }
 0x17f   : > { %1313 = vmatpush.msrb.mxu2 %v7344_v23 }
 0x181   : > { %1314 = vmatpush.msrb.mxu2 %v7352_v25 }
 0x183   : > { %1315 = vmatpush.msrb.mxu2 %v7360_v27 }
 0x185   : > { %1316 = vmatpush.msrb.mxu2 %v7368_v29 }
 0x187   : > { %1317 = vmatpush.msrb.mxu2 %v7376_v31 }
 0x1e3   : > { %v906_v33 = vpop.f32.mrf.mxu2 }
 0x1e4   : > { %v907_v34 = vadd.f32 1e-05, %v906_v33 }
 0x1e6   : > { %6451 = vrsqrt.f32 %v907_v34  ;;  %vm915_vm3 = vweird.f32 %v907_v34 }
 0x1eb   : > { %v1038_v35 = vpop.f32.mrf.mxu2 }
 0x1ec   : > { %v6452_v36 = vpop.eup %6451  ;;  %v1039_v37 = vadd.f32 1e-05, %v1038_v35 }
 0x1ed   : > { %v910_v38 = vmul.f32 %v6452_v36, %v907_v34  ;;  %vm916_vm2 = vweird.f32 %v6452_v36 }
 0x1ee   : > { %6453 = vrsqrt.f32 %v1039_v37  ;;  %vm917_vm4 = vmor %vm915_vm3, %vm916_vm2  ;;  %vm1047_vm6 = vweird.f32 %v1039_v37  ;;  %vm1548_vm2 = vcmask 138240  }
 0x1ef   : > { %v911_v39 = vmul.f32 %v6452_v36, %v910_v38 }
 0x1f1   : > { %v912_v40 = vmul.f32 0.5, %v911_v39 }
 0x1f3   : > { %v913_v42 = vsub.f32 1.5, %v912_v40 }
 0x1f4   : > { %v6454_v43 = vpop.eup %6453 }
 0x1f5   : > { %v914_v44 = vmul.f32 %v6452_v36, %v913_v42  ;;  %v1042_v45 = vmul.f32 %v6454_v43, %v1039_v37  ;;  %vm1048_vm5 = vweird.f32 %v6454_v43 }
 0x1f6   : > { %vm1049_vm8 = vmor %vm1047_vm6, %vm1048_vm5 }
 0x1f7   : > { %v918_v46 = vsel %vm917_vm4, %v6452_v36, %v914_v44  ;;  %v1043_v47 = vmul.f32 %v6454_v43, %v1042_v45  ;;  %vm1705_vm4 = vcmask 916480  }
 0x1f8   : > { %v919_v48 = vperm.slane %v918_v46, 0 }
 0x1f9   : > { %v1044_v49 = vmul.f32 0.5, %v1043_v47 }
 0x1fa   : > { %v920_v51 = vmul.f32 %v919_v48, %v7304_v6  ;;  %v921_v59 = vmul.f32 %v919_v48, %v7302_v4 }
 0x1fb   : > { %v1045_v52 = vsub.f32 1.5, %v1044_v49 }
 0x1fc   : > { %v932_v54 = vmul.f32 %v7398_v41, %v920_v51  ;;  %v933_v62 = vmul.f32 %v7400_v50, %v921_v59  ;;  %v6112_v51 = vld [vmem:[%s11369_s6 + $0x30] sm:$0xff] }
 0x1fd   : > { %v1046_v56 = vmul.f32 %v6454_v43, %v1045_v52 }
 0x1fe   : > { %v944_v57 = vadd.f32 %v7403_v53, %v932_v54  ;;  %v945_v8 = vadd.f32 %v7414_v63, %v933_v62 }
 0x1ff   : > { %v1050_v58 = vsel %vm1049_vm8, %v6454_v43, %v1046_v56  ;;  %vm1663_vm8 = vcmask 1039360  }
 0x200   : > { %v1051_v60 = vperm.slane %v1050_v58, 0  ;;  %6098 = vmatmul.msk.f32.vlgmr.msra.gmra.mxu1 %vm1058_vm7, %v944_v57  ;;  %6100 = vmatmul.msk.f32.vlgmr.msra.gmra.mxu2 %vm1058_vm7, %v944_v57 }
 0x201   : > { %1498 = vmatpush.msra.mxu2 %v7322_v17 }
 0x202   : > { %v1052_v61 = vmul.f32 %v1051_v60, %v7314_v14  ;;  %v1053_v7 = vmul.f32 %v1051_v60, %v7312_v13  ;;  %v6102_v13 = vld [vmem:[%s11369_s6 + $0x20] sm:$0xff]  ;;  %v6103_v14 = vld [vmem:[%s11369_s6 + $0x28] sm:$0xff] }
 0x203   : > { %1499 = vmatpush.msra.mxu2 %v7328_v19 }
 0x204   : > { %v1054_v6 = vmul.f32 %v1052_v61, %v7398_v41  ;;  %v1055_v9 = vmul.f32 %v1053_v7, %v7400_v50 }
 0x205   : > { %1500 = vmatpush.msra.mxu2 %v7336_v21 }
 0x206   : > { %v1056_v4 = vadd.f32 %v1054_v6, %v7403_v53  ;;  %v1057_v10 = vadd.f32 %v1055_v9, %v7414_v63 }
 0x207   : > { %1501 = vmatpush.msra.mxu2 %v7344_v23 }
 0x208   : > { %6094 = vmatmul.msk.f32.vlgmr.msrb.gmra.mxu0 %vm1058_vm7, %v1056_v4  ;;  %6096 = vmatmul.msk.f32.vlgmr.msrb.gmra.mxu3 %vm1058_vm7, %v1056_v4 }
 0x209   : > { %6099 = vmatmul.msk.f32.gmra.mxu1 %vm1058_vm7, %v945_v8  ;;  %6101 = vmatmul.msk.f32.gmra.mxu2 %vm1058_vm7, %v945_v8 }
 0x20a   : > { %1333 = vmatpush.msrb.mxu0 %v7324_v18  ;;  %1502 = vmatpush.msra.mxu2 %v7352_v25 }
 0x20c   : > { %1334 = vmatpush.msrb.mxu0 %v7330_v20  ;;  %1503 = vmatpush.msra.mxu2 %v7360_v27 }
 0x20e   : > { %1335 = vmatpush.msrb.mxu0 %v7338_v22  ;;  %1504 = vmatpush.msra.mxu2 %v7368_v29 }
 0x210   : > { %6095 = vmatmul.msk.f32.gmra.mxu0 %vm1058_vm7, %v1057_v10  ;;  %6097 = vmatmul.msk.f32.gmra.mxu3 %vm1058_vm7, %v1057_v10 }
 0x211   : > { %1336 = vmatpush.msrb.mxu0 %v7346_v24  ;;  %1505 = vmatpush.msra.mxu2 %v7376_v31 }
 0x213   : > { %1337 = vmatpush.msrb.mxu0 %v7354_v26 }
 0x215   : > { %1338 = vmatpush.msrb.mxu0 %v7362_v28 }
 0x217   : > { %1339 = vmatpush.msrb.mxu0 %v7370_v30 }
 0x218   : > { %6104 = vmatmul.msk.f32.vlgmr.msra.gmra.mxu0 %vm808_vm0, %v6102_v13 }
 0x219   : > { %1340 = vmatpush.msrb.mxu0 %v7378_v32 }
 0x220   : > { %6105 = vmatmul.msk.f32.gmra.mxu0 %vm808_vm0, %v6103_v14 }
 0x285   : > { %v1082_v15 = vpop.f32.mrf.mxu0 }
 0x286   : > { %1115 = vrot.lane.b32.xlu2 %v1082_v15, %s7037_s21 }
 0x28b   : > { %v1105_v16 = vpop.f32.mrf.mxu3 }
 0x28c   : > { %1117 = vrot.lane.b32.xlu0 %v1105_v16, %s7037_s21 }
 0x28d   : > { %v1085_v17 = vpop.f32.mrf.mxu0 }
 0x293   : > { %v1108_v19 = vpop.f32.mrf.mxu3 }
 0x294   : > { %1121 = vrot.lane.b32.xlu1 %v1108_v19, %s7037_s21  ;;  %1119 = vrot.lane.b32.xlu0 %v1085_v17, %s7037_s21 }
 0x295   : > { %v1210_v21 = vpop.f32.mrf.mxu0 }
 0x296   : > { %v1211_v23 = vadd.f32 %v1210_v21, %v7280_v12 }
 0x298   : > { %v1216_v25 = vmul.f32 %v1211_v23, %v1211_v23 }
 0x29a   : > { %v1218_v27 = vmul.f32 %v1216_v25, %v1211_v23 }
 0x29c   : > { %v1220_v29 = vmul.f32 0.044715, %v1218_v27 }
 0x29d   : > { %v1213_v31 = vpop.f32.mrf.mxu0 }
 0x29e   : > { %v1214_v33 = vadd.f32 %v1213_v31, %v7278_v11  ;;  %v1222_v34 = vadd.f32 %v1220_v29, %v1211_v23 }
 0x2a0   : > { %v1217_v35 = vmul.f32 %v1214_v33, %v1214_v33  ;;  %v1224_v37 = vmul.f32 0.7978846, %v1222_v34 }
 0x2a2   : > { %v1219_v36 = vmul.f32 %v1217_v35, %v1214_v33  ;;  %6455 = vtanh.f32 %v1224_v37 }
 0x2a4   : > { %v1221_v38 = vmul.f32 0.044715, %v1219_v36 }
 0x2a6   : > { %v1223_v39 = vadd.f32 %v1221_v38, %v1214_v33 }
 0x2a8   : > { %v1225_v40 = vmul.f32 0.7978846, %v1223_v39  ;;  %v6456_v42 = vpop.eup %6455 }
 0x2a9   : > { %v1228_v43 = vadd.f32 1.0, %v6456_v42 }
 0x2aa   : > { %6457 = vtanh.f32 %v1225_v40 }
 0x2ab   : > { %v1230_v47 = vmul.f32 0.5, %v1228_v43 }
 0x2ad   : > { %v1232_v49 = vmul.f32 %v1230_v47, %v1211_v23 }
 0x2b0   : > { %v6458_v44 = vpop.eup %6457 }
 0x2b1   : > { %v1229_v45 = vadd.f32 1.0, %v6458_v44 }
 0x2b3   : > { %v1231_v46 = vmul.f32 0.5, %v1229_v45 }
 0x2b5   : > { %v1233_v48 = vmul.f32 %v1231_v46, %v1214_v33  ;;  %v1178_v46 = vpop.f32.mrf.mxu2 }
 0x2b7   : > { %1248 = vmatpush.msra.mxu3 %v1233_v48 }
 0x2b9   : > { %1249 = vmatpush.msra.mxu3 %v1232_v49 }
 0x2ba   : > { %6106 = vmatmul.msk.f32.vlgmr.msra.gmra.mxu3 %vm860_vm1, %v7036_v55 }
 0x2bb   : > { %1393 = vmatpush.msrb.mxu3 %v7240_v1  ;;  %v6113_v1 = vld [vmem:[%s11369_s6 + $0x38] sm:$0xff] }
 0x2bd   : > { %1394 = vmatpush.msrb.mxu3 %v7242_v2  ;;  %v7498_v47 = vpop.f32.mrf.mxu2 }
 0x2bf   : > { %1395 = vmatpush.msrb.mxu3 %v7246_v3 }
 0x2c1   : > { %1396 = vmatpush.msrb.mxu3 %v7253_v5 }
 0x2c2   : > { %6114 = vmatmul.msk.f32.vlgmr.msrb.gmra.mxu3 %vm808_vm0, %v6112_v51 }
 0x2c3   : > { %1521 = vmatpush.msra.mxu3 %v7324_v18 }
 0x2c5   : > { %1522 = vmatpush.msra.mxu3 %v7330_v20 }
 0x2c7   : > { %1523 = vmatpush.msra.mxu3 %v7338_v22 }
 0x2c9   : > { %1524 = vmatpush.msra.mxu3 %v7346_v24 }
 0x2ca   : > { %6115 = vmatmul.msk.f32.gmra.mxu3 %vm808_vm0, %v6113_v1 }
 0x2cb   : > { %1525 = vmatpush.msra.mxu3 %v7354_v26 }
 0x2cd   : > { %1526 = vmatpush.msra.mxu3 %v7362_v28 }
 0x2cf   : > { %1527 = vmatpush.msra.mxu3 %v7370_v30 }
 0x2d1   : > { %1528 = vmatpush.msra.mxu3 %v7378_v32 }
 0x33d   : > { %v1251_v2 = vpop.f32.mrf.mxu3 }
 0x33e   : > { %v1254_v3 = vperm.slane %v1251_v2, 0 }
 0x340   : > { %v1255_v5 = vsub.f32 %v1232_v49, %v1254_v3  ;;  %v1256_v18 = vsub.f32 %v1233_v48, %v1254_v3 }
 0x342   : > { %v1258_v20 = vmul.f32 %v1256_v18, %v1256_v18  ;;  %v1257_v52 = vmul.f32 %v1255_v5, %v1255_v5 }
 0x344   : > { %1273 = vmatpush.msrb.mxu1 %v1258_v20 }
 0x345   : > { %v1398_v22 = vpop.f32.mrf.mxu3 }
 0x346   : > { %v1399_v24 = vadd.f32 %v1398_v22, %v7280_v12  ;;  %1274 = vmatpush.msrb.mxu1 %v1257_v52 }
 0x347   : > { %6107 = vmatmul.msk.f32.vlgmr.msrb.gmra.mxu1 %vm860_vm1, %v7036_v55 }
 0x348   : > { %v1404_v26 = vmul.f32 %v1399_v24, %v1399_v24 }
 0x34a   : > { %v1406_v28 = vmul.f32 %v1404_v26, %v1399_v24 }
 0x34c   : > { %v1408_v54 = vmul.f32 0.044715, %v1406_v28 }
 0x34d   : > { %v1401_v30 = vpop.f32.mrf.mxu3 }
 0x34e   : > { %v1402_v32 = vadd.f32 %v1401_v30, %v7278_v11  ;;  %v1410_v56 = vadd.f32 %v1408_v54, %v1399_v24  ;;  %v7484_v11 = vpop.f32.mrf.mxu1 }
 0x350   : > { %v1405_v57 = vmul.f32 %v1402_v32, %v1402_v32  ;;  %v1412_v59 = vmul.f32 0.7978846, %v1410_v56 }
 0x352   : > { %v1407_v58 = vmul.f32 %v1405_v57, %v1402_v32  ;;  %6459 = vtanh.f32 %v1412_v59 }
 0x354   : > { %v1409_v60 = vmul.f32 0.044715, %v1407_v58 }
 0x356   : > { %v1411_v61 = vadd.f32 %v1409_v60, %v1402_v32  ;;  %v7486_v14 = vpop.f32.mrf.mxu1 }
 0x358   : > { %v1413_v62 = vmul.f32 0.7978846, %v1411_v61  ;;  %v6460_v12 = vpop.eup %6459  ;;  %v1122_v61 = vpop.permute.xlu1 %1121 }
 0x359   : > { %v1416_v6 = vadd.f32 1.0, %v6460_v12 }
 0x35a   : > { %6461 = vtanh.f32 %v1413_v62 }
 0x35b   : > { %v1418_v9 = vmul.f32 0.5, %v1416_v6 }
 0x35d   : > { %v1420_v13 = vmul.f32 %v1418_v9, %v1399_v24 }
 0x360   : > { %v6462_v4 = vpop.eup %6461 }
 0x361   : > { %v1417_v7 = vadd.f32 1.0, %v6462_v4 }
 0x363   : > { %v1419_v8 = vmul.f32 0.5, %v1417_v7 }
 0x365   : > { %v1421_v10 = vmul.f32 %v1419_v8, %v1402_v32 }
 0x367   : > { %1436 = vmatpush.msra.mxu1 %v1421_v10 }
 0x369   : > { %1437 = vmatpush.msra.mxu1 %v1420_v13 }
 0x36a   : > { %6116 = vmatmul.msk.f32.vlgmr.msra.gmra.mxu1 %vm860_vm1, %v7036_v55 }
 0x3c4   : > { %v1276_v15 = vpop.f32.mrf.mxu1 }
 0x3c5   : > { %v1277_v16 = vadd.f32 1e-05, %v1276_v15 }
 0x3c7   : > { %6463 = vrsqrt.f32 %v1277_v16  ;;  %vm1285_vm9 = vweird.f32 %v1277_v16 }
 0x3cd   : > { %v6464_v17 = vpop.eup %6463 }
 0x3ce   : > { %v1280_v19 = vmul.f32 %v6464_v17, %v1277_v16  ;;  %vm1286_vm10 = vweird.f32 %v6464_v17 }
 0x3cf   : > { %vm1287_vm11 = vmor %vm1285_vm9, %vm1286_vm10  ;;  %vm1722_vm10 = vcmask 908288  }
 0x3d0   : > { %v1281_v21 = vmul.f32 %v6464_v17, %v1280_v19 }
 0x3d2   : > { %v1282_v23 = vmul.f32 0.5, %v1281_v21 }
 0x3d4   : > { %v1283_v25 = vsub.f32 1.5, %v1282_v23 }
 0x3d6   : > { %v1284_v27 = vmul.f32 %v6464_v17, %v1283_v25 }
 0x3d8   : > { %v1288_v29 = vsel %vm1287_vm11, %v6464_v17, %v1284_v27 }
 0x3d9   : > { %v1289_v31 = vperm.slane %v1288_v29, 0 }
 0x3db   : > { %v1290_v33 = vmul.f32 %v1289_v31, %v1255_v5  ;;  %v1291_v36 = vmul.f32 %v1289_v31, %v1256_v18 }
 0x3dd   : > { %v1292_v34 = vmul.f32 %v1290_v33, %v7398_v41  ;;  %v1293_v37 = vmul.f32 %v1291_v36, %v7400_v50 }
 0x3df   : > { %v1294_v35 = vadd.f32 %v1292_v34, %v7403_v53  ;;  %v1295_v39 = vadd.f32 %v1293_v37, %v7414_v63 }
 0x3e1   : > { %6108 = vmatmul.msk.f32.vlgmr.msrb.gmra.mxu2 %vm1058_vm7, %v1294_v35  ;;  %6110 = vmatmul.msk.f32.vlgmr.msrb.gmra.mxu0 %vm1058_vm7, %v1294_v35 }
 0x3e7   : > { %v1439_v38 = vpop.f32.mrf.mxu1 }
 0x3e8   : > { %v1442_v40 = vperm.slane %v1439_v38, 0 }
 0x3e9   : > { %6109 = vmatmul.msk.f32.gmra.mxu2 %vm1058_vm7, %v1295_v39  ;;  %6111 = vmatmul.msk.f32.gmra.mxu0 %vm1058_vm7, %v1295_v39 }
 0x3ea   : > { %v1443_v42 = vsub.f32 %v1420_v13, %v1442_v40  ;;  %v1444_v43 = vsub.f32 %v1421_v10, %v1442_v40 }
 0x3ec   : > { %v1446_v44 = vmul.f32 %v1444_v43, %v1444_v43  ;;  %v1445_v45 = vmul.f32 %v1443_v42, %v1443_v42 }
 0x3ee   : > { %1461 = vmatpush.msrb.mxu1 %v1446_v44 }
 0x3f0   : > { %1462 = vmatpush.msrb.mxu1 %v1445_v45 }
 0x3f1   : > { %6117 = vmatmul.msk.f32.vlgmr.msrb.gmra.mxu1 %vm860_vm1, %v7036_v55 }
 0x45e   : > { %v1342_v48 = vpop.f32.mrf.mxu0 }
 0x45f   : > { %1354 = vrot.lane.b32.xlu1 %v1342_v48, %s7038_s0  ;;  %v1739_v48 = vld [vmem:[%s11372_s4] sm:$0xff]  ;;  %s12131_s4 = sld [smem:[#allocation226_spill]] }
 0x464   : > { %v1319_v49 = vpop.f32.mrf.mxu2 }
 0x465   : > { %1352 = vrot.lane.b32.xlu0 %v1319_v49, %s7038_s0  ;;  %v1740_v49 = vld [vmem:[%s11373_s2 + $0x8] sm:$0xff] }
 0x466   : > { %v1345_v51 = vpop.f32.mrf.mxu0 }
 0x467   : > { %1358 = vrot.lane.b32.xlu2 %v1345_v51, %s7038_s0  ;;  %v1850_v51 = vld [vmem:[%s10974_s8 + $0x8] sm:$0xff] }
 0x46c   : > { %v1322_v1 = vpop.f32.mrf.mxu2 }
 0x46d   : > { %1356 = vrot.lane.b32.xlu1 %v1322_v1, %s7038_s0  ;;  %v1852_v1 = vld [vmem:[%s10975_s9 + $0x8] sm:$0xff] }
 0x46e   : > { %v1464_v2 = vpop.f32.mrf.mxu1 }
 0x46f   : > { %v1465_v3 = vadd.f32 1e-05, %v1464_v2  ;;  %v1849_v2 = vld [vmem:[%s10974_s8] sm:$0xff] }
 0x471   : > { %6465 = vrsqrt.f32 %v1465_v3  ;;  %vm1473_vm13 = vweird.f32 %v1465_v3 }
 0x477   : > { %v6466_v5 = vpop.eup %6465 }
 0x478   : > { %v1468_v18 = vmul.f32 %v6466_v5, %v1465_v3  ;;  %vm1474_vm12 = vweird.f32 %v6466_v5  ;;  %v1851_v3 = vld [vmem:[%s10975_s9] sm:$0xff] }
 0x479   : > { %vm1475_vm14 = vmor %vm1473_vm13, %vm1474_vm12  ;;  %vm1616_vm13 = vcmask 121856  }
 0x47a   : > { %v1469_v20 = vmul.f32 %v6466_v5, %v1468_v18  ;;  %v2339_v18 = vld [vmem:[%s10979_s13] sm:$0xff] }
 0x47c   : > { %v1470_v52 = vmul.f32 0.5, %v1469_v20  ;;  %v2290_v20 = vld [vmem:[%s10978_s12] sm:$0xff] }
 0x47e   : > { %v1471_v22 = vsub.f32 1.5, %v1470_v52  ;;  %v2340_v52 = vld [vmem:[%s10980_s14] sm:$0xff] }
 0x480   : > { %v1472_v24 = vmul.f32 %v6466_v5, %v1471_v22 }
 0x482   : > { %v1476_v26 = vsel %vm1475_vm14, %v6466_v5, %v1472_v24  ;;  %vm6130_vm14 = vmneg %vm860_vm1 }
 0x483   : > { %v1477_v28 = vperm.slane %v1476_v26, 0 }
 0x485   : > { %v1478_v54 = vmul.f32 %v1477_v28, %v1443_v42  ;;  %v1479_v56 = vmul.f32 %v1477_v28, %v1444_v43 }
 0x487   : > { %v1480_v30 = vmul.f32 %v1478_v54, %v7398_v41  ;;  %v1481_v57 = vmul.f32 %v1479_v56, %v7400_v50  ;;  %v1118_v50 = vpop.permute.xlu0 %1117 }
 0x489   : > { %v1482_v32 = vadd.f32 %v1480_v30, %v7403_v53  ;;  %v1483_v58 = vadd.f32 %v1481_v57, %v7414_v63  ;;  %v1116_v63 = vpop.permute.xlu2 %1115  ;;  %v1561_v57 = vld [vmem:[#allocation4] sm:$0x3] }
 0x48a   : > { %v1124_v8 = vsel %vm1123_vm15, %v1116_v63, %v1118_v50  ;;  %v1130_v21 = vsel %vm1123_vm15, 0.0, %v1116_v63  ;;  %vm1582_vm3 = vcmp.ge.s32.totalorder %v1561_v57, 1  ;;  %vm1625_vm5 = vcmp.le.s32.totalorder %v1561_v57, 14 }
 0x48b   : > { %6118 = vmatmul.msk.f32.vlgmr.msra.gmra.mxu2 %vm1058_vm7, %v1482_v32  ;;  %6120 = vmatmul.msk.f32.vlgmr.msra.gmra.mxu3 %vm1058_vm7, %v1482_v32  ;;  %v1179_v10 = vadd.f32 %v1178_v46, %v1124_v8  ;;  %v1156_v25 = vadd.f32 %v7484_v11, %v1130_v21  ;;  %v1626_v50 = vsel %vm1625_vm5, 1, %v11000_v0 }
 0x48c   : > { %v1628_v63 = vperm.slane %v1626_v50, 1 }
 0x48e   : > { %vm7652_vm9 = vcmp.eq.s32.totalorder %v1628_v63, 1 }
 0x48f   : > { %v1120_v12 = vpop.permute.xlu0 %1119 }
 0x490   : > { %v1125_v33 = vsel %vm1123_vm15, %v1120_v12, %v1122_v61  ;;  %v1131_v40 = vsel %vm1123_vm15, 0.0, %v1120_v12 }
 0x491   : > { %v1182_v11 = vadd.f32 %v7498_v47, %v1125_v33  ;;  %v1159_v43 = vadd.f32 %v7486_v14, %v1131_v40  ;;  %v1627_v33 = vperm.slane %v1626_v50, 0 }
 0x493   : > { %6119 = vmatmul.msk.f32.gmra.mxu2 %vm1058_vm7, %v1483_v58  ;;  %6121 = vmatmul.msk.f32.gmra.mxu3 %vm1058_vm7, %v1483_v58  ;;  %vm1684_vm7 = vcmask 924672   ;;  %vm7687_vm12 = vcmp.eq.s32.totalorder %v1627_v33, 1 }
 0x4c1   : > { %v1359_v6 = vpop.permute.xlu2 %1358 }
 0x4d1   : > { %v1355_v62 = vpop.permute.xlu1 %1354 }
 0x4d7   : > { %v1353_v7 = vpop.permute.xlu0 %1352 }
 0x4d8   : > { %v1360_v9 = vsel %vm860_vm1, %v1353_v7, %v1355_v62  ;;  %v1366_v23 = vsel %vm860_vm1, 0.0, %v1353_v7 }
 0x4d9   : > { %v1369_v13 = vadd.f32 %v1360_v9, %v1179_v10  ;;  %v1368_v29 = vadd.f32 %v1366_v23, %v1156_v25 }
 0x4df   : > { %v1357_v4 = vpop.permute.xlu1 %1356 }
 0x4e0   : > { %v1361_v35 = vsel %vm860_vm1, %v1357_v4, %v1359_v6  ;;  %v1367_v42 = vsel %vm860_vm1, 0.0, %v1357_v4 }
 0x4e1   : > { %v1371_v38 = vadd.f32 %v1361_v35, %v1182_v11  ;;  %v1370_v45 = vadd.f32 %v1367_v42, %v1159_v43 }
 0x50e   : > { %v1507_v59 = vpop.f32.mrf.mxu2  ;;  %v1530_v60 = vpop.f32.mrf.mxu3 }
 0x50f   : > { %1542 = vrot.lane.b32.xlu2 %v1530_v60, %s7039_s26  ;;  %1540 = vrot.lane.b32.xlu1 %v1507_v59, %s7039_s26  ;;  %v1583_v60 = vsel %vm1582_vm3, 1, %v11000_v0 }
 0x510   : > { %v1584_v25 = vperm.slane %v1583_v60, 0 }
 0x512   : > { %vm7670_vm11 = vcmp.eq.s32.totalorder %v1584_v25, 1 }
 0x516   : > { %v1510_v41 = vpop.f32.mrf.mxu2  ;;  %v1533_v53 = vpop.f32.mrf.mxu3 }
 0x517   : > { %1546 = vrot.lane.b32.xlu0 %v1533_v53, %s7039_s26  ;;  %1544 = vrot.lane.b32.xlu2 %v1510_v41, %s7039_s26  ;;  %v1585_v53 = vperm.slane %v1583_v60, 1 }
 0x519   : > { %vm7644_vm6 = vcmp.eq.s32.totalorder %v1585_v53, 1 }
 0x569   : > { %v1543_v15 = vpop.permute.xlu2 %1542 }
 0x571   : > { %v1545_v36 = vpop.permute.xlu2 %1544 }
 0x572   : > { %v1556_v44 = vsel %vm1548_vm2, 0.0, %v1545_v36 }
 0x573   : > { %v7561_v46 = vadd.f32 %v1556_v44, %v1370_v45 }
 0x581   : > { %v1541_v16 = vpop.permute.xlu1 %1540 }
 0x582   : > { %v1549_v17 = vsel %vm1548_vm2, %v1541_v16, %v1543_v15  ;;  %v1555_v27 = vsel %vm1548_vm2, 0.0, %v1541_v16 }
 0x583   : > { %v7519_v19 = vadd.f32 %v1549_v17, %v1369_v13  ;;  %v7531_v31 = vadd.f32 %v1555_v27, %v1368_v29 }
 0x585   : > { %1657 = vrot.lane.b32.xlu1 %v7519_v19, %s10998_s7  ;;  %1678 = vrot.lane.b32.xlu0 %v7519_v19, %s7041_s3  ;;  %v6403_v47 = vpack.i.bf16 %v7531_v31, %v7561_v46 }
 0x586   : > { %1699 = vrot.lane.b32.xlu2 %v7519_v19, %s7042_s30 }
 0x589   : > { %v1547_v34 = vpop.permute.xlu0 %1546 }
 0x58a   : > { %v1550_v37 = vsel %vm1548_vm2, %v1545_v36, %v1547_v34 }
 0x58b   : > { %v7543_v39 = vadd.f32 %v1550_v37, %v1371_v38 }
 0x58d   : > { %1608 = vrot.lane.b32.xlu1 %v7531_v31, %s7043_s24  ;;  %1655 = vrot.lane.b32.xlu0 %v7531_v31, %s10998_s7  ;;  %v6408_v14 = vpack.i.bf16 %v7519_v19, %v7543_v39 }
 0x58e   : > { %1676 = vrot.lane.b32.xlu2 %v7531_v31, %s7041_s3 }
 0x595   : > { %1703 = vrot.lane.b32.xlu1 %v7543_v39, %s7042_s30  ;;  %1635 = vrot.lane.b32.xlu0 %v7531_v31, %s7037_s21 }
 0x596   : > { %1566 = vrot.lane.b32.xlu2 %v7531_v31, %s7039_s26 }
 0x59d   : > { %1682 = vrot.lane.b32.xlu1 %v7543_v39, %s7041_s3  ;;  %1637 = vrot.lane.b32.xlu0 %v7519_v19, %s7037_s21 }
 0x59e   : > { %1661 = vrot.lane.b32.xlu2 %v7543_v39, %s10998_s7 }
 0x5a5   : > { %1659 = vrot.lane.b32.xlu1 %v7561_v46, %s10998_s7  ;;  %6404 = vrot.lane.b32.xlu0 %v6403_v47, %s7042_s30  ;;  %s12083_s7 = smov 127   ;;  %s7048_s30 = smov 95  }
 0x5a6   : > { %1639 = vrot.lane.b32.xlu2 %v7561_v46, %s7037_s21 }
 0x5ad   : > { %1641 = vrot.lane.b32.xlu1 %v7543_v39, %s7037_s21  ;;  %1680 = vrot.lane.b32.xlu0 %v7561_v46, %s7041_s3  ;;  %s7047_s3 = smov 33  }
 0x5ae   : > { %1612 = vrot.lane.b32.xlu2 %v7561_v46, %s7043_s24 }
 0x5b5   : > { %1596 = vrot.lane.b32.xlu1 %v7561_v46, %s7038_s0  ;;  %1610 = vrot.lane.b32.xlu0 %v7519_v19, %s7043_s24 }
 0x5b6   : > { %1614 = vrot.lane.b32.xlu2 %v7543_v39, %s7043_s24  ;;  %s7049_s24 = smov 31  }
 0x5bd   : > { %1570 = vrot.lane.b32.xlu1 %v7561_v46, %s7039_s26  ;;  %1592 = vrot.lane.b32.xlu0 %v7531_v31, %s7038_s0 }
 0x5be   : > { %6409 = vrot.lane.b32.xlu2 %v6408_v14, %s7038_s0  ;;  %s7046_s0 = smov 32  }
 0x5c5   : > { %1718 = vrot.lane.b32.xlu1 %v7561_v46, %s7044_s25  ;;  %1572 = vrot.lane.b32.xlu0 %v7543_v39, %s7039_s26 }
 0x5c6   : > { %1720 = vrot.lane.b32.xlu2 %v7543_v39, %s7044_s25 }
 0x5cd   : > { %1714 = vrot.lane.b32.xlu1 %v7531_v31, %s7044_s25  ;;  %1568 = vrot.lane.b32.xlu0 %v7519_v19, %s7039_s26  ;;  %s7050_s26 = smov 97  }
 0x5ce   : > { %1716 = vrot.lane.b32.xlu2 %v7519_v19, %s7044_s25  ;;  %s11382_s25 = sld [smem:[#allocation222_spill]] }
 0x5d4   : > { %v1735_v57 = vld [vmem:[%s11382_s25] sm:$0xff]  ;;  %v1737_v50 = vld [vmem:[%s11382_s25 + $0x10] sm:$0xff] }
 0x5d5   : > { %1743 = vperm.xlu1 %6401, %v1739_v48   ;;  %1748 = vperm.xlu0 %6400, %v1740_v49  }
 0x5d6   : > { %2012 = vperm.xlu2 %6402, %v1850_v51  }
 0x5dd   : > { %2026 = vperm.xlu1 %6401, %v1852_v1   ;;  %2007 = vperm.xlu0 %6400, %v1849_v2   ;;  %v1736_v2 = vld [vmem:[%s11382_s25 + $0x8] sm:$0xff] }
 0x5de   : > { %2021 = vperm.xlu2 %6402, %v1851_v3  }
 0x5e0   : > { %v1700_v5 = vpop.permute.xlu2 %1699 }
 0x5e5   : > { %2475 = vperm.xlu1 %6401, %v2339_v18   ;;  %2293 = vperm.xlu0 %6400, %v2290_v20  }
 0x5e6   : > { %2482 = vperm.xlu2 %6402, %v2340_v52  }
 0x5e8   : > { %v1677_v22 = vpop.permute.xlu2 %1676 }
 0x5f0   : > { %v7624_v24 = vpop.permute.xlu2 %1566 }
 0x5f7   : > { %v7626_v26 = vpop.permute.xlu1 %1657  ;;  %v1679_v28 = vpop.permute.xlu0 %1678 }
 0x5f8   : > { %v7628_v54 = vpop.permute.xlu2 %1661  ;;  %v1691_v7 = vsel %vm1684_vm7, %v1679_v28, 0.0  ;;  %v1670_v10 = vsel %vm1663_vm8, %v7626_v26, 0.0 }
 0x5f9   : > { %v1671_v9 = vsel %vm1663_vm8, %v7628_v54, 0.0 }
 0x5ff   : > { %v7630_v30 = vpop.permute.xlu1 %1608  ;;  %v7632_v32 = vpop.permute.xlu0 %1655 }
 0x600   : > { %v7634_v56 = vpop.permute.xlu2 %1639  ;;  %v1664_v44 = vsel %vm1663_vm8, %v7632_v32, %v7626_v26  ;;  %v1738_v26 = vld [vmem:[%s11382_s25 + $0x18] sm:$0xff] }
 0x601   : > { %v1650_v3 = vsel %vm1123_vm15, 0.0, %v7634_v56 }
 0x607   : > { %v1704_v58 = vpop.permute.xlu1 %1703  ;;  %v7636_v59 = vpop.permute.xlu0 %1635 }
 0x608   : > { %v7639_v41 = vpop.permute.xlu2 %1612  ;;  %6140 = vmatpush.msk.msrb.mxu2 %vm1705_vm4, %v1704_v58 }
 0x60a   : > { %6141 = vmatpush.msk.msrb.mxu2 %vm1705_vm4, %v1700_v5 }
 0x60f   : > { %v1683_v62 = vpop.permute.xlu1 %1682  ;;  %v1638_v12 = vpop.permute.xlu0 %1637 }
 0x610   : > { %v1692_v6 = vsel %vm1684_vm7, %v1683_v62, 0.0  ;;  %v1615_v4 = vpop.permute.xlu2 %1614 }
 0x611   : > { %6142 = vmatpush.msk.msrb.mxu2 %vm7644_vm6, %v1692_v6  ;;  %v1618_v42 = vsel %vm1616_vm13, %v7639_v41, %v1615_v4 }
 0x613   : > { %6143 = vmatpush.msk.msrb.mxu2 %vm7644_vm6, %v1691_v7 }
 0x615   : > { %6144 = vmatpush.msk.msrb.mxu2 %vm7652_vm9, %v1671_v9 }
 0x617   : > { %v1660_v13 = vpop.permute.xlu1 %1659  ;;  %v6405_v15 = vpop.permute.xlu0 %6404  ;;  %6145 = vmatpush.msk.msrb.mxu2 %vm7652_vm9, %v1670_v10 }
 0x618   : > { %v6407_v16 = vunpack.i.h.bf16 %v6405_v15  ;;  %v6406_v17 = vunpack.i.l.bf16 %v6405_v15  ;;  %v6410_v21 = vpop.permute.xlu2 %6409  ;;  %v1665_v43 = vsel %vm1663_vm8, %v1660_v13, %v7628_v54 }
 0x619   : > { %1809 = vmatpush.msrb.mxu2 %v7543_v39  ;;  %v1643_v39 = vsel %vm1123_vm15, %v7636_v59, %v1638_v12  ;;  %v6411_v14 = vunpack.i.l.bf16 %v6410_v21 }
 0x61a   : > { %v1707_v23 = vsel %vm1705_vm4, %v6406_v17, %v1704_v58  ;;  %v1706_v27 = vsel %vm1705_vm4, %v6407_v16, %v1700_v5  ;;  %v6412_v5 = vunpack.i.h.bf16 %v6410_v21  ;;  %v1580_v58 = vsel %vm1548_vm2, 0.0, %v7624_v24 }
 0x61b   : > { %1757 = vmatpush.msra.mxu0 %v1707_v23  ;;  %1810 = vmatpush.msrb.mxu2 %v7519_v19  ;;  %v1685_v19 = vsel %vm1684_vm7, %v1677_v22, %v1679_v28  ;;  %v1623_v22 = vsel %vm1616_vm13, 0.0, %v7630_v30 }
 0x61d   : > { %1758 = vmatpush.msra.mxu0 %v1706_v27 }
 0x61f   : > { %v1642_v34 = vpop.permute.xlu1 %1641  ;;  %v1681_v35 = vpop.permute.xlu0 %1680 }
 0x620   : > { %v1644_v11 = vsel %vm1123_vm15, %v7634_v56, %v1642_v34  ;;  %v1686_v36 = vsel %vm1684_vm7, %v1681_v35, %v1683_v62  ;;  %v1721_v37 = vpop.permute.xlu2 %1720 }
 0x621   : > { %v1730_v38 = vsel %vm1722_vm10, %v1721_v37, 0.0  ;;  %6122 = vmatpush.msk.msra.mxu0 %vm7670_vm11, %v1686_v36  ;;  %6146 = vmatpush.msk.msrb.mxu2 %vm7644_vm6, %v1644_v11 }
 0x622   : > { %6152 = vmatpush.msk.msrb.mxu3 %vm7652_vm9, %v1730_v38 }
 0x623   : > { %6123 = vmatpush.msk.msra.mxu0 %vm7670_vm11, %v1685_v19  ;;  %6147 = vmatpush.msk.msrb.mxu2 %vm7644_vm6, %v1643_v39 }
 0x625   : > { %6124 = vmatpush.msk.msra.mxu0 %vm7687_vm12, %v1665_v43  ;;  %6148 = vmatpush.msk.msrb.mxu2 %vm7652_vm9, %v1618_v42 }
 0x627   : > { %v1597_v45 = vpop.permute.xlu1 %1596  ;;  %v1611_v47 = vpop.permute.xlu0 %1610  ;;  %6125 = vmatpush.msk.msra.mxu0 %vm7687_vm12, %v1664_v44 }
 0x628   : > { %v1617_v48 = vsel %vm1616_vm13, %v7630_v30, %v1611_v47  ;;  %v1717_v49 = vpop.permute.xlu2 %1716  ;;  %v1601_v1 = vsel %vm860_vm1, %v1597_v45, %v6411_v14 }
 0x629   : > { %v1729_v51 = vsel %vm1722_vm10, %v1717_v49, 0.0  ;;  %1763 = vmatpush.msra.mxu0 %v7561_v46  ;;  %6149 = vmatpush.msk.msrb.mxu2 %vm7652_vm9, %v1617_v48  ;;  %v1649_v46 = vsel %vm1123_vm15, 0.0, %v7636_v59 }
 0x62a   : > { %6153 = vmatpush.msk.msrb.mxu3 %vm7652_vm9, %v1729_v51  ;;  %vm2359_vm9 = vcmask 64512  }
 0x62b   : > { %1764 = vmatpush.msra.mxu0 %v7531_v31  ;;  %1815 = vmatpush.msrb.mxu2 %v1601_v1  ;;  %v1624_v31 = vsel %vm1616_vm13, 0.0, %v7639_v41 }
 0x62c   : > { %6154 = vmatmul.msk.f32.vlgmr.msrb.gmra.mxu3 %vm860_vm1, %v1736_v2 }
 0x62d   : > { %6126 = vmatpush.msk.msra.mxu0 %vm7670_vm11, %v1650_v3 }
 0x62f   : > { %v1571_v18 = vpop.permute.xlu1 %1570  ;;  %v1593_v20 = vpop.permute.xlu0 %1592  ;;  %6127 = vmatpush.msk.msra.mxu0 %vm7670_vm11, %v1649_v46 }
 0x630   : > { %v1600_v52 = vsel %vm860_vm1, %v1593_v20, %v6412_v5  ;;  %v1581_v32 = vsel %vm1548_vm2, 0.0, %v1571_v18 }
 0x631   : > { %6128 = vmatpush.msk.msra.mxu0 %vm7687_vm12, %v1624_v31  ;;  %1816 = vmatpush.msrb.mxu2 %v1600_v52 }
 0x633   : > { %6129 = vmatpush.msk.msra.mxu0 %vm7687_vm12, %v1623_v22 }
 0x634   : > { %6155 = vmatmul.msk.f32.gmra.mxu3 %vm860_vm1, %v1738_v26 }
 0x635   : > { %6131 = vmatpush.msk.msra.mxu0 %vm6130_vm14, %v1597_v45 }
 0x637   : > { %v1719_v28 = vpop.permute.xlu1 %1718  ;;  %v1573_v54 = vpop.permute.xlu0 %1572  ;;  %6133 = vmatpush.msk.msra.mxu0 %vm6130_vm14, %v1593_v20 }
 0x638   : > { %v1724_v56 = vsel %vm1722_vm10, %v1719_v28, %v1721_v37  ;;  %v1575_v30 = vsel %vm1548_vm2, %v1571_v18, %v1573_v54 }
 0x639   : > { %6134 = vmatpush.msk.msra.mxu0 %vm7670_vm11, %v1581_v32  ;;  %6136 = vmatpush.msk.msra.mxu1 %vm7687_vm12, %v1724_v56 }
 0x63a   : > { %6150 = vmatpush.msk.msrb.mxu2 %vm7644_vm6, %v1575_v30 }
 0x63b   : > { %6135 = vmatpush.msk.msra.mxu0 %vm7670_vm11, %v1580_v58 }
 0x63c   : > { %1773 = vmatmul.f32.vlgmr.msra.gmra.mxu0 %v1735_v57 }
 0x63f   : > { %v1715_v59 = vpop.permute.xlu1 %1714  ;;  %v1569_v60 = vpop.permute.xlu0 %1568 }
 0x640   : > { %v1723_v41 = vsel %vm1722_vm10, %v1715_v59, %v1717_v49  ;;  %v1574_v53 = vsel %vm1548_vm2, %v7624_v24, %v1569_v60 }
 0x641   : > { %6137 = vmatpush.msk.msra.mxu1 %vm7687_vm12, %v1723_v41  ;;  %6151 = vmatpush.msk.msrb.mxu2 %vm7644_vm6, %v1574_v53 }
 0x642   : > { %6138 = vmatmul.msk.f32.vlgmr.msra.gmra.mxu1 %vm860_vm1, %v1736_v2  ;;  %1819 = vmatmul.f32.vlgmr.msrb.gmra.mxu2 %v1735_v57 }
 0x644   : > { %1776 = vmatmul.f32.gmra.mxu0 %v1737_v50 }
 0x647   : > { %v1744_v62 = vpop.permute.xlu1 %1743  ;;  %v1749_v9 = vpop.permute.xlu0 %1748 }
 0x64a   : > { %6139 = vmatmul.msk.f32.gmra.mxu1 %vm860_vm1, %v1738_v26  ;;  %1822 = vmatmul.f32.gmra.mxu2 %v1737_v50 }
 0x6af   : > { %v1843_v61 = vpop.f32.mrf.mxu3 }
 0x6b7   : > { %v1846_v36 = vpop.f32.mrf.mxu3 }
 0x6b9   : > { %v1774_v63 = vpop.f32.mrf.mxu0 }
 0x6ba   : > { %v1775_v24 = vadd.f32 %v1774_v63, %v1744_v62 }
 0x6bf   : > { %v1797_v12 = vpop.f32.mrf.mxu1 }
 0x6c0   : > { %v1798_v6 = vadd.f32 %v1797_v12, %v1775_v24 }
 0x6c1   : > { %v1777_v7 = vpop.f32.mrf.mxu0 }
 0x6c2   : > { %v1853_v4 = vmul.f32 %v1798_v6, %v1798_v6  ;;  %v1778_v15 = vadd.f32 %v1777_v7, %v1749_v9 }
 0x6c4   : > { %v1857_v8 = vmul.f32 %v1853_v4, %v1798_v6 }
 0x6c5   : > { %v1820_v10 = vpop.f32.mrf.mxu2 }
 0x6c6   : > { %v1861_v13 = vmul.f32 0.044715, %v1857_v8  ;;  %v1821_v16 = vadd.f32 %v1820_v10, %v1744_v62 }
 0x6c7   : > { %v1800_v17 = vpop.f32.mrf.mxu1 }
 0x6c8   : > { %v1801_v21 = vadd.f32 %v1800_v17, %v1778_v15  ;;  %v1844_v23 = vadd.f32 %v1843_v61, %v1821_v16  ;;  %v1865_v25 = vadd.f32 %v1861_v13, %v1798_v6 }
 0x6ca   : > { %v1855_v27 = vmul.f32 %v1801_v21, %v1801_v21  ;;  %v1854_v29 = vmul.f32 %v1844_v23, %v1844_v23  ;;  %v1869_v35 = vmul.f32 0.7978846, %v1865_v25  ;;  %v2013_v25 = vpop.permute.xlu2 %2012 }
 0x6cc   : > { %v1859_v33 = vmul.f32 %v1855_v27, %v1801_v21  ;;  %v1858_v34 = vmul.f32 %v1854_v29, %v1844_v23  ;;  %6467 = vtanh.f32 %v1869_v35 }
 0x6cd   : > { %v1823_v11 = vpop.f32.mrf.mxu2 }
 0x6ce   : > { %v1863_v37 = vmul.f32 0.044715, %v1859_v33  ;;  %v1862_v38 = vmul.f32 0.044715, %v1858_v34  ;;  %v1824_v19 = vadd.f32 %v1823_v11, %v1749_v9 }
 0x6d0   : > { %v1867_v39 = vadd.f32 %v1863_v37, %v1801_v21  ;;  %v1847_v40 = vadd.f32 %v1846_v36, %v1824_v19  ;;  %v1866_v42 = vadd.f32 %v1862_v38, %v1844_v23  ;;  %v2008_v38 = vpop.permute.xlu0 %2007 }
 0x6d2   : > { %v1871_v43 = vmul.f32 0.7978846, %v1867_v39  ;;  %v1856_v44 = vmul.f32 %v1847_v40, %v1847_v40  ;;  %v1870_v47 = vmul.f32 0.7978846, %v1866_v42  ;;  %v6468_v14 = vpop.eup %6467 }
 0x6d3   : > { %v1877_v51 = vadd.f32 1.0, %v6468_v14  ;;  %v2022_v14 = vpop.permute.xlu2 %2021 }
 0x6d4   : > { %6469 = vtanh.f32 %v1871_v43  ;;  %v1860_v45 = vmul.f32 %v1856_v44, %v1847_v40  ;;  %v2027_v43 = vpop.permute.xlu1 %2026 }
 0x6d5   : > { %6471 = vtanh.f32 %v1870_v47  ;;  %v1881_v5 = vmul.f32 0.5, %v1877_v51  ;;  %v2289_v51 = vld [vmem:[%s10977_s11] sm:$0xff] }
 0x6d6   : > { %v1864_v48 = vmul.f32 0.044715, %v1860_v45 }
 0x6d7   : > { %v1885_v31 = vmul.f32 %v1881_v5, %v1798_v6 }
 0x6d8   : > { %v1868_v49 = vadd.f32 %v1864_v48, %v1847_v40 }
 0x6da   : > { %v6470_v1 = vpop.eup %6469  ;;  %v1872_v2 = vmul.f32 0.7978846, %v1868_v49 }
 0x6db   : > { %v1879_v3 = vadd.f32 1.0, %v6470_v1  ;;  %v6472_v18 = vpop.eup %6471 }
 0x6dc   : > { %6473 = vtanh.f32 %v1872_v2  ;;  %v1878_v52 = vadd.f32 1.0, %v6472_v18  ;;  %v7797_v2 = vpop.permute.xlu0 %2293 }
 0x6dd   : > { %v1883_v46 = vmul.f32 0.5, %v1879_v3  ;;  %11387 = vst [vmem:[#allocation17_spill] sm:$0xff] %v7797_v2 }
 0x6de   : > { %v1882_v54 = vmul.f32 0.5, %v1878_v52 }
 0x6df   : > { %v1887_v20 = vmul.f32 %v1883_v46, %v1801_v21 }
 0x6e0   : > { %v1886_v56 = vmul.f32 %v1882_v54, %v1844_v23 }
 0x6e1   : > { %1903 = vmatpush.msrb.mxu1 %v1887_v20 }
 0x6e2   : > { %v6474_v22 = vpop.eup %6473 }
 0x6e3   : > { %1904 = vmatpush.msrb.mxu1 %v1885_v31  ;;  %v1880_v26 = vadd.f32 1.0, %v6474_v22 }
 0x6e4   : > { %6156 = vmatmul.msk.f32.vlgmr.msrb.gmra.mxu1 %vm860_vm1, %v7036_v55 }
 0x6e5   : > { %v1884_v28 = vmul.f32 0.5, %v1880_v26 }
 0x6e7   : > { %v1888_v32 = vmul.f32 %v1884_v28, %v1847_v40 }
 0x6e9   : > { %1923 = vmatpush.msra.mxu1 %v1888_v32 }
 0x6eb   : > { %1924 = vmatpush.msra.mxu1 %v1886_v56 }
 0x6ec   : > { %6157 = vmatmul.msk.f32.vlgmr.msra.gmra.mxu1 %vm860_vm1, %v7036_v55 }
 0x761   : > { %v1906_v30 = vpop.f32.mrf.mxu1 }
 0x762   : > { %v1929_v57 = vperm.slane %v1906_v30, 0 }
 0x764   : > { %v1931_v58 = vsub.f32 %v1885_v31, %v1929_v57  ;;  %v1933_v59 = vsub.f32 %v1887_v20, %v1929_v57 }
 0x766   : > { %v1937_v60 = vmul.f32 %v1933_v59, %v1933_v59  ;;  %v1935_v41 = vmul.f32 %v1931_v58, %v1931_v58 }
 0x768   : > { %1953 = vmatpush.msra.mxu3 %v1937_v60 }
 0x769   : > { %v1926_v53 = vpop.f32.mrf.mxu1 }
 0x76a   : > { %v1930_v50 = vperm.slane %v1926_v53, 0  ;;  %1954 = vmatpush.msra.mxu3 %v1935_v41  ;;  %v11002_v53 = vmov 0.125  }
 0x76b   : > { %6158 = vmatmul.msk.f32.vlgmr.msra.gmra.mxu3 %vm860_vm1, %v7036_v55 }
 0x76c   : > { %v1932_v63 = vsub.f32 %v1886_v56, %v1930_v50  ;;  %v1934_v62 = vsub.f32 %v1888_v32, %v1930_v50 }
 0x76e   : > { %v1938_v24 = vmul.f32 %v1934_v62, %v1934_v62  ;;  %v1936_v12 = vmul.f32 %v1932_v63, %v1932_v63 }
 0x770   : > { %1973 = vmatpush.msrb.mxu1 %v1938_v24  ;;  %v6166_v24 = vld [vmem:[%s10977_s11 + $0x8] sm:$0xff] }
 0x772   : > { %1974 = vmatpush.msrb.mxu1 %v1936_v12 }
 0x773   : > { %6159 = vmatmul.msk.f32.vlgmr.msrb.gmra.mxu1 %vm860_vm1, %v7036_v55 }
 0x7ee   : > { %v1956_v6 = vpop.f32.mrf.mxu3 }
 0x7ef   : > { %v1957_v4 = vadd.f32 1e-05, %v1956_v6 }
 0x7f0   : > { %v1976_v7 = vpop.f32.mrf.mxu1 }
 0x7f1   : > { %6475 = vrsqrt.f32 %v1957_v4  ;;  %v1977_v61 = vadd.f32 1e-05, %v1976_v7  ;;  %vm1985_vm2 = vweird.f32 %v1957_v4 }
 0x7f3   : > { %6477 = vrsqrt.f32 %v1977_v61  ;;  %vm1995_vm6 = vweird.f32 %v1977_v61 }
 0x7f7   : > { %v6476_v8 = vpop.eup %6475 }
 0x7f8   : > { %v1980_v9 = vmul.f32 %v6476_v8, %v1957_v4  ;;  %vm1986_vm3 = vweird.f32 %v6476_v8 }
 0x7f9   : > { %v6478_v10 = vpop.eup %6477  ;;  %vm1987_vm4 = vmor %vm1985_vm2, %vm1986_vm3 }
 0x7fa   : > { %v1981_v13 = vmul.f32 %v6476_v8, %v1980_v9  ;;  %v1990_v15 = vmul.f32 %v6478_v10, %v1977_v61  ;;  %vm1996_vm5 = vweird.f32 %v6478_v10 }
 0x7fb   : > { %vm1997_vm7 = vmor %vm1995_vm6, %vm1996_vm5 }
 0x7fc   : > { %v1982_v16 = vmul.f32 0.5, %v1981_v13  ;;  %v1991_v17 = vmul.f32 %v6478_v10, %v1990_v15 }
 0x7fe   : > { %v1983_v21 = vsub.f32 1.5, %v1982_v16  ;;  %v1992_v23 = vmul.f32 0.5, %v1991_v17 }
 0x800   : > { %v1984_v55 = vmul.f32 %v6476_v8, %v1983_v21  ;;  %v1993_v27 = vsub.f32 1.5, %v1992_v23 }
 0x802   : > { %v1988_v29 = vsel %vm1987_vm4, %v6476_v8, %v1984_v55  ;;  %v1994_v33 = vmul.f32 %v6478_v10, %v1993_v27 }
 0x803   : > { %v1999_v34 = vperm.slane %v1988_v29, 0 }
 0x804   : > { %v1998_v35 = vsel %vm1997_vm7, %v6478_v10, %v1994_v33 }
 0x805   : > { %v2000_v11 = vperm.slane %v1998_v35, 0  ;;  %v2003_v36 = vmul.f32 %v1999_v34, %v1933_v59  ;;  %v2001_v37 = vmul.f32 %v1999_v34, %v1931_v58 }
 0x807   : > { %v2017_v19 = vmul.f32 %v2013_v25, %v2003_v36  ;;  %v2015_v39 = vmul.f32 %v2008_v38, %v2001_v37  ;;  %v2004_v40 = vmul.f32 %v2000_v11, %v1934_v62  ;;  %v2002_v42 = vmul.f32 %v2000_v11, %v1932_v63 }
 0x809   : > { %v7780_v44 = vadd.f32 %v2027_v43, %v2017_v19  ;;  %v2018_v45 = vmul.f32 %v2013_v25, %v2004_v40  ;;  %v2016_v47 = vmul.f32 %v2008_v38, %v2002_v42  ;;  %v7783_v48 = vadd.f32 %v2022_v14, %v2015_v39 }
 0x80b   : > { %11383 = vst [vmem:[#allocation13_spill] sm:$0xff] %v7780_v44  ;;  %2313 = vmatpush.msrb.mxu0 %v7780_v44  ;;  %v7785_v49 = vadd.f32 %v2027_v43, %v2018_v45  ;;  %v7792_v1 = vadd.f32 %v2022_v14, %v2016_v47  ;;  %v2153_v47 = vld [vmem:[#allocation6 + $0x3c0] sm:$0xff] }
 0x80c   : > { %11384 = vst [vmem:[#allocation14_spill] sm:$0xff] %v7783_v48  ;;  %v2145_v14 = vld [vmem:[#allocation6 + $0x380] sm:$0xff] }
 0x80d   : > { %11385 = vst [vmem:[#allocation15_spill] sm:$0xff] %v7785_v49  ;;  %2314 = vmatpush.msrb.mxu0 %v7783_v48  ;;  %2333 = vmatpush.msrb.mxu3 %v7785_v49 }
 0x80e   : > { %11386 = vst [vmem:[#allocation16_spill] sm:$0xff] %v7792_v1  ;;  %6160 = vmatmul.msk.f32.vlgmr.msrb.gmra.mxu0 %vm860_vm1, %v2289_v51 }
 0x80f   : > { %2334 = vmatpush.msrb.mxu3 %v7792_v1 }
 0x810   : > { %6161 = vmatmul.msk.f32.vlgmr.msrb.gmra.mxu3 %vm860_vm1, %v2289_v51  ;;  %v2137_v51 = vld [vmem:[#allocation6 + $0x340] sm:$0xff] }
 0x88b   : > { %v2316_v3 = vpop.f32.mrf.mxu0 }
 0x88c   : > { %v2317_v46 = vadd.f32 %v2316_v3, %v7797_v2 }
 0x88e   : > { %v2341_v5 = vmul.f32 %v2317_v46, %v2317_v46 }
 0x890   : > { %v2343_v18 = vmul.f32 %v2341_v5, %v2317_v46 }
 0x892   : > { %v2345_v20 = vmul.f32 0.044715, %v2343_v18  ;;  %v2121_v18 = vld [vmem:[#allocation6 + $0x2c0] sm:$0xff] }
 0x893   : > { %v2336_v31 = vpop.f32.mrf.mxu3 }
 0x894   : > { %v2347_v52 = vadd.f32 %v2345_v20, %v2317_v46  ;;  %v2337_v22 = vadd.f32 %v2336_v31, %v7797_v2  ;;  %v2113_v31 = vld [vmem:[#allocation6 + $0x280] sm:$0xff] }
 0x896   : > { %v2349_v26 = vmul.f32 0.7978846, %v2347_v52  ;;  %v2342_v28 = vmul.f32 %v2337_v22, %v2337_v22 }
 0x898   : > { %6479 = vtanh.f32 %v2349_v26  ;;  %v2344_v54 = vmul.f32 %v2342_v28, %v2337_v22  ;;  %v2154_v26 = vld [vmem:[#allocation6 + $0x3c8] sm:$0xff]  ;;  %v2105_v28 = vld [vmem:[#allocation6 + $0x240] sm:$0xff] }
 0x89a   : > { %v2346_v32 = vmul.f32 0.044715, %v2344_v54  ;;  %v2273_v54 = vld [vmem:[#allocation6 + $0x780] sm:$0xff] }
 0x89c   : > { %v2348_v56 = vadd.f32 %v2346_v32, %v2337_v22  ;;  %v2146_v32 = vld [vmem:[#allocation6 + $0x388] sm:$0xff] }
 0x89e   : > { %v6480_v30 = vpop.eup %6479  ;;  %v2350_v57 = vmul.f32 0.7978846, %v2348_v56  ;;  %v2097_v56 = vld [vmem:[#allocation6 + $0x200] sm:$0xff] }
 0x89f   : > { %v2353_v58 = vadd.f32 1.0, %v6480_v30  ;;  %v2265_v30 = vld [vmem:[#allocation6 + $0x740] sm:$0xff] }
 0x8a0   : > { %6481 = vtanh.f32 %v2350_v57  ;;  %v2257_v57 = vld [vmem:[#allocation6 + $0x700] sm:$0xff] }
 0x8a1   : > { %v2355_v59 = vmul.f32 0.5, %v2353_v58  ;;  %v2138_v58 = vld [vmem:[#allocation6 + $0x348] sm:$0xff] }
 0x8a3   : > { %v2357_v60 = vmul.f32 %v2355_v59, %v2317_v46  ;;  %v2129_v46 = vld [vmem:[#allocation6 + $0x300] sm:$0xff] }
 0x8a4   : > { %v2089_v59 = vld [vmem:[#allocation6 + $0x1c0] sm:$0xff] }
 0x8a5   : > { %2378 = vmatpush.msra.mxu1 %v2357_v60 }
 0x8a6   : > { %v6482_v41 = vpop.eup %6481  ;;  %6162 = vmatmul.msk.f32.vlgmr.msra.gmra.mxu1 %vm2359_vm9, %v11002_v53 }
 0x8a7   : > { %2506 = vmatpush.msrb.mxu1 %v7780_v44  ;;  %v2354_v50 = vadd.f32 1.0, %v6482_v41  ;;  %v2130_v41 = vld [vmem:[#allocation6 + $0x308] sm:$0xff] }
 0x8a9   : > { %2507 = vmatpush.msrb.mxu1 %v7783_v48  ;;  %v2356_v63 = vmul.f32 0.5, %v2354_v50  ;;  %v2081_v50 = vld [vmem:[#allocation6 + $0x180] sm:$0xff]  ;;  %v8015_v48 = vld [vmem:[#allocation6 + $0x2a8] sm:$0xff] }
 0x8ab   : > { %v2358_v62 = vmul.f32 %v2356_v63, %v2337_v22  ;;  %v2281_v22 = vld [vmem:[#allocation6 + $0x7c0] sm:$0xff]  ;;  %v2122_v63 = vld [vmem:[#allocation6 + $0x2c8] sm:$0xff] }
 0x8ad   : > { %2398 = vmatpush.msra.mxu2 %v2358_v62 }
 0x8ae   : > { %6163 = vmatmul.msk.f32.vlgmr.msra.gmra.mxu2 %vm2359_vm9, %v11002_v53  ;;  %6167 = vmatmul.msk.f32.vlgmr.msrb.gmra.mxu1 %vm860_vm1, %v6166_v24 }
 0x8af   : > { %2526 = vmatpush.msrb.mxu2 %v7785_v49  ;;  %v8013_v49 = vld [vmem:[#allocation6 + $0x2a0] sm:$0xff] }
 0x8b1   : > { %2527 = vmatpush.msrb.mxu2 %v7792_v1 }
 0x8b6   : > { %6168 = vmatmul.msk.f32.vlgmr.msrb.gmra.mxu2 %vm860_vm1, %v6166_v24  ;;  %v2114_v24 = vld [vmem:[#allocation6 + $0x288] sm:$0xff] }
 0x923   : > { %v2380_v12 = vpop.f32.mrf.mxu1 }
 0x924   : > { %v2403_v6 = vperm.slane %v2380_v12, 0  ;;  %v2065_v12 = vld [vmem:[#allocation6 + $0x100] sm:$0xff] }
 0x926   : > { %v7814_v4 = vsub.f32 %v2357_v60, %v2403_v6  ;;  %v2106_v6 = vld [vmem:[#allocation6 + $0x248] sm:$0xff] }
 0x928   : > { %v2407_v7 = vmul.f32 %v7814_v4, %v7814_v4 }
 0x92a   : > { %2424 = vmatpush.msra.mxu0 %v2407_v7  ;;  %v2057_v7 = vld [vmem:[#allocation6 + $0xc0] sm:$0xff] }
 0x92b   : > { %6164 = vmatmul.msk.f32.vlgmr.msra.gmra.mxu0 %vm2359_vm9, %v11002_v53  ;;  %v2509_v61 = vpop.f32.mrf.mxu1 }
 0x92c   : > { %v2510_v8 = vadd.f32 %v2509_v61, %v7797_v2 }
 0x92e   : > { %v2532_v9 = vmul.f32 %v2510_v8, %v2510_v8 }
 0x930   : > { %v2534_v10 = vmul.f32 %v2532_v9, %v2510_v8  ;;  %v2049_v9 = vld [vmem:[#allocation6 + $0x80] sm:$0xff] }
 0x931   : > { %v2400_v13 = vpop.f32.mrf.mxu2 }
 0x932   : > { %v2536_v15 = vmul.f32 0.044715, %v2534_v10  ;;  %v2404_v16 = vperm.slane %v2400_v13, 0  ;;  %v2090_v13 = vld [vmem:[#allocation6 + $0x1c8] sm:$0xff] }
 0x934   : > { %v2538_v17 = vadd.f32 %v2536_v15, %v2510_v8  ;;  %v7821_v21 = vsub.f32 %v2358_v62, %v2404_v16  ;;  %v2073_v62 = vld [vmem:[#allocation6 + $0x140] sm:$0xff] }
 0x935   : > { %v2041_v15 = vld [vmem:[#allocation6 + $0x40] sm:$0xff] }
 0x936   : > { %v2540_v23 = vmul.f32 0.7978846, %v2538_v17  ;;  %v2408_v25 = vmul.f32 %v7821_v21, %v7821_v21  ;;  %v2082_v17 = vld [vmem:[#allocation6 + $0x188] sm:$0xff] }
 0x938   : > { %6483 = vtanh.f32 %v2540_v23  ;;  %2444 = vmatpush.msra.mxu3 %v2408_v25  ;;  %v2033_v25 = vld [vmem:[#allocation6] sm:$0xff] }
 0x939   : > { %6165 = vmatmul.msk.f32.vlgmr.msra.gmra.mxu3 %vm2359_vm9, %v11002_v53  ;;  %v2529_v55 = vpop.f32.mrf.mxu2 }
 0x93a   : > { %v2530_v27 = vadd.f32 %v2529_v55, %v7797_v2  ;;  %v2074_v55 = vld [vmem:[#allocation6 + $0x148] sm:$0xff] }
 0x93b   : > { %v8007_v2 = vld [vmem:[#allocation6 + $0x2e8] sm:$0xff] }
 0x93c   : > { %v2533_v29 = vmul.f32 %v2530_v27, %v2530_v27 }
 0x93e   : > { %v6484_v33 = vpop.eup %6483  ;;  %v2535_v34 = vmul.f32 %v2533_v29, %v2530_v27  ;;  %v2155_v29 = vld [vmem:[#allocation6 + $0x3d0] sm:$0xff] }
 0x93f   : > { %v2544_v35 = vadd.f32 1.0, %v6484_v33  ;;  %v2066_v33 = vld [vmem:[#allocation6 + $0x108] sm:$0xff] }
 0x940   : > { %v2537_v11 = vmul.f32 0.044715, %v2535_v34  ;;  %v2274_v34 = vld [vmem:[#allocation6 + $0x788] sm:$0xff] }
 0x941   : > { %v2546_v36 = vmul.f32 0.5, %v2544_v35  ;;  %v2058_v35 = vld [vmem:[#allocation6 + $0xc8] sm:$0xff] }
 0x942   : > { %v2539_v37 = vadd.f32 %v2537_v11, %v2530_v27  ;;  %v2266_v11 = vld [vmem:[#allocation6 + $0x748] sm:$0xff] }
 0x943   : > { %v2548_v38 = vmul.f32 %v2546_v36, %v2510_v8  ;;  %v2098_v8 = vld [vmem:[#allocation6 + $0x208] sm:$0xff] }
 0x944   : > { %v2541_v19 = vmul.f32 0.7978846, %v2539_v37  ;;  %v2050_v36 = vld [vmem:[#allocation6 + $0x88] sm:$0xff] }
 0x945   : > { %2565 = vmatpush.msrb.mxu0 %v2548_v38  ;;  %v2258_v37 = vld [vmem:[#allocation6 + $0x708] sm:$0xff] }
 0x946   : > { %6485 = vtanh.f32 %v2541_v19  ;;  %6169 = vmatmul.msk.f32.vlgmr.msrb.gmra.mxu0 %vm2359_vm9, %v11002_v53  ;;  %v2034_v19 = vld [vmem:[#allocation6 + $0x8] sm:$0xff] }
 0x947   : > { %2664 = vmatpush.msra.mxu0 %v2153_v47  ;;  %v2250_v47 = vld [vmem:[#allocation6 + $0x6c8] sm:$0xff] }
 0x949   : > { %2665 = vmatpush.msra.mxu0 %v2145_v14  ;;  %v2139_v14 = vld [vmem:[#allocation6 + $0x350] sm:$0xff] }
 0x94b   : > { %2666 = vmatpush.msra.mxu0 %v2137_v51  ;;  %v2140_v51 = vld [vmem:[#allocation6 + $0x358] sm:$0xff] }
 0x94c   : > { %v6486_v39 = vpop.eup %6485 }
 0x94d   : > { %v2545_v40 = vadd.f32 1.0, %v6486_v39  ;;  %2667 = vmatpush.msra.mxu0 %v2129_v46  ;;  %v2156_v39 = vld [vmem:[#allocation6 + $0x3d8] sm:$0xff]  ;;  %v2242_v46 = vld [vmem:[#allocation6 + $0x688] sm:$0xff] }
 0x94f   : > { %v2547_v42 = vmul.f32 0.5, %v2545_v40  ;;  %2668 = vmatpush.msra.mxu0 %v2121_v18  ;;  %v2147_v40 = vld [vmem:[#allocation6 + $0x390] sm:$0xff]  ;;  %v2132_v18 = vld [vmem:[#allocation6 + $0x318] sm:$0xff] }
 0x951   : > { %v7830_v43 = vmul.f32 %v2547_v42, %v2530_v27  ;;  %2669 = vmatpush.msra.mxu0 %v2113_v31  ;;  %v2282_v27 = vld [vmem:[#allocation6 + $0x7c8] sm:$0xff]  ;;  %v2148_v42 = vld [vmem:[#allocation6 + $0x398] sm:$0xff]  ;;  %v2233_v31 = vld [vmem:[#allocation6 + $0x640] sm:$0xff] }
 0x953   : > { %2585 = vmatpush.msrb.mxu3 %v7830_v43  ;;  %2670 = vmatpush.msra.mxu0 %v2105_v28  ;;  %v2225_v28 = vld [vmem:[#allocation6 + $0x600] sm:$0xff] }
 0x954   : > { %6170 = vmatmul.msk.f32.vlgmr.msrb.gmra.mxu3 %vm2359_vm9, %v11002_v53 }
 0x955   : > { %2684 = vmatpush.msra.mxu3 %v2281_v22  ;;  %2671 = vmatpush.msra.mxu0 %v2097_v56  ;;  %v2123_v22 = vld [vmem:[#allocation6 + $0x2d0] sm:$0xff]  ;;  %v2116_v56 = vld [vmem:[#allocation6 + $0x298] sm:$0xff] }
 0x957   : > { %2685 = vmatpush.msra.mxu3 %v2273_v54  ;;  %2672 = vmatpush.msra.mxu0 %v2089_v59  ;;  %v2226_v54 = vld [vmem:[#allocation6 + $0x608] sm:$0xff]  ;;  %v2108_v59 = vld [vmem:[#allocation6 + $0x258] sm:$0xff] }
 0x959   : > { %2686 = vmatpush.msra.mxu3 %v2265_v30  ;;  %2673 = vmatpush.msra.mxu0 %v2081_v50  ;;  %v2217_v30 = vld [vmem:[#allocation6 + $0x5c0] sm:$0xff]  ;;  %v2210_v50 = vld [vmem:[#allocation6 + $0x588] sm:$0xff] }
 0x95b   : > { %2687 = vmatpush.msra.mxu3 %v2257_v57  ;;  %2674 = vmatpush.msra.mxu0 %v2073_v62  ;;  %v2218_v57 = vld [vmem:[#allocation6 + $0x5c8] sm:$0xff]  ;;  %v2100_v62 = vld [vmem:[#allocation6 + $0x218] sm:$0xff] }
 0x95d   : > { %2675 = vmatpush.msra.mxu0 %v2065_v12  ;;  %v2202_v12 = vld [vmem:[#allocation6 + $0x548] sm:$0xff] }
 0x95f   : > { %2676 = vmatpush.msra.mxu0 %v2057_v7  ;;  %v2092_v7 = vld [vmem:[#allocation6 + $0x1d8] sm:$0xff] }
 0x961   : > { %2677 = vmatpush.msra.mxu0 %v2049_v9  ;;  %v2083_v9 = vld [vmem:[#allocation6 + $0x190] sm:$0xff] }
 0x963   : > { %2678 = vmatpush.msra.mxu0 %v2041_v15  ;;  %v2186_v15 = vld [vmem:[#allocation6 + $0x4c8] sm:$0xff] }
 0x965   : > { %2679 = vmatpush.msra.mxu0 %v2033_v25  ;;  %v2177_v25 = vld [vmem:[#allocation6 + $0x480] sm:$0xff] }
 0x967   : > { %2744 = vmatpush.msrb.mxu0 %v2155_v29  ;;  %v2068_v29 = vld [vmem:[#allocation6 + $0x118] sm:$0xff] }
 0x969   : > { %2745 = vmatpush.msrb.mxu0 %v2147_v40  ;;  %v7866_v40 = vld [vmem:[#allocation6 + $0x7d8] sm:$0xff] }
 0x96b   : > { %2746 = vmatpush.msrb.mxu0 %v2139_v14  ;;  %v7878_v14 = vld [vmem:[#allocation6 + $0x798] sm:$0xff] }
 0x9a8   : > { %v7835_v45 = vpop.f32.mrf.mxu0 }
 0x9bc   : > { %v7843_v60 = vpop.f32.mrf.mxu3 }
 0x9c3   : > { %v2567_v3 = vpop.f32.mrf.mxu0 }
 0x9c4   : > { %v2590_v5 = vperm.slane %v2567_v3, 0  ;;  %v2241_v3 = vld [vmem:[#allocation6 + $0x680] sm:$0xff] }
 0x9c6   : > { %v7837_v20 = vsub.f32 %v2548_v38, %v2590_v5  ;;  %v2042_v38 = vld [vmem:[#allocation6 + $0x48] sm:$0xff]  ;;  %v2131_v5 = vld [vmem:[#allocation6 + $0x310] sm:$0xff] }
 0x9c7   : > { %2747 = vmatpush.msrb.mxu0 %v2131_v5  ;;  %v7890_v5 = vld [vmem:[#allocation6 + $0x758] sm:$0xff] }
 0x9c8   : > { %v2594_v52 = vmul.f32 %v7837_v20, %v7837_v20 }
 0x9c9   : > { %2748 = vmatpush.msrb.mxu0 %v2123_v22  ;;  %v7900_v22 = vld [vmem:[#allocation6 + $0x6d0] sm:$0xff] }
 0x9ca   : > { %2611 = vmatpush.msra.mxu1 %v2594_v52  ;;  %v2234_v52 = vld [vmem:[#allocation6 + $0x648] sm:$0xff] }
 0x9cb   : > { %6171 = vmatmul.msk.f32.vlgmr.msra.gmra.mxu1 %vm2359_vm9, %v11002_v53 }
 0x9cc   : > { %2704 = vmatpush.msrb.mxu1 %v2154_v26  ;;  %v2124_v26 = vld [vmem:[#allocation6 + $0x2d8] sm:$0xff] }
 0x9ce   : > { %2705 = vmatpush.msrb.mxu1 %v2146_v32  ;;  %v2115_v32 = vld [vmem:[#allocation6 + $0x290] sm:$0xff] }
 0x9cf   : > { %2749 = vmatpush.msrb.mxu0 %v2115_v32  ;;  %v7908_v32 = vld [vmem:[#allocation6 + $0x698] sm:$0xff] }
 0x9d0   : > { %2706 = vmatpush.msrb.mxu1 %v2138_v58  ;;  %v2107_v58 = vld [vmem:[#allocation6 + $0x250] sm:$0xff] }
 0x9d1   : > { %2750 = vmatpush.msrb.mxu0 %v2107_v58  ;;  %v7920_v58 = vld [vmem:[#allocation6 + $0x618] sm:$0xff] }
 0x9d2   : > { %2707 = vmatpush.msrb.mxu1 %v2130_v41  ;;  %v2209_v41 = vld [vmem:[#allocation6 + $0x580] sm:$0xff] }
 0x9d4   : > { %2708 = vmatpush.msrb.mxu1 %v2122_v63  ;;  %v2099_v63 = vld [vmem:[#allocation6 + $0x210] sm:$0xff] }
 0x9d5   : > { %2751 = vmatpush.msrb.mxu0 %v2099_v63 }
 0x9d6   : > { %2709 = vmatpush.msrb.mxu1 %v2114_v24  ;;  %v2201_v24 = vld [vmem:[#allocation6 + $0x540] sm:$0xff] }
 0x9d7   : > { %v2587_v61 = vpop.f32.mrf.mxu3 }
 0x9d8   : > { %v2591_v10 = vperm.slane %v2587_v61, 0  ;;  %2710 = vmatpush.msrb.mxu1 %v2106_v6  ;;  %v2091_v6 = vld [vmem:[#allocation6 + $0x1d0] sm:$0xff]  ;;  %v2193_v61 = vld [vmem:[#allocation6 + $0x500] sm:$0xff] }
 0x9d9   : > { %2752 = vmatpush.msrb.mxu0 %v2091_v6  ;;  %v7936_v6 = vld [vmem:[#allocation6 + $0x550] sm:$0xff] }
 0x9da   : > { %v7846_v16 = vsub.f32 %v7830_v43, %v2591_v10  ;;  %2711 = vmatpush.msrb.mxu1 %v2098_v8  ;;  %v2249_v43 = vld [vmem:[#allocation6 + $0x6c0] sm:$0xff]  ;;  %v2194_v8 = vld [vmem:[#allocation6 + $0x508] sm:$0xff]  ;;  %v2084_v10 = vld [vmem:[#allocation6 + $0x198] sm:$0xff]  ;;  %11388 = vst [vmem:[#allocation18_spill] sm:$0xff] %v7936_v6 }
 0x9db   : > { %2688 = vmatpush.msra.mxu3 %v2249_v43  ;;  %2753 = vmatpush.msrb.mxu0 %v2083_v9  ;;  %v7872_v43 = vld [vmem:[#allocation6 + $0x790] sm:$0xff]  ;;  %v7944_v9 = vld [vmem:[#allocation6 + $0x518] sm:$0xff] }
 0x9dc   : > { %v2595_v23 = vmul.f32 %v7846_v16, %v7846_v16  ;;  %2712 = vmatpush.msrb.mxu1 %v2090_v13  ;;  %v2185_v13 = vld [vmem:[#allocation6 + $0x4c0] sm:$0xff]  ;;  %11391 = vst [vmem:[#allocation21_spill] sm:$0xff] %v7944_v9 }
 0x9dd   : > { %2689 = vmatpush.msra.mxu3 %v2241_v3  ;;  %v7884_v3 = vld [vmem:[#allocation6 + $0x750] sm:$0xff] }
 0x9de   : > { %2631 = vmatpush.msra.mxu2 %v2595_v23  ;;  %2713 = vmatpush.msrb.mxu1 %v2082_v17  ;;  %v2075_v17 = vld [vmem:[#allocation6 + $0x150] sm:$0xff]  ;;  %v2076_v23 = vld [vmem:[#allocation6 + $0x158] sm:$0xff] }
 0x9df   : > { %6172 = vmatmul.msk.f32.vlgmr.msra.gmra.mxu2 %vm2359_vm9, %v11002_v53  ;;  %2690 = vmatpush.msra.mxu3 %v2233_v31  ;;  %v7896_v31 = vld [vmem:[#allocation6 + $0x718] sm:$0xff]  ;;  %v8005_v53 = vld [vmem:[#allocation6 + $0x2e0] sm:$0xff] }
 0x9e0   : > { %2714 = vmatpush.msrb.mxu1 %v2074_v55  ;;  %2724 = vmatpush.msrb.mxu2 %v2282_v27  ;;  %v2178_v55 = vld [vmem:[#allocation6 + $0x488] sm:$0xff]  ;;  %v2067_v27 = vld [vmem:[#allocation6 + $0x110] sm:$0xff] }
 0x9e1   : > { %2691 = vmatpush.msra.mxu3 %v2225_v28  ;;  %2754 = vmatpush.msrb.mxu0 %v2075_v17 }
 0x9e2   : > { %2715 = vmatpush.msrb.mxu1 %v2066_v33  ;;  %2725 = vmatpush.msrb.mxu2 %v2274_v34  ;;  %v2169_v33 = vld [vmem:[#allocation6 + $0x440] sm:$0xff]  ;;  %v2170_v34 = vld [vmem:[#allocation6 + $0x448] sm:$0xff] }
 0x9e3   : > { %2692 = vmatpush.msra.mxu3 %v2217_v30  ;;  %2755 = vmatpush.msrb.mxu0 %v2067_v27  ;;  %v7914_v30 = vld [vmem:[#allocation6 + $0x658] sm:$0xff]  ;;  %v7960_v27 = vld [vmem:[#allocation6 + $0x450] sm:$0xff] }
 0x9e4   : > { %2716 = vmatpush.msrb.mxu1 %v2058_v35  ;;  %2726 = vmatpush.msrb.mxu2 %v2266_v11  ;;  %v2059_v35 = vld [vmem:[#allocation6 + $0xd0] sm:$0xff]  ;;  %v2060_v11 = vld [vmem:[#allocation6 + $0xd8] sm:$0xff]  ;;  %11396 = vst [vmem:[#allocation26_spill] sm:$0xff] %v7960_v27 }
 0x9e5   : > { %2693 = vmatpush.msra.mxu3 %v2209_v41  ;;  %2756 = vmatpush.msrb.mxu0 %v2059_v35  ;;  %v7926_v41 = vld [vmem:[#allocation6 + $0x5d8] sm:$0xff] }
 0x9e6   : > { %2717 = vmatpush.msrb.mxu1 %v2050_v36  ;;  %2727 = vmatpush.msrb.mxu2 %v2258_v37  ;;  %v7852_v36 = vld [vmem:[#allocation6 + $0x400] sm:$0xff]  ;;  %v7854_v37 = vld [vmem:[#allocation6 + $0x408] sm:$0xff]  ;;  %v7968_v35 = vld [vmem:[#allocation6 + $0x418] sm:$0xff] }
 0x9e7   : > { %2694 = vmatpush.msra.mxu3 %v2201_v24  ;;  %v7932_v24 = vld [vmem:[#allocation6 + $0x598] sm:$0xff]  ;;  %11399 = vst [vmem:[#allocation29_spill] sm:$0xff] %v7968_v35 }
 0x9e8   : > { %2718 = vmatpush.msrb.mxu1 %v2042_v38  ;;  %2728 = vmatpush.msrb.mxu2 %v2250_v47  ;;  %v7858_v38 = vld [vmem:[#allocation6 + $0x90] sm:$0xff]  ;;  %v7874_v47 = vld [vmem:[#allocation6 + $0x58] sm:$0xff] }
 0x9e9   : > { %2695 = vmatpush.msra.mxu3 %v2193_v61  ;;  %2757 = vmatpush.msrb.mxu0 %v7858_v38 }
 0x9ea   : > { %2719 = vmatpush.msrb.mxu1 %v2034_v19  ;;  %2729 = vmatpush.msrb.mxu2 %v2242_v46  ;;  %v7860_v19 = vld [vmem:[#allocation6 + $0x7d0] sm:$0xff]  ;;  %v7886_v46 = vld [vmem:[#allocation6 + $0x18] sm:$0xff] }
 0x9eb   : > { %2696 = vmatpush.msra.mxu3 %v2185_v13  ;;  %v7948_v13 = vld [vmem:[#allocation6 + $0x4d0] sm:$0xff] }
 0x9ec   : > { %2784 = vmatpush.msra.mxu1 %v2156_v39  ;;  %2730 = vmatpush.msrb.mxu2 %v2234_v52  ;;  %v7862_v39 = vld [vmem:[#allocation6 + $0x98] sm:$0xff]  ;;  %11392 = vst [vmem:[#allocation22_spill] sm:$0xff] %v7948_v13 }
 0x9ed   : > { %2697 = vmatpush.msra.mxu3 %v2177_v25  ;;  %v7956_v25 = vld [vmem:[#allocation6 + $0x498] sm:$0xff] }
 0x9ee   : > { %2785 = vmatpush.msra.mxu1 %v2148_v42  ;;  %2731 = vmatpush.msrb.mxu2 %v2226_v54  ;;  %v7870_v42 = vld [vmem:[#allocation6 + $0x50] sm:$0xff]  ;;  %11395 = vst [vmem:[#allocation25_spill] sm:$0xff] %v7956_v25 }
 0x9ef   : > { %2698 = vmatpush.msra.mxu3 %v2169_v33  ;;  %2758 = vmatpush.msrb.mxu0 %v7870_v42  ;;  %v7906_v54 = vld [vmem:[#allocation6 + $0x690] sm:$0xff] }
 0x9f0   : > { %2786 = vmatpush.msra.mxu1 %v2140_v51  ;;  %2732 = vmatpush.msrb.mxu2 %v2218_v57  ;;  %v7882_v51 = vld [vmem:[#allocation6 + $0x10] sm:$0xff] }
 0x9f1   : > { %2699 = vmatpush.msra.mxu3 %v7852_v36  ;;  %2759 = vmatpush.msrb.mxu0 %v7882_v51  ;;  %v7918_v57 = vld [vmem:[#allocation6 + $0x610] sm:$0xff] }
 0x9f2   : > { %2787 = vmatpush.msra.mxu1 %v2132_v18  ;;  %2733 = vmatpush.msrb.mxu2 %v2210_v50  ;;  %v7894_v18 = vld [vmem:[#allocation6 + $0x710] sm:$0xff] }
 0x9f3   : > { %2764 = vmatpush.msrb.mxu3 %v7860_v19 }
 0x9f4   : > { %2788 = vmatpush.msra.mxu1 %v2124_v26  ;;  %2734 = vmatpush.msrb.mxu2 %v2202_v12  ;;  %v7902_v26 = vld [vmem:[#allocation6 + $0x6d8] sm:$0xff] }
 0x9f5   : > { %2765 = vmatpush.msrb.mxu3 %v7872_v43 }
 0x9f6   : > { %2789 = vmatpush.msra.mxu1 %v2116_v56  ;;  %2735 = vmatpush.msrb.mxu2 %v2194_v8  ;;  %v7912_v56 = vld [vmem:[#allocation6 + $0x650] sm:$0xff] }
 0x9f7   : > { %2766 = vmatpush.msrb.mxu3 %v7884_v3  ;;  %v7942_v8 = vld [vmem:[#allocation6 + $0x510] sm:$0xff] }
 0x9f8   : > { %2790 = vmatpush.msra.mxu1 %v2108_v59  ;;  %2736 = vmatpush.msrb.mxu2 %v2186_v15  ;;  %v7924_v59 = vld [vmem:[#allocation6 + $0x5d0] sm:$0xff]  ;;  %11390 = vst [vmem:[#allocation20_spill] sm:$0xff] %v7942_v8  ;;  %v7950_v15 = vld [vmem:[#allocation6 + $0x4d8] sm:$0xff] }
 0x9f9   : > { %2767 = vmatpush.msrb.mxu3 %v7894_v18  ;;  %11393 = vst [vmem:[#allocation23_spill] sm:$0xff] %v7950_v15 }
 0x9fa   : > { %2791 = vmatpush.msra.mxu1 %v2100_v62  ;;  %2737 = vmatpush.msrb.mxu2 %v2178_v55  ;;  %v7930_v62 = vld [vmem:[#allocation6 + $0x590] sm:$0xff] }
 0x9fb   : > { %2768 = vmatpush.msrb.mxu3 %v7900_v22 }
 0x9fc   : > { %2792 = vmatpush.msra.mxu1 %v2092_v7  ;;  %2738 = vmatpush.msrb.mxu2 %v2170_v34  ;;  %v7938_v7 = vld [vmem:[#allocation6 + $0x558] sm:$0xff]  ;;  %v7966_v34 = vld [vmem:[#allocation6 + $0x410] sm:$0xff] }
 0x9fd   : > { %2769 = vmatpush.msrb.mxu3 %v7906_v54  ;;  %11389 = vst [vmem:[#allocation19_spill] sm:$0xff] %v7938_v7 }
 0x9fe   : > { %2793 = vmatpush.msra.mxu1 %v2084_v10  ;;  %2739 = vmatpush.msrb.mxu2 %v7854_v37  ;;  %11398 = vst [vmem:[#allocation28_spill] sm:$0xff] %v7966_v34 }
 0x9ff   : > { %2770 = vmatpush.msrb.mxu3 %v7912_v56 }
 0xa00   : > { %2794 = vmatpush.msra.mxu1 %v2076_v23  ;;  %2804 = vmatpush.msra.mxu2 %v7866_v40  ;;  %v7954_v23 = vld [vmem:[#allocation6 + $0x490] sm:$0xff] }
 0xa01   : > { %2771 = vmatpush.msrb.mxu3 %v7918_v57  ;;  %11394 = vst [vmem:[#allocation24_spill] sm:$0xff] %v7954_v23 }
 0xa02   : > { %2795 = vmatpush.msra.mxu1 %v2068_v29  ;;  %2805 = vmatpush.msra.mxu2 %v7878_v14  ;;  %v7962_v29 = vld [vmem:[#allocation6 + $0x458] sm:$0xff] }
 0xa03   : > { %2772 = vmatpush.msrb.mxu3 %v7924_v59  ;;  %11397 = vst [vmem:[#allocation27_spill] sm:$0xff] %v7962_v29 }
 0xa04   : > { %2796 = vmatpush.msra.mxu1 %v2060_v11  ;;  %2806 = vmatpush.msra.mxu2 %v7890_v5 }
 0xa05   : > { %2773 = vmatpush.msrb.mxu3 %v7930_v62 }
 0xa06   : > { %2797 = vmatpush.msra.mxu1 %v7862_v39  ;;  %2807 = vmatpush.msra.mxu2 %v7896_v31 }
 0xa07   : > { %2774 = vmatpush.msrb.mxu3 %v7936_v6  ;;  %v8045_v6 = vld [vmem:[#allocation6 + $0x168] sm:$0xff] }
 0xa08   : > { %2798 = vmatpush.msra.mxu1 %v7874_v47  ;;  %2808 = vmatpush.msra.mxu2 %v7902_v26  ;;  %11407 = vst [vmem:[#allocation37_spill] sm:$0xff] %v8045_v6 }
 0xa09   : > { %2775 = vmatpush.msrb.mxu3 %v7942_v8 }
 0xa0a   : > { %2799 = vmatpush.msra.mxu1 %v7886_v46  ;;  %2809 = vmatpush.msra.mxu2 %v7908_v32 }
 0xa0b   : > { %2776 = vmatpush.msrb.mxu3 %v7948_v13 }
 0xa0c   : > { %2810 = vmatpush.msra.mxu2 %v7914_v30 }
 0xa0d   : > { %2777 = vmatpush.msrb.mxu3 %v7954_v23 }
 0xa0e   : > { %2811 = vmatpush.msra.mxu2 %v7920_v58 }
 0xa0f   : > { %2778 = vmatpush.msrb.mxu3 %v7960_v27  ;;  %v8025_v27 = vld [vmem:[#allocation6 + $0x220] sm:$0xff] }
 0xa10   : > { %2812 = vmatpush.msra.mxu2 %v7926_v41 }
 0xa11   : > { %2779 = vmatpush.msrb.mxu3 %v7966_v34  ;;  %v8021_v34 = vld [vmem:[#allocation6 + $0x268] sm:$0xff] }
 0xa12   : > { %2813 = vmatpush.msra.mxu2 %v7932_v24 }
 0xa14   : > { %2814 = vmatpush.msra.mxu2 %v7938_v7  ;;  %v8043_v7 = vld [vmem:[#allocation6 + $0x160] sm:$0xff] }
 0xa15   : > { %11406 = vst [vmem:[#allocation36_spill] sm:$0xff] %v8043_v7 }
 0xa16   : > { %2815 = vmatpush.msra.mxu2 %v7944_v9  ;;  %v8039_v9 = vld [vmem:[#allocation6 + $0x1a8] sm:$0xff] }
 0xa17   : > { %11405 = vst [vmem:[#allocation35_spill] sm:$0xff] %v8039_v9 }
 0xa18   : > { %2816 = vmatpush.msra.mxu2 %v7950_v15  ;;  %v8033_v15 = vld [vmem:[#allocation6 + $0x1e8] sm:$0xff] }
 0xa19   : > { %11403 = vst [vmem:[#allocation33_spill] sm:$0xff] %v8033_v15 }
 0xa1a   : > { %2817 = vmatpush.msra.mxu2 %v7956_v25  ;;  %v8027_v25 = vld [vmem:[#allocation6 + $0x228] sm:$0xff] }
 0xa1b   : > { %11402 = vst [vmem:[#allocation32_spill] sm:$0xff] %v8027_v25 }
 0xa1c   : > { %2818 = vmatpush.msra.mxu2 %v7962_v29 }
 0xa1e   : > { %2819 = vmatpush.msra.mxu2 %v7968_v35  ;;  %v8019_v35 = vld [vmem:[#allocation6 + $0x260] sm:$0xff] }
 0xa48   : > { %v2613_v52 = vpop.f32.mrf.mxu1 }
 0xa49   : > { %v2614_v28 = vadd.f32 1e-05, %v2613_v52  ;;  %v7972_v52 = vpop.permute.xlu1 %2475 }
 0xa4a   : > { %11400 = vst [vmem:[#allocation30_spill] sm:$0xff] %v7972_v52 }
 0xa4b   : > { %6487 = vrsqrt.f32 %v2614_v28  ;;  %vm2642_vm10 = vweird.f32 %v2614_v28 }
 0xa51   : > { %v6488_v50 = vpop.eup %6487 }
 0xa52   : > { %v2637_v63 = vmul.f32 %v6488_v50, %v2614_v28  ;;  %vm2643_vm11 = vweird.f32 %v6488_v50 }
 0xa53   : > { %vm2644_vm12 = vmor %vm2642_vm10, %vm2643_vm11 }
 0xa54   : > { %v2638_v12 = vmul.f32 %v6488_v50, %v2637_v63 }
 0xa56   : > { %v2639_v61 = vmul.f32 0.5, %v2638_v12 }
 0xa58   : > { %v2640_v10 = vsub.f32 1.5, %v2639_v61 }
 0xa5a   : > { %v2641_v17 = vmul.f32 %v6488_v50, %v2640_v10  ;;  %v7981_v10 = vld [vmem:[#allocation6 + $0x3e0] sm:$0xff] }
 0xa5c   : > { %v2645_v55 = vsel %vm2644_vm12, %v6488_v50, %v2641_v17  ;;  %v7976_v50 = vpop.permute.xlu2 %2482  ;;  %v7983_v17 = vld [vmem:[#allocation6 + $0x3e8] sm:$0xff] }
 0xa5d   : > { %v2656_v33 = vperm.slane %v2645_v55, 0  ;;  %11401 = vst [vmem:[#allocation31_spill] sm:$0xff] %v7976_v50  ;;  %v7989_v55 = vld [vmem:[#allocation6 + $0x3a8] sm:$0xff] }
 0xa5f   : > { %v2658_v11 = vmul.f32 %v2656_v33, %v7837_v20  ;;  %v7987_v20 = vld [vmem:[#allocation6 + $0x3a0] sm:$0xff] }
 0xa60   : > { %v7993_v33 = vld [vmem:[#allocation6 + $0x360] sm:$0xff] }
 0xa61   : > { %v2660_v28 = vmul.f32 %v2658_v11, %v7972_v52  ;;  %v7995_v11 = vld [vmem:[#allocation6 + $0x368] sm:$0xff] }
 0xa62   : > { %v2633_v63 = vpop.f32.mrf.mxu2 }
 0xa63   : > { %v7979_v12 = vadd.f32 %v2660_v28, %v7976_v50  ;;  %v2634_v61 = vadd.f32 1e-05, %v2633_v63  ;;  %v7999_v28 = vld [vmem:[#allocation6 + $0x320] sm:$0xff]  ;;  %v8001_v63 = vld [vmem:[#allocation6 + $0x328] sm:$0xff] }
 0xa65   : > { %6489 = vrsqrt.f32 %v2634_v61  ;;  %2680 = vmatmul.f32.vlgmr.msra.gmra.mxu0 %v7979_v12  ;;  %2720 = vmatmul.f32.vlgmr.msrb.gmra.mxu1 %v7979_v12  ;;  %vm2652_vm14 = vweird.f32 %v2634_v61 }
 0xa66   : > { %2824 = vmatpush.msra.mxu0 %v7981_v10  ;;  %2864 = vmatpush.msrb.mxu1 %v7983_v17 }
 0xa68   : > { %2825 = vmatpush.msra.mxu0 %v7987_v20  ;;  %2865 = vmatpush.msrb.mxu1 %v7989_v55 }
 0xa6a   : > { %2826 = vmatpush.msra.mxu0 %v7993_v33  ;;  %2866 = vmatpush.msrb.mxu1 %v7995_v11 }
 0xa6b   : > { %v6490_v0 = vpop.eup %6489 }
 0xa6c   : > { %v2647_v1 = vmul.f32 %v6490_v0, %v2634_v61  ;;  %2827 = vmatpush.msra.mxu0 %v7999_v28  ;;  %2867 = vmatpush.msrb.mxu1 %v8001_v63  ;;  %vm2653_vm13 = vweird.f32 %v6490_v0  ;;  %v8050_v61 = vld [vmem:[#allocation6 + $0x120] sm:$0xff] }
 0xa6d   : > { %2760 = vmatmul.f32.vlgmr.msrb.gmra.mxu0 %v7979_v12  ;;  %2800 = vmatmul.f32.vlgmr.msra.gmra.mxu1 %v7979_v12  ;;  %vm2654_vm2 = vmor %vm2652_vm14, %vm2653_vm13  ;;  %11408 = vst [vmem:[#allocation38_spill] sm:$0xff] %v8050_v61 }
 0xa6e   : > { %v2648_v44 = vmul.f32 %v6490_v0, %v2647_v1  ;;  %2828 = vmatpush.msra.mxu0 %v8005_v53  ;;  %2868 = vmatpush.msrb.mxu1 %v8007_v2  ;;  %v8031_v1 = vld [vmem:[#allocation6 + $0x1e0] sm:$0xff] }
 0xa70   : > { %v2649_v29 = vmul.f32 0.5, %v2648_v44  ;;  %2829 = vmatpush.msra.mxu0 %v8013_v49  ;;  %2869 = vmatpush.msrb.mxu1 %v8015_v48  ;;  %v8037_v44 = vld [vmem:[#allocation6 + $0x1a0] sm:$0xff] }
 0xa71   : > { %11404 = vst [vmem:[#allocation34_spill] sm:$0xff] %v8037_v44 }
 0xa72   : > { %v2650_v23 = vsub.f32 1.5, %v2649_v29  ;;  %2830 = vmatpush.msra.mxu0 %v8019_v35  ;;  %2870 = vmatpush.msrb.mxu1 %v8021_v34 }
 0xa74   : > { %v2651_v13 = vmul.f32 %v6490_v0, %v2650_v23  ;;  %2831 = vmatpush.msra.mxu0 %v8025_v27  ;;  %2871 = vmatpush.msrb.mxu1 %v8027_v25  ;;  %v8052_v25 = vld [vmem:[#allocation6 + $0x128] sm:$0xff] }
 0xa75   : > { %11409 = vst [vmem:[#allocation39_spill] sm:$0xff] %v8052_v25 }
 0xa76   : > { %v2655_v29 = vsel %vm2654_vm2, %v6490_v0, %v2651_v13  ;;  %2832 = vmatpush.msra.mxu0 %v8031_v1  ;;  %2872 = vmatpush.msrb.mxu1 %v8033_v15  ;;  %v8057_v13 = vld [vmem:[#allocation6 + $0xe0] sm:$0xff]  ;;  %v8300_v15 = vld [vmem:[#allocation6 + $0x38] sm:$0xff] }
 0xa77   : > { %v2657_v8 = vperm.slane %v2655_v29, 0  ;;  %11410 = vst [vmem:[#allocation40_spill] sm:$0xff] %v8057_v13  ;;  %v8059_v29 = vld [vmem:[#allocation6 + $0xe8] sm:$0xff] }
 0xa78   : > { %2833 = vmatpush.msra.mxu0 %v8037_v44  ;;  %2873 = vmatpush.msrb.mxu1 %v8039_v9  ;;  %11411 = vst [vmem:[#allocation41_spill] sm:$0xff] %v8059_v29  ;;  %v8068_v9 = vld [vmem:[#allocation6 + $0x7e0] sm:$0xff]  ;;  %v8096_v44 = vld [vmem:[#allocation6 + $0x28] sm:$0xff] }
 0xa79   : > { %v2659_v23 = vmul.f32 %v2657_v8, %v7846_v16  ;;  %v8066_v8 = vld [vmem:[#allocation6 + $0xa0] sm:$0xff]  ;;  %11413 = vst [vmem:[#allocation43_spill] sm:$0xff] %v8068_v9 }
 0xa7a   : > { %2834 = vmatpush.msra.mxu0 %v8043_v7  ;;  %2874 = vmatpush.msrb.mxu1 %v8045_v6  ;;  %11412 = vst [vmem:[#allocation42_spill] sm:$0xff] %v8066_v8  ;;  %v8074_v6 = vld [vmem:[#allocation6 + $0x7e8] sm:$0xff]  ;;  %v8092_v7 = vld [vmem:[#allocation6 + $0x760] sm:$0xff] }
 0xa7b   : > { %v2661_v0 = vmul.f32 %v2659_v23, %v7972_v52  ;;  %v8072_v23 = vld [vmem:[#allocation6 + $0xa8] sm:$0xff]  ;;  %11415 = vst [vmem:[#allocation45_spill] sm:$0xff] %v8074_v6 }
 0xa7c   : > { %2835 = vmatpush.msra.mxu0 %v8050_v61  ;;  %2875 = vmatpush.msrb.mxu1 %v8052_v25  ;;  %11414 = vst [vmem:[#allocation44_spill] sm:$0xff] %v8072_v23  ;;  %v8078_v25 = vld [vmem:[#allocation6 + $0x60] sm:$0xff]  ;;  %v8084_v61 = vld [vmem:[#allocation6 + $0x68] sm:$0xff] }
 0xa7d   : > { %v8064_v16 = vadd.f32 %v2661_v0, %v7976_v50  ;;  %11416 = vst [vmem:[#allocation46_spill] sm:$0xff] %v8078_v25  ;;  %v8080_v0 = vld [vmem:[#allocation6 + $0x7a0] sm:$0xff] }
 0xa7e   : > { %2836 = vmatpush.msra.mxu0 %v8057_v13  ;;  %2876 = vmatpush.msrb.mxu1 %v8059_v29  ;;  %11417 = vst [vmem:[#allocation47_spill] sm:$0xff] %v8080_v0  ;;  %v8086_v13 = vld [vmem:[#allocation6 + $0x7a8] sm:$0xff]  ;;  %v8090_v29 = vld [vmem:[#allocation6 + $0x20] sm:$0xff] }
 0xa7f   : > { %2700 = vmatmul.f32.vlgmr.msra.gmra.mxu3 %v8064_v16  ;;  %2740 = vmatmul.f32.vlgmr.msrb.gmra.mxu2 %v8064_v16  ;;  %11418 = vst [vmem:[#allocation48_spill] sm:$0xff] %v8084_v61 }
 0xa80   : > { %2837 = vmatpush.msra.mxu0 %v8066_v8  ;;  %2844 = vmatpush.msra.mxu3 %v8068_v9  ;;  %11419 = vst [vmem:[#allocation49_spill] sm:$0xff] %v8086_v13  ;;  %v8098_v8 = vld [vmem:[#allocation6 + $0x768] sm:$0xff]  ;;  %v8154_v9 = vld [vmem:[#allocation6 + $0x2f0] sm:$0xff] }
 0xa81   : > { %2877 = vmatpush.msrb.mxu1 %v8072_v23  ;;  %2884 = vmatpush.msrb.mxu2 %v8074_v6  ;;  %11420 = vst [vmem:[#allocation50_spill] sm:$0xff] %v8090_v29  ;;  %v8104_v6 = vld [vmem:[#allocation6 + $0x3f0] sm:$0xff]  ;;  %v8106_v23 = vld [vmem:[#allocation6 + $0x3f8] sm:$0xff] }
 0xa82   : > { %11421 = vst [vmem:[#allocation51_spill] sm:$0xff] %v8092_v7  ;;  %2838 = vmatpush.msra.mxu0 %v8078_v25  ;;  %2845 = vmatpush.msra.mxu3 %v8080_v0  ;;  %v8110_v0 = vld [vmem:[#allocation6 + $0x720] sm:$0xff]  ;;  %v8112_v25 = vld [vmem:[#allocation6 + $0x728] sm:$0xff] }
 0xa83   : > { %11422 = vst [vmem:[#allocation52_spill] sm:$0xff] %v8096_v44  ;;  %2878 = vmatpush.msrb.mxu1 %v8084_v61  ;;  %2885 = vmatpush.msrb.mxu2 %v8086_v13  ;;  %v8116_v13 = vld [vmem:[#allocation6 + $0x3b0] sm:$0xff]  ;;  %v8132_v61 = vld [vmem:[#allocation6 + $0x378] sm:$0xff] }
 0xa84   : > { %11423 = vst [vmem:[#allocation53_spill] sm:$0xff] %v8098_v8  ;;  %2839 = vmatpush.msra.mxu0 %v8090_v29  ;;  %2846 = vmatpush.msra.mxu3 %v8092_v7  ;;  %v8118_v29 = vld [vmem:[#allocation6 + $0x3b8] sm:$0xff]  ;;  %v8130_v7 = vld [vmem:[#allocation6 + $0x370] sm:$0xff] }
 0xa85   : > { %11424 = vst [vmem:[#allocation54_spill] sm:$0xff] %v8104_v6  ;;  %2879 = vmatpush.msrb.mxu1 %v8096_v44  ;;  %2886 = vmatpush.msrb.mxu2 %v8098_v8  ;;  %v8124_v8 = vld [vmem:[#allocation6 + $0x6e0] sm:$0xff]  ;;  %v8126_v44 = vld [vmem:[#allocation6 + $0x6e8] sm:$0xff] }
 0xa86   : > { %11425 = vst [vmem:[#allocation55_spill] sm:$0xff] %v8106_v23  ;;  %2840 = vmatmul.f32.vlgmr.msra.gmra.mxu0 %v7979_v12  ;;  %2880 = vmatmul.f32.vlgmr.msrb.gmra.mxu1 %v7979_v12 }
 0xa87   : > { %11426 = vst [vmem:[#allocation56_spill] sm:$0xff] %v8110_v0  ;;  %2904 = vmatpush.msrb.mxu0 %v8104_v6  ;;  %2944 = vmatpush.msra.mxu1 %v8106_v23  ;;  %v8136_v23 = vld [vmem:[#allocation6 + $0x6a0] sm:$0xff]  ;;  %v8150_v6 = vld [vmem:[#allocation6 + $0x668] sm:$0xff] }
 0xa88   : > { %11427 = vst [vmem:[#allocation57_spill] sm:$0xff] %v8112_v25  ;;  %2847 = vmatpush.msra.mxu3 %v8110_v0  ;;  %2887 = vmatpush.msrb.mxu2 %v8112_v25  ;;  %v8138_v0 = vld [vmem:[#allocation6 + $0x6a8] sm:$0xff]  ;;  %v8142_v25 = vld [vmem:[#allocation6 + $0x330] sm:$0xff] }
 0xa89   : > { %11428 = vst [vmem:[#allocation58_spill] sm:$0xff] %v8116_v13  ;;  %2905 = vmatpush.msrb.mxu0 %v8116_v13  ;;  %2945 = vmatpush.msra.mxu1 %v8118_v29  ;;  %v8144_v13 = vld [vmem:[#allocation6 + $0x338] sm:$0xff] }
 0xa8a   : > { %11429 = vst [vmem:[#allocation59_spill] sm:$0xff] %v8118_v29  ;;  %2780 = vmatmul.f32.vlgmr.msrb.gmra.mxu3 %v8064_v16  ;;  %2820 = vmatmul.f32.vlgmr.msra.gmra.mxu2 %v8064_v16  ;;  %v8148_v29 = vld [vmem:[#allocation6 + $0x660] sm:$0xff] }
 0xa8b   : > { %11430 = vst [vmem:[#allocation60_spill] sm:$0xff] %v8124_v8  ;;  %2848 = vmatpush.msra.mxu3 %v8124_v8  ;;  %2888 = vmatpush.msrb.mxu2 %v8126_v44  ;;  %v8156_v8 = vld [vmem:[#allocation6 + $0x2f8] sm:$0xff] }
 0xa8c   : > { %11431 = vst [vmem:[#allocation61_spill] sm:$0xff] %v8126_v44  ;;  %2906 = vmatpush.msrb.mxu0 %v8130_v7  ;;  %2946 = vmatpush.msra.mxu1 %v8132_v61  ;;  %v8160_v44 = vld [vmem:[#allocation6 + $0x620] sm:$0xff] }
 0xa8d   : > { %11432 = vst [vmem:[#allocation62_spill] sm:$0xff] %v8130_v7  ;;  %2849 = vmatpush.msra.mxu3 %v8136_v23  ;;  %2889 = vmatpush.msrb.mxu2 %v8138_v0  ;;  %v8162_v7 = vld [vmem:[#allocation6 + $0x628] sm:$0xff] }
 0xa8e   : > { %11433 = vst [vmem:[#allocation63_spill] sm:$0xff] %v8132_v61  ;;  %2907 = vmatpush.msrb.mxu0 %v8142_v25  ;;  %2947 = vmatpush.msra.mxu1 %v8144_v13  ;;  %v8166_v61 = vld [vmem:[#allocation6 + $0x2b0] sm:$0xff] }
 0xa8f   : > { %11434 = vst [vmem:[#allocation64_spill] sm:$0xff] %v8136_v23  ;;  %2850 = vmatpush.msra.mxu3 %v8148_v29  ;;  %2890 = vmatpush.msrb.mxu2 %v8150_v6  ;;  %v8168_v23 = vld [vmem:[#allocation6 + $0x2b8] sm:$0xff] }
 0xa90   : > { %11435 = vst [vmem:[#allocation65_spill] sm:$0xff] %v8138_v0  ;;  %2908 = vmatpush.msrb.mxu0 %v8154_v9  ;;  %2948 = vmatpush.msra.mxu1 %v8156_v8  ;;  %v8172_v0 = vld [vmem:[#allocation6 + $0x5e0] sm:$0xff] }
 0xa91   : > { %11436 = vst [vmem:[#allocation66_spill] sm:$0xff] %v8142_v25  ;;  %v8174_v25 = vld [vmem:[#allocation6 + $0x5e8] sm:$0xff]  ;;  %2851 = vmatpush.msra.mxu3 %v8160_v44  ;;  %2891 = vmatpush.msrb.mxu2 %v8162_v7 }
 0xa92   : > { %11437 = vst [vmem:[#allocation67_spill] sm:$0xff] %v8144_v13  ;;  %v8178_v13 = vld [vmem:[#allocation6 + $0x270] sm:$0xff]  ;;  %2909 = vmatpush.msrb.mxu0 %v8166_v61  ;;  %2949 = vmatpush.msra.mxu1 %v8168_v23 }
 0xa93   : > { %11438 = vst [vmem:[#allocation68_spill] sm:$0xff] %v8148_v29  ;;  %v8180_v29 = vld [vmem:[#allocation6 + $0x278] sm:$0xff]  ;;  %2852 = vmatpush.msra.mxu3 %v8172_v0  ;;  %2892 = vmatpush.msrb.mxu2 %v8174_v25 }
 0xa94   : > { %11439 = vst [vmem:[#allocation69_spill] sm:$0xff] %v8150_v6  ;;  %v8184_v6 = vld [vmem:[#allocation6 + $0x5a0] sm:$0xff]  ;;  %2910 = vmatpush.msrb.mxu0 %v8178_v13  ;;  %2950 = vmatpush.msra.mxu1 %v8180_v29 }
 0xa95   : > { %11440 = vst [vmem:[#allocation70_spill] sm:$0xff] %v8154_v9  ;;  %v8186_v9 = vld [vmem:[#allocation6 + $0x5a8] sm:$0xff]  ;;  %2853 = vmatpush.msra.mxu3 %v8184_v6 }
 0xa96   : > { %11441 = vst [vmem:[#allocation71_spill] sm:$0xff] %v8156_v8  ;;  %v8190_v8 = vld [vmem:[#allocation6 + $0x230] sm:$0xff]  ;;  %2893 = vmatpush.msrb.mxu2 %v8186_v9 }
 0xa97   : > { %11442 = vst [vmem:[#allocation72_spill] sm:$0xff] %v8160_v44  ;;  %v8192_v44 = vld [vmem:[#allocation6 + $0x238] sm:$0xff]  ;;  %2911 = vmatpush.msrb.mxu0 %v8190_v8 }
 0xa98   : > { %11443 = vst [vmem:[#allocation73_spill] sm:$0xff] %v8162_v7  ;;  %v8196_v7 = vld [vmem:[#allocation6 + $0x560] sm:$0xff]  ;;  %2951 = vmatpush.msra.mxu1 %v8192_v44 }
 0xa99   : > { %11444 = vst [vmem:[#allocation74_spill] sm:$0xff] %v8166_v61  ;;  %v8198_v61 = vld [vmem:[#allocation6 + $0x568] sm:$0xff]  ;;  %2854 = vmatpush.msra.mxu3 %v8196_v7 }
 0xa9a   : > { %11445 = vst [vmem:[#allocation75_spill] sm:$0xff] %v8168_v23  ;;  %v8202_v23 = vld [vmem:[#allocation6 + $0x1f0] sm:$0xff]  ;;  %2894 = vmatpush.msrb.mxu2 %v8198_v61 }
 0xa9b   : > { %11446 = vst [vmem:[#allocation76_spill] sm:$0xff] %v8172_v0  ;;  %v8204_v0 = vld [vmem:[#allocation6 + $0x1f8] sm:$0xff]  ;;  %2912 = vmatpush.msrb.mxu0 %v8202_v23 }
 0xa9c   : > { %11447 = vst [vmem:[#allocation77_spill] sm:$0xff] %v8174_v25  ;;  %v8208_v25 = vld [vmem:[#allocation6 + $0x520] sm:$0xff]  ;;  %2952 = vmatpush.msra.mxu1 %v8204_v0 }
 0xa9d   : > { %11448 = vst [vmem:[#allocation78_spill] sm:$0xff] %v8178_v13  ;;  %v8210_v13 = vld [vmem:[#allocation6 + $0x528] sm:$0xff]  ;;  %2855 = vmatpush.msra.mxu3 %v8208_v25 }
 0xa9e   : > { %11449 = vst [vmem:[#allocation79_spill] sm:$0xff] %v8180_v29  ;;  %v8214_v29 = vld [vmem:[#allocation6 + $0x1b0] sm:$0xff]  ;;  %2895 = vmatpush.msrb.mxu2 %v8210_v13 }
 0xa9f   : > { %11450 = vst [vmem:[#allocation80_spill] sm:$0xff] %v8184_v6  ;;  %v8216_v6 = vld [vmem:[#allocation6 + $0x1b8] sm:$0xff]  ;;  %2913 = vmatpush.msrb.mxu0 %v8214_v29 }
 0xaa0   : > { %11451 = vst [vmem:[#allocation81_spill] sm:$0xff] %v8186_v9  ;;  %v8220_v9 = vld [vmem:[#allocation6 + $0x4e0] sm:$0xff]  ;;  %2953 = vmatpush.msra.mxu1 %v8216_v6 }
 0xaa1   : > { %11452 = vst [vmem:[#allocation82_spill] sm:$0xff] %v8190_v8  ;;  %v8222_v8 = vld [vmem:[#allocation6 + $0x4e8] sm:$0xff]  ;;  %2856 = vmatpush.msra.mxu3 %v8220_v9 }
 0xaa2   : > { %11453 = vst [vmem:[#allocation83_spill] sm:$0xff] %v8192_v44  ;;  %v8225_v44 = vadd.f32 1e-05, %v7835_v45  ;;  %2896 = vmatpush.msrb.mxu2 %v8222_v8  ;;  %v8241_v45 = vld [vmem:[#allocation6 + $0x130] sm:$0xff] }
 0xaa3   : > { %11454 = vst [vmem:[#allocation84_spill] sm:$0xff] %v8196_v7  ;;  %v8231_v7 = vld [vmem:[#allocation6 + $0x178] sm:$0xff] }
 0xaa4   : > { %11455 = vst [vmem:[#allocation85_spill] sm:$0xff] %v8198_v61  ;;  %v8229_v61 = vld [vmem:[#allocation6 + $0x170] sm:$0xff]  ;;  %2954 = vmatpush.msra.mxu1 %v8231_v7  ;;  %6491 = vrsqrt.f32 %v8225_v44  ;;  %vm2455_vm3 = vweird.f32 %v8225_v44 }
 0xaa5   : > { %11456 = vst [vmem:[#allocation86_spill] sm:$0xff] %v8202_v23  ;;  %v8237_v23 = vld [vmem:[#allocation6 + $0x4a8] sm:$0xff]  ;;  %2914 = vmatpush.msrb.mxu0 %v8229_v61 }
 0xaa6   : > { %11457 = vst [vmem:[#allocation87_spill] sm:$0xff] %v8204_v0  ;;  %v8235_v0 = vld [vmem:[#allocation6 + $0x4a0] sm:$0xff]  ;;  %2897 = vmatpush.msrb.mxu2 %v8237_v23 }
 0xaa7   : > { %11458 = vst [vmem:[#allocation88_spill] sm:$0xff] %v8208_v25  ;;  %v8243_v25 = vld [vmem:[#allocation6 + $0x138] sm:$0xff]  ;;  %2857 = vmatpush.msra.mxu3 %v8235_v0  ;;  %2915 = vmatpush.msrb.mxu0 %v8241_v45 }
 0xaa8   : > { %11459 = vst [vmem:[#allocation89_spill] sm:$0xff] %v8210_v13  ;;  %v8247_v13 = vld [vmem:[#allocation6 + $0x460] sm:$0xff]  ;;  %2955 = vmatpush.msra.mxu1 %v8243_v25 }
 0xaa9   : > { %11460 = vst [vmem:[#allocation90_spill] sm:$0xff] %v8214_v29  ;;  %v8249_v29 = vld [vmem:[#allocation6 + $0x468] sm:$0xff]  ;;  %2858 = vmatpush.msra.mxu3 %v8247_v13 }
 0xaaa   : > { %11461 = vst [vmem:[#allocation91_spill] sm:$0xff] %v8216_v6  ;;  %2898 = vmatpush.msrb.mxu2 %v8249_v29  ;;  %v8296_v6 = vld [vmem:[#allocation6 + $0x770] sm:$0xff] }
 0xaab   : > { %11462 = vst [vmem:[#allocation92_spill] sm:$0xff] %v8220_v9  ;;  %v8254_v9 = vld [vmem:[#allocation6 + $0xf0] sm:$0xff] }
 0xaac   : > { %11463 = vst [vmem:[#allocation93_spill] sm:$0xff] %v8222_v8  ;;  %v8256_v8 = vld [vmem:[#allocation6 + $0xf8] sm:$0xff]  ;;  %2916 = vmatpush.msrb.mxu0 %v8254_v9 }
 0xaad   : > { %11464 = vst [vmem:[#allocation94_spill] sm:$0xff] %v8229_v61  ;;  %v8260_v61 = vld [vmem:[#allocation6 + $0x420] sm:$0xff]  ;;  %2956 = vmatpush.msra.mxu1 %v8256_v8 }
 0xaae   : > { %11465 = vst [vmem:[#allocation95_spill] sm:$0xff] %v8231_v7  ;;  %v8262_v7 = vld [vmem:[#allocation6 + $0x428] sm:$0xff]  ;;  %2859 = vmatpush.msra.mxu3 %v8260_v61 }
 0xaaf   : > { %11466 = vst [vmem:[#allocation96_spill] sm:$0xff] %v8235_v0  ;;  %v8270_v0 = vld [vmem:[#allocation6 + $0x7f0] sm:$0xff]  ;;  %2899 = vmatpush.msrb.mxu2 %v8262_v7  ;;  %2860 = vmatmul.f32.vlgmr.msra.gmra.mxu3 %v8064_v16 }
 0xab0   : > { %11467 = vst [vmem:[#allocation97_spill] sm:$0xff] %v8237_v23  ;;  %v8268_v23 = vld [vmem:[#allocation6 + $0xb0] sm:$0xff]  ;;  %2900 = vmatmul.f32.vlgmr.msrb.gmra.mxu2 %v8064_v16  ;;  %2924 = vmatpush.msrb.mxu3 %v8270_v0 }
 0xab1   : > { %11468 = vst [vmem:[#allocation98_spill] sm:$0xff] %v8241_v45  ;;  %v8276_v45 = vld [vmem:[#allocation6 + $0x7f8] sm:$0xff]  ;;  %2917 = vmatpush.msrb.mxu0 %v8268_v23 }
 0xab2   : > { %11469 = vst [vmem:[#allocation99_spill] sm:$0xff] %v8243_v25  ;;  %v8274_v25 = vld [vmem:[#allocation6 + $0xb8] sm:$0xff]  ;;  %2964 = vmatpush.msra.mxu2 %v8276_v45 }
 0xab3   : > { %11470 = vst [vmem:[#allocation100_spill] sm:$0xff] %v8247_v13  ;;  %2957 = vmatpush.msra.mxu1 %v8274_v25  ;;  %v8294_v13 = vld [vmem:[#allocation6 + $0x30] sm:$0xff] }
 0xab4   : > { %11471 = vst [vmem:[#allocation101_spill] sm:$0xff] %v8249_v29  ;;  %v8280_v29 = vld [vmem:[#allocation6 + $0x70] sm:$0xff] }
 0xab5   : > { %11472 = vst [vmem:[#allocation102_spill] sm:$0xff] %v8254_v9  ;;  %v8282_v9 = vld [vmem:[#allocation6 + $0x7b0] sm:$0xff]  ;;  %2918 = vmatpush.msrb.mxu0 %v8280_v29 }
 0xab6   : > { %11473 = vst [vmem:[#allocation103_spill] sm:$0xff] %v8256_v8  ;;  %v8284_v8 = vpop.eup %6491  ;;  %2925 = vmatpush.msrb.mxu3 %v8282_v9 }
 0xab7   : > { %11474 = vst [vmem:[#allocation104_spill] sm:$0xff] %v8260_v61  ;;  %v8288_v61 = vld [vmem:[#allocation6 + $0x78] sm:$0xff]  ;;  %2919 = vmatpush.msrb.mxu0 %v8294_v13  ;;  %vm2456_vm4 = vweird.f32 %v8284_v8 }
 0xab8   : > { %11475 = vst [vmem:[#allocation105_spill] sm:$0xff] %v8262_v7  ;;  %v8290_v7 = vld [vmem:[#allocation6 + $0x7b8] sm:$0xff]  ;;  %2958 = vmatpush.msra.mxu1 %v8288_v61  ;;  %2926 = vmatpush.msrb.mxu3 %v8296_v6  ;;  %vm8411_vm5 = vmor %vm2455_vm3, %vm2456_vm4 }
 0xab9   : > { %11476 = vst [vmem:[#allocation106_spill] sm:$0xff] %v8268_v23  ;;  %v8302_v23 = vld [vmem:[#allocation6 + $0x778] sm:$0xff]  ;;  %2965 = vmatpush.msra.mxu2 %v8290_v7  ;;  %2920 = vmatmul.f32.vlgmr.msrb.gmra.mxu0 %v7979_v12 }
 0xaba   : > { %11477 = vst [vmem:[#allocation107_spill] sm:$0xff] %v8270_v0  ;;  %v2450_v0 = vmul.f32 %v8284_v8, %v8225_v44  ;;  %2959 = vmatpush.msra.mxu1 %v8300_v15  ;;  %v8426_v44 = vld [vmem:[#allocation6 + $0x538] sm:$0xff] }
 0xabb   : > { %11478 = vst [vmem:[#allocation108_spill] sm:$0xff] %v8276_v45  ;;  %2966 = vmatpush.msra.mxu2 %v8302_v23  ;;  %2960 = vmatmul.f32.vlgmr.msra.gmra.mxu1 %v7979_v12  ;;  %v8319_v45 = vld [vmem:[#allocation6 + $0x3c0] sm:$0xff]  ;;  %v8334_v12 = vld [vmem:[#allocation6 + $0x388] sm:$0xff] }
 0xabc   : > { %11479 = vst [vmem:[#allocation109_spill] sm:$0xff] %v8280_v29  ;;  %v8314_v29 = vld [vmem:[#allocation6 + $0x738] sm:$0xff]  ;;  %3024 = vmatpush.msra.mxu0 %v8319_v45 }
 0xabd   : > { %11480 = vst [vmem:[#allocation110_spill] sm:$0xff] %v8282_v9  ;;  %v8312_v9 = vld [vmem:[#allocation6 + $0x730] sm:$0xff]  ;;  %2967 = vmatpush.msra.mxu2 %v8314_v29 }
 0xabe   : > { %11481 = vst [vmem:[#allocation111_spill] sm:$0xff] %v8288_v61  ;;  %v2451_v61 = vmul.f32 %v8284_v8, %v2450_v0  ;;  %2927 = vmatpush.msrb.mxu3 %v8312_v9  ;;  %v8337_v0 = vld [vmem:[#allocation6 + $0x6b0] sm:$0xff] }
 0xabf   : > { %11482 = vst [vmem:[#allocation112_spill] sm:$0xff] %v8294_v13  ;;  %v8322_v13 = vld [vmem:[#allocation6 + $0x3c8] sm:$0xff] }
 0xac0   : > { %11483 = vst [vmem:[#allocation113_spill] sm:$0xff] %v8296_v6  ;;  %3064 = vmatpush.msrb.mxu1 %v8322_v13  ;;  %v8331_v6 = vld [vmem:[#allocation6 + $0x380] sm:$0xff] }
 0xac1   : > { %11484 = vst [vmem:[#allocation114_spill] sm:$0xff] %v8300_v15  ;;  %v8325_v15 = vld [vmem:[#allocation6 + $0x6f0] sm:$0xff]  ;;  %3025 = vmatpush.msra.mxu0 %v8331_v6 }
 0xac2   : > { %11485 = vst [vmem:[#allocation115_spill] sm:$0xff] %v8302_v23  ;;  %v8327_v23 = vld [vmem:[#allocation6 + $0x6f8] sm:$0xff]  ;;  %3065 = vmatpush.msrb.mxu1 %v8334_v12  ;;  %2928 = vmatpush.msrb.mxu3 %v8325_v15 }
 0xac3   : > { %11486 = vst [vmem:[#allocation116_spill] sm:$0xff] %v8312_v9  ;;  %2968 = vmatpush.msra.mxu2 %v8327_v23  ;;  %v8343_v9 = vld [vmem:[#allocation6 + $0x340] sm:$0xff] }
 0xac4   : > { %11487 = vst [vmem:[#allocation117_spill] sm:$0xff] %v8314_v29  ;;  %3026 = vmatpush.msra.mxu0 %v8343_v9  ;;  %v8346_v29 = vld [vmem:[#allocation6 + $0x348] sm:$0xff]  ;;  %2929 = vmatpush.msrb.mxu3 %v8337_v0 }
 0xac5   : > { %11488 = vst [vmem:[#allocation118_spill] sm:$0xff] %v8319_v45  ;;  %v8339_v45 = vld [vmem:[#allocation6 + $0x6b8] sm:$0xff]  ;;  %3066 = vmatpush.msrb.mxu1 %v8346_v29 }
 0xac6   : > { %11489 = vst [vmem:[#allocation119_spill] sm:$0xff] %v8322_v13  ;;  %v2452_v13 = vmul.f32 0.5, %v2451_v61  ;;  %2969 = vmatpush.msra.mxu2 %v8339_v45  ;;  %v8358_v61 = vld [vmem:[#allocation6 + $0x308] sm:$0xff] }
 0xac7   : > { %11490 = vst [vmem:[#allocation120_spill] sm:$0xff] %v8325_v15  ;;  %v8355_v15 = vld [vmem:[#allocation6 + $0x300] sm:$0xff]  ;;  %3067 = vmatpush.msrb.mxu1 %v8358_v61 }
 0xac8   : > { %11491 = vst [vmem:[#allocation121_spill] sm:$0xff] %v8327_v23  ;;  %3027 = vmatpush.msra.mxu0 %v8355_v15  ;;  %v8363_v23 = vld [vmem:[#allocation6 + $0x638] sm:$0xff] }
 0xac9   : > { %11492 = vst [vmem:[#allocation122_spill] sm:$0xff] %v8331_v6  ;;  %v8349_v6 = vld [vmem:[#allocation6 + $0x670] sm:$0xff] }
 0xaca   : > { %11493 = vst [vmem:[#allocation123_spill] sm:$0xff] %v8334_v12  ;;  %v8351_v12 = vld [vmem:[#allocation6 + $0x678] sm:$0xff]  ;;  %2930 = vmatpush.msrb.mxu3 %v8349_v6 }
 0xacb   : > { %11494 = vst [vmem:[#allocation124_spill] sm:$0xff] %v8337_v0  ;;  %2970 = vmatpush.msra.mxu2 %v8351_v12  ;;  %v8367_v0 = vld [vmem:[#allocation6 + $0x2c0] sm:$0xff] }
 0xacc   : > { %11495 = vst [vmem:[#allocation125_spill] sm:$0xff] %v8339_v45  ;;  %3028 = vmatpush.msra.mxu0 %v8367_v0  ;;  %v8370_v45 = vld [vmem:[#allocation6 + $0x2c8] sm:$0xff] }
 0xacd   : > { %11496 = vst [vmem:[#allocation126_spill] sm:$0xff] %v8343_v9  ;;  %v8361_v9 = vld [vmem:[#allocation6 + $0x630] sm:$0xff]  ;;  %3068 = vmatpush.msrb.mxu1 %v8370_v45  ;;  %2971 = vmatpush.msra.mxu2 %v8363_v23 }
 0xace   : > { %11497 = vst [vmem:[#allocation127_spill] sm:$0xff] %v8346_v29  ;;  %v2453_v29 = vsub.f32 1.5, %v2452_v13  ;;  %2931 = vmatpush.msrb.mxu3 %v8361_v9  ;;  %v8382_v13 = vadd.f32 1e-05, %v7843_v60  ;;  %v8397_v60 = vld [vmem:[#allocation6 + $0x240] sm:$0xff] }
 0xacf   : > { %11498 = vst [vmem:[#allocation128_spill] sm:$0xff] %v8349_v6  ;;  %v8400_v6 = vld [vmem:[#allocation6 + $0x248] sm:$0xff] }
 0xad0   : > { %11499 = vst [vmem:[#allocation129_spill] sm:$0xff] %v8351_v12  ;;  %v8390_v12 = vld [vmem:[#allocation6 + $0x5b0] sm:$0xff]  ;;  %6493 = vrsqrt.f32 %v8382_v13  ;;  %vm2465_vm6 = vweird.f32 %v8382_v13 }
 0xad1   : > { %11500 = vst [vmem:[#allocation130_spill] sm:$0xff] %v8355_v15  ;;  %v8373_v15 = vld [vmem:[#allocation6 + $0x5f0] sm:$0xff] }
 0xad2   : > { %11501 = vst [vmem:[#allocation131_spill] sm:$0xff] %v8358_v61  ;;  %v8375_v61 = vld [vmem:[#allocation6 + $0x5f8] sm:$0xff]  ;;  %2932 = vmatpush.msrb.mxu3 %v8373_v15 }
 0xad3   : > { %11502 = vst [vmem:[#allocation132_spill] sm:$0xff] %v8361_v9  ;;  %v8392_v9 = vld [vmem:[#allocation6 + $0x5b8] sm:$0xff]  ;;  %2972 = vmatpush.msra.mxu2 %v8375_v61 }
 0xad4   : > { %11503 = vst [vmem:[#allocation133_spill] sm:$0xff] %v8363_v23  ;;  %v2454_v23 = vmul.f32 %v8284_v8, %v2453_v29  ;;  %2933 = vmatpush.msrb.mxu3 %v8390_v12  ;;  %v8418_v29 = vld [vmem:[#allocation6 + $0x200] sm:$0xff] }
 0xad5   : > { %11504 = vst [vmem:[#allocation134_spill] sm:$0xff] %v8367_v0  ;;  %v8384_v0 = vld [vmem:[#allocation6 + $0x280] sm:$0xff]  ;;  %2973 = vmatpush.msra.mxu2 %v8392_v9 }
 0xad6   : > { %11505 = vst [vmem:[#allocation135_spill] sm:$0xff] %v8370_v45  ;;  %3029 = vmatpush.msra.mxu0 %v8384_v0  ;;  %v8387_v45 = vld [vmem:[#allocation6 + $0x288] sm:$0xff] }
 0xad7   : > { %11506 = vst [vmem:[#allocation136_spill] sm:$0xff] %v8373_v15  ;;  %3069 = vmatpush.msrb.mxu1 %v8387_v45  ;;  %v8441_v15 = vld [vmem:[#allocation6 + $0x4f8] sm:$0xff] }
 0xad8   : > { %11507 = vst [vmem:[#allocation137_spill] sm:$0xff] %v8375_v61  ;;  %3030 = vmatpush.msra.mxu0 %v8397_v60  ;;  %v8453_v61 = vld [vmem:[#allocation6 + $0x4b8] sm:$0xff] }
 0xad9   : > { %11508 = vst [vmem:[#allocation138_spill] sm:$0xff] %v8384_v0  ;;  %3070 = vmatpush.msrb.mxu1 %v8400_v6  ;;  %v8403_v0 = vld [vmem:[#allocation6 + $0x570] sm:$0xff] }
 0xada   : > { %11509 = vst [vmem:[#allocation139_spill] sm:$0xff] %v8387_v45  ;;  %v8405_v45 = vld [vmem:[#allocation6 + $0x578] sm:$0xff]  ;;  %3031 = vmatpush.msra.mxu0 %v8418_v29  ;;  %2934 = vmatpush.msrb.mxu3 %v8403_v0 }
 0xadb   : > { %11510 = vst [vmem:[#allocation140_spill] sm:$0xff] %v8390_v12  ;;  %2974 = vmatpush.msra.mxu2 %v8405_v45  ;;  %v8433_v12 = vld [vmem:[#allocation6 + $0x1c0] sm:$0xff] }
 0xadc   : > { %11511 = vst [vmem:[#allocation141_spill] sm:$0xff] %v8392_v9  ;;  %v2458_v9 = vsel %vm8411_vm5, %v8284_v8, %v2454_v23  ;;  %3032 = vmatpush.msra.mxu0 %v8433_v12  ;;  %v8448_v8 = vld [vmem:[#allocation6 + $0x188] sm:$0xff]  ;;  %v8451_v23 = vld [vmem:[#allocation6 + $0x4b0] sm:$0xff] }
 0xadd   : > { %11512 = vst [vmem:[#allocation142_spill] sm:$0xff] %v8397_v60  ;;  %v8424_v60 = vld [vmem:[#allocation6 + $0x530] sm:$0xff]  ;;  %2975 = vmatpush.msra.mxu2 %v8426_v44 }
 0xade   : > { %11513 = vst [vmem:[#allocation143_spill] sm:$0xff] %v8400_v6  ;;  %v8421_v6 = vld [vmem:[#allocation6 + $0x208] sm:$0xff]  ;;  %2935 = vmatpush.msrb.mxu3 %v8424_v60 }
 0xadf   : > { %11514 = vst [vmem:[#allocation144_spill] sm:$0xff] %v8403_v0  ;;  %3071 = vmatpush.msrb.mxu1 %v8421_v6  ;;  %2976 = vmatpush.msra.mxu2 %v8441_v15 }
 0xae0   : > { %11515 = vst [vmem:[#allocation145_spill] sm:$0xff] %v8405_v45  ;;  %v8445_v45 = vld [vmem:[#allocation6 + $0x180] sm:$0xff] }
 0xae1   : > { %11518 = vst [vmem:[#allocation146_spill] sm:$0xff] %v8418_v29  ;;  %v8436_v29 = vld [vmem:[#allocation6 + $0x1c8] sm:$0xff]  ;;  %3033 = vmatpush.msra.mxu0 %v8445_v45  ;;  %2977 = vmatpush.msra.mxu2 %v8453_v61 }
 0xae2   : > { %11519 = vst [vmem:[#allocation147_spill] sm:$0xff] %v8421_v6  ;;  %3072 = vmatpush.msrb.mxu1 %v8436_v29  ;;  %v8439_v6 = vld [vmem:[#allocation6 + $0x4f0] sm:$0xff] }
 0xae3   : > { %11520 = vst [vmem:[#allocation148_spill] sm:$0xff] %v8424_v60  ;;  %2936 = vmatpush.msrb.mxu3 %v8439_v6  ;;  %v8467_v60 = vld [vmem:[#allocation6 + $0x478] sm:$0xff] }
 0xae4   : > { %11521 = vst [vmem:[#allocation149_spill] sm:$0xff] %v8426_v44  ;;  %3073 = vmatpush.msrb.mxu1 %v8448_v8  ;;  %v8459_v44 = vld [vmem:[#allocation6 + $0x140] sm:$0xff]  ;;  %2978 = vmatpush.msra.mxu2 %v8467_v60 }
 0xae5   : > { %11522 = vst [vmem:[#allocation150_spill] sm:$0xff] %v8433_v12  ;;  %v8457_v12 = vpop.eup %6493  ;;  %3034 = vmatpush.msra.mxu0 %v8459_v44  ;;  %2937 = vmatpush.msrb.mxu3 %v8451_v23 }
 0xae6   : > { %11523 = vst [vmem:[#allocation151_spill] sm:$0xff] %v8436_v29  ;;  %v2469_v29 = vperm.slane %v2458_v9, 0  ;;  %v8471_v9 = vld [vmem:[#allocation6 + $0x100] sm:$0xff]  ;;  %v2460_v0 = vmul.f32 %v8457_v12, %v8382_v13  ;;  %vm2466_vm7 = vweird.f32 %v8457_v12  ;;  %v8596_v13 = vld [vmem:[#allocation6 + $0x2d0] sm:$0xff] }
 0xae7   : > { %11524 = vst [vmem:[#allocation152_spill] sm:$0xff] %v8439_v6  ;;  %3035 = vmatpush.msra.mxu0 %v8471_v9  ;;  %v8479_v6 = vld [vmem:[#allocation6 + $0x438] sm:$0xff]  ;;  %vm8580_vm10 = vmor %vm2465_vm6, %vm2466_vm7 }
 0xae8   : > { %11525 = vst [vmem:[#allocation153_spill] sm:$0xff] %v8441_v15  ;;  %v8474_v15 = vld [vmem:[#allocation6 + $0x108] sm:$0xff]  ;;  %2979 = vmatpush.msra.mxu2 %v8479_v6 }
 0xae9   : > { %11526 = vst [vmem:[#allocation154_spill] sm:$0xff] %v8445_v45  ;;  %v8462_v45 = vld [vmem:[#allocation6 + $0x148] sm:$0xff]  ;;  %2980 = vmatmul.f32.vlgmr.msra.gmra.mxu2 %v8064_v16 }
 0xaea   : > { %11527 = vst [vmem:[#allocation155_spill] sm:$0xff] %v8448_v8  ;;  %3074 = vmatpush.msrb.mxu1 %v8462_v45  ;;  %v8465_v8 = vld [vmem:[#allocation6 + $0x470] sm:$0xff] }
 0xaeb   : > { %11528 = vst [vmem:[#allocation156_spill] sm:$0xff] %v8453_v61  ;;  %2938 = vmatpush.msrb.mxu3 %v8465_v8  ;;  %v8486_v61 = vld [vmem:[#allocation6 + $0xc0] sm:$0xff] }
 0xaec   : > { %11529 = vst [vmem:[#allocation157_spill] sm:$0xff] %v8459_v44  ;;  %3075 = vmatpush.msrb.mxu1 %v8474_v15  ;;  %v8477_v44 = vld [vmem:[#allocation6 + $0x430] sm:$0xff]  ;;  %3036 = vmatpush.msra.mxu0 %v8486_v61 }
 0xaed   : > { %11530 = vst [vmem:[#allocation158_spill] sm:$0xff] %v8462_v45  ;;  %v2471_v45 = vmul.f32 %v2469_v29, %v7814_v4  ;;  %2939 = vmatpush.msrb.mxu3 %v8477_v44  ;;  %v2461_v29 = vmul.f32 %v8457_v12, %v2460_v0  ;;  %v8516_v0 = vld [vmem:[#allocation6 + $0x48] sm:$0xff] }
 0xaee   : > { %11531 = vst [vmem:[#allocation159_spill] sm:$0xff] %v8471_v9  ;;  %v8489_v9 = vld [vmem:[#allocation6 + $0xc8] sm:$0xff]  ;;  %2940 = vmatmul.f32.vlgmr.msrb.gmra.mxu3 %v8064_v16  ;;  %v8510_v16 = vld [vmem:[#allocation6 + $0x40] sm:$0xff] }
 0xaef   : > { %11532 = vst [vmem:[#allocation160_spill] sm:$0xff] %v8474_v15  ;;  %3076 = vmatpush.msrb.mxu1 %v8489_v9  ;;  %v2478_v4 = vmul.f32 %v7972_v52, %v2471_v45  ;;  %v8498_v15 = vld [vmem:[#allocation6 + $0x80] sm:$0xff] }
 0xaf0   : > { %11533 = vst [vmem:[#allocation161_spill] sm:$0xff] %v8479_v6  ;;  %3037 = vmatpush.msra.mxu0 %v8498_v15  ;;  %v8507_v6 = vld [vmem:[#allocation6 + $0x7c8] sm:$0xff]  ;;  %v8513_v45 = vld [vmem:[#allocation6 + $0x780] sm:$0xff] }
 0xaf1   : > { %11534 = vst [vmem:[#allocation162_spill] sm:$0xff] %v8486_v61  ;;  %v8501_v61 = vld [vmem:[#allocation6 + $0x7c0] sm:$0xff]  ;;  %3084 = vmatpush.msrb.mxu2 %v8507_v6 }
 0xaf2   : > { %11535 = vst [vmem:[#allocation163_spill] sm:$0xff] %v8489_v9  ;;  %3044 = vmatpush.msra.mxu3 %v8501_v61  ;;  %v8504_v9 = vld [vmem:[#allocation6 + $0x88] sm:$0xff]  ;;  %3038 = vmatpush.msra.mxu0 %v8510_v16 }
 0xaf3   : > { %11536 = vst [vmem:[#allocation164_spill] sm:$0xff] %v8498_v15  ;;  %3077 = vmatpush.msrb.mxu1 %v8504_v9  ;;  %v8525_v15 = vld [vmem:[#allocation6] sm:$0xff] }
 0xaf4   : > { %11537 = vst [vmem:[#allocation165_spill] sm:$0xff] %v8501_v61  ;;  %3045 = vmatpush.msra.mxu3 %v8513_v45  ;;  %v8519_v61 = vld [vmem:[#allocation6 + $0x788] sm:$0xff]  ;;  %3039 = vmatpush.msra.mxu0 %v8525_v15 }
 0xaf5   : > { %11538 = vst [vmem:[#allocation166_spill] sm:$0xff] %v8504_v9  ;;  %3078 = vmatpush.msrb.mxu1 %v8516_v0  ;;  %3085 = vmatpush.msrb.mxu2 %v8519_v61  ;;  %v8523_v9 = vadd.f32 %v7976_v50, %v2478_v4  ;;  %v8539_v4 = vld [vmem:[#allocation6 + $0x3d0] sm:$0xff] }
 0xaf6   : > { %11539 = vst [vmem:[#allocation167_spill] sm:$0xff] %v8507_v6  ;;  %v2462_v6 = vmul.f32 0.5, %v2461_v29  ;;  %3104 = vmatpush.msrb.mxu0 %v8539_v4  ;;  %v8542_v29 = vld [vmem:[#allocation6 + $0x3d8] sm:$0xff] }
 0xaf7   : > { %11540 = vst [vmem:[#allocation168_spill] sm:$0xff] %v8510_v16  ;;  %v8528_v16 = vld [vmem:[#allocation6 + $0x740] sm:$0xff]  ;;  %3040 = vmatmul.f32.vlgmr.msra.gmra.mxu0 %v8523_v9 }
 0xaf8   : > { %11541 = vst [vmem:[#allocation169_spill] sm:$0xff] %v8513_v45  ;;  %3046 = vmatpush.msra.mxu3 %v8528_v16  ;;  %v8531_v45 = vld [vmem:[#allocation6 + $0x8] sm:$0xff] }
 0xaf9   : > { %11542 = vst [vmem:[#allocation170_spill] sm:$0xff] %v8516_v0  ;;  %3079 = vmatpush.msrb.mxu1 %v8531_v45  ;;  %v8534_v0 = vld [vmem:[#allocation6 + $0x748] sm:$0xff] }
 0xafa   : > { %11543 = vst [vmem:[#allocation171_spill] sm:$0xff] %v8519_v61  ;;  %3086 = vmatpush.msrb.mxu2 %v8534_v0  ;;  %3080 = vmatmul.f32.vlgmr.msrb.gmra.mxu1 %v8523_v9  ;;  %v2463_v61 = vsub.f32 1.5, %v2462_v6  ;;  %v8559_v6 = vld [vmem:[#allocation6 + $0x6c0] sm:$0xff] }
 0xafb   : > { %11544 = vst [vmem:[#allocation172_spill] sm:$0xff] %v8525_v15  ;;  %3144 = vmatpush.msra.mxu1 %v8542_v29  ;;  %v8554_v15 = vld [vmem:[#allocation6 + $0x398] sm:$0xff] }
 0xafc   : > { %11545 = vst [vmem:[#allocation173_spill] sm:$0xff] %v8528_v16  ;;  %v8545_v16 = vld [vmem:[#allocation6 + $0x700] sm:$0xff] }
 0xafd   : > { %11546 = vst [vmem:[#allocation174_spill] sm:$0xff] %v8531_v45  ;;  %3047 = vmatpush.msra.mxu3 %v8545_v16  ;;  %v8548_v45 = vld [vmem:[#allocation6 + $0x708] sm:$0xff]  ;;  %3145 = vmatpush.msra.mxu1 %v8554_v15 }
 0xafe   : > { %11547 = vst [vmem:[#allocation175_spill] sm:$0xff] %v8534_v0  ;;  %3087 = vmatpush.msrb.mxu2 %v8548_v45  ;;  %v8551_v0 = vld [vmem:[#allocation6 + $0x390] sm:$0xff] }
 0xaff   : > { %11548 = vst [vmem:[#allocation176_spill] sm:$0xff] %v8539_v4  ;;  %3105 = vmatpush.msrb.mxu0 %v8551_v0  ;;  %3048 = vmatpush.msra.mxu3 %v8559_v6  ;;  %v8575_v4 = vld [vmem:[#allocation6 + $0x688] sm:$0xff] }
 0xb00   : > { %11549 = vst [vmem:[#allocation177_spill] sm:$0xff] %v8542_v29  ;;  %v8562_v29 = vld [vmem:[#allocation6 + $0x6c8] sm:$0xff] }
 0xb01   : > { %11550 = vst [vmem:[#allocation178_spill] sm:$0xff] %v8545_v16  ;;  %3088 = vmatpush.msrb.mxu2 %v8562_v29  ;;  %v8568_v16 = vld [vmem:[#allocation6 + $0x358] sm:$0xff] }
 0xb02   : > { %11551 = vst [vmem:[#allocation179_spill] sm:$0xff] %v8548_v45  ;;  %v8565_v45 = vld [vmem:[#allocation6 + $0x350] sm:$0xff]  ;;  %3146 = vmatpush.msra.mxu1 %v8568_v16 }
 0xb03   : > { %11552 = vst [vmem:[#allocation180_spill] sm:$0xff] %v8551_v0  ;;  %3106 = vmatpush.msrb.mxu0 %v8565_v45  ;;  %v8572_v0 = vld [vmem:[#allocation6 + $0x680] sm:$0xff]  ;;  %3089 = vmatpush.msrb.mxu2 %v8575_v4 }
 0xb04   : > { %11553 = vst [vmem:[#allocation181_spill] sm:$0xff] %v8554_v15  ;;  %v2464_v15 = vmul.f32 %v8457_v12, %v2463_v61  ;;  %3049 = vmatpush.msra.mxu3 %v8572_v0  ;;  %v8590_v61 = vld [vmem:[#allocation6 + $0x640] sm:$0xff] }
 0xb05   : > { %11554 = vst [vmem:[#allocation182_spill] sm:$0xff] %v8559_v6  ;;  %v8584_v6 = vld [vmem:[#allocation6 + $0x310] sm:$0xff] }
 0xb06   : > { %11555 = vst [vmem:[#allocation183_spill] sm:$0xff] %v8562_v29  ;;  %3107 = vmatpush.msrb.mxu0 %v8584_v6  ;;  %3050 = vmatpush.msra.mxu3 %v8590_v61  ;;  %v8623_v29 = vld [vmem:[#allocation6 + $0x250] sm:$0xff] }
 0xb07   : > { %11556 = vst [vmem:[#allocation184_spill] sm:$0xff] %v8568_v16  ;;  %v8587_v16 = vld [vmem:[#allocation6 + $0x318] sm:$0xff] }
 0xb08   : > { %11557 = vst [vmem:[#allocation185_spill] sm:$0xff] %v8572_v0  ;;  %3147 = vmatpush.msra.mxu1 %v8587_v16  ;;  %v8593_v0 = vld [vmem:[#allocation6 + $0x648] sm:$0xff]  ;;  %3108 = vmatpush.msrb.mxu0 %v8596_v13 }
 0xb09   : > { %11558 = vst [vmem:[#allocation186_spill] sm:$0xff] %v8575_v4  ;;  %3090 = vmatpush.msrb.mxu2 %v8593_v0  ;;  %v8599_v4 = vld [vmem:[#allocation6 + $0x2d8] sm:$0xff] }
 0xb0a   : > { %11561 = vst [vmem:[#allocation187_spill] sm:$0xff] %v8584_v6  ;;  %3148 = vmatpush.msra.mxu1 %v8599_v4  ;;  %v8605_v6 = vld [vmem:[#allocation6 + $0x600] sm:$0xff] }
 0xb0b   : > { %11562 = vst [vmem:[#allocation188_spill] sm:$0xff] %v8587_v16  ;;  %v2468_v16 = vsel %vm8580_vm10, %v8457_v12, %v2464_v15  ;;  %3051 = vmatpush.msra.mxu3 %v8605_v6  ;;  %v8620_v15 = vld [vmem:[#allocation6 + $0x5c8] sm:$0xff] }
 0xb0c   : > { %11563 = vst [vmem:[#allocation189_spill] sm:$0xff] %v8590_v61  ;;  %v8608_v61 = vld [vmem:[#allocation6 + $0x608] sm:$0xff]  ;;  %v2470_v12 = vperm.slane %v2468_v16, 0  ;;  %v8638_v16 = vld [vmem:[#allocation6 + $0x218] sm:$0xff] }
 0xb0d   : > { %11564 = vst [vmem:[#allocation190_spill] sm:$0xff] %v8593_v0  ;;  %3091 = vmatpush.msrb.mxu2 %v8608_v61  ;;  %v8611_v0 = vld [vmem:[#allocation6 + $0x290] sm:$0xff] }
 0xb0e   : > { %11565 = vst [vmem:[#allocation191_spill] sm:$0xff] %v8596_v13  ;;  %3109 = vmatpush.msrb.mxu0 %v8611_v0  ;;  %v8614_v13 = vld [vmem:[#allocation6 + $0x298] sm:$0xff] }
 0xb0f   : > { %11566 = vst [vmem:[#allocation192_spill] sm:$0xff] %v8599_v4  ;;  %3149 = vmatpush.msra.mxu1 %v8614_v13  ;;  %v8617_v4 = vld [vmem:[#allocation6 + $0x5c0] sm:$0xff]  ;;  %3092 = vmatpush.msrb.mxu2 %v8620_v15 }
 0xb10   : > { %11567 = vst [vmem:[#allocation193_spill] sm:$0xff] %v8605_v6  ;;  %3052 = vmatpush.msra.mxu3 %v8617_v4  ;;  %3110 = vmatpush.msrb.mxu0 %v8623_v29  ;;  %v8629_v6 = vld [vmem:[#allocation6 + $0x580] sm:$0xff] }
 0xb11   : > { %11568 = vst [vmem:[#allocation194_spill] sm:$0xff] %v8608_v61  ;;  %v8626_v61 = vld [vmem:[#allocation6 + $0x258] sm:$0xff] }
 0xb12   : > { %11569 = vst [vmem:[#allocation195_spill] sm:$0xff] %v8614_v13  ;;  %3150 = vmatpush.msra.mxu1 %v8626_v61  ;;  %3053 = vmatpush.msra.mxu3 %v8629_v6  ;;  %v8632_v13 = vld [vmem:[#allocation6 + $0x588] sm:$0xff] }
 0xb13   : > { %11570 = vst [vmem:[#allocation196_spill] sm:$0xff] %v8617_v4  ;;  %3093 = vmatpush.msrb.mxu2 %v8632_v13  ;;  %v8635_v4 = vld [vmem:[#allocation6 + $0x210] sm:$0xff] }
 0xb14   : > { %11571 = vst [vmem:[#allocation197_spill] sm:$0xff] %v8620_v15  ;;  %3111 = vmatpush.msrb.mxu0 %v8635_v4  ;;  %3151 = vmatpush.msra.mxu1 %v8638_v16  ;;  %v8641_v15 = vld [vmem:[#allocation6 + $0x540] sm:$0xff] }
 0xb15   : > { %11572 = vst [vmem:[#allocation198_spill] sm:$0xff] %v8623_v29  ;;  %3054 = vmatpush.msra.mxu3 %v8641_v15  ;;  %v8648_v29 = vld [vmem:[#allocation6 + $0x1d0] sm:$0xff] }
 0xb16   : > { %11573 = vst [vmem:[#allocation199_spill] sm:$0xff] %v8626_v61  ;;  %v8644_v61 = vld [vmem:[#allocation6 + $0x548] sm:$0xff]  ;;  %3112 = vmatpush.msrb.mxu0 %v8648_v29 }
 0xb17   : > { %11574 = vst [vmem:[#allocation200_spill] sm:$0xff] %v8629_v6  ;;  %3094 = vmatpush.msrb.mxu2 %v8644_v61  ;;  %v2472_v6 = vmul.f32 %v2470_v12, %v7821_v21  ;;  %v8663_v21 = vld [vmem:[#allocation6 + $0x198] sm:$0xff]  ;;  %v8666_v12 = vld [vmem:[#allocation6 + $0x4c0] sm:$0xff] }
 0xb18   : > { %11575 = vst [vmem:[#allocation201_spill] sm:$0xff] %v8632_v13  ;;  %v8651_v13 = vld [vmem:[#allocation6 + $0x1d8] sm:$0xff] }
 0xb19   : > { %11576 = vst [vmem:[#allocation202_spill] sm:$0xff] %v8635_v4  ;;  %3152 = vmatpush.msra.mxu1 %v8651_v13  ;;  %v8654_v4 = vld [vmem:[#allocation6 + $0x500] sm:$0xff] }
 0xb1a   : > { %11577 = vst [vmem:[#allocation203_spill] sm:$0xff] %v8638_v16  ;;  %3055 = vmatpush.msra.mxu3 %v8654_v4  ;;  %v8657_v16 = vld [vmem:[#allocation6 + $0x508] sm:$0xff] }
 0xb1b   : > { %11578 = vst [vmem:[#allocation204_spill] sm:$0xff] %v8641_v15  ;;  %3095 = vmatpush.msrb.mxu2 %v8657_v16  ;;  %v8660_v15 = vld [vmem:[#allocation6 + $0x190] sm:$0xff]  ;;  %3153 = vmatpush.msra.mxu1 %v8663_v21 }
 0xb1c   : > { %11579 = vst [vmem:[#allocation205_spill] sm:$0xff] %v8644_v61  ;;  %3113 = vmatpush.msrb.mxu0 %v8660_v15  ;;  %3056 = vmatpush.msra.mxu3 %v8666_v12  ;;  %v8669_v61 = vld [vmem:[#allocation6 + $0x4c8] sm:$0xff] }
 0xb1d   : > { %11580 = vst [vmem:[#allocation206_spill] sm:$0xff] %v8651_v13  ;;  %3096 = vmatpush.msrb.mxu2 %v8669_v61  ;;  %v2479_v13 = vmul.f32 %v7972_v52, %v2472_v6  ;;  %v8688_v6 = vld [vmem:[#allocation6 + $0x118] sm:$0xff]  ;;  %v8691_v52 = vld [vmem:[#allocation6 + $0x440] sm:$0xff] }
 0xb1e   : > { %11581 = vst [vmem:[#allocation207_spill] sm:$0xff] %v8654_v4  ;;  %v8673_v4 = vld [vmem:[#allocation6 + $0x150] sm:$0xff] }
 0xb1f   : > { %11582 = vst [vmem:[#allocation208_spill] sm:$0xff] %v8657_v16  ;;  %3114 = vmatpush.msrb.mxu0 %v8673_v4  ;;  %v8676_v16 = vld [vmem:[#allocation6 + $0x158] sm:$0xff] }
 0xb20   : > { %11583 = vst [vmem:[#allocation209_spill] sm:$0xff] %v8660_v15  ;;  %3154 = vmatpush.msra.mxu1 %v8676_v16  ;;  %v8679_v15 = vld [vmem:[#allocation6 + $0x480] sm:$0xff] }
 0xb21   : > { %11584 = vst [vmem:[#allocation210_spill] sm:$0xff] %v8663_v21  ;;  %3057 = vmatpush.msra.mxu3 %v8679_v15  ;;  %v8682_v21 = vld [vmem:[#allocation6 + $0x488] sm:$0xff] }
 0xb22   : > { %11585 = vst [vmem:[#allocation211_spill] sm:$0xff] %v8666_v12  ;;  %3097 = vmatpush.msrb.mxu2 %v8682_v21  ;;  %v8685_v12 = vld [vmem:[#allocation6 + $0x110] sm:$0xff]  ;;  %3155 = vmatpush.msra.mxu1 %v8688_v6 }
 0xb23   : > { %11586 = vst [vmem:[#allocation212_spill] sm:$0xff] %v8669_v61  ;;  %3115 = vmatpush.msrb.mxu0 %v8685_v12  ;;  %3058 = vmatpush.msra.mxu3 %v8691_v52  ;;  %v8694_v61 = vld [vmem:[#allocation6 + $0x448] sm:$0xff] }
 0xb24   : > { %11587 = vst [vmem:[#allocation213_spill] sm:$0xff] %v8676_v16  ;;  %3098 = vmatpush.msrb.mxu2 %v8694_v61  ;;  %v8698_v16 = vadd.f32 %v7976_v50, %v2479_v13  ;;  %v11628_v13 = vld [vmem:[#allocation58_spill] sm:$0xff] }
 0xb25   : > { %11588 = vst [vmem:[#allocation214_spill] sm:$0xff] %v8679_v15  ;;  %v8703_v15 = vld [vmem:[#allocation6 + $0xd8] sm:$0xff]  ;;  %3059 = vmatpush.msra.mxu3 %v7852_v36  ;;  %v11594_v36 = vld [vmem:[#allocation20_spill] sm:$0xff] }
 0xb26   : > { %11589 = vst [vmem:[#allocation215_spill] sm:$0xff] %v8682_v21  ;;  %v8700_v21 = vld [vmem:[#allocation6 + $0xd0] sm:$0xff]  ;;  %3156 = vmatpush.msra.mxu1 %v8703_v15  ;;  %3099 = vmatpush.msrb.mxu2 %v7854_v37  ;;  %v11595_v37 = vld [vmem:[#allocation21_spill] sm:$0xff] }
 0xb27   : > { %3116 = vmatpush.msrb.mxu0 %v8700_v21  ;;  %3060 = vmatmul.f32.vlgmr.msra.gmra.mxu3 %v8698_v16 }
 0xb28   : > { %3100 = vmatmul.f32.vlgmr.msrb.gmra.mxu2 %v8698_v16  ;;  %3124 = vmatpush.msrb.mxu3 %v7860_v19  ;;  %v11597_v19 = vld [vmem:[#allocation35_spill] sm:$0xff] }
 0xb29   : > { %3117 = vmatpush.msrb.mxu0 %v7858_v38  ;;  %3157 = vmatpush.msra.mxu1 %v7862_v39  ;;  %v11596_v38 = vld [vmem:[#allocation34_spill] sm:$0xff] }
 0xb2a   : > { %3164 = vmatpush.msra.mxu2 %v7866_v40  ;;  %3125 = vmatpush.msrb.mxu3 %v7872_v43  ;;  %v11598_v39 = vld [vmem:[#allocation22_spill] sm:$0xff]  ;;  %v11599_v40 = vld [vmem:[#allocation23_spill] sm:$0xff]  ;;  %v11601_v43 = vld [vmem:[#allocation37_spill] sm:$0xff] }
 0xb2b   : > { %3118 = vmatpush.msrb.mxu0 %v7870_v42  ;;  %3158 = vmatpush.msra.mxu1 %v7874_v47  ;;  %v11600_v42 = vld [vmem:[#allocation36_spill] sm:$0xff] }
 0xb2c   : > { %3165 = vmatpush.msra.mxu2 %v7878_v14  ;;  %3126 = vmatpush.msrb.mxu3 %v7884_v3  ;;  %v11602_v47 = vld [vmem:[#allocation24_spill] sm:$0xff]  ;;  %v11603_v14 = vld [vmem:[#allocation25_spill] sm:$0xff]  ;;  %v11605_v3 = vld [vmem:[#allocation39_spill] sm:$0xff] }
 0xb2d   : > { %3119 = vmatpush.msrb.mxu0 %v7882_v51  ;;  %3159 = vmatpush.msra.mxu1 %v7886_v46  ;;  %v11604_v51 = vld [vmem:[#allocation38_spill] sm:$0xff] }
 0xb2e   : > { %3166 = vmatpush.msra.mxu2 %v7890_v5  ;;  %3120 = vmatmul.f32.vlgmr.msrb.gmra.mxu0 %v8523_v9  ;;  %v11606_v46 = vld [vmem:[#allocation26_spill] sm:$0xff]  ;;  %v11607_v5 = vld [vmem:[#allocation27_spill] sm:$0xff] }
 0xb2f   : > { %3160 = vmatmul.f32.vlgmr.msra.gmra.mxu1 %v8523_v9  ;;  %3184 = vmatpush.msra.mxu0 %v7981_v10  ;;  %v11623_v10 = vld [vmem:[#allocation53_spill] sm:$0xff] }
 0xb30   : > { %3224 = vmatpush.msrb.mxu1 %v7983_v17  ;;  %3127 = vmatpush.msrb.mxu3 %v7894_v18  ;;  %v11608_v18 = vld [vmem:[#allocation40_spill] sm:$0xff]  ;;  %v2681_v17 = vpop.f32.mrf.mxu0 }
 0xb31   : > { %3167 = vmatpush.msra.mxu2 %v7896_v31  ;;  %3185 = vmatpush.msra.mxu0 %v7987_v20  ;;  %v11609_v31 = vld [vmem:[#allocation41_spill] sm:$0xff]  ;;  %v2721_v20 = vpop.f32.mrf.mxu1 }
 0xb32   : > { %3225 = vmatpush.msrb.mxu1 %v7989_v55  ;;  %3128 = vmatpush.msrb.mxu3 %v7900_v22  ;;  %v11610_v22 = vld [vmem:[#allocation28_spill] sm:$0xff]  ;;  %v11624_v55 = vld [vmem:[#allocation54_spill] sm:$0xff] }
 0xb33   : > { %3168 = vmatpush.msra.mxu2 %v7902_v26  ;;  %3186 = vmatpush.msra.mxu0 %v7993_v33  ;;  %v11611_v26 = vld [vmem:[#allocation29_spill] sm:$0xff]  ;;  %v11625_v33 = vld [vmem:[#allocation55_spill] sm:$0xff] }
 0xb34   : > { %3226 = vmatpush.msrb.mxu1 %v7995_v11  ;;  %3129 = vmatpush.msrb.mxu3 %v7906_v54  ;;  %v11612_v54 = vld [vmem:[#allocation42_spill] sm:$0xff]  ;;  %v11626_v11 = vld [vmem:[#allocation56_spill] sm:$0xff] }
 0xb35   : > { %3169 = vmatpush.msra.mxu2 %v7908_v32  ;;  %3187 = vmatpush.msra.mxu0 %v7999_v28  ;;  %v11613_v32 = vld [vmem:[#allocation43_spill] sm:$0xff]  ;;  %v11627_v28 = vld [vmem:[#allocation57_spill] sm:$0xff] }
 0xb36   : > { %3227 = vmatpush.msrb.mxu1 %v8001_v63  ;;  %3130 = vmatpush.msrb.mxu3 %v7912_v56  ;;  %v11614_v56 = vld [vmem:[#allocation44_spill] sm:$0xff] }
 0xb37   : > { %3170 = vmatpush.msra.mxu2 %v7914_v30  ;;  %3188 = vmatpush.msra.mxu0 %v8005_v53  ;;  %v11591_v53 = vld [vmem:[#allocation18_spill] sm:$0xff]  ;;  %v11615_v30 = vld [vmem:[#allocation45_spill] sm:$0xff] }
 0xb38   : > { %3228 = vmatpush.msrb.mxu1 %v8007_v2  ;;  %3131 = vmatpush.msrb.mxu3 %v7918_v57  ;;  %v11590_v2 = vld [vmem:[#allocation32_spill] sm:$0xff]  ;;  %v11616_v57 = vld [vmem:[#allocation46_spill] sm:$0xff] }
 0xb39   : > { %3171 = vmatpush.msra.mxu2 %v7920_v58  ;;  %3189 = vmatpush.msra.mxu0 %v8013_v49  ;;  %v11592_v49 = vld [vmem:[#allocation19_spill] sm:$0xff] }
 0xb3a   : > { %3229 = vmatpush.msrb.mxu1 %v8015_v48  ;;  %3132 = vmatpush.msrb.mxu3 %v7924_v59  ;;  %v11593_v48 = vld [vmem:[#allocation33_spill] sm:$0xff]  ;;  %v11617_v58 = vld [vmem:[#allocation47_spill] sm:$0xff]  ;;  %v11618_v59 = vld [vmem:[#allocation48_spill] sm:$0xff] }
 0xb3b   : > { %3172 = vmatpush.msra.mxu2 %v7926_v41  ;;  %3190 = vmatpush.msra.mxu0 %v8019_v35  ;;  %v11619_v41 = vld [vmem:[#allocation49_spill] sm:$0xff]  ;;  %v11622_v35 = vld [vmem:[#allocation52_spill] sm:$0xff] }
 0xb3c   : > { %3230 = vmatpush.msrb.mxu1 %v8021_v34  ;;  %3133 = vmatpush.msrb.mxu3 %v7930_v62  ;;  %v11620_v62 = vld [vmem:[#allocation50_spill] sm:$0xff]  ;;  %v2741_v34 = vpop.f32.mrf.mxu2 }
 0xb3d   : > { %3173 = vmatpush.msra.mxu2 %v7932_v24  ;;  %3191 = vmatpush.msra.mxu0 %v8025_v27  ;;  %v11621_v24 = vld [vmem:[#allocation51_spill] sm:$0xff]  ;;  %v2701_v27 = vpop.f32.mrf.mxu3 }
 0xb3e   : > { %3231 = vmatpush.msrb.mxu1 %v11590_v2  ;;  %3134 = vmatpush.msrb.mxu3 %v11591_v53  ;;  %v2702_v63 = vadd.f32 %v2701_v27, %v2681_v17  ;;  %v11629_v2 = vld [vmem:[#allocation59_spill] sm:$0xff]  ;;  %v11630_v53 = vld [vmem:[#allocation60_spill] sm:$0xff]  ;;  %v11655_v27 = vld [vmem:[#allocation85_spill] sm:$0xff] }
 0xb3f   : > { %3174 = vmatpush.msra.mxu2 %v11592_v49  ;;  %3192 = vmatpush.msra.mxu0 %v8031_v1  ;;  %v2742_v1 = vadd.f32 %v2741_v34, %v2721_v20  ;;  %v11631_v49 = vld [vmem:[#allocation61_spill] sm:$0xff]  ;;  %v11656_v34 = vld [vmem:[#allocation86_spill] sm:$0xff] }
 0xb40   : > { %3232 = vmatpush.msrb.mxu1 %v11593_v48  ;;  %3135 = vmatpush.msrb.mxu3 %v11594_v36  ;;  %v11632_v48 = vld [vmem:[#allocation62_spill] sm:$0xff]  ;;  %v11633_v36 = vld [vmem:[#allocation63_spill] sm:$0xff]  ;;  %v11659_v17 = vld [vmem:[#allocation89_spill] sm:$0xff] }
 0xb41   : > { %3175 = vmatpush.msra.mxu2 %v11595_v37  ;;  %3193 = vmatpush.msra.mxu0 %v11596_v38  ;;  %v11634_v37 = vld [vmem:[#allocation64_spill] sm:$0xff]  ;;  %v11635_v38 = vld [vmem:[#allocation65_spill] sm:$0xff]  ;;  %v11660_v20 = vld [vmem:[#allocation90_spill] sm:$0xff] }
 0xb42   : > { %3233 = vmatpush.msrb.mxu1 %v11597_v19  ;;  %3136 = vmatpush.msrb.mxu3 %v11598_v39  ;;  %v11636_v19 = vld [vmem:[#allocation66_spill] sm:$0xff]  ;;  %v11637_v39 = vld [vmem:[#allocation67_spill] sm:$0xff] }
 0xb43   : > { %3176 = vmatpush.msra.mxu2 %v11599_v40  ;;  %3194 = vmatpush.msra.mxu0 %v11600_v42 }
 0xb44   : > { %3234 = vmatpush.msrb.mxu1 %v11601_v43  ;;  %3137 = vmatpush.msrb.mxu3 %v11602_v47  ;;  %v2821_v42 = vpop.f32.mrf.mxu2  ;;  %v11638_v43 = vld [vmem:[#allocation68_spill] sm:$0xff]  ;;  %v11639_v47 = vld [vmem:[#allocation69_spill] sm:$0xff] }
 0xb45   : > { %3177 = vmatpush.msra.mxu2 %v11603_v14  ;;  %3195 = vmatpush.msra.mxu0 %v11604_v51  ;;  %v2781_v40 = vpop.f32.mrf.mxu3  ;;  %v2761_v14 = vpop.f32.mrf.mxu0 }
 0xb46   : > { %3235 = vmatpush.msrb.mxu1 %v11605_v3  ;;  %3138 = vmatpush.msrb.mxu3 %v11606_v46  ;;  %v2801_v51 = vpop.f32.mrf.mxu1  ;;  %v11640_v3 = vld [vmem:[#allocation70_spill] sm:$0xff]  ;;  %v11641_v46 = vld [vmem:[#allocation71_spill] sm:$0xff] }
 0xb47   : > { %3178 = vmatpush.msra.mxu2 %v11607_v5  ;;  %3196 = vmatpush.msra.mxu0 %v11608_v18  ;;  %v11642_v5 = vld [vmem:[#allocation72_spill] sm:$0xff]  ;;  %v11643_v18 = vld [vmem:[#allocation73_spill] sm:$0xff] }
 0xb48   : > { %3236 = vmatpush.msrb.mxu1 %v11609_v31  ;;  %3139 = vmatpush.msrb.mxu3 %v11610_v22  ;;  %v2782_v31 = vadd.f32 %v2781_v40, %v2761_v14  ;;  %v2822_v22 = vadd.f32 %v2821_v42, %v2801_v51  ;;  %v11677_v40 = vld [vmem:[#allocation107_spill] sm:$0xff]  ;;  %v11678_v42 = vld [vmem:[#allocation108_spill] sm:$0xff]  ;;  %v11680_v14 = vld [vmem:[#allocation110_spill] sm:$0xff] }
 0xb49   : > { %3179 = vmatpush.msra.mxu2 %v11611_v26  ;;  %3140 = vmatmul.f32.vlgmr.msrb.gmra.mxu3 %v8698_v16  ;;  %v11644_v26 = vld [vmem:[#allocation74_spill] sm:$0xff] }
 0xb4a   : > { %3180 = vmatmul.f32.vlgmr.msra.gmra.mxu2 %v8698_v16  ;;  %3197 = vmatpush.msra.mxu0 %v11612_v54  ;;  %v11645_v54 = vld [vmem:[#allocation75_spill] sm:$0xff] }
 0xb4b   : > { %3204 = vmatpush.msra.mxu3 %v11613_v32  ;;  %3237 = vmatpush.msrb.mxu1 %v11614_v56  ;;  %v11646_v32 = vld [vmem:[#allocation76_spill] sm:$0xff]  ;;  %v11647_v56 = vld [vmem:[#allocation77_spill] sm:$0xff] }
 0xb4c   : > { %3244 = vmatpush.msrb.mxu2 %v11615_v30  ;;  %3198 = vmatpush.msra.mxu0 %v11616_v57  ;;  %v11648_v30 = vld [vmem:[#allocation78_spill] sm:$0xff]  ;;  %v11649_v57 = vld [vmem:[#allocation79_spill] sm:$0xff] }
 0xb4d   : > { %3205 = vmatpush.msra.mxu3 %v11617_v58  ;;  %3238 = vmatpush.msrb.mxu1 %v11618_v59  ;;  %v11650_v58 = vld [vmem:[#allocation80_spill] sm:$0xff]  ;;  %v11651_v59 = vld [vmem:[#allocation81_spill] sm:$0xff]  ;;  %v2841_v51 = vpop.f32.mrf.mxu0 }
 0xb4e   : > { %3245 = vmatpush.msrb.mxu2 %v11619_v41  ;;  %3199 = vmatpush.msra.mxu0 %v11620_v62  ;;  %v11652_v41 = vld [vmem:[#allocation82_spill] sm:$0xff]  ;;  %v11653_v62 = vld [vmem:[#allocation83_spill] sm:$0xff] }
 0xb4f   : > { %3206 = vmatpush.msra.mxu3 %v11621_v24  ;;  %3239 = vmatpush.msrb.mxu1 %v11622_v35  ;;  %v11654_v24 = vld [vmem:[#allocation84_spill] sm:$0xff]  ;;  %v11657_v35 = vld [vmem:[#allocation87_spill] sm:$0xff] }
 0xb50   : > { %3246 = vmatpush.msrb.mxu2 %v11623_v10  ;;  %3200 = vmatmul.f32.vlgmr.msra.gmra.mxu0 %v8523_v9  ;;  %v11658_v10 = vld [vmem:[#allocation88_spill] sm:$0xff] }
 0xb51   : > { %3240 = vmatmul.f32.vlgmr.msrb.gmra.mxu1 %v8523_v9  ;;  %3264 = vmatpush.msrb.mxu0 %v11624_v55  ;;  %v11661_v55 = vld [vmem:[#allocation91_spill] sm:$0xff] }
 0xb52   : > { %3304 = vmatpush.msra.mxu1 %v11625_v33  ;;  %3207 = vmatpush.msra.mxu3 %v11626_v11  ;;  %v11662_v33 = vld [vmem:[#allocation92_spill] sm:$0xff]  ;;  %v11663_v11 = vld [vmem:[#allocation93_spill] sm:$0xff] }
 0xb53   : > { %3247 = vmatpush.msrb.mxu2 %v11627_v28  ;;  %3265 = vmatpush.msrb.mxu0 %v11628_v13  ;;  %v11664_v28 = vld [vmem:[#allocation94_spill] sm:$0xff]  ;;  %v11667_v13 = vld [vmem:[#allocation97_spill] sm:$0xff] }
 0xb54   : > { %3305 = vmatpush.msra.mxu1 %v11629_v2  ;;  %3208 = vmatpush.msra.mxu3 %v11630_v53  ;;  %v11668_v2 = vld [vmem:[#allocation98_spill] sm:$0xff]  ;;  %v11669_v53 = vld [vmem:[#allocation99_spill] sm:$0xff] }
 0xb55   : > { %3248 = vmatpush.msrb.mxu2 %v11631_v49  ;;  %3266 = vmatpush.msrb.mxu0 %v11632_v48  ;;  %v11670_v49 = vld [vmem:[#allocation100_spill] sm:$0xff]  ;;  %v11671_v48 = vld [vmem:[#allocation101_spill] sm:$0xff] }
 0xb56   : > { %3306 = vmatpush.msra.mxu1 %v11633_v36  ;;  %2994 = vrot.lane.b32.xlu1 %v2742_v1, %s7037_s21  ;;  %v11666_v1 = vld [vmem:[#allocation96_spill] sm:$0xff]  ;;  %v11672_v36 = vld [vmem:[#allocation102_spill] sm:$0xff] }
 0xb57   : > { %2992 = vrot.lane.b32.xlu0 %v2702_v63, %s7037_s21  ;;  %3209 = vmatpush.msra.mxu3 %v11634_v37  ;;  %v11665_v63 = vld [vmem:[#allocation95_spill] sm:$0xff] }
 0xb58   : > { %3249 = vmatpush.msrb.mxu2 %v11635_v38  ;;  %3267 = vmatpush.msrb.mxu0 %v11636_v19  ;;  %v11673_v37 = vld [vmem:[#allocation103_spill] sm:$0xff]  ;;  %v11674_v38 = vld [vmem:[#allocation104_spill] sm:$0xff]  ;;  %v11675_v19 = vld [vmem:[#allocation105_spill] sm:$0xff] }
 0xb59   : > { %3307 = vmatpush.msra.mxu1 %v11637_v39  ;;  %3210 = vmatpush.msra.mxu3 %v11638_v43  ;;  %v11676_v39 = vld [vmem:[#allocation106_spill] sm:$0xff]  ;;  %v2861_v43 = vpop.f32.mrf.mxu3 }
 0xb5a   : > { %3250 = vmatpush.msrb.mxu2 %v11639_v47  ;;  %3268 = vmatpush.msrb.mxu0 %v11640_v3  ;;  %v11679_v47 = vld [vmem:[#allocation109_spill] sm:$0xff]  ;;  %v11681_v3 = vld [vmem:[#allocation111_spill] sm:$0xff] }
 0xb5b   : > { %3308 = vmatpush.msra.mxu1 %v11641_v46  ;;  %3211 = vmatpush.msra.mxu3 %v11642_v5  ;;  %v11682_v46 = vld [vmem:[#allocation112_spill] sm:$0xff]  ;;  %v11683_v5 = vld [vmem:[#allocation113_spill] sm:$0xff] }
 0xb5c   : > { %3251 = vmatpush.msrb.mxu2 %v11643_v18  ;;  %3269 = vmatpush.msrb.mxu0 %v11644_v26  ;;  %v2862_v18 = vadd.f32 %v2861_v43, %v2841_v51  ;;  %v11687_v26 = vld [vmem:[#allocation116_spill] sm:$0xff] }
 0xb5d   : > { %3309 = vmatpush.msra.mxu1 %v11645_v54  ;;  %3212 = vmatpush.msra.mxu3 %v11646_v32  ;;  %v11688_v54 = vld [vmem:[#allocation117_spill] sm:$0xff]  ;;  %v11690_v32 = vld [vmem:[#allocation120_spill] sm:$0xff] }
 0xb5e   : > { %3252 = vmatpush.msrb.mxu2 %v11647_v56  ;;  %3270 = vmatpush.msrb.mxu0 %v11648_v30  ;;  %v11691_v56 = vld [vmem:[#allocation121_spill] sm:$0xff]  ;;  %v2901_v30 = vpop.f32.mrf.mxu2 }
 0xb5f   : > { %3310 = vmatpush.msra.mxu1 %v11649_v57  ;;  %2996 = vrot.lane.b32.xlu2 %v2782_v31, %s7037_s21  ;;  %v11684_v31 = vld [vmem:[#allocation114_spill] sm:$0xff]  ;;  %v11692_v57 = vld [vmem:[#allocation124_spill] sm:$0xff] }
 0xb60   : > { %2998 = vrot.lane.b32.xlu0 %v2822_v22, %s7037_s21  ;;  %3213 = vmatpush.msra.mxu3 %v11650_v58  ;;  %v11686_v22 = vld [vmem:[#allocation13_spill] sm:$0xff] }
 0xb61   : > { %3253 = vmatpush.msrb.mxu2 %v11651_v59  ;;  %3271 = vmatpush.msrb.mxu0 %v11652_v41  ;;  %v11693_v58 = vld [vmem:[#allocation125_spill] sm:$0xff]  ;;  %v2881_v59 = vpop.f32.mrf.mxu1  ;;  %v11694_v41 = vld [vmem:[#allocation128_spill] sm:$0xff] }
 0xb62   : > { %3311 = vmatpush.msra.mxu1 %v11653_v62  ;;  %3214 = vmatpush.msra.mxu3 %v11654_v24  ;;  %v2902_v62 = vadd.f32 %v2901_v30, %v2881_v59  ;;  %v11695_v24 = vld [vmem:[#allocation129_spill] sm:$0xff] }
 0xb63   : > { %3254 = vmatpush.msrb.mxu2 %v11655_v27  ;;  %3272 = vmatpush.msrb.mxu0 %v11656_v34  ;;  %v11696_v27 = vld [vmem:[#allocation132_spill] sm:$0xff]  ;;  %v11697_v34 = vld [vmem:[#allocation133_spill] sm:$0xff] }
 0xb64   : > { %3312 = vmatpush.msra.mxu1 %v11657_v35  ;;  %3215 = vmatpush.msra.mxu3 %v11658_v10  ;;  %v11698_v35 = vld [vmem:[#allocation136_spill] sm:$0xff]  ;;  %v11699_v10 = vld [vmem:[#allocation137_spill] sm:$0xff] }
 0xb65   : > { %3255 = vmatpush.msrb.mxu2 %v11659_v17  ;;  %3273 = vmatpush.msrb.mxu0 %v11660_v20  ;;  %v11700_v17 = vld [vmem:[#allocation140_spill] sm:$0xff]  ;;  %v11701_v20 = vld [vmem:[#allocation141_spill] sm:$0xff] }
 0xb66   : > { %3313 = vmatpush.msra.mxu1 %v11661_v55  ;;  %3216 = vmatpush.msra.mxu3 %v11662_v33  ;;  %v11702_v55 = vld [vmem:[#allocation144_spill] sm:$0xff]  ;;  %v11703_v33 = vld [vmem:[#allocation145_spill] sm:$0xff] }
 0xb67   : > { %3256 = vmatpush.msrb.mxu2 %v11663_v11  ;;  %3274 = vmatpush.msrb.mxu0 %v11664_v28  ;;  %v11704_v11 = vld [vmem:[#allocation148_spill] sm:$0xff]  ;;  %v11705_v28 = vld [vmem:[#allocation149_spill] sm:$0xff] }
 0xb68   : > { %3314 = vmatpush.msra.mxu1 %v11665_v63  ;;  %3217 = vmatpush.msra.mxu3 %v11666_v1  ;;  %v2921_v63 = vpop.f32.mrf.mxu0 }
 0xb69   : > { %3257 = vmatpush.msrb.mxu2 %v11667_v13  ;;  %3275 = vmatpush.msrb.mxu0 %v11668_v2  ;;  %v2961_v1 = vpop.f32.mrf.mxu1  ;;  %v11706_v13 = vld [vmem:[#allocation152_spill] sm:$0xff]  ;;  %v11707_v2 = vld [vmem:[#allocation153_spill] sm:$0xff] }
 0xb6a   : > { %3315 = vmatpush.msra.mxu1 %v11669_v53  ;;  %3218 = vmatpush.msra.mxu3 %v11670_v49 }
 0xb6b   : > { %3258 = vmatpush.msrb.mxu2 %v11671_v48  ;;  %3276 = vmatpush.msrb.mxu0 %v11672_v36 }
 0xb6c   : > { %3316 = vmatpush.msra.mxu1 %v11673_v37  ;;  %3219 = vmatpush.msra.mxu3 %v11674_v38  ;;  %v2981_v49 = vpop.f32.mrf.mxu2  ;;  %v11708_v37 = vld [vmem:[#allocation156_spill] sm:$0xff]  ;;  %v11709_v38 = vld [vmem:[#allocation161_spill] sm:$0xff] }
 0xb6d   : > { %3259 = vmatpush.msrb.mxu2 %v11675_v19  ;;  %3220 = vmatmul.f32.vlgmr.msra.gmra.mxu3 %v8698_v16  ;;  %v2982_v36 = vadd.f32 %v2981_v49, %v2961_v1  ;;  %v11711_v19 = vld [vmem:[#allocation16_spill] sm:$0xff]  ;;  %v11734_v49 = vld [vmem:[#allocation154_spill] sm:$0xff] }
 0xb6e   : > { %3260 = vmatmul.f32.vlgmr.msrb.gmra.mxu2 %v8698_v16  ;;  %3277 = vmatpush.msrb.mxu0 %v11676_v39 }
 0xb6f   : > { %3284 = vmatpush.msrb.mxu3 %v11677_v40  ;;  %3317 = vmatpush.msra.mxu1 %v8274_v25  ;;  %v11685_v25 = vld [vmem:[#allocation115_spill] sm:$0xff] }
 0xb70   : > { %3324 = vmatpush.msra.mxu2 %v11678_v42  ;;  %3278 = vmatpush.msrb.mxu0 %v11679_v47 }
 0xb71   : > { %3285 = vmatpush.msrb.mxu3 %v11680_v14  ;;  %3318 = vmatpush.msra.mxu1 %v11681_v3  ;;  %v2941_v53 = vpop.f32.mrf.mxu3 }
 0xb72   : > { %3325 = vmatpush.msra.mxu2 %v8290_v7  ;;  %3279 = vmatpush.msrb.mxu0 %v11682_v46  ;;  %v11689_v7 = vld [vmem:[#allocation14_spill] sm:$0xff]  ;;  %v2942_v48 = vadd.f32 %v2941_v53, %v2921_v63 }
 0xb73   : > { %3286 = vmatpush.msrb.mxu3 %v11683_v5  ;;  %3319 = vmatpush.msra.mxu1 %v11684_v31  ;;  %v11721_v5 = vld [vmem:[#allocation17_spill] sm:$0xff]  ;;  %v11731_v63 = vld [vmem:[#allocation142_spill] sm:$0xff] }
 0xb74   : > { %3326 = vmatpush.msra.mxu2 %v11685_v25  ;;  %3280 = vmatmul.f32.vlgmr.msrb.gmra.mxu0 %v8523_v9  ;;  %v11733_v53 = vld [vmem:[#allocation150_spill] sm:$0xff] }
 0xb75   : > { %3320 = vmatmul.f32.vlgmr.msra.gmra.mxu1 %v8523_v9  ;;  %3363 = vmatpush.msra.mxu0 %v11686_v22  ;;  %v6173_v9 = vld [vmem:[%s10977_s11 + $0x10] sm:$0xff] }
 0xb76   : > { %3287 = vmatpush.msrb.mxu3 %v11687_v26  ;;  %3327 = vmatpush.msra.mxu2 %v11688_v54 }
 0xb77   : > { %3000 = vrot.lane.b32.xlu1 %v2862_v18, %s7037_s21  ;;  %3364 = vmatpush.msra.mxu0 %v11689_v7 }
 0xb78   : > { %3288 = vmatpush.msrb.mxu3 %v11690_v32  ;;  %3328 = vmatpush.msra.mxu2 %v11691_v56 }
 0xb79   : > { %3004 = vrot.lane.b32.xlu2 %v2942_v48, %s7037_s21  ;;  %3006 = vrot.lane.b32.xlu0 %v2982_v36, %s7037_s21  ;;  %v11735_v48 = vld [vmem:[#allocation157_spill] sm:$0xff]  ;;  %v11736_v36 = vld [vmem:[#allocation159_spill] sm:$0xff] }
 0xb7a   : > { %3289 = vmatpush.msrb.mxu3 %v11692_v57  ;;  %3329 = vmatpush.msra.mxu2 %v11693_v58 }
 0xb7c   : > { %3290 = vmatpush.msrb.mxu3 %v11694_v41  ;;  %3330 = vmatpush.msra.mxu2 %v11695_v24  ;;  %v11725_v24 = vld [vmem:[#allocation118_spill] sm:$0xff] }
 0xb7d   : > { %6174 = vmatmul.msk.f32.vlgmr.msra.gmra.mxu0 %vm860_vm1, %v6173_v9 }
 0xb7e   : > { %3291 = vmatpush.msrb.mxu3 %v11696_v27  ;;  %3331 = vmatpush.msra.mxu2 %v11697_v34  ;;  %v11726_v27 = vld [vmem:[#allocation122_spill] sm:$0xff] }
 0xb7f   : > { %3002 = vrot.lane.b32.xlu1 %v2902_v62, %s7037_s21  ;;  %v11724_v62 = vmov 0.125  }
 0xb80   : > { %3292 = vmatpush.msrb.mxu3 %v11698_v35  ;;  %3332 = vmatpush.msra.mxu2 %v11699_v10  ;;  %v11727_v35 = vld [vmem:[#allocation126_spill] sm:$0xff] }
 0xb82   : > { %3293 = vmatpush.msrb.mxu3 %v11700_v17  ;;  %3333 = vmatpush.msra.mxu2 %v11701_v20  ;;  %v11728_v17 = vld [vmem:[#allocation130_spill] sm:$0xff] }
 0xb84   : > { %3294 = vmatpush.msrb.mxu3 %v11702_v55  ;;  %3334 = vmatpush.msra.mxu2 %v11703_v33  ;;  %v11729_v55 = vld [vmem:[#allocation134_spill] sm:$0xff] }
 0xb86   : > { %3295 = vmatpush.msrb.mxu3 %v11704_v11  ;;  %3335 = vmatpush.msra.mxu2 %v11705_v28  ;;  %v11730_v11 = vld [vmem:[#allocation138_spill] sm:$0xff] }
 0xb88   : > { %3296 = vmatpush.msrb.mxu3 %v11706_v13  ;;  %3336 = vmatpush.msra.mxu2 %v11707_v2  ;;  %v11732_v13 = vld [vmem:[#allocation146_spill] sm:$0xff] }
 0xb8a   : > { %3297 = vmatpush.msrb.mxu3 %v8451_v23  ;;  %3337 = vmatpush.msra.mxu2 %v11708_v37  ;;  %v11710_v23 = vld [vmem:[#allocation15_spill] sm:$0xff] }
 0xb8c   : > { %3298 = vmatpush.msrb.mxu3 %v8465_v8  ;;  %3338 = vmatpush.msra.mxu2 %v8467_v60 }
 0xb8e   : > { %3299 = vmatpush.msrb.mxu3 %v8477_v44  ;;  %3339 = vmatpush.msra.mxu2 %v11709_v38  ;;  %v8914_v44 = vpop.f32.mrf.mxu0 }
 0xb8f   : > { %3300 = vmatmul.f32.vlgmr.msrb.gmra.mxu3 %v8698_v16  ;;  %3340 = vmatmul.f32.vlgmr.msra.gmra.mxu2 %v8698_v16  ;;  %11715 = vst [vmem:[#allocation33_spill] sm:$0xff] %v8914_v44 }
 0xb90   : > { %3383 = vmatpush.msra.mxu3 %v11710_v23 }
 0xb92   : > { %3384 = vmatpush.msra.mxu3 %v11711_v19 }
 0xb97   : > { %6175 = vmatmul.msk.f32.vlgmr.msra.gmra.mxu3 %vm860_vm1, %v6173_v9 }
 0xbaa   : > { %v8933_v3 = vpop.f32.mrf.mxu3 }
 0xbab   : > { %v8918_v16 = vpop.f32.mrf.mxu0  ;;  %11720 = vst [vmem:[#allocation22_spill] sm:$0xff] %v8933_v3 }
 0xbac   : > { %11717 = vst [vmem:[#allocation21_spill] sm:$0xff] %v8918_v16  ;;  %v9182_v16 = vld [vmem:[#allocation6 + $0x498] sm:$0xff] }
 0xbad   : > { %11811 = vst [vmem:[#allocation41_spill] sm:$0xff] %v9182_v16 }
 0xbb9   : > { %v8905_v8 = vpop.permute.xlu2 %2996 }
 0xbba   : > { %11712 = vst [vmem:[#allocation32_spill] sm:$0xff] %v8905_v8 }
 0xbc8   : > { %v8907_v39 = vpop.permute.xlu1 %2994 }
 0xbc9   : > { %11713 = vst [vmem:[#allocation18_spill] sm:$0xff] %v8907_v39  ;;  %v8912_v60 = vsel %vm1123_vm15, %v8907_v39, %v8905_v8  ;;  %v8916_v40 = vpop.permute.xlu0 %2992 }
 0xbca   : > { %11714 = vst [vmem:[#allocation19_spill] sm:$0xff] %v8912_v60  ;;  %v9185_v60 = vld [vmem:[#allocation6 + $0x458] sm:$0xff] }
 0xbcb   : > { %11716 = vst [vmem:[#allocation20_spill] sm:$0xff] %v8916_v40 }
 0xbcc   : > { %v8936_v54 = vpop.f32.mrf.mxu3  ;;  %11812 = vst [vmem:[#allocation28_spill] sm:$0xff] %v9185_v60 }
 0xbcd   : > { %v8924_v47 = vpop.f32.mrf.mxu0  ;;  %11722 = vst [vmem:[#allocation23_spill] sm:$0xff] %v8936_v54  ;;  %v9179_v54 = vld [vmem:[#allocation6 + $0x4d8] sm:$0xff] }
 0xbce   : > { %11810 = vst [vmem:[#allocation40_spill] sm:$0xff] %v9179_v54 }
 0xbd2   : > { %v8920_v42 = vpop.permute.xlu0 %2998 }
 0xbd3   : > { %11718 = vst [vmem:[#allocation34_spill] sm:$0xff] %v8920_v42 }
 0xbe9   : > { %v8922_v43 = vpop.permute.xlu1 %3000 }
 0xbea   : > { %v8929_v14 = vsel %vm1123_vm15, %v8920_v42, %v8922_v43 }
 0xbf0   : > { %v8938_v30 = vpop.f32.mrf.mxu3 }
 0xbf1   : > { %v8931_v51 = vpop.f32.mrf.mxu0 }
 0xbf2   : > { %11719 = vst [vmem:[#allocation35_spill] sm:$0xff] %v8931_v51  ;;  %v9176_v51 = vld [vmem:[#allocation6 + $0x518] sm:$0xff] }
 0xbf3   : > { %11809 = vst [vmem:[#allocation27_spill] sm:$0xff] %v9176_v51 }
 0xbfa   : > { %v3366_v46 = vpop.f32.mrf.mxu0 }
 0xbfb   : > { %v3367_v18 = vadd.f32 %v3366_v46, %v11721_v5  ;;  %v11737_v46 = vld [vmem:[#allocation162_spill] sm:$0xff] }
 0xbfd   : > { %v3389_v31 = vmul.f32 %v3367_v18, %v3367_v18 }
 0xbff   : > { %v3391_v25 = vmul.f32 %v3389_v31, %v3367_v18  ;;  %v11738_v31 = vld [vmem:[#allocation164_spill] sm:$0xff] }
 0xc01   : > { %v3393_v26 = vmul.f32 0.044715, %v3391_v25 }
 0xc03   : > { %v3395_v32 = vadd.f32 %v3393_v26, %v3367_v18  ;;  %v11739_v26 = vld [vmem:[#allocation168_spill] sm:$0xff] }
 0xc05   : > { %v3397_v56 = vmul.f32 0.7978846, %v3395_v32  ;;  %v11740_v32 = vld [vmem:[#allocation172_spill] sm:$0xff] }
 0xc07   : > { %6495 = vtanh.f32 %v3397_v56  ;;  %v11741_v56 = vld [vmem:[#allocation176_spill] sm:$0xff] }
 0xc0d   : > { %v6496_v57 = vpop.eup %6495 }
 0xc0e   : > { %v3401_v9 = vadd.f32 1.0, %v6496_v57  ;;  %v11742_v57 = vld [vmem:[#allocation165_spill] sm:$0xff] }
 0xc10   : > { %v3403_v58 = vmul.f32 0.5, %v3401_v9  ;;  %v11743_v9 = vld [vmem:[#allocation180_spill] sm:$0xff] }
 0xc12   : > { %v8940_v59 = vpop.f32.mrf.mxu3  ;;  %v8942_v41 = vmul.f32 %v3403_v58, %v3367_v18  ;;  %v11744_v58 = vld [vmem:[#allocation169_spill] sm:$0xff] }
 0xc13   : > { %11723 = vst [vmem:[#allocation36_spill] sm:$0xff] %v8940_v59  ;;  %v11783_v59 = vld [vmem:[#allocation174_spill] sm:$0xff] }
 0xc14   : > { %3422 = vmatpush.msrb.mxu1 %v8942_v41 }
 0xc15   : > { %6176 = vmatmul.msk.f32.vlgmr.msrb.gmra.mxu1 %vm2359_vm9, %v11724_v62 }
 0xc16   : > { %3521 = vmatpush.msra.mxu1 %v11725_v24  ;;  %v11745_v24 = vld [vmem:[#allocation173_spill] sm:$0xff] }
 0xc18   : > { %3522 = vmatpush.msra.mxu1 %v11726_v27  ;;  %v11746_v27 = vld [vmem:[#allocation187_spill] sm:$0xff] }
 0xc1a   : > { %v3386_v34 = vpop.f32.mrf.mxu3  ;;  %3523 = vmatpush.msra.mxu1 %v11727_v35  ;;  %v11748_v35 = vld [vmem:[#allocation191_spill] sm:$0xff] }
 0xc1b   : > { %v3387_v10 = vadd.f32 %v3386_v34, %v11721_v5  ;;  %v11747_v34 = vld [vmem:[#allocation178_spill] sm:$0xff] }
 0xc1c   : > { %3524 = vmatpush.msra.mxu1 %v11728_v17  ;;  %v11750_v17 = vld [vmem:[#allocation185_spill] sm:$0xff] }
 0xc1d   : > { %v3390_v20 = vmul.f32 %v3387_v10, %v3387_v10 }
 0xc1e   : > { %3525 = vmatpush.msra.mxu1 %v11729_v55  ;;  %v11752_v55 = vld [vmem:[#allocation189_spill] sm:$0xff] }
 0xc1f   : > { %v3392_v33 = vmul.f32 %v3390_v20, %v3387_v10  ;;  %v11751_v20 = vld [vmem:[#allocation198_spill] sm:$0xff] }
 0xc20   : > { %3526 = vmatpush.msra.mxu1 %v11730_v11  ;;  %v11755_v11 = vld [vmem:[#allocation196_spill] sm:$0xff] }
 0xc21   : > { %v3394_v28 = vmul.f32 0.044715, %v3392_v33  ;;  %v11753_v33 = vld [vmem:[#allocation202_spill] sm:$0xff] }
 0xc22   : > { %3527 = vmatpush.msra.mxu1 %v11731_v63  ;;  %v11757_v63 = vld [vmem:[#allocation200_spill] sm:$0xff] }
 0xc23   : > { %v3396_v1 = vadd.f32 %v3394_v28, %v3387_v10  ;;  %v11756_v28 = vld [vmem:[#allocation209_spill] sm:$0xff] }
 0xc24   : > { %3528 = vmatpush.msra.mxu1 %v11732_v13  ;;  %v11760_v13 = vld [vmem:[#allocation211_spill] sm:$0xff] }
 0xc25   : > { %v3398_v2 = vmul.f32 0.7978846, %v3396_v1  ;;  %v11759_v1 = vld [vmem:[#allocation207_spill] sm:$0xff] }
 0xc26   : > { %3529 = vmatpush.msra.mxu1 %v11733_v53  ;;  %v8999_v53 = vld [vmem:[#allocation6 + $0x50] sm:$0xff] }
 0xc27   : > { %6497 = vtanh.f32 %v3398_v2  ;;  %v8995_v2 = vld [vmem:[#allocation6 + $0x90] sm:$0xff] }
 0xc28   : > { %3530 = vmatpush.msra.mxu1 %v11734_v49  ;;  %v9012_v49 = vld [vmem:[#allocation6 + $0x790] sm:$0xff] }
 0xc2a   : > { %3531 = vmatpush.msra.mxu1 %v11735_v48  ;;  %v9015_v48 = vld [vmem:[#allocation6 + $0x750] sm:$0xff] }
 0xc2c   : > { %3532 = vmatpush.msra.mxu1 %v11736_v36  ;;  %v9021_v36 = vld [vmem:[#allocation6 + $0x6d0] sm:$0xff] }
 0xc2d   : > { %v6498_v37 = vpop.eup %6497 }
 0xc2e   : > { %v3402_v38 = vadd.f32 1.0, %v6498_v37  ;;  %3533 = vmatpush.msra.mxu1 %v11737_v46  ;;  %v9024_v37 = vld [vmem:[#allocation6 + $0x690] sm:$0xff] }
 0xc2f   : > { %v9030_v46 = vld [vmem:[#allocation6 + $0x610] sm:$0xff] }
 0xc30   : > { %v3404_v18 = vmul.f32 0.5, %v3402_v38  ;;  %3534 = vmatpush.msra.mxu1 %v11738_v31  ;;  %v9027_v38 = vld [vmem:[#allocation6 + $0x650] sm:$0xff] }
 0xc31   : > { %v9036_v31 = vld [vmem:[#allocation6 + $0x590] sm:$0xff] }
 0xc32   : > { %v8962_v25 = vmul.f32 %v3404_v18, %v3387_v10  ;;  %3535 = vmatpush.msra.mxu1 %v11739_v26  ;;  %v11749_v10 = vld [vmem:[#allocation182_spill] sm:$0xff] }
 0xc33   : > { %v9033_v18 = vld [vmem:[#allocation6 + $0x5d0] sm:$0xff] }
 0xc34   : > { %3442 = vmatpush.msrb.mxu2 %v8962_v25  ;;  %3536 = vmatpush.msra.mxu1 %v11740_v32  ;;  %v9039_v26 = vld [vmem:[#allocation6 + $0x550] sm:$0xff] }
 0xc35   : > { %6177 = vmatmul.msk.f32.vlgmr.msrb.gmra.mxu2 %vm2359_vm9, %v11724_v62  ;;  %v9042_v32 = vld [vmem:[#allocation6 + $0x510] sm:$0xff] }
 0xc36   : > { %3601 = vmatpush.msrb.mxu1 %v11741_v56  ;;  %3541 = vmatpush.msra.mxu2 %v11742_v57  ;;  %v9045_v56 = vld [vmem:[#allocation6 + $0x4d0] sm:$0xff] }
 0xc37   : > { %v9048_v57 = vld [vmem:[#allocation6 + $0x490] sm:$0xff] }
 0xc38   : > { %3602 = vmatpush.msrb.mxu1 %v11743_v9  ;;  %3542 = vmatpush.msra.mxu2 %v11744_v58  ;;  %v9051_v9 = vld [vmem:[#allocation6 + $0x450] sm:$0xff]  ;;  %v9054_v58 = vpop.f32.mrf.mxu1 }
 0xc39   : > { %11762 = vst [vmem:[#allocation37_spill] sm:$0xff] %v9054_v58 }
 0xc3a   : > { %3603 = vmatpush.msrb.mxu1 %v8565_v45  ;;  %3543 = vmatpush.msra.mxu2 %v11745_v24  ;;  %v11754_v45 = vld [vmem:[#allocation193_spill] sm:$0xff]  ;;  %v9056_v24 = vld [vmem:[#allocation6 + $0x410] sm:$0xff] }
 0xc3c   : > { %3604 = vmatpush.msrb.mxu1 %v11746_v27  ;;  %3544 = vmatpush.msra.mxu2 %v11747_v34 }
 0xc3e   : > { %3605 = vmatpush.msrb.mxu1 %v11748_v35  ;;  %3545 = vmatpush.msra.mxu2 %v11749_v10 }
 0xc40   : > { %3606 = vmatpush.msrb.mxu1 %v8611_v0  ;;  %3546 = vmatpush.msra.mxu2 %v11750_v17  ;;  %v11758_v0 = vld [vmem:[#allocation204_spill] sm:$0xff]  ;;  %v9059_v27 = vpop.f32.mrf.mxu1 }
 0xc41   : > { %11763 = vst [vmem:[#allocation24_spill] sm:$0xff] %v9059_v27 }
 0xc42   : > { %3607 = vmatpush.msrb.mxu1 %v11751_v20  ;;  %3547 = vmatpush.msra.mxu2 %v11752_v55 }
 0xc44   : > { %3608 = vmatpush.msrb.mxu1 %v11753_v33  ;;  %3548 = vmatpush.msra.mxu2 %v11754_v45  ;;  %v9070_v33 = vpop.f32.mrf.mxu2  ;;  %v11766_v45 = vld [vmem:[#allocation119_spill] sm:$0xff] }
 0xc45   : > { %11765 = vst [vmem:[#allocation38_spill] sm:$0xff] %v9070_v33 }
 0xc46   : > { %3609 = vmatpush.msrb.mxu1 %v8648_v29  ;;  %3549 = vmatpush.msra.mxu2 %v11755_v11  ;;  %v11761_v29 = vld [vmem:[#allocation214_spill] sm:$0xff]  ;;  %v11767_v11 = vld [vmem:[#allocation123_spill] sm:$0xff] }
 0xc48   : > { %3610 = vmatpush.msrb.mxu1 %v11756_v28  ;;  %3550 = vmatpush.msra.mxu2 %v11757_v63  ;;  %v9061_v34 = vpop.f32.mrf.mxu1  ;;  %v11768_v28 = vld [vmem:[#allocation127_spill] sm:$0xff] }
 0xc4a   : > { %3611 = vmatpush.msrb.mxu1 %v8673_v4  ;;  %3551 = vmatpush.msra.mxu2 %v11758_v0  ;;  %v9003_v4 = vld [vmem:[#allocation6 + $0x10] sm:$0xff]  ;;  %v11770_v0 = vld [vmem:[#allocation131_spill] sm:$0xff] }
 0xc4c   : > { %3612 = vmatpush.msrb.mxu1 %v8685_v12  ;;  %3552 = vmatpush.msra.mxu2 %v11759_v1  ;;  %v9006_v12 = vld [vmem:[#allocation6 + $0x400] sm:$0xff]  ;;  %v9077_v63 = vpop.f32.mrf.mxu2  ;;  %v11772_v1 = vld [vmem:[#allocation139_spill] sm:$0xff] }
 0xc4d   : > { %11769 = vst [vmem:[#allocation39_spill] sm:$0xff] %v9077_v63  ;;  %v9188_v63 = vld [vmem:[#allocation6 + $0x418] sm:$0xff] }
 0xc4e   : > { %3613 = vmatpush.msrb.mxu1 %v8700_v21  ;;  %3553 = vmatpush.msra.mxu2 %v11760_v13  ;;  %v9009_v21 = vld [vmem:[#allocation6 + $0x7d0] sm:$0xff]  ;;  %v11773_v13 = vld [vmem:[#allocation143_spill] sm:$0xff]  ;;  %11813 = vst [vmem:[#allocation29_spill] sm:$0xff] %v9188_v63 }
 0xc50   : > { %3614 = vmatpush.msrb.mxu1 %v8995_v2  ;;  %3554 = vmatpush.msra.mxu2 %v11761_v29  ;;  %v9063_v35 = vpop.f32.mrf.mxu1 }
 0xc51   : > { %11764 = vst [vmem:[#allocation25_spill] sm:$0xff] %v9063_v35 }
 0xc52   : > { %3615 = vmatpush.msrb.mxu1 %v8999_v53  ;;  %3555 = vmatpush.msra.mxu2 %v8691_v52  ;;  %v9018_v52 = vld [vmem:[#allocation6 + $0x710] sm:$0xff] }
 0xc54   : > { %3616 = vmatpush.msrb.mxu1 %v9003_v4  ;;  %3556 = vmatpush.msra.mxu2 %v9006_v12  ;;  %v9083_v29 = vpop.f32.mrf.mxu2 }
 0xc56   : > { %3621 = vmatpush.msrb.mxu2 %v9009_v21 }
 0xc58   : > { %3622 = vmatpush.msrb.mxu2 %v9012_v49 }
 0xc5a   : > { %3623 = vmatpush.msrb.mxu2 %v9015_v48 }
 0xc5c   : > { %3624 = vmatpush.msrb.mxu2 %v9018_v52 }
 0xc5e   : > { %3625 = vmatpush.msrb.mxu2 %v9021_v36 }
 0xc60   : > { %3626 = vmatpush.msrb.mxu2 %v9024_v37 }
 0xc62   : > { %3627 = vmatpush.msrb.mxu2 %v9027_v38 }
 0xc64   : > { %3628 = vmatpush.msrb.mxu2 %v9030_v46 }
 0xc66   : > { %3629 = vmatpush.msrb.mxu2 %v9033_v18 }
 0xc68   : > { %3630 = vmatpush.msrb.mxu2 %v9036_v31 }
 0xc6a   : > { %3631 = vmatpush.msrb.mxu2 %v9039_v26 }
 0xc6c   : > { %3632 = vmatpush.msrb.mxu2 %v9042_v32 }
 0xc6e   : > { %3633 = vmatpush.msrb.mxu2 %v9045_v56 }
 0xc70   : > { %3634 = vmatpush.msrb.mxu2 %v9048_v57 }
 0xc72   : > { %3635 = vmatpush.msrb.mxu2 %v9051_v9 }
 0xc74   : > { %3636 = vmatpush.msrb.mxu2 %v9056_v24 }
 0xc92   : > { %v3424_v10 = vpop.f32.mrf.mxu1 }
 0xc93   : > { %v3447_v17 = vperm.slane %v3424_v10, 0  ;;  %v11774_v10 = vld [vmem:[#allocation147_spill] sm:$0xff] }
 0xc95   : > { %v9066_v20 = vsub.f32 %v8942_v41, %v3447_v17  ;;  %v11771_v41 = vld [vmem:[#allocation135_spill] sm:$0xff] }
 0xc96   : > { %v11775_v17 = vld [vmem:[#allocation151_spill] sm:$0xff] }
 0xc97   : > { %v3451_v55 = vmul.f32 %v9066_v20, %v9066_v20 }
 0xc99   : > { %3468 = vmatpush.msrb.mxu0 %v3451_v55  ;;  %v11776_v55 = vld [vmem:[#allocation155_spill] sm:$0xff] }
 0xc9a   : > { %6178 = vmatmul.msk.f32.vlgmr.msrb.gmra.mxu0 %vm2359_vm9, %v11724_v62 }
 0xc9b   : > { %3561 = vmatpush.msra.mxu0 %v11766_v45  ;;  %v11777_v45 = vld [vmem:[#allocation158_spill] sm:$0xff] }
 0xc9d   : > { %3562 = vmatpush.msra.mxu0 %v11767_v11  ;;  %v9089_v11 = vpop.f32.mrf.mxu2 }
 0xc9e   : > { %11778 = vst [vmem:[#allocation26_spill] sm:$0xff] %v9089_v11  ;;  %v9173_v11 = vld [vmem:[#allocation6 + $0x558] sm:$0xff] }
 0xc9f   : > { %3563 = vmatpush.msra.mxu0 %v11768_v28  ;;  %v11779_v28 = vld [vmem:[#allocation160_spill] sm:$0xff] }
 0xca1   : > { %3564 = vmatpush.msra.mxu0 %v11770_v0  ;;  %v11780_v0 = vld [vmem:[#allocation163_spill] sm:$0xff] }
 0xca3   : > { %3565 = vmatpush.msra.mxu0 %v11771_v41  ;;  %v11781_v41 = vld [vmem:[#allocation166_spill] sm:$0xff] }
 0xca5   : > { %3566 = vmatpush.msra.mxu0 %v11772_v1  ;;  %v11782_v1 = vld [vmem:[#allocation170_spill] sm:$0xff] }
 0xca7   : > { %3567 = vmatpush.msra.mxu0 %v11773_v13 }
 0xca9   : > { %3568 = vmatpush.msra.mxu0 %v11774_v10  ;;  %v11784_v10 = vld [vmem:[#allocation177_spill] sm:$0xff] }
 0xcab   : > { %3569 = vmatpush.msra.mxu0 %v11775_v17 }
 0xcad   : > { %3570 = vmatpush.msra.mxu0 %v11776_v55  ;;  %v11785_v55 = vld [vmem:[#allocation181_spill] sm:$0xff] }
 0xcaf   : > { %3571 = vmatpush.msra.mxu0 %v11777_v45 }
 0xcb1   : > { %3572 = vmatpush.msra.mxu0 %v11779_v28  ;;  %v11786_v28 = vld [vmem:[#allocation184_spill] sm:$0xff] }
 0xcb3   : > { %3573 = vmatpush.msra.mxu0 %v11780_v0  ;;  %v11787_v0 = vld [vmem:[#allocation188_spill] sm:$0xff] }
 0xcb5   : > { %3574 = vmatpush.msra.mxu0 %v11781_v41  ;;  %v11788_v41 = vld [vmem:[#allocation167_spill] sm:$0xff] }
 0xcb7   : > { %3575 = vmatpush.msra.mxu0 %v11782_v1  ;;  %v11790_v1 = vld [vmem:[#allocation171_spill] sm:$0xff] }
 0xcb8   : > { %v3444_v13 = vpop.f32.mrf.mxu2 }
 0xcb9   : > { %v3448_v35 = vperm.slane %v3444_v13, 0  ;;  %3576 = vmatpush.msra.mxu0 %v11783_v59  ;;  %v11789_v59 = vld [vmem:[#allocation192_spill] sm:$0xff]  ;;  %v11793_v13 = vld [vmem:[#allocation199_spill] sm:$0xff] }
 0xcbb   : > { %3641 = vmatpush.msrb.mxu0 %v11784_v10  ;;  %v9098_v17 = vsub.f32 %v8962_v25, %v3448_v35  ;;  %v11791_v25 = vld [vmem:[#allocation195_spill] sm:$0xff] }
 0xcbc   : > { %v11792_v35 = vld [vmem:[#allocation175_spill] sm:$0xff] }
 0xcbd   : > { %3642 = vmatpush.msrb.mxu0 %v11785_v55  ;;  %v3452_v45 = vmul.f32 %v9098_v17, %v9098_v17  ;;  %v11794_v10 = vld [vmem:[#allocation179_spill] sm:$0xff] }
 0xcbe   : > { %v11795_v55 = vld [vmem:[#allocation203_spill] sm:$0xff] }
 0xcbf   : > { %3643 = vmatpush.msrb.mxu0 %v11786_v28  ;;  %3488 = vmatpush.msrb.mxu3 %v3452_v45  ;;  %v11796_v45 = vld [vmem:[#allocation183_spill] sm:$0xff]  ;;  %v11797_v28 = vld [vmem:[#allocation206_spill] sm:$0xff] }
 0xcc0   : > { %6179 = vmatmul.msk.f32.vlgmr.msrb.gmra.mxu3 %vm2359_vm9, %v11724_v62 }
 0xcc1   : > { %3644 = vmatpush.msrb.mxu0 %v11787_v0  ;;  %3581 = vmatpush.msra.mxu3 %v11788_v41  ;;  %v11798_v0 = vld [vmem:[#allocation186_spill] sm:$0xff] }
 0xcc2   : > { %v11799_v41 = vld [vmem:[#allocation210_spill] sm:$0xff] }
 0xcc3   : > { %3645 = vmatpush.msrb.mxu0 %v11789_v59  ;;  %3582 = vmatpush.msra.mxu3 %v11790_v1  ;;  %v11800_v59 = vld [vmem:[#allocation190_spill] sm:$0xff]  ;;  %v11801_v1 = vld [vmem:[#allocation213_spill] sm:$0xff] }
 0xcc5   : > { %3646 = vmatpush.msrb.mxu0 %v11791_v25  ;;  %3583 = vmatpush.msra.mxu3 %v11792_v35  ;;  %v11802_v25 = vld [vmem:[#allocation194_spill] sm:$0xff]  ;;  %v11803_v35 = vld [vmem:[#allocation197_spill] sm:$0xff] }
 0xcc7   : > { %3647 = vmatpush.msrb.mxu0 %v11793_v13  ;;  %3584 = vmatpush.msra.mxu3 %v11794_v10  ;;  %v11804_v13 = vld [vmem:[#allocation201_spill] sm:$0xff]  ;;  %v9126_v10 = vld [vmem:[#allocation6 + $0x98] sm:$0xff] }
 0xcc9   : > { %3648 = vmatpush.msrb.mxu0 %v11795_v55  ;;  %3585 = vmatpush.msra.mxu3 %v11796_v45  ;;  %v11805_v55 = vld [vmem:[#allocation205_spill] sm:$0xff]  ;;  %v9130_v45 = vld [vmem:[#allocation6 + $0x58] sm:$0xff] }
 0xccb   : > { %3649 = vmatpush.msrb.mxu0 %v11797_v28  ;;  %3586 = vmatpush.msra.mxu3 %v11798_v0  ;;  %v11806_v28 = vld [vmem:[#allocation208_spill] sm:$0xff]  ;;  %v9134_v0 = vld [vmem:[#allocation6 + $0x18] sm:$0xff] }
 0xccd   : > { %3650 = vmatpush.msrb.mxu0 %v11799_v41  ;;  %3587 = vmatpush.msra.mxu3 %v11800_v59  ;;  %v9140_v41 = vld [vmem:[#allocation6 + $0x408] sm:$0xff]  ;;  %v9143_v59 = vld [vmem:[#allocation6 + $0x7d8] sm:$0xff] }
 0xccf   : > { %3651 = vmatpush.msrb.mxu0 %v11801_v1  ;;  %3588 = vmatpush.msra.mxu3 %v11802_v25  ;;  %v9146_v1 = vld [vmem:[#allocation6 + $0x798] sm:$0xff] }
 0xcd0   : > { %v9149_v25 = vld [vmem:[#allocation6 + $0x758] sm:$0xff] }
 0xcd1   : > { %3652 = vmatpush.msrb.mxu0 %v8688_v6  ;;  %3589 = vmatpush.msra.mxu3 %v11803_v35  ;;  %v11807_v6 = vld [vmem:[#allocation212_spill] sm:$0xff]  ;;  %v9152_v35 = vld [vmem:[#allocation6 + $0x718] sm:$0xff] }
 0xcd3   : > { %3653 = vmatpush.msrb.mxu0 %v8703_v15  ;;  %3590 = vmatpush.msra.mxu3 %v11804_v13  ;;  %v11808_v15 = vld [vmem:[#allocation215_spill] sm:$0xff] }
 0xcd4   : > { %v9158_v13 = vld [vmem:[#allocation6 + $0x698] sm:$0xff] }
 0xcd5   : > { %3654 = vmatpush.msrb.mxu0 %v9126_v10  ;;  %3591 = vmatpush.msra.mxu3 %v11805_v55  ;;  %v9161_v55 = vld [vmem:[#allocation6 + $0x658] sm:$0xff] }
 0xcd7   : > { %3655 = vmatpush.msrb.mxu0 %v9130_v45  ;;  %3592 = vmatpush.msra.mxu3 %v11806_v28  ;;  %v9164_v28 = vld [vmem:[#allocation6 + $0x618] sm:$0xff] }
 0xcd9   : > { %3656 = vmatpush.msrb.mxu0 %v9134_v0  ;;  %3593 = vmatpush.msra.mxu3 %v11807_v6  ;;  %v9167_v6 = vld [vmem:[#allocation6 + $0x5d8] sm:$0xff] }
 0xcdb   : > { %3594 = vmatpush.msra.mxu3 %v11808_v15  ;;  %v9170_v15 = vld [vmem:[#allocation6 + $0x598] sm:$0xff] }
 0xcdd   : > { %3595 = vmatpush.msra.mxu3 %v8694_v61  ;;  %v9155_v61 = vld [vmem:[#allocation6 + $0x6d8] sm:$0xff] }
 0xcdf   : > { %3596 = vmatpush.msra.mxu3 %v9140_v41 }
 0xce1   : > { %3661 = vmatpush.msrb.mxu3 %v9143_v59 }
 0xce3   : > { %3662 = vmatpush.msrb.mxu3 %v9146_v1 }
 0xce5   : > { %3663 = vmatpush.msrb.mxu3 %v9149_v25 }
 0xce7   : > { %3664 = vmatpush.msrb.mxu3 %v9152_v35 }
 0xce9   : > { %3665 = vmatpush.msrb.mxu3 %v9155_v61 }
 0xceb   : > { %3666 = vmatpush.msrb.mxu3 %v9158_v13 }
 0xced   : > { %3667 = vmatpush.msrb.mxu3 %v9161_v55 }
 0xcef   : > { %3668 = vmatpush.msrb.mxu3 %v9164_v28 }
 0xcf1   : > { %3669 = vmatpush.msrb.mxu3 %v9167_v6 }
 0xcf3   : > { %3670 = vmatpush.msrb.mxu3 %v9170_v15 }
 0xcf5   : > { %3671 = vmatpush.msrb.mxu3 %v9173_v11 }
 0xcf7   : > { %3672 = vmatpush.msrb.mxu3 %v9176_v51 }
 0xcf9   : > { %3673 = vmatpush.msrb.mxu3 %v9179_v54  ;;  %v11814_v54 = vld [vmem:[#allocation30_spill] sm:$0xff] }
 0xcfb   : > { %3674 = vmatpush.msrb.mxu3 %v9182_v16 }
 0xcfd   : > { %3675 = vmatpush.msrb.mxu3 %v9185_v60 }
 0xcff   : > { %3676 = vmatpush.msrb.mxu3 %v9188_v63 }
 0xd17   : > { %v3470_v27 = vpop.f32.mrf.mxu0 }
 0xd18   : > { %v3471_v8 = vadd.f32 1e-05, %v3470_v27  ;;  %v9198_v27 = vld [vmem:[#allocation6 + $0x3e0] sm:$0xff] }
 0xd19   : > { %11815 = vst [vmem:[#allocation42_spill] sm:$0xff] %v9198_v27 }
 0xd1a   : > { %6499 = vrsqrt.f32 %v3471_v8  ;;  %vm3499_vm11 = vweird.f32 %v3471_v8 }
 0xd20   : > { %v6500_v42 = vpop.eup %6499 }
 0xd21   : > { %v3494_v33 = vmul.f32 %v6500_v42, %v3471_v8  ;;  %vm3500_vm12 = vweird.f32 %v6500_v42  ;;  %v9201_v8 = vld [vmem:[#allocation6 + $0x3e8] sm:$0xff] }
 0xd22   : > { %vm3501_vm13 = vmor %vm3499_vm11, %vm3500_vm12  ;;  %11816 = vst [vmem:[#allocation43_spill] sm:$0xff] %v9201_v8  ;;  %vm4410_vm11 = vcmask 269312  }
 0xd23   : > { %v3495_v3 = vmul.f32 %v6500_v42, %v3494_v33  ;;  %v9236_v33 = vld [vmem:[#allocation6 + $0x260] sm:$0xff] }
 0xd24   : > { %11827 = vst [vmem:[#allocation54_spill] sm:$0xff] %v9236_v33 }
 0xd25   : > { %v3496_v58 = vmul.f32 0.5, %v3495_v3  ;;  %v9227_v3 = vld [vmem:[#allocation6 + $0x2e8] sm:$0xff] }
 0xd26   : > { %11824 = vst [vmem:[#allocation51_spill] sm:$0xff] %v9227_v3 }
 0xd27   : > { %v3497_v44 = vsub.f32 1.5, %v3496_v58  ;;  %v9230_v58 = vld [vmem:[#allocation6 + $0x2a0] sm:$0xff] }
 0xd28   : > { %11825 = vst [vmem:[#allocation52_spill] sm:$0xff] %v9230_v58 }
 0xd29   : > { %v3498_v40 = vmul.f32 %v6500_v42, %v3497_v44  ;;  %v9210_v44 = vld [vmem:[#allocation6 + $0x360] sm:$0xff] }
 0xd2a   : > { %11819 = vst [vmem:[#allocation46_spill] sm:$0xff] %v9210_v44 }
 0xd2b   : > { %v3502_v39 = vsel %vm3501_vm13, %v6500_v42, %v3498_v40  ;;  %v9213_v40 = vld [vmem:[#allocation6 + $0x368] sm:$0xff]  ;;  %vm4763_vm13 = vcmask 777216  }
 0xd2c   : > { %v3513_v16 = vperm.slane %v3502_v39, 0  ;;  %v9204_v39 = vld [vmem:[#allocation6 + $0x3a0] sm:$0xff]  ;;  %11820 = vst [vmem:[#allocation47_spill] sm:$0xff] %v9213_v40  ;;  %v9219_v42 = vld [vmem:[#allocation6 + $0x328] sm:$0xff] }
 0xd2d   : > { %11817 = vst [vmem:[#allocation44_spill] sm:$0xff] %v9204_v39 }
 0xd2e   : > { %v3515_v60 = vmul.f32 %v3513_v16, %v9066_v20  ;;  %v9216_v16 = vld [vmem:[#allocation6 + $0x320] sm:$0xff]  ;;  %11822 = vst [vmem:[#allocation49_spill] sm:$0xff] %v9219_v42  ;;  %v9233_v20 = vld [vmem:[#allocation6 + $0x2a8] sm:$0xff] }
 0xd2f   : > { %11821 = vst [vmem:[#allocation48_spill] sm:$0xff] %v9216_v16 }
 0xd30   : > { %v3517_v51 = vmul.f32 %v3515_v60, %v11814_v54  ;;  %v9207_v60 = vld [vmem:[#allocation6 + $0x3a8] sm:$0xff]  ;;  %11826 = vst [vmem:[#allocation53_spill] sm:$0xff] %v9233_v20 }
 0xd31   : > { %11818 = vst [vmem:[#allocation45_spill] sm:$0xff] %v9207_v60 }
 0xd32   : > { %v9194_v63 = vadd.f32 %v3517_v51, %v7976_v50  ;;  %v9224_v51 = vld [vmem:[#allocation6 + $0x2e0] sm:$0xff] }
 0xd33   : > { %11823 = vst [vmem:[#allocation50_spill] sm:$0xff] %v9224_v51 }
 0xd34   : > { %3537 = vmatmul.f32.vlgmr.msra.gmra.mxu1 %v9194_v63  ;;  %3577 = vmatmul.f32.vlgmr.msra.gmra.mxu0 %v9194_v63 }
 0xd35   : > { %3681 = vmatpush.msra.mxu1 %v9198_v27  ;;  %3721 = vmatpush.msra.mxu0 %v9201_v8 }
 0xd37   : > { %3682 = vmatpush.msra.mxu1 %v9204_v39  ;;  %3722 = vmatpush.msra.mxu0 %v9207_v60  ;;  %v9284_v60 = vld [vmem:[#allocation6 + $0x60] sm:$0xff]  ;;  %v9287_v39 = vld [vmem:[#allocation6 + $0x68] sm:$0xff] }
 0xd38   : > { %11843 = vst [vmem:[#allocation70_spill] sm:$0xff] %v9284_v60 }
 0xd39   : > { %3683 = vmatpush.msra.mxu1 %v9210_v44  ;;  %3723 = vmatpush.msra.mxu0 %v9213_v40  ;;  %v9248_v40 = vld [vmem:[#allocation6 + $0x1e0] sm:$0xff]  ;;  %11844 = vst [vmem:[#allocation71_spill] sm:$0xff] %v9287_v39 }
 0xd3a   : > { %11831 = vst [vmem:[#allocation58_spill] sm:$0xff] %v9248_v40  ;;  %v9272_v44 = vld [vmem:[#allocation6 + $0xe0] sm:$0xff] }
 0xd3b   : > { %3684 = vmatpush.msra.mxu1 %v9216_v16  ;;  %3724 = vmatpush.msra.mxu0 %v9219_v42  ;;  %v9239_v42 = vld [vmem:[#allocation6 + $0x268] sm:$0xff]  ;;  %11839 = vst [vmem:[#allocation66_spill] sm:$0xff] %v9272_v44 }
 0xd3c   : > { %3617 = vmatmul.f32.vlgmr.msrb.gmra.mxu1 %v9194_v63  ;;  %3657 = vmatmul.f32.vlgmr.msrb.gmra.mxu0 %v9194_v63  ;;  %11828 = vst [vmem:[#allocation55_spill] sm:$0xff] %v9239_v42 }
 0xd3d   : > { %3685 = vmatpush.msra.mxu1 %v9224_v51  ;;  %3725 = vmatpush.msra.mxu0 %v9227_v3  ;;  %v9242_v51 = vld [vmem:[#allocation6 + $0x220] sm:$0xff]  ;;  %v9245_v3 = vld [vmem:[#allocation6 + $0x228] sm:$0xff] }
 0xd3e   : > { %11829 = vst [vmem:[#allocation56_spill] sm:$0xff] %v9242_v51 }
 0xd3f   : > { %3686 = vmatpush.msra.mxu1 %v9230_v58  ;;  %3726 = vmatpush.msra.mxu0 %v9233_v20  ;;  %11830 = vst [vmem:[#allocation57_spill] sm:$0xff] %v9245_v3  ;;  %v9251_v20 = vld [vmem:[#allocation6 + $0x1e8] sm:$0xff] }
 0xd40   : > { %11832 = vst [vmem:[#allocation59_spill] sm:$0xff] %v9251_v20 }
 0xd41   : > { %3687 = vmatpush.msra.mxu1 %v9236_v33  ;;  %3727 = vmatpush.msra.mxu0 %v9239_v42  ;;  %v9254_v42 = vld [vmem:[#allocation6 + $0x1a0] sm:$0xff] }
 0xd42   : > { %11833 = vst [vmem:[#allocation60_spill] sm:$0xff] %v9254_v42 }
 0xd43   : > { %3688 = vmatpush.msra.mxu1 %v9242_v51  ;;  %3728 = vmatpush.msra.mxu0 %v9245_v3  ;;  %v3490_v58 = vpop.f32.mrf.mxu3  ;;  %v9257_v51 = vld [vmem:[#allocation6 + $0x1a8] sm:$0xff]  ;;  %v9260_v3 = vld [vmem:[#allocation6 + $0x160] sm:$0xff] }
 0xd44   : > { %v3491_v16 = vadd.f32 1e-05, %v3490_v58  ;;  %11834 = vst [vmem:[#allocation61_spill] sm:$0xff] %v9257_v51  ;;  %v9263_v58 = vld [vmem:[#allocation6 + $0x168] sm:$0xff] }
 0xd45   : > { %3689 = vmatpush.msra.mxu1 %v9248_v40  ;;  %3729 = vmatpush.msra.mxu0 %v9251_v20  ;;  %11835 = vst [vmem:[#allocation62_spill] sm:$0xff] %v9260_v3  ;;  %v9266_v40 = vld [vmem:[#allocation6 + $0x120] sm:$0xff]  ;;  %v9269_v20 = vld [vmem:[#allocation6 + $0x128] sm:$0xff] }
 0xd46   : > { %6501 = vrsqrt.f32 %v3491_v16  ;;  %11836 = vst [vmem:[#allocation63_spill] sm:$0xff] %v9263_v58  ;;  %vm3509_vm2 = vweird.f32 %v3491_v16 }
 0xd47   : > { %3690 = vmatpush.msra.mxu1 %v9254_v42  ;;  %3730 = vmatpush.msra.mxu0 %v9257_v51  ;;  %11837 = vst [vmem:[#allocation64_spill] sm:$0xff] %v9266_v40  ;;  %v9275_v51 = vld [vmem:[#allocation6 + $0xe8] sm:$0xff] }
 0xd48   : > { %11838 = vst [vmem:[#allocation65_spill] sm:$0xff] %v9269_v20 }
 0xd49   : > { %3691 = vmatpush.msra.mxu1 %v9260_v3  ;;  %3731 = vmatpush.msra.mxu0 %v9263_v58  ;;  %11840 = vst [vmem:[#allocation67_spill] sm:$0xff] %v9275_v51  ;;  %v9278_v58 = vld [vmem:[#allocation6 + $0xa0] sm:$0xff] }
 0xd4a   : > { %11841 = vst [vmem:[#allocation68_spill] sm:$0xff] %v9278_v58 }
 0xd4b   : > { %3692 = vmatpush.msra.mxu1 %v9266_v40  ;;  %3732 = vmatpush.msra.mxu0 %v9269_v20  ;;  %v9281_v40 = vld [vmem:[#allocation6 + $0xa8] sm:$0xff] }
 0xd4c   : > { %v6502_v42 = vpop.eup %6501  ;;  %11842 = vst [vmem:[#allocation69_spill] sm:$0xff] %v9281_v40 }
 0xd4d   : > { %v3504_v33 = vmul.f32 %v6502_v42, %v3491_v16  ;;  %3693 = vmatpush.msra.mxu1 %v9272_v44  ;;  %3733 = vmatpush.msra.mxu0 %v9275_v51  ;;  %vm3510_vm14 = vweird.f32 %v6502_v42  ;;  %v9310_v16 = vld [vmem:[#allocation6 + $0x370] sm:$0xff] }
 0xd4e   : > { %vm3511_vm3 = vmor %vm3509_vm2, %vm3510_vm14  ;;  %11851 = vst [vmem:[#allocation78_spill] sm:$0xff] %v9310_v16 }
 0xd4f   : > { %v3505_v3 = vmul.f32 %v6502_v42, %v3504_v33  ;;  %3694 = vmatpush.msra.mxu1 %v9278_v58  ;;  %3734 = vmatpush.msra.mxu0 %v9281_v40  ;;  %v9290_v33 = vld [vmem:[#allocation6 + $0x20] sm:$0xff]  ;;  %v9293_v58 = vld [vmem:[#allocation6 + $0x28] sm:$0xff] }
 0xd50   : > { %11845 = vst [vmem:[#allocation72_spill] sm:$0xff] %v9290_v33 }
 0xd51   : > { %v3506_v20 = vmul.f32 0.5, %v3505_v3  ;;  %3695 = vmatpush.msra.mxu1 %v9284_v60  ;;  %3735 = vmatpush.msra.mxu0 %v9287_v39  ;;  %11846 = vst [vmem:[#allocation73_spill] sm:$0xff] %v9293_v58  ;;  %v9298_v60 = vld [vmem:[#allocation6 + $0x3f0] sm:$0xff] }
 0xd52   : > { %11847 = vst [vmem:[#allocation74_spill] sm:$0xff] %v9298_v60  ;;  %v9304_v39 = vld [vmem:[#allocation6 + $0x3b0] sm:$0xff] }
 0xd53   : > { %v3507_v44 = vsub.f32 1.5, %v3506_v20  ;;  %3696 = vmatpush.msra.mxu1 %v9290_v33  ;;  %3736 = vmatpush.msra.mxu0 %v9293_v58  ;;  %v9301_v20 = vld [vmem:[#allocation6 + $0x3f8] sm:$0xff]  ;;  %11849 = vst [vmem:[#allocation76_spill] sm:$0xff] %v9304_v39 }
 0xd54   : > { %3697 = vmatmul.f32.vlgmr.msra.gmra.mxu1 %v9194_v63  ;;  %3737 = vmatmul.f32.vlgmr.msra.gmra.mxu0 %v9194_v63  ;;  %11848 = vst [vmem:[#allocation75_spill] sm:$0xff] %v9301_v20  ;;  %v9307_v58 = vld [vmem:[#allocation6 + $0x3b8] sm:$0xff] }
 0xd55   : > { %v3508_v3 = vmul.f32 %v6502_v42, %v3507_v44  ;;  %3761 = vmatpush.msrb.mxu1 %v9298_v60  ;;  %3801 = vmatpush.msrb.mxu0 %v9301_v20  ;;  %11850 = vst [vmem:[#allocation77_spill] sm:$0xff] %v9307_v58  ;;  %v9313_v60 = vld [vmem:[#allocation6 + $0x378] sm:$0xff] }
 0xd56   : > { %11852 = vst [vmem:[#allocation79_spill] sm:$0xff] %v9313_v60 }
 0xd57   : > { %v3512_v33 = vsel %vm3511_vm3, %v6502_v42, %v3508_v3  ;;  %3762 = vmatpush.msrb.mxu1 %v9304_v39  ;;  %3802 = vmatpush.msrb.mxu0 %v9307_v58  ;;  %v9317_v42 = vld [vmem:[#allocation6 + $0x330] sm:$0xff]  ;;  %v9320_v3 = vld [vmem:[#allocation6 + $0x338] sm:$0xff] }
 0xd58   : > { %v3514_v44 = vperm.slane %v3512_v33, 0  ;;  %11853 = vst [vmem:[#allocation80_spill] sm:$0xff] %v9317_v42  ;;  %v9324_v58 = vld [vmem:[#allocation6 + $0x2f0] sm:$0xff] }
 0xd59   : > { %3763 = vmatpush.msrb.mxu1 %v9310_v16  ;;  %3803 = vmatpush.msrb.mxu0 %v9313_v60  ;;  %11854 = vst [vmem:[#allocation81_spill] sm:$0xff] %v9320_v3  ;;  %v9327_v16 = vld [vmem:[#allocation6 + $0x2f8] sm:$0xff] }
 0xd5a   : > { %v3516_v20 = vmul.f32 %v3514_v44, %v9098_v17  ;;  %11855 = vst [vmem:[#allocation82_spill] sm:$0xff] %v9324_v58  ;;  %v9333_v44 = vld [vmem:[#allocation6 + $0x2b0] sm:$0xff] }
 0xd5b   : > { %3764 = vmatpush.msrb.mxu1 %v9317_v42  ;;  %3804 = vmatpush.msrb.mxu0 %v9320_v3  ;;  %11856 = vst [vmem:[#allocation83_spill] sm:$0xff] %v9327_v16  ;;  %v9336_v42 = vld [vmem:[#allocation6 + $0x2b8] sm:$0xff] }
 0xd5c   : > { %v3518_v33 = vmul.f32 %v3516_v20, %v11814_v54  ;;  %11857 = vst [vmem:[#allocation84_spill] sm:$0xff] %v9333_v44  ;;  %v9341_v20 = vld [vmem:[#allocation6 + $0x270] sm:$0xff] }
 0xd5d   : > { %3765 = vmatpush.msrb.mxu1 %v9324_v58  ;;  %3805 = vmatpush.msrb.mxu0 %v9327_v16  ;;  %11858 = vst [vmem:[#allocation85_spill] sm:$0xff] %v9336_v42  ;;  %v9344_v16 = vld [vmem:[#allocation6 + $0x278] sm:$0xff] }
 0xd5e   : > { %v9331_v17 = vadd.f32 %v3518_v33, %v7976_v50  ;;  %11859 = vst [vmem:[#allocation86_spill] sm:$0xff] %v9341_v20  ;;  %v9347_v33 = vld [vmem:[#allocation6 + $0x7e0] sm:$0xff]  ;;  %v9356_v58 = vld [vmem:[#allocation6 + $0x238] sm:$0xff] }
 0xd5f   : > { %3766 = vmatpush.msrb.mxu1 %v9333_v44  ;;  %3806 = vmatpush.msrb.mxu0 %v9336_v42  ;;  %11860 = vst [vmem:[#allocation87_spill] sm:$0xff] %v9344_v16  ;;  %v9350_v44 = vld [vmem:[#allocation6 + $0x7e8] sm:$0xff]  ;;  %v9353_v42 = vld [vmem:[#allocation6 + $0x230] sm:$0xff] }
 0xd60   : > { %3557 = vmatmul.f32.vlgmr.msra.gmra.mxu2 %v9331_v17  ;;  %3597 = vmatmul.f32.vlgmr.msra.gmra.mxu3 %v9331_v17  ;;  %11861 = vst [vmem:[#allocation88_spill] sm:$0xff] %v9347_v33 }
 0xd61   : > { %3767 = vmatpush.msrb.mxu1 %v9341_v20  ;;  %3807 = vmatpush.msrb.mxu0 %v9344_v16  ;;  %11862 = vst [vmem:[#allocation89_spill] sm:$0xff] %v9350_v44  ;;  %v9359_v20 = vld [vmem:[#allocation6 + $0x7a0] sm:$0xff]  ;;  %v9362_v16 = vld [vmem:[#allocation6 + $0x7a8] sm:$0xff] }
 0xd62   : > { %3701 = vmatpush.msra.mxu2 %v9347_v33  ;;  %3741 = vmatpush.msra.mxu3 %v9350_v44  ;;  %11863 = vst [vmem:[#allocation90_spill] sm:$0xff] %v9353_v42  ;;  %v9365_v33 = vld [vmem:[#allocation6 + $0x1f0] sm:$0xff]  ;;  %v9368_v44 = vld [vmem:[#allocation6 + $0x1f8] sm:$0xff] }
 0xd63   : > { %3768 = vmatpush.msrb.mxu1 %v9353_v42  ;;  %11864 = vst [vmem:[#allocation91_spill] sm:$0xff] %v9356_v58  ;;  %3808 = vmatpush.msrb.mxu0 %v9356_v58  ;;  %v9371_v42 = vld [vmem:[#allocation6 + $0x760] sm:$0xff]  ;;  %v9374_v58 = vld [vmem:[#allocation6 + $0x768] sm:$0xff] }
 0xd64   : > { %11865 = vst [vmem:[#allocation92_spill] sm:$0xff] %v9359_v20  ;;  %3702 = vmatpush.msra.mxu2 %v9359_v20  ;;  %3742 = vmatpush.msra.mxu3 %v9362_v16  ;;  %v9377_v20 = vld [vmem:[#allocation6 + $0x1b0] sm:$0xff] }
 0xd65   : > { %11866 = vst [vmem:[#allocation93_spill] sm:$0xff] %v9362_v16  ;;  %3769 = vmatpush.msrb.mxu1 %v9365_v33  ;;  %3809 = vmatpush.msrb.mxu0 %v9368_v44  ;;  %v9380_v16 = vld [vmem:[#allocation6 + $0x1b8] sm:$0xff] }
 0xd66   : > { %11867 = vst [vmem:[#allocation94_spill] sm:$0xff] %v9365_v33  ;;  %3703 = vmatpush.msra.mxu2 %v9371_v42  ;;  %3743 = vmatpush.msra.mxu3 %v9374_v58  ;;  %v9383_v33 = vld [vmem:[#allocation6 + $0x720] sm:$0xff] }
 0xd67   : > { %11868 = vst [vmem:[#allocation95_spill] sm:$0xff] %v9368_v44  ;;  %3770 = vmatpush.msrb.mxu1 %v9377_v20  ;;  %3810 = vmatpush.msrb.mxu0 %v9380_v16  ;;  %v9386_v44 = vld [vmem:[#allocation6 + $0x728] sm:$0xff] }
 0xd68   : > { %11869 = vst [vmem:[#allocation96_spill] sm:$0xff] %v9371_v42  ;;  %3704 = vmatpush.msra.mxu2 %v9383_v33  ;;  %3744 = vmatpush.msra.mxu3 %v9386_v44  ;;  %v9389_v42 = vld [vmem:[#allocation6 + $0x170] sm:$0xff] }
 0xd69   : > { %11870 = vst [vmem:[#allocation97_spill] sm:$0xff] %v9374_v58  ;;  %3771 = vmatpush.msrb.mxu1 %v9389_v42  ;;  %v9392_v58 = vld [vmem:[#allocation6 + $0x178] sm:$0xff]  ;;  %3637 = vmatmul.f32.vlgmr.msrb.gmra.mxu2 %v9331_v17 }
 0xd6a   : > { %11871 = vst [vmem:[#allocation98_spill] sm:$0xff] %v9377_v20  ;;  %3811 = vmatpush.msrb.mxu0 %v9392_v58  ;;  %3677 = vmatmul.f32.vlgmr.msrb.gmra.mxu3 %v9331_v17  ;;  %v9412_v20 = vld [vmem:[#allocation6 + $0x6a8] sm:$0xff] }
 0xd6b   : > { %11872 = vst [vmem:[#allocation99_spill] sm:$0xff] %v9380_v16  ;;  %v9397_v16 = vld [vmem:[#allocation6 + $0x6e0] sm:$0xff] }
 0xd6c   : > { %11873 = vst [vmem:[#allocation100_spill] sm:$0xff] %v9383_v33  ;;  %3705 = vmatpush.msra.mxu2 %v9397_v16  ;;  %v9400_v33 = vld [vmem:[#allocation6 + $0x6e8] sm:$0xff] }
 0xd6d   : > { %11874 = vst [vmem:[#allocation101_spill] sm:$0xff] %v9386_v44  ;;  %3745 = vmatpush.msra.mxu3 %v9400_v33  ;;  %v9403_v44 = vld [vmem:[#allocation6 + $0x130] sm:$0xff] }
 0xd6e   : > { %11875 = vst [vmem:[#allocation102_spill] sm:$0xff] %v9389_v42  ;;  %3772 = vmatpush.msrb.mxu1 %v9403_v44  ;;  %v9406_v42 = vld [vmem:[#allocation6 + $0x138] sm:$0xff] }
 0xd6f   : > { %11876 = vst [vmem:[#allocation103_spill] sm:$0xff] %v9392_v58  ;;  %3812 = vmatpush.msrb.mxu0 %v9406_v42  ;;  %v9409_v58 = vld [vmem:[#allocation6 + $0x6a0] sm:$0xff]  ;;  %3746 = vmatpush.msra.mxu3 %v9412_v20 }
 0xd70   : > { %11877 = vst [vmem:[#allocation104_spill] sm:$0xff] %v9397_v16  ;;  %3706 = vmatpush.msra.mxu2 %v9409_v58  ;;  %v9415_v16 = vld [vmem:[#allocation6 + $0xf0] sm:$0xff] }
 0xd71   : > { %11878 = vst [vmem:[#allocation105_spill] sm:$0xff] %v9400_v33  ;;  %3773 = vmatpush.msrb.mxu1 %v9415_v16  ;;  %v9418_v33 = vld [vmem:[#allocation6 + $0xf8] sm:$0xff] }
 0xd72   : > { %11879 = vst [vmem:[#allocation106_spill] sm:$0xff] %v9403_v44  ;;  %3813 = vmatpush.msrb.mxu0 %v9418_v33  ;;  %v9421_v44 = vld [vmem:[#allocation6 + $0x660] sm:$0xff] }
 0xd73   : > { %11880 = vst [vmem:[#allocation107_spill] sm:$0xff] %v9406_v42  ;;  %3707 = vmatpush.msra.mxu2 %v9421_v44  ;;  %v9424_v42 = vld [vmem:[#allocation6 + $0x668] sm:$0xff] }
 0xd74   : > { %11881 = vst [vmem:[#allocation108_spill] sm:$0xff] %v9409_v58  ;;  %3747 = vmatpush.msra.mxu3 %v9424_v42  ;;  %v9427_v58 = vld [vmem:[#allocation6 + $0xb0] sm:$0xff] }
 0xd75   : > { %11882 = vst [vmem:[#allocation109_spill] sm:$0xff] %v9412_v20  ;;  %3774 = vmatpush.msrb.mxu1 %v9427_v58  ;;  %v9430_v20 = vld [vmem:[#allocation6 + $0xb8] sm:$0xff] }
 0xd76   : > { %11883 = vst [vmem:[#allocation110_spill] sm:$0xff] %v9415_v16  ;;  %3814 = vmatpush.msrb.mxu0 %v9430_v20  ;;  %v9433_v16 = vld [vmem:[#allocation6 + $0x620] sm:$0xff] }
 0xd77   : > { %11884 = vst [vmem:[#allocation111_spill] sm:$0xff] %v9418_v33  ;;  %3708 = vmatpush.msra.mxu2 %v9433_v16  ;;  %v9436_v33 = vld [vmem:[#allocation6 + $0x628] sm:$0xff] }
 0xd78   : > { %11885 = vst [vmem:[#allocation112_spill] sm:$0xff] %v9421_v44  ;;  %3748 = vmatpush.msra.mxu3 %v9436_v33  ;;  %v9439_v44 = vld [vmem:[#allocation6 + $0x70] sm:$0xff] }
 0xd79   : > { %11886 = vst [vmem:[#allocation113_spill] sm:$0xff] %v9424_v42  ;;  %3775 = vmatpush.msrb.mxu1 %v9439_v44  ;;  %v9442_v42 = vld [vmem:[#allocation6 + $0x78] sm:$0xff] }
 0xd7a   : > { %11887 = vst [vmem:[#allocation114_spill] sm:$0xff] %v9427_v58  ;;  %3815 = vmatpush.msrb.mxu0 %v9442_v42  ;;  %v9445_v58 = vld [vmem:[#allocation6 + $0x5e0] sm:$0xff] }
 0xd7b   : > { %11888 = vst [vmem:[#allocation115_spill] sm:$0xff] %v9430_v20  ;;  %3709 = vmatpush.msra.mxu2 %v9445_v58  ;;  %v9448_v20 = vld [vmem:[#allocation6 + $0x5e8] sm:$0xff] }
 0xd7c   : > { %11889 = vst [vmem:[#allocation13_spill] sm:$0xff] %v9433_v16  ;;  %3749 = vmatpush.msra.mxu3 %v9448_v20  ;;  %v9451_v16 = vld [vmem:[#allocation6 + $0x30] sm:$0xff] }
 0xd7d   : > { %11890 = vst [vmem:[#allocation116_spill] sm:$0xff] %v9436_v33  ;;  %3776 = vmatpush.msrb.mxu1 %v9451_v16  ;;  %v9454_v33 = vld [vmem:[#allocation6 + $0x38] sm:$0xff] }
 0xd7e   : > { %11891 = vst [vmem:[#allocation117_spill] sm:$0xff] %v9439_v44  ;;  %3816 = vmatpush.msrb.mxu0 %v9454_v33  ;;  %v9457_v44 = vld [vmem:[#allocation6 + $0x5a0] sm:$0xff]  ;;  %3777 = vmatmul.f32.vlgmr.msrb.gmra.mxu1 %v9194_v63 }
 0xd7f   : > { %11892 = vst [vmem:[#allocation14_spill] sm:$0xff] %v9442_v42  ;;  %3710 = vmatpush.msra.mxu2 %v9457_v44  ;;  %v9460_v42 = vld [vmem:[#allocation6 + $0x5a8] sm:$0xff]  ;;  %3817 = vmatmul.f32.vlgmr.msrb.gmra.mxu0 %v9194_v63  ;;  %v9479_v63 = vld [vmem:[#allocation6 + $0x4e0] sm:$0xff] }
 0xd80   : > { %11893 = vst [vmem:[#allocation120_spill] sm:$0xff] %v9445_v58  ;;  %3750 = vmatpush.msra.mxu3 %v9460_v42  ;;  %3908 = vmatpush.msra.mxu1 %v11686_v22  ;;  %v9469_v58 = vld [vmem:[#allocation6 + $0x568] sm:$0xff]  ;;  %v9485_v22 = vld [vmem:[%s10977_s11 + $0x18] sm:$0xff] }
 0xd81   : > { %11894 = vst [vmem:[#allocation121_spill] sm:$0xff] %v9448_v20  ;;  %v9466_v20 = vld [vmem:[#allocation6 + $0x560] sm:$0xff] }
 0xd82   : > { %11895 = vst [vmem:[#allocation124_spill] sm:$0xff] %v9451_v16  ;;  %3711 = vmatpush.msra.mxu2 %v9466_v20  ;;  %3751 = vmatpush.msra.mxu3 %v9469_v58 }
 0xd83   : > { %11896 = vst [vmem:[#allocation125_spill] sm:$0xff] %v9454_v33  ;;  %3909 = vmatpush.msra.mxu1 %v11689_v7  ;;  %v9490_v7 = vld [vmem:[#allocation6 + $0x4a0] sm:$0xff] }
 0xd84   : > { %11897 = vst [vmem:[#allocation128_spill] sm:$0xff] %v9457_v44  ;;  %v9473_v44 = vld [vmem:[#allocation6 + $0x520] sm:$0xff] }
 0xd85   : > { %11898 = vst [vmem:[#allocation129_spill] sm:$0xff] %v9460_v42  ;;  %3712 = vmatpush.msra.mxu2 %v9473_v44  ;;  %v9476_v42 = vld [vmem:[#allocation6 + $0x528] sm:$0xff] }
 0xd86   : > { %11899 = vst [vmem:[#allocation132_spill] sm:$0xff] %v9466_v20  ;;  %3752 = vmatpush.msra.mxu3 %v9476_v42  ;;  %6181 = vmatmul.msk.f32.vlgmr.msra.gmra.mxu1 %vm860_vm1, %v9485_v22  ;;  %v9527_v20 = vld [vmem:[#allocation6 + $0x778] sm:$0xff] }
 0xd87   : > { %11900 = vst [vmem:[#allocation133_spill] sm:$0xff] %v9469_v58  ;;  %3713 = vmatpush.msra.mxu2 %v9479_v63  ;;  %v9487_v58 = vld [vmem:[#allocation6 + $0x4e8] sm:$0xff] }
 0xd88   : > { %11901 = vst [vmem:[#allocation136_spill] sm:$0xff] %v9473_v44  ;;  %3753 = vmatpush.msra.mxu3 %v9487_v58  ;;  %v9493_v44 = vld [vmem:[#allocation6 + $0x4a8] sm:$0xff] }
 0xd89   : > { %11902 = vst [vmem:[#allocation137_spill] sm:$0xff] %v9476_v42  ;;  %3714 = vmatpush.msra.mxu2 %v9490_v7  ;;  %v9501_v42 = vld [vmem:[#allocation6 + $0x468] sm:$0xff] }
 0xd8a   : > { %11903 = vst [vmem:[#allocation140_spill] sm:$0xff] %v9479_v63  ;;  %3754 = vmatpush.msra.mxu3 %v9493_v44  ;;  %v9498_v63 = vld [vmem:[#allocation6 + $0x460] sm:$0xff] }
 0xd8b   : > { %11904 = vst [vmem:[#allocation141_spill] sm:$0xff] %v9487_v58  ;;  %3715 = vmatpush.msra.mxu2 %v9498_v63  ;;  %v9504_v58 = vld [vmem:[#allocation6 + $0x420] sm:$0xff] }
 0xd8c   : > { %11905 = vst [vmem:[#allocation144_spill] sm:$0xff] %v9490_v7  ;;  %3755 = vmatpush.msra.mxu3 %v9501_v42  ;;  %v9507_v7 = vld [vmem:[#allocation6 + $0x428] sm:$0xff] }
 0xd8d   : > { %11906 = vst [vmem:[#allocation145_spill] sm:$0xff] %v9493_v44  ;;  %3716 = vmatpush.msra.mxu2 %v9504_v58  ;;  %v9512_v44 = vld [vmem:[#allocation6 + $0x7f0] sm:$0xff] }
 0xd8e   : > { %11907 = vst [vmem:[#allocation148_spill] sm:$0xff] %v9498_v63  ;;  %3756 = vmatpush.msra.mxu3 %v9507_v7  ;;  %3717 = vmatmul.f32.vlgmr.msra.gmra.mxu2 %v9331_v17  ;;  %v9515_v63 = vld [vmem:[#allocation6 + $0x7f8] sm:$0xff] }
 0xd8f   : > { %11908 = vst [vmem:[#allocation149_spill] sm:$0xff] %v9501_v42  ;;  %3757 = vmatmul.f32.vlgmr.msra.gmra.mxu3 %v9331_v17  ;;  %3781 = vmatpush.msrb.mxu2 %v9512_v44  ;;  %v9518_v42 = vld [vmem:[#allocation6 + $0x7b0] sm:$0xff] }
 0xd90   : > { %11909 = vst [vmem:[#allocation152_spill] sm:$0xff] %v9504_v58  ;;  %3821 = vmatpush.msrb.mxu3 %v9515_v63  ;;  %v9521_v58 = vld [vmem:[#allocation6 + $0x7b8] sm:$0xff] }
 0xd91   : > { %11910 = vst [vmem:[#allocation153_spill] sm:$0xff] %v9507_v7  ;;  %3782 = vmatpush.msrb.mxu2 %v9518_v42  ;;  %v9524_v7 = vld [vmem:[#allocation6 + $0x770] sm:$0xff] }
 0xd92   : > { %11911 = vst [vmem:[#allocation156_spill] sm:$0xff] %v9512_v44  ;;  %3822 = vmatpush.msrb.mxu3 %v9521_v58  ;;  %v9530_v44 = vld [vmem:[#allocation6 + $0x730] sm:$0xff] }
 0xd93   : > { %11912 = vst [vmem:[#allocation161_spill] sm:$0xff] %v9515_v63  ;;  %3783 = vmatpush.msrb.mxu2 %v9524_v7  ;;  %v9533_v63 = vld [vmem:[#allocation6 + $0x738] sm:$0xff] }
 0xd94   : > { %11913 = vst [vmem:[#allocation15_spill] sm:$0xff] %v9518_v42  ;;  %3823 = vmatpush.msrb.mxu3 %v9527_v20  ;;  %v9536_v42 = vld [vmem:[#allocation6 + $0x6f0] sm:$0xff] }
 0xd95   : > { %11914 = vst [vmem:[#allocation16_spill] sm:$0xff] %v9521_v58  ;;  %3784 = vmatpush.msrb.mxu2 %v9530_v44  ;;  %v9539_v58 = vld [vmem:[#allocation6 + $0x6f8] sm:$0xff] }
 0xd96   : > { %11915 = vst [vmem:[#allocation17_spill] sm:$0xff] %v9524_v7  ;;  %3824 = vmatpush.msrb.mxu3 %v9533_v63  ;;  %v9542_v7 = vld [vmem:[#allocation6 + $0x6b0] sm:$0xff] }
 0xd97   : > { %11916 = vst [vmem:[#allocation118_spill] sm:$0xff] %v9527_v20  ;;  %3785 = vmatpush.msrb.mxu2 %v9536_v42  ;;  %v9545_v20 = vld [vmem:[#allocation6 + $0x6b8] sm:$0xff] }
 0xd98   : > { %11917 = vst [vmem:[#allocation122_spill] sm:$0xff] %v9530_v44  ;;  %3825 = vmatpush.msrb.mxu3 %v9539_v58  ;;  %v9548_v44 = vld [vmem:[#allocation6 + $0x670] sm:$0xff] }
 0xd99   : > { %11918 = vst [vmem:[#allocation126_spill] sm:$0xff] %v9533_v63  ;;  %3786 = vmatpush.msrb.mxu2 %v9542_v7  ;;  %v9551_v63 = vld [vmem:[#allocation6 + $0x678] sm:$0xff] }
 0xd9a   : > { %11919 = vst [vmem:[#allocation130_spill] sm:$0xff] %v9536_v42  ;;  %3826 = vmatpush.msrb.mxu3 %v9545_v20  ;;  %v9554_v42 = vld [vmem:[#allocation6 + $0x630] sm:$0xff] }
 0xd9b   : > { %11920 = vst [vmem:[#allocation134_spill] sm:$0xff] %v9539_v58  ;;  %3787 = vmatpush.msrb.mxu2 %v9548_v44  ;;  %v9557_v58 = vld [vmem:[#allocation6 + $0x638] sm:$0xff] }
 0xd9c   : > { %11921 = vst [vmem:[#allocation138_spill] sm:$0xff] %v9542_v7  ;;  %3827 = vmatpush.msrb.mxu3 %v9551_v63  ;;  %v9560_v7 = vld [vmem:[#allocation6 + $0x5f0] sm:$0xff] }
 0xd9d   : > { %11922 = vst [vmem:[#allocation142_spill] sm:$0xff] %v9545_v20  ;;  %3788 = vmatpush.msrb.mxu2 %v9554_v42  ;;  %v9563_v20 = vld [vmem:[#allocation6 + $0x5f8] sm:$0xff] }
 0xd9e   : > { %11923 = vst [vmem:[#allocation146_spill] sm:$0xff] %v9548_v44  ;;  %3828 = vmatpush.msrb.mxu3 %v9557_v58  ;;  %v9566_v44 = vld [vmem:[#allocation6 + $0x5b0] sm:$0xff] }
 0xd9f   : > { %11924 = vst [vmem:[#allocation150_spill] sm:$0xff] %v9551_v63  ;;  %3789 = vmatpush.msrb.mxu2 %v9560_v7  ;;  %v9569_v63 = vld [vmem:[#allocation6 + $0x5b8] sm:$0xff] }
 0xda0   : > { %11925 = vst [vmem:[#allocation154_spill] sm:$0xff] %v9554_v42  ;;  %3829 = vmatpush.msrb.mxu3 %v9563_v20  ;;  %v9572_v42 = vld [vmem:[#allocation6 + $0x570] sm:$0xff] }
 0xda1   : > { %11926 = vst [vmem:[#allocation157_spill] sm:$0xff] %v9557_v58  ;;  %3790 = vmatpush.msrb.mxu2 %v9566_v44  ;;  %v9575_v58 = vld [vmem:[#allocation6 + $0x578] sm:$0xff] }
 0xda2   : > { %11927 = vst [vmem:[#allocation159_spill] sm:$0xff] %v9560_v7  ;;  %3830 = vmatpush.msrb.mxu3 %v9569_v63  ;;  %v9578_v7 = vld [vmem:[#allocation6 + $0x530] sm:$0xff] }
 0xda3   : > { %11928 = vst [vmem:[#allocation162_spill] sm:$0xff] %v9563_v20  ;;  %3791 = vmatpush.msrb.mxu2 %v9572_v42  ;;  %v9581_v20 = vld [vmem:[#allocation6 + $0x538] sm:$0xff] }
 0xda4   : > { %11929 = vst [vmem:[#allocation164_spill] sm:$0xff] %v9566_v44  ;;  %3831 = vmatpush.msrb.mxu3 %v9575_v58  ;;  %v9584_v44 = vld [vmem:[#allocation6 + $0x4f0] sm:$0xff] }
 0xda5   : > { %11930 = vst [vmem:[#allocation168_spill] sm:$0xff] %v9569_v63  ;;  %3792 = vmatpush.msrb.mxu2 %v9578_v7  ;;  %v9587_v63 = vld [vmem:[#allocation6 + $0x4f8] sm:$0xff] }
 0xda6   : > { %11931 = vst [vmem:[#allocation172_spill] sm:$0xff] %v9572_v42  ;;  %3832 = vmatpush.msrb.mxu3 %v9581_v20  ;;  %v9590_v42 = vld [vmem:[#allocation6 + $0x4b0] sm:$0xff] }
 0xda7   : > { %11932 = vst [vmem:[#allocation176_spill] sm:$0xff] %v9575_v58  ;;  %3793 = vmatpush.msrb.mxu2 %v9584_v44  ;;  %v9593_v58 = vld [vmem:[#allocation6 + $0x4b8] sm:$0xff] }
 0xda8   : > { %11933 = vst [vmem:[#allocation165_spill] sm:$0xff] %v9578_v7  ;;  %3833 = vmatpush.msrb.mxu3 %v9587_v63  ;;  %v9596_v7 = vld [vmem:[#allocation6 + $0x470] sm:$0xff] }
 0xda9   : > { %11934 = vst [vmem:[#allocation180_spill] sm:$0xff] %v9581_v20  ;;  %3794 = vmatpush.msrb.mxu2 %v9590_v42  ;;  %v9599_v20 = vld [vmem:[#allocation6 + $0x478] sm:$0xff] }
 0xdaa   : > { %11935 = vst [vmem:[#allocation169_spill] sm:$0xff] %v9584_v44  ;;  %3834 = vmatpush.msrb.mxu3 %v9593_v58  ;;  %v9602_v44 = vld [vmem:[#allocation6 + $0x430] sm:$0xff] }
 0xdab   : > { %11936 = vst [vmem:[#allocation173_spill] sm:$0xff] %v9587_v63  ;;  %3795 = vmatpush.msrb.mxu2 %v9596_v7  ;;  %v9605_v63 = vld [vmem:[#allocation6 + $0x438] sm:$0xff] }
 0xdac   : > { %11937 = vst [vmem:[#allocation187_spill] sm:$0xff] %v9590_v42  ;;  %3835 = vmatpush.msrb.mxu3 %v9599_v20 }
 0xdad   : > { %11938 = vst [vmem:[#allocation178_spill] sm:$0xff] %v9593_v58  ;;  %3796 = vmatpush.msrb.mxu2 %v9602_v44 }
 0xdae   : > { %11939 = vst [vmem:[#allocation191_spill] sm:$0xff] %v9596_v7  ;;  %3836 = vmatpush.msrb.mxu3 %v9605_v63  ;;  %3797 = vmatmul.f32.vlgmr.msrb.gmra.mxu2 %v9331_v17 }
 0xdaf   : > { %11940 = vst [vmem:[#allocation182_spill] sm:$0xff] %v9599_v20  ;;  %3837 = vmatmul.f32.vlgmr.msrb.gmra.mxu3 %v9331_v17  ;;  %3928 = vmatpush.msra.mxu2 %v11710_v23 }
 0xdb0   : > { %11941 = vst [vmem:[#allocation185_spill] sm:$0xff] %v9602_v44 }
 0xdb1   : > { %11942 = vst [vmem:[#allocation198_spill] sm:$0xff] %v9605_v63  ;;  %3929 = vmatpush.msra.mxu2 %v11711_v19  ;;  %v3538_v20 = vpop.f32.mrf.mxu1  ;;  %v3578_v7 = vpop.f32.mrf.mxu0 }
 0xdb6   : > { %6182 = vmatmul.msk.f32.vlgmr.msra.gmra.mxu2 %vm860_vm1, %v9485_v22 }
 0xdb9   : > { %v3618_v58 = vpop.f32.mrf.mxu1  ;;  %v3658_v63 = vpop.f32.mrf.mxu0 }
 0xdd1   : > { %v3698_v17 = vpop.f32.mrf.mxu1 }
 0xde3   : > { %v3558_v42 = vpop.f32.mrf.mxu2  ;;  %v3598_v44 = vpop.f32.mrf.mxu3 }
 0xde4   : > { %v3559_v33 = vadd.f32 %v3558_v42, %v3538_v20  ;;  %v3599_v16 = vadd.f32 %v3598_v44, %v3578_v7 }
 0xde6   : > { %3851 = vrot.lane.b32.xlu0 %v3599_v16, %s7046_s0  ;;  %3849 = vrot.lane.b32.xlu2 %v3559_v33, %s7046_s0  ;;  %v3738_v33 = vpop.f32.mrf.mxu0 }
 0xdec   : > { %v3638_v23 = vpop.f32.mrf.mxu2 }
 0xded   : > { %v3678_v3 = vpop.f32.mrf.mxu3  ;;  %v3639_v19 = vadd.f32 %v3638_v23, %v3618_v58 }
 0xdee   : > { %v3679_v60 = vadd.f32 %v3678_v3, %v3658_v63 }
 0xdef   : > { %3853 = vrot.lane.b32.xlu1 %v3639_v19, %s7046_s0  ;;  %v6806_v19 = vld [vmem:[#allocation6 + $0x200] sm:$0xff] }
 0xdf0   : > { %3855 = vrot.lane.b32.xlu2 %v3679_v60, %s7046_s0 }
 0xdfb   : > { %v3778_v22 = vpop.f32.mrf.mxu1 }
 0xe03   : > { %v3911_v39 = vpop.f32.mrf.mxu1 }
 0xe04   : > { %v3912_v42 = vadd.f32 %v3911_v39, %v11721_v5  ;;  %v6799_v39 = vld [vmem:[#allocation6 + $0x3c0] sm:$0xff] }
 0xe06   : > { %v3934_v44 = vmul.f32 %v3912_v42, %v3912_v42 }
 0xe08   : > { %v3936_v20 = vmul.f32 %v3934_v44, %v3912_v42 }
 0xe0a   : > { %v3938_v7 = vmul.f32 0.044715, %v3936_v20 }
 0xe0c   : > { %v3940_v16 = vadd.f32 %v3938_v7, %v3912_v42 }
 0xe0e   : > { %v3942_v51 = vmul.f32 0.7978846, %v3940_v16  ;;  %v6807_v16 = vld [vmem:[#allocation6 + $0x1c0] sm:$0xff] }
 0xe10   : > { %6503 = vtanh.f32 %v3942_v51  ;;  %v6802_v51 = vld [vmem:[#allocation6 + $0x300] sm:$0xff] }
 0xe11   : > { %v3718_v40 = vpop.f32.mrf.mxu2 }
 0xe12   : > { %v3719_v8 = vadd.f32 %v3718_v40, %v3698_v17  ;;  %v3758_v27 = vpop.f32.mrf.mxu3  ;;  %v6800_v40 = vld [vmem:[#allocation6 + $0x380] sm:$0xff] }
 0xe13   : > { %v3759_v50 = vadd.f32 %v3758_v27, %v3738_v33  ;;  %v6801_v27 = vld [vmem:[#allocation6 + $0x340] sm:$0xff] }
 0xe14   : > { %3857 = vrot.lane.b32.xlu0 %v3719_v8, %s7046_s0  ;;  %v6803_v8 = vld [vmem:[#allocation6 + $0x2c0] sm:$0xff] }
 0xe15   : > { %3859 = vrot.lane.b32.xlu2 %v3759_v50, %s7046_s0  ;;  %v6804_v50 = vld [vmem:[#allocation6 + $0x280] sm:$0xff] }
 0xe16   : > { %v6504_v60 = vpop.eup %6503  ;;  %v6805_v17 = vld [vmem:[#allocation6 + $0x240] sm:$0xff] }
 0xe17   : > { %v3946_v58 = vadd.f32 1.0, %v6504_v60  ;;  %v6808_v33 = vld [vmem:[#allocation6 + $0x180] sm:$0xff] }
 0xe18   : > { %v6809_v60 = vld [vmem:[#allocation6 + $0x140] sm:$0xff] }
 0xe19   : > { %v3948_v3 = vmul.f32 0.5, %v3946_v58 }
 0xe1b   : > { %v9621_v63 = vmul.f32 %v3948_v3, %v3912_v42  ;;  %v3818_v42 = vpop.f32.mrf.mxu0  ;;  %v6810_v3 = vld [vmem:[#allocation6 + $0x100] sm:$0xff] }
 0xe1d   : > { %3967 = vmatpush.msra.mxu0 %v9621_v63 }
 0xe1e   : > { %6183 = vmatmul.msk.f32.vlgmr.msra.gmra.mxu0 %vm2359_vm9, %v11724_v62 }
 0xe1f   : > { %4066 = vmatpush.msrb.mxu0 %v6799_v39 }
 0xe21   : > { %4067 = vmatpush.msrb.mxu0 %v6800_v40  ;;  %v6811_v40 = vld [vmem:[#allocation6 + $0xc0] sm:$0xff] }
 0xe23   : > { %4068 = vmatpush.msrb.mxu0 %v6801_v27  ;;  %v6812_v27 = vld [vmem:[#allocation6 + $0x80] sm:$0xff] }
 0xe25   : > { %4069 = vmatpush.msrb.mxu0 %v6802_v51 }
 0xe27   : > { %4070 = vmatpush.msrb.mxu0 %v6803_v8  ;;  %v6813_v8 = vld [vmem:[#allocation6 + $0x40] sm:$0xff] }
 0xe29   : > { %4071 = vmatpush.msrb.mxu0 %v6804_v50 }
 0xe2b   : > { %4072 = vmatpush.msrb.mxu0 %v6805_v17  ;;  %v6814_v17 = vld [vmem:[#allocation6] sm:$0xff] }
 0xe2d   : > { %4073 = vmatpush.msrb.mxu0 %v6806_v19  ;;  %v6815_v19 = vld [vmem:[#allocation6 + $0x3d0] sm:$0xff] }
 0xe2f   : > { %4074 = vmatpush.msrb.mxu0 %v6807_v16 }
 0xe31   : > { %v3798_v23 = vpop.f32.mrf.mxu2  ;;  %4075 = vmatpush.msrb.mxu0 %v6808_v33  ;;  %v6820_v33 = vld [vmem:[#allocation6 + $0x290] sm:$0xff] }
 0xe32   : > { %v3799_v44 = vadd.f32 %v3798_v23, %v3778_v22  ;;  %v3838_v20 = vpop.f32.mrf.mxu3 }
 0xe33   : > { %v3839_v7 = vadd.f32 %v3838_v20, %v3818_v42  ;;  %4076 = vmatpush.msrb.mxu0 %v6809_v60  ;;  %v6817_v20 = vld [vmem:[#allocation6 + $0x350] sm:$0xff] }
 0xe34   : > { %3861 = vrot.lane.b32.xlu0 %v3799_v44, %s7046_s0  ;;  %v6816_v44 = vld [vmem:[#allocation6 + $0x390] sm:$0xff] }
 0xe35   : > { %3863 = vrot.lane.b32.xlu1 %v3839_v7, %s7046_s0  ;;  %4077 = vmatpush.msrb.mxu0 %v6810_v3  ;;  %v6819_v7 = vld [vmem:[#allocation6 + $0x2d0] sm:$0xff] }
 0xe37   : > { %4078 = vmatpush.msrb.mxu0 %v6811_v40  ;;  %v6822_v40 = vld [vmem:[#allocation6 + $0x210] sm:$0xff] }
 0xe39   : > { %v3931_v58 = vpop.f32.mrf.mxu2  ;;  %4079 = vmatpush.msrb.mxu0 %v6812_v27  ;;  %v6823_v27 = vld [vmem:[#allocation6 + $0x1d0] sm:$0xff] }
 0xe3a   : > { %v3932_v39 = vadd.f32 %v3931_v58, %v11721_v5  ;;  %v6818_v5 = vld [vmem:[#allocation6 + $0x310] sm:$0xff] }
 0xe3b   : > { %4080 = vmatpush.msrb.mxu0 %v6813_v8  ;;  %v6821_v58 = vld [vmem:[#allocation6 + $0x250] sm:$0xff]  ;;  %v6825_v8 = vld [vmem:[#allocation6 + $0x7c0] sm:$0xff] }
 0xe3c   : > { %v3935_v22 = vmul.f32 %v3932_v39, %v3932_v39 }
 0xe3d   : > { %4081 = vmatpush.msrb.mxu0 %v6814_v17  ;;  %v6827_v17 = vld [vmem:[#allocation6 + $0x780] sm:$0xff] }
 0xe3e   : > { %v3937_v51 = vmul.f32 %v3935_v22, %v3932_v39 }
 0xe3f   : > { %4146 = vmatpush.msra.mxu0 %v6815_v19  ;;  %v6829_v19 = vld [vmem:[#allocation6 + $0x740] sm:$0xff] }
 0xe40   : > { %v3939_v50 = vmul.f32 0.044715, %v3937_v51  ;;  %v6824_v51 = vld [vmem:[#allocation6 + $0x190] sm:$0xff] }
 0xe41   : > { %4147 = vmatpush.msra.mxu0 %v6816_v44  ;;  %v6832_v44 = vld [vmem:[#allocation6 + $0x6c0] sm:$0xff] }
 0xe42   : > { %v3941_v23 = vadd.f32 %v3939_v50, %v3932_v39  ;;  %v6826_v50 = vld [vmem:[#allocation6 + $0x150] sm:$0xff] }
 0xe43   : > { %4148 = vmatpush.msra.mxu0 %v6817_v20  ;;  %v6833_v20 = vld [vmem:[#allocation6 + $0x680] sm:$0xff] }
 0xe44   : > { %v3943_v42 = vmul.f32 0.7978846, %v3941_v23  ;;  %v6828_v23 = vld [vmem:[#allocation6 + $0x110] sm:$0xff] }
 0xe45   : > { %4149 = vmatpush.msra.mxu0 %v6818_v5  ;;  %v6834_v5 = vld [vmem:[#allocation6 + $0x640] sm:$0xff] }
 0xe46   : > { %6505 = vtanh.f32 %v3943_v42  ;;  %v6831_v42 = vld [vmem:[#allocation6 + $0x700] sm:$0xff] }
 0xe47   : > { %4150 = vmatpush.msra.mxu0 %v6819_v7  ;;  %v6835_v7 = vld [vmem:[#allocation6 + $0x600] sm:$0xff] }
 0xe49   : > { %4151 = vmatpush.msra.mxu0 %v6820_v33  ;;  %v6837_v33 = vld [vmem:[#allocation6 + $0x580] sm:$0xff] }
 0xe4b   : > { %4152 = vmatpush.msra.mxu0 %v6821_v58  ;;  %v6839_v58 = vld [vmem:[#allocation6 + $0x500] sm:$0xff] }
 0xe4c   : > { %v6506_v16 = vpop.eup %6505 }
 0xe4d   : > { %v3947_v60 = vadd.f32 1.0, %v6506_v16  ;;  %4153 = vmatpush.msra.mxu0 %v6822_v40  ;;  %v6836_v16 = vld [vmem:[#allocation6 + $0x5c0] sm:$0xff] }
 0xe4e   : > { %v6842_v40 = vld [vmem:[#allocation6 + $0x440] sm:$0xff] }
 0xe4f   : > { %v3949_v3 = vmul.f32 0.5, %v3947_v60  ;;  %4154 = vmatpush.msra.mxu0 %v6823_v27  ;;  %v6838_v60 = vld [vmem:[#allocation6 + $0x540] sm:$0xff]  ;;  %v9643_v27 = vpop.permute.xlu0 %3006 }
 0xe51   : > { %v9629_v22 = vmul.f32 %v3949_v3, %v3932_v39  ;;  %4155 = vmatpush.msra.mxu0 %v6824_v51  ;;  %v6830_v39 = vld [vmem:[#allocation6 + $0xd0] sm:$0xff]  ;;  %v6840_v3 = vld [vmem:[#allocation6 + $0x4c0] sm:$0xff]  ;;  %v9648_v51 = vpop.permute.xlu1 %3002 }
 0xe53   : > { %3987 = vmatpush.msra.mxu3 %v9629_v22  ;;  %4156 = vmatpush.msra.mxu0 %v6826_v50 }
 0xe54   : > { %6184 = vmatmul.msk.f32.vlgmr.msra.gmra.mxu3 %vm2359_vm9, %v11724_v62 }
 0xe55   : > { %4086 = vmatpush.msrb.mxu3 %v6825_v8  ;;  %4157 = vmatpush.msra.mxu0 %v6828_v23  ;;  %v6853_v23 = vld [vmem:[#allocation6 + $0x148] sm:$0xff] }
 0xe57   : > { %4087 = vmatpush.msrb.mxu3 %v6827_v17  ;;  %4158 = vmatpush.msra.mxu0 %v6830_v39  ;;  %v6852_v17 = vld [vmem:[#allocation6 + $0x188] sm:$0xff] }
 0xe58   : > { %v9653_v50 = vpop.permute.xlu0 %3851  ;;  %v6855_v39 = vld [vmem:[#allocation6 + $0xc8] sm:$0xff] }
 0xe59   : > { %4088 = vmatpush.msrb.mxu3 %v6829_v19  ;;  %4159 = vmatpush.msra.mxu0 %v8995_v2  ;;  %v9637_v2 = vpop.permute.xlu2 %3004  ;;  %v6854_v19 = vld [vmem:[#allocation6 + $0x108] sm:$0xff] }
 0xe5b   : > { %4089 = vmatpush.msrb.mxu3 %v6831_v42  ;;  %4160 = vmatpush.msra.mxu0 %v8999_v53  ;;  %v6841_v53 = vld [vmem:[#allocation6 + $0x480] sm:$0xff]  ;;  %v6856_v42 = vld [vmem:[#allocation6 + $0x88] sm:$0xff] }
 0xe5d   : > { %4090 = vmatpush.msrb.mxu3 %v6832_v44  ;;  %4161 = vmatpush.msra.mxu0 %v9003_v4  ;;  %v6857_v44 = vld [vmem:[#allocation6 + $0x48] sm:$0xff] }
 0xe5f   : > { %4091 = vmatpush.msrb.mxu3 %v6833_v20  ;;  %v6858_v20 = vld [vmem:[#allocation6 + $0x8] sm:$0xff] }
 0xe61   : > { %4092 = vmatpush.msrb.mxu3 %v6834_v5  ;;  %v9640_v4 = vpop.permute.xlu2 %3849  ;;  %v6859_v5 = vld [vmem:[#allocation6 + $0x3d8] sm:$0xff] }
 0xe63   : > { %4093 = vmatpush.msrb.mxu3 %v6835_v7  ;;  %v6860_v7 = vld [vmem:[#allocation6 + $0x398] sm:$0xff] }
 0xe65   : > { %4094 = vmatpush.msrb.mxu3 %v6836_v16  ;;  %v6861_v16 = vld [vmem:[#allocation6 + $0x358] sm:$0xff] }
 0xe67   : > { %4095 = vmatpush.msrb.mxu3 %v6837_v33  ;;  %v6862_v33 = vld [vmem:[#allocation6 + $0x318] sm:$0xff] }
 0xe69   : > { %4096 = vmatpush.msrb.mxu3 %v6838_v60  ;;  %v9651_v8 = vpop.permute.xlu2 %3855  ;;  %v6863_v60 = vld [vmem:[#allocation6 + $0x2d8] sm:$0xff] }
 0xe6b   : > { %4097 = vmatpush.msrb.mxu3 %v6839_v58  ;;  %v6864_v58 = vld [vmem:[#allocation6 + $0x298] sm:$0xff] }
 0xe6d   : > { %4098 = vmatpush.msrb.mxu3 %v6840_v3  ;;  %v6865_v3 = vld [vmem:[#allocation6 + $0x258] sm:$0xff] }
 0xe6f   : > { %4099 = vmatpush.msrb.mxu3 %v6841_v53  ;;  %v6866_v53 = vld [vmem:[#allocation6 + $0x218] sm:$0xff] }
 0xe71   : > { %4100 = vmatpush.msrb.mxu3 %v6842_v40 }
 0xe73   : > { %4101 = vmatpush.msrb.mxu3 %v9006_v12  ;;  %v3012_v12 = vsel %vm1123_vm15, %v8922_v43, %v9648_v51 }
 0xe75   : > { %4166 = vmatpush.msra.mxu3 %v9009_v21  ;;  %v3242_v21 = vadd.f32 %v9061_v34, %v3012_v12  ;;  %v6849_v34 = vld [vmem:[#allocation6 + $0x248] sm:$0xff]  ;;  %v6867_v12 = vld [vmem:[#allocation6 + $0x1d8] sm:$0xff] }
 0xe77   : > { %4167 = vmatpush.msra.mxu3 %v9012_v49  ;;  %v3202_v49 = vadd.f32 %v8924_v47, %v8929_v14 }
 0xe79   : > { %4168 = vmatpush.msra.mxu3 %v9015_v48  ;;  %v3222_v48 = vadd.f32 %v8938_v30, %v3202_v49  ;;  %v6868_v49 = vld [vmem:[#allocation6 + $0x198] sm:$0xff] }
 0xe7b   : > { %4169 = vmatpush.msra.mxu3 %v9018_v52  ;;  %v9666_v52 = vpop.permute.xlu2 %3859 }
 0xe7d   : > { %4170 = vmatpush.msra.mxu3 %v9021_v36  ;;  %v3262_v36 = vadd.f32 %v9083_v29, %v3242_v21  ;;  %v6850_v29 = vld [vmem:[#allocation6 + $0x208] sm:$0xff] }
 0xe7f   : > { %4171 = vmatpush.msra.mxu3 %v9024_v37 }
 0xe81   : > { %4172 = vmatpush.msra.mxu3 %v9027_v38 }
 0xe83   : > { %4173 = vmatpush.msra.mxu3 %v9030_v46 }
 0xe85   : > { %4174 = vmatpush.msra.mxu3 %v9033_v18 }
 0xe86   : > { %v3858_v37 = vpop.permute.xlu0 %3857 }
 0xe87   : > { %4175 = vmatpush.msra.mxu3 %v9036_v31  ;;  %v3868_v43 = vsel %vm808_vm0, %v9651_v8, %v3858_v37  ;;  %v3869_v38 = vsel %vm808_vm0, %v3858_v37, %v9666_v52 }
 0xe88   : > { %v9674_v46 = vadd.f32 %v3868_v43, %v3222_v48  ;;  %v9676_v47 = vadd.f32 %v3869_v38, %v3262_v36  ;;  %v6869_v36 = vld [vmem:[#allocation6 + $0x158] sm:$0xff] }
 0xe89   : > { %4176 = vmatpush.msra.mxu3 %v9039_v26  ;;  %v6843_v26 = vld [vmem:[#allocation6 + $0x3c8] sm:$0xff]  ;;  %v6870_v43 = vld [vmem:[#allocation6 + $0x118] sm:$0xff] }
 0xe8a   : > { %v6871_v38 = vld [vmem:[#allocation6 + $0xd8] sm:$0xff] }
 0xe8b   : > { %4177 = vmatpush.msra.mxu3 %v9042_v32  ;;  %v6844_v32 = vld [vmem:[#allocation6 + $0x388] sm:$0xff] }
 0xe8d   : > { %4178 = vmatpush.msra.mxu3 %v9045_v56  ;;  %v6845_v56 = vld [vmem:[#allocation6 + $0x348] sm:$0xff] }
 0xe8f   : > { %4179 = vmatpush.msra.mxu3 %v9048_v57  ;;  %v6846_v57 = vld [vmem:[#allocation6 + $0x308] sm:$0xff] }
 0xe91   : > { %4180 = vmatpush.msra.mxu3 %v9051_v9  ;;  %v6847_v9 = vld [vmem:[#allocation6 + $0x2c8] sm:$0xff] }
 0xe93   : > { %4181 = vmatpush.msra.mxu3 %v9056_v24  ;;  %v6848_v24 = vld [vmem:[#allocation6 + $0x288] sm:$0xff] }
 0xe9b   : > { %v3969_v14 = vpop.f32.mrf.mxu0 }
 0xe9c   : > { %v3992_v30 = vperm.slane %v3969_v14, 0  ;;  %v6872_v14 = vld [vmem:[#allocation6 + $0x7c8] sm:$0xff] }
 0xe9e   : > { %v9685_v18 = vsub.f32 %v9621_v63, %v3992_v30  ;;  %v6851_v63 = vld [vmem:[#allocation6 + $0x1c8] sm:$0xff] }
 0xe9f   : > { %v6873_v30 = vld [vmem:[#allocation6 + $0x788] sm:$0xff] }
 0xea0   : > { %v3996_v31 = vmul.f32 %v9685_v18, %v9685_v18 }
 0xea2   : > { %4013 = vmatpush.msrb.mxu1 %v3996_v31  ;;  %v6875_v31 = vld [vmem:[#allocation6 + $0x708] sm:$0xff] }
 0xea3   : > { %6185 = vmatmul.msk.f32.vlgmr.msrb.gmra.mxu1 %vm2359_vm9, %v11724_v62 }
 0xea4   : > { %4106 = vmatpush.msra.mxu1 %v6843_v26  ;;  %v6876_v26 = vld [vmem:[#allocation6 + $0x6c8] sm:$0xff] }
 0xea6   : > { %4107 = vmatpush.msra.mxu1 %v6844_v32  ;;  %v6877_v32 = vld [vmem:[#allocation6 + $0x688] sm:$0xff] }
 0xea8   : > { %4108 = vmatpush.msra.mxu1 %v6845_v56  ;;  %v6878_v56 = vld [vmem:[#allocation6 + $0x648] sm:$0xff] }
 0xeaa   : > { %4109 = vmatpush.msra.mxu1 %v6846_v57  ;;  %v6879_v57 = vld [vmem:[#allocation6 + $0x608] sm:$0xff] }
 0xeac   : > { %4110 = vmatpush.msra.mxu1 %v6847_v9  ;;  %v6880_v9 = vld [vmem:[#allocation6 + $0x5c8] sm:$0xff] }
 0xeae   : > { %4111 = vmatpush.msra.mxu1 %v6848_v24  ;;  %v6882_v24 = vld [vmem:[#allocation6 + $0x548] sm:$0xff] }
 0xeb0   : > { %4112 = vmatpush.msra.mxu1 %v6849_v34  ;;  %v6884_v34 = vld [vmem:[#allocation6 + $0x4c8] sm:$0xff] }
 0xeb2   : > { %4113 = vmatpush.msra.mxu1 %v6850_v29  ;;  %v6886_v29 = vld [vmem:[#allocation6 + $0x448] sm:$0xff] }
 0xeb4   : > { %4114 = vmatpush.msra.mxu1 %v6851_v63 }
 0xeb6   : > { %4115 = vmatpush.msra.mxu1 %v6852_v17 }
 0xeb8   : > { %4116 = vmatpush.msra.mxu1 %v6853_v23 }
 0xeba   : > { %4117 = vmatpush.msra.mxu1 %v6854_v19 }
 0xebc   : > { %4118 = vmatpush.msra.mxu1 %v6855_v39 }
 0xebe   : > { %4119 = vmatpush.msra.mxu1 %v6856_v42  ;;  %v11948_v42 = vld [vmem:[#allocation31_spill] sm:$0xff] }
 0xec0   : > { %4120 = vmatpush.msra.mxu1 %v6857_v44 }
 0xec2   : > { %4121 = vmatpush.msra.mxu1 %v6858_v20  ;;  %v11949_v20 = vld [vmem:[#allocation42_spill] sm:$0xff] }
 0xec4   : > { %4186 = vmatpush.msrb.mxu1 %v6859_v5  ;;  %v11950_v5 = vld [vmem:[#allocation43_spill] sm:$0xff] }
 0xec6   : > { %4187 = vmatpush.msrb.mxu1 %v6860_v7  ;;  %v11951_v7 = vld [vmem:[#allocation44_spill] sm:$0xff] }
 0xec8   : > { %4188 = vmatpush.msrb.mxu1 %v6861_v16  ;;  %v11952_v16 = vld [vmem:[#allocation45_spill] sm:$0xff] }
 0xeca   : > { %4189 = vmatpush.msrb.mxu1 %v6862_v33  ;;  %v11953_v33 = vld [vmem:[#allocation46_spill] sm:$0xff] }
 0xecc   : > { %4190 = vmatpush.msrb.mxu1 %v6863_v60  ;;  %v11955_v60 = vld [vmem:[#allocation48_spill] sm:$0xff] }
 0xece   : > { %4191 = vmatpush.msrb.mxu1 %v6864_v58  ;;  %v11956_v58 = vld [vmem:[#allocation49_spill] sm:$0xff] }
 0xed0   : > { %4192 = vmatpush.msrb.mxu1 %v6865_v3  ;;  %v11957_v3 = vld [vmem:[#allocation50_spill] sm:$0xff] }
 0xed2   : > { %4193 = vmatpush.msrb.mxu1 %v6866_v53  ;;  %v11958_v53 = vld [vmem:[#allocation51_spill] sm:$0xff] }
 0xed4   : > { %4194 = vmatpush.msrb.mxu1 %v6867_v12  ;;  %v11960_v12 = vld [vmem:[#allocation53_spill] sm:$0xff] }
 0xed6   : > { %4195 = vmatpush.msrb.mxu1 %v6868_v49  ;;  %v11962_v49 = vld [vmem:[#allocation55_spill] sm:$0xff] }
 0xed7   : > { %v3989_v40 = vpop.f32.mrf.mxu3 }
 0xed8   : > { %v3993_v21 = vperm.slane %v3989_v40, 0  ;;  %4196 = vmatpush.msrb.mxu1 %v6869_v36  ;;  %v11959_v40 = vld [vmem:[#allocation52_spill] sm:$0xff] }
 0xed9   : > { %v11963_v36 = vld [vmem:[#allocation56_spill] sm:$0xff] }
 0xeda   : > { %v9692_v48 = vsub.f32 %v9629_v22, %v3993_v21  ;;  %4197 = vmatpush.msrb.mxu1 %v6870_v43  ;;  %v6874_v22 = vld [vmem:[#allocation6 + $0x748] sm:$0xff]  ;;  %v11961_v21 = vld [vmem:[#allocation54_spill] sm:$0xff] }
 0xedb   : > { %v11965_v43 = vld [vmem:[#allocation58_spill] sm:$0xff] }
 0xedc   : > { %v3997_v37 = vmul.f32 %v9692_v48, %v9692_v48  ;;  %4198 = vmatpush.msrb.mxu1 %v6871_v38  ;;  %v11966_v38 = vld [vmem:[#allocation59_spill] sm:$0xff] }
 0xede   : > { %4033 = vmatpush.msrb.mxu2 %v3997_v37  ;;  %4199 = vmatpush.msrb.mxu1 %v9126_v10  ;;  %v6881_v10 = vld [vmem:[#allocation6 + $0x588] sm:$0xff] }
 0xedf   : > { %6186 = vmatmul.msk.f32.vlgmr.msrb.gmra.mxu2 %vm2359_vm9, %v11724_v62  ;;  %v11964_v37 = vld [vmem:[#allocation57_spill] sm:$0xff] }
 0xee0   : > { %4126 = vmatpush.msra.mxu2 %v6872_v14  ;;  %4200 = vmatpush.msrb.mxu1 %v9130_v45  ;;  %v6883_v45 = vld [vmem:[#allocation6 + $0x508] sm:$0xff]  ;;  %v11967_v14 = vld [vmem:[#allocation60_spill] sm:$0xff] }
 0xee2   : > { %4127 = vmatpush.msra.mxu2 %v6873_v30  ;;  %4201 = vmatpush.msrb.mxu1 %v9134_v0  ;;  %v6885_v0 = vld [vmem:[#allocation6 + $0x488] sm:$0xff] }
 0xee3   : > { %v11968_v30 = vld [vmem:[#allocation61_spill] sm:$0xff] }
 0xee4   : > { %4128 = vmatpush.msra.mxu2 %v6874_v22  ;;  %v11969_v22 = vld [vmem:[#allocation62_spill] sm:$0xff] }
 0xee6   : > { %4129 = vmatpush.msra.mxu2 %v6875_v31  ;;  %v11970_v31 = vld [vmem:[#allocation63_spill] sm:$0xff] }
 0xee8   : > { %4130 = vmatpush.msra.mxu2 %v6876_v26  ;;  %v11971_v26 = vld [vmem:[#allocation64_spill] sm:$0xff] }
 0xeea   : > { %4131 = vmatpush.msra.mxu2 %v6877_v32  ;;  %v11972_v32 = vld [vmem:[#allocation65_spill] sm:$0xff] }
 0xeec   : > { %4132 = vmatpush.msra.mxu2 %v6878_v56  ;;  %v11973_v56 = vld [vmem:[#allocation66_spill] sm:$0xff] }
 0xeee   : > { %4133 = vmatpush.msra.mxu2 %v6879_v57  ;;  %v11974_v57 = vld [vmem:[#allocation67_spill] sm:$0xff] }
 0xef0   : > { %4134 = vmatpush.msra.mxu2 %v6880_v9  ;;  %v11975_v9 = vld [vmem:[#allocation68_spill] sm:$0xff] }
 0xef2   : > { %4135 = vmatpush.msra.mxu2 %v6881_v10  ;;  %v11976_v10 = vld [vmem:[#allocation69_spill] sm:$0xff] }
 0xef4   : > { %4136 = vmatpush.msra.mxu2 %v6882_v24  ;;  %v11977_v24 = vld [vmem:[#allocation70_spill] sm:$0xff] }
 0xef6   : > { %4137 = vmatpush.msra.mxu2 %v6883_v45  ;;  %v11978_v45 = vld [vmem:[#allocation71_spill] sm:$0xff] }
 0xef8   : > { %4138 = vmatpush.msra.mxu2 %v6884_v34  ;;  %v11979_v34 = vld [vmem:[#allocation72_spill] sm:$0xff] }
 0xefa   : > { %4139 = vmatpush.msra.mxu2 %v6885_v0  ;;  %v11980_v0 = vld [vmem:[#allocation73_spill] sm:$0xff] }
 0xefc   : > { %4140 = vmatpush.msra.mxu2 %v6886_v29  ;;  %v11981_v29 = vld [vmem:[#allocation74_spill] sm:$0xff] }
 0xefe   : > { %4141 = vmatpush.msra.mxu2 %v9140_v41  ;;  %v11943_v41 = vld [vmem:[#allocation27_spill] sm:$0xff] }
 0xf00   : > { %4206 = vmatpush.msrb.mxu2 %v9143_v59  ;;  %v11944_v59 = vld [vmem:[#allocation40_spill] sm:$0xff] }
 0xf02   : > { %4207 = vmatpush.msrb.mxu2 %v9146_v1  ;;  %v11945_v1 = vld [vmem:[#allocation41_spill] sm:$0xff] }
 0xf04   : > { %4208 = vmatpush.msrb.mxu2 %v9149_v25  ;;  %v11946_v25 = vld [vmem:[#allocation28_spill] sm:$0xff] }
 0xf06   : > { %4209 = vmatpush.msrb.mxu2 %v9152_v35  ;;  %v11947_v35 = vld [vmem:[#allocation29_spill] sm:$0xff] }
 0xf08   : > { %4210 = vmatpush.msrb.mxu2 %v9155_v61 }
 0xf0a   : > { %4211 = vmatpush.msrb.mxu2 %v9158_v13 }
 0xf0c   : > { %4212 = vmatpush.msrb.mxu2 %v9161_v55 }
 0xf0e   : > { %4213 = vmatpush.msrb.mxu2 %v9164_v28 }
 0xf10   : > { %4214 = vmatpush.msrb.mxu2 %v9167_v6 }
 0xf12   : > { %4215 = vmatpush.msrb.mxu2 %v9170_v15 }
 0xf14   : > { %4216 = vmatpush.msrb.mxu2 %v9173_v11 }
 0xf16   : > { %4217 = vmatpush.msrb.mxu2 %v11943_v41  ;;  %v11982_v41 = vld [vmem:[#allocation75_spill] sm:$0xff] }
 0xf18   : > { %4218 = vmatpush.msrb.mxu2 %v11944_v59 }
 0xf1a   : > { %4219 = vmatpush.msrb.mxu2 %v11945_v1 }
 0xf1c   : > { %4220 = vmatpush.msrb.mxu2 %v11946_v25  ;;  %v11983_v25 = vld [vmem:[#allocation76_spill] sm:$0xff] }
 0xf1e   : > { %4221 = vmatpush.msrb.mxu2 %v11947_v35  ;;  %v11984_v35 = vld [vmem:[#allocation77_spill] sm:$0xff] }
 0xf20   : > { %v4015_v61 = vpop.f32.mrf.mxu1 }
 0xf21   : > { %v4016_v13 = vadd.f32 1e-05, %v4015_v61  ;;  %v11985_v61 = vld [vmem:[#allocation78_spill] sm:$0xff] }
 0xf23   : > { %6507 = vrsqrt.f32 %v4016_v13  ;;  %vm4044_vm1 = vweird.f32 %v4016_v13 }
 0xf29   : > { %v6508_v55 = vpop.eup %6507 }
 0xf2a   : > { %v4039_v28 = vmul.f32 %v6508_v55, %v4016_v13  ;;  %vm4045_vm4 = vweird.f32 %v6508_v55  ;;  %v11986_v13 = vld [vmem:[#allocation79_spill] sm:$0xff] }
 0xf2b   : > { %vm4046_vm5 = vmor %vm4044_vm1, %vm4045_vm4  ;;  %vm4730_vm1 = vcmask 785408   ;;  %vm4689_vm4 = vcmask 793600  }
 0xf2c   : > { %v4040_v6 = vmul.f32 %v6508_v55, %v4039_v28  ;;  %v11988_v28 = vld [vmem:[#allocation81_spill] sm:$0xff] }
 0xf2e   : > { %v4041_v63 = vmul.f32 0.5, %v4040_v6  ;;  %v11989_v6 = vld [vmem:[#allocation82_spill] sm:$0xff] }
 0xf30   : > { %v4042_v11 = vsub.f32 1.5, %v4041_v63  ;;  %v11990_v63 = vld [vmem:[#allocation83_spill] sm:$0xff] }
 0xf32   : > { %v4043_v15 = vmul.f32 %v6508_v55, %v4042_v11 }
 0xf34   : > { %v4047_v17 = vsel %vm4046_vm5, %v6508_v55, %v4043_v15  ;;  %v11987_v55 = vld [vmem:[#allocation80_spill] sm:$0xff] }
 0xf35   : > { %v4058_v23 = vperm.slane %v4047_v17, 0  ;;  %v11991_v17 = vld [vmem:[#allocation84_spill] sm:$0xff] }
 0xf37   : > { %v4060_v19 = vmul.f32 %v4058_v23, %v9685_v18  ;;  %v11954_v18 = vld [vmem:[#allocation47_spill] sm:$0xff]  ;;  %v11992_v23 = vld [vmem:[#allocation85_spill] sm:$0xff] }
 0xf39   : > { %v4062_v39 = vmul.f32 %v4060_v19, %v11814_v54 }
 0xf3b   : > { %v9721_v44 = vadd.f32 %v4062_v39, %v11948_v42  ;;  %v11993_v39 = vld [vmem:[#allocation86_spill] sm:$0xff] }
 0xf3d   : > { %4082 = vmatmul.f32.vlgmr.msrb.gmra.mxu0 %v9721_v44  ;;  %4122 = vmatmul.f32.vlgmr.msra.gmra.mxu1 %v9721_v44 }
 0xf3e   : > { %4226 = vmatpush.msrb.mxu0 %v11949_v20  ;;  %4266 = vmatpush.msra.mxu1 %v11950_v5  ;;  %v11994_v20 = vld [vmem:[#allocation87_spill] sm:$0xff] }
 0xf40   : > { %4227 = vmatpush.msrb.mxu0 %v11951_v7  ;;  %4267 = vmatpush.msra.mxu1 %v11952_v16  ;;  %v11995_v7 = vld [vmem:[#allocation90_spill] sm:$0xff]  ;;  %v11996_v16 = vld [vmem:[#allocation91_spill] sm:$0xff] }
 0xf42   : > { %4228 = vmatpush.msrb.mxu0 %v11953_v33  ;;  %4268 = vmatpush.msra.mxu1 %v11954_v18  ;;  %v11997_v18 = vld [vmem:[#allocation94_spill] sm:$0xff] }
 0xf44   : > { %4229 = vmatpush.msrb.mxu0 %v11955_v60  ;;  %4269 = vmatpush.msra.mxu1 %v11956_v58  ;;  %v11998_v60 = vld [vmem:[#allocation95_spill] sm:$0xff] }
 0xf45   : > { %4162 = vmatmul.f32.vlgmr.msra.gmra.mxu0 %v9721_v44  ;;  %4202 = vmatmul.f32.vlgmr.msrb.gmra.mxu1 %v9721_v44 }
 0xf46   : > { %4230 = vmatpush.msrb.mxu0 %v11957_v3  ;;  %4270 = vmatpush.msra.mxu1 %v11958_v53  ;;  %v11999_v3 = vld [vmem:[#allocation98_spill] sm:$0xff]  ;;  %v12000_v53 = vld [vmem:[#allocation99_spill] sm:$0xff] }
 0xf48   : > { %4231 = vmatpush.msrb.mxu0 %v11959_v40  ;;  %4271 = vmatpush.msra.mxu1 %v11960_v12  ;;  %v12001_v12 = vld [vmem:[#allocation102_spill] sm:$0xff] }
 0xf4a   : > { %4232 = vmatpush.msrb.mxu0 %v11961_v21  ;;  %4272 = vmatpush.msra.mxu1 %v11962_v49  ;;  %v12002_v21 = vld [vmem:[#allocation103_spill] sm:$0xff] }
 0xf4c   : > { %4233 = vmatpush.msrb.mxu0 %v11963_v36  ;;  %4273 = vmatpush.msra.mxu1 %v11964_v37  ;;  %v12003_v36 = vld [vmem:[#allocation106_spill] sm:$0xff]  ;;  %v12004_v37 = vld [vmem:[#allocation107_spill] sm:$0xff] }
 0xf4e   : > { %4234 = vmatpush.msrb.mxu0 %v11965_v43  ;;  %4274 = vmatpush.msra.mxu1 %v11966_v38  ;;  %v12005_v38 = vld [vmem:[#allocation110_spill] sm:$0xff] }
 0xf50   : > { %4235 = vmatpush.msrb.mxu0 %v11967_v14  ;;  %4275 = vmatpush.msra.mxu1 %v11968_v30  ;;  %v12006_v14 = vld [vmem:[#allocation111_spill] sm:$0xff] }
 0xf52   : > { %4236 = vmatpush.msrb.mxu0 %v11969_v22  ;;  %4276 = vmatpush.msra.mxu1 %v11970_v31  ;;  %v12007_v22 = vld [vmem:[#allocation114_spill] sm:$0xff]  ;;  %v12008_v31 = vld [vmem:[#allocation115_spill] sm:$0xff] }
 0xf54   : > { %4237 = vmatpush.msrb.mxu0 %v11971_v26  ;;  %4277 = vmatpush.msra.mxu1 %v11972_v32  ;;  %v12009_v32 = vld [vmem:[#allocation117_spill] sm:$0xff] }
 0xf56   : > { %4238 = vmatpush.msrb.mxu0 %v11973_v56  ;;  %4278 = vmatpush.msra.mxu1 %v11974_v57  ;;  %v12010_v56 = vld [vmem:[#allocation14_spill] sm:$0xff]  ;;  %v12012_v57 = vld [vmem:[#allocation125_spill] sm:$0xff] }
 0xf58   : > { %4239 = vmatpush.msrb.mxu0 %v11975_v9  ;;  %4279 = vmatpush.msra.mxu1 %v11976_v10  ;;  %v12014_v9 = vld [vmem:[#allocation89_spill] sm:$0xff] }
 0xf59   : > { %v12016_v10 = vld [vmem:[#allocation93_spill] sm:$0xff] }
 0xf5a   : > { %4240 = vmatpush.msrb.mxu0 %v11977_v24  ;;  %4280 = vmatpush.msra.mxu1 %v11978_v45  ;;  %v12017_v24 = vld [vmem:[#allocation96_spill] sm:$0xff]  ;;  %v12018_v45 = vld [vmem:[#allocation97_spill] sm:$0xff] }
 0xf5c   : > { %4241 = vmatpush.msrb.mxu0 %v11979_v34  ;;  %4281 = vmatpush.msra.mxu1 %v11980_v0  ;;  %v12019_v34 = vld [vmem:[#allocation100_spill] sm:$0xff]  ;;  %v12020_v0 = vld [vmem:[#allocation101_spill] sm:$0xff] }
 0xf5d   : > { %4242 = vmatmul.f32.vlgmr.msrb.gmra.mxu0 %v9721_v44  ;;  %4282 = vmatmul.f32.vlgmr.msra.gmra.mxu1 %v9721_v44 }
 0xf5e   : > { %4306 = vmatpush.msra.mxu0 %v11981_v29  ;;  %4346 = vmatpush.msrb.mxu1 %v11982_v41  ;;  %v12021_v29 = vld [vmem:[#allocation104_spill] sm:$0xff]  ;;  %v12022_v41 = vld [vmem:[#allocation105_spill] sm:$0xff] }
 0xf60   : > { %4307 = vmatpush.msra.mxu0 %v11983_v25  ;;  %4347 = vmatpush.msrb.mxu1 %v11984_v35  ;;  %v12026_v25 = vld [vmem:[#allocation113_spill] sm:$0xff] }
 0xf61   : > { %v12027_v35 = vld [vmem:[#allocation13_spill] sm:$0xff] }
 0xf62   : > { %v4035_v59 = vpop.f32.mrf.mxu2  ;;  %4308 = vmatpush.msra.mxu0 %v11985_v61  ;;  %4348 = vmatpush.msrb.mxu1 %v11986_v13  ;;  %v12028_v61 = vld [vmem:[#allocation116_spill] sm:$0xff] }
 0xf63   : > { %v4036_v1 = vadd.f32 1e-05, %v4035_v59  ;;  %v12024_v59 = vld [vmem:[#allocation109_spill] sm:$0xff]  ;;  %v12029_v13 = vld [vmem:[#allocation120_spill] sm:$0xff] }
 0xf64   : > { %4309 = vmatpush.msra.mxu0 %v11987_v55  ;;  %4349 = vmatpush.msrb.mxu1 %v11988_v28  ;;  %v12030_v55 = vld [vmem:[#allocation121_spill] sm:$0xff]  ;;  %v12031_v28 = vld [vmem:[#allocation128_spill] sm:$0xff] }
 0xf65   : > { %6509 = vrsqrt.f32 %v4036_v1  ;;  %vm4054_vm7 = vweird.f32 %v4036_v1 }
 0xf66   : > { %4310 = vmatpush.msra.mxu0 %v11989_v6  ;;  %4350 = vmatpush.msrb.mxu1 %v11990_v63  ;;  %v12032_v6 = vld [vmem:[#allocation129_spill] sm:$0xff]  ;;  %v12033_v63 = vld [vmem:[#allocation132_spill] sm:$0xff] }
 0xf68   : > { %4311 = vmatpush.msra.mxu0 %v11991_v17  ;;  %4351 = vmatpush.msrb.mxu1 %v11992_v23  ;;  %v12036_v17 = vld [vmem:[#allocation137_spill] sm:$0xff]  ;;  %v12037_v23 = vld [vmem:[#allocation140_spill] sm:$0xff] }
 0xf6a   : > { %4312 = vmatpush.msra.mxu0 %v11993_v39  ;;  %4352 = vmatpush.msrb.mxu1 %v11994_v20  ;;  %v12039_v39 = vld [vmem:[#allocation144_spill] sm:$0xff]  ;;  %v12040_v20 = vld [vmem:[#allocation145_spill] sm:$0xff] }
 0xf6b   : > { %v6510_v11 = vpop.eup %6509 }
 0xf6c   : > { %v4049_v15 = vmul.f32 %v6510_v11, %v4036_v1  ;;  %4313 = vmatpush.msra.mxu0 %v11995_v7  ;;  %4353 = vmatpush.msrb.mxu1 %v11996_v16  ;;  %vm4055_vm6 = vweird.f32 %v6510_v11  ;;  %v12025_v1 = vld [vmem:[#allocation112_spill] sm:$0xff]  ;;  %v12042_v7 = vld [vmem:[#allocation149_spill] sm:$0xff] }
 0xf6d   : > { %vm4056_vm10 = vmor %vm4054_vm7, %vm4055_vm6  ;;  %v12043_v16 = vld [vmem:[#allocation152_spill] sm:$0xff] }
 0xf6e   : > { %v4050_v19 = vmul.f32 %v6510_v11, %v4049_v15  ;;  %4314 = vmatpush.msra.mxu0 %v11997_v18  ;;  %4354 = vmatpush.msrb.mxu1 %v11998_v60  ;;  %v12035_v15 = vld [vmem:[#allocation136_spill] sm:$0xff]  ;;  %v12046_v60 = vld [vmem:[#allocation161_spill] sm:$0xff] }
 0xf6f   : > { %v12045_v18 = vld [vmem:[#allocation156_spill] sm:$0xff] }
 0xf70   : > { %v4051_v5 = vmul.f32 0.5, %v4050_v19  ;;  %4315 = vmatpush.msra.mxu0 %v11999_v3  ;;  %4355 = vmatpush.msrb.mxu1 %v12000_v53  ;;  %v12038_v19 = vld [vmem:[#allocation141_spill] sm:$0xff]  ;;  %v12048_v3 = vld [vmem:[#allocation16_spill] sm:$0xff] }
 0xf71   : > { %v12049_v53 = vld [vmem:[#allocation17_spill] sm:$0xff] }
 0xf72   : > { %v4052_v33 = vsub.f32 1.5, %v4051_v5  ;;  %4316 = vmatpush.msra.mxu0 %v12001_v12  ;;  %4356 = vmatpush.msrb.mxu1 %v12002_v21  ;;  %v12041_v5 = vld [vmem:[#allocation148_spill] sm:$0xff]  ;;  %v12051_v12 = vld [vmem:[#allocation122_spill] sm:$0xff] }
 0xf73   : > { %v12052_v21 = vld [vmem:[#allocation126_spill] sm:$0xff] }
 0xf74   : > { %v4053_v58 = vmul.f32 %v6510_v11, %v4052_v33  ;;  %4317 = vmatpush.msra.mxu0 %v12003_v36  ;;  %4357 = vmatpush.msrb.mxu1 %v12004_v37  ;;  %v12044_v33 = vld [vmem:[#allocation153_spill] sm:$0xff]  ;;  %v12054_v36 = vld [vmem:[#allocation134_spill] sm:$0xff] }
 0xf75   : > { %v12055_v37 = vld [vmem:[#allocation138_spill] sm:$0xff] }
 0xf76   : > { %v4057_v40 = vsel %vm4056_vm10, %v6510_v11, %v4053_v58  ;;  %4318 = vmatpush.msra.mxu0 %v12005_v38  ;;  %4358 = vmatpush.msrb.mxu1 %v12006_v14  ;;  %v12034_v11 = vld [vmem:[#allocation133_spill] sm:$0xff]  ;;  %v12047_v58 = vld [vmem:[#allocation15_spill] sm:$0xff]  ;;  %v12057_v38 = vld [vmem:[#allocation146_spill] sm:$0xff]  ;;  %vm4550_vm10 = vcmask 252928  }
 0xf77   : > { %v4059_v49 = vperm.slane %v4057_v40, 0  ;;  %v12050_v40 = vld [vmem:[#allocation118_spill] sm:$0xff] }
 0xf78   : > { %4319 = vmatpush.msra.mxu0 %v12007_v22  ;;  %4359 = vmatpush.msrb.mxu1 %v12008_v31  ;;  %v12058_v14 = vld [vmem:[#allocation150_spill] sm:$0xff]  ;;  %v12060_v22 = vld [vmem:[#allocation157_spill] sm:$0xff]  ;;  %v12061_v31 = vld [vmem:[#allocation159_spill] sm:$0xff] }
 0xf79   : > { %v4061_v43 = vmul.f32 %v4059_v49, %v9692_v48  ;;  %v12011_v48 = vld [vmem:[#allocation124_spill] sm:$0xff]  ;;  %v12053_v49 = vld [vmem:[#allocation130_spill] sm:$0xff] }
 0xf7a   : > { %4320 = vmatpush.msra.mxu0 %v12009_v32  ;;  %4360 = vmatpush.msrb.mxu1 %v12010_v56  ;;  %v12062_v32 = vld [vmem:[#allocation162_spill] sm:$0xff]  ;;  %v12063_v56 = vld [vmem:[#allocation164_spill] sm:$0xff] }
 0xf7b   : > { %v4063_v30 = vmul.f32 %v4061_v43, %v11814_v54  ;;  %v12013_v54 = vld [vmem:[#allocation88_spill] sm:$0xff]  ;;  %v12056_v43 = vld [vmem:[#allocation142_spill] sm:$0xff] }
 0xf7c   : > { %4321 = vmatpush.msra.mxu0 %v12011_v48  ;;  %4361 = vmatpush.msrb.mxu1 %v12012_v57  ;;  %v12064_v48 = vld [vmem:[#allocation168_spill] sm:$0xff] }
 0xf7d   : > { %v9792_v26 = vadd.f32 %v4063_v30, %v11948_v42  ;;  %4322 = vmatmul.f32.vlgmr.msra.gmra.mxu0 %v9721_v44  ;;  %4362 = vmatmul.f32.vlgmr.msrb.gmra.mxu1 %v9721_v44  ;;  %v12015_v42 = vld [vmem:[#allocation92_spill] sm:$0xff]  ;;  %v12059_v30 = vld [vmem:[#allocation154_spill] sm:$0xff] }
 0xf7e   : > { %v12023_v44 = vld [vmem:[#allocation108_spill] sm:$0xff] }
 0xf7f   : > { %4102 = vmatmul.f32.vlgmr.msrb.gmra.mxu3 %v9792_v26  ;;  %4142 = vmatmul.f32.vlgmr.msra.gmra.mxu2 %v9792_v26  ;;  %v12065_v57 = vld [vmem:[#allocation172_spill] sm:$0xff] }
 0xf80   : > { %4246 = vmatpush.msrb.mxu3 %v12013_v54  ;;  %4286 = vmatpush.msra.mxu2 %v12014_v9  ;;  %v12066_v54 = vld [vmem:[#allocation176_spill] sm:$0xff]  ;;  %v12067_v9 = vld [vmem:[#allocation165_spill] sm:$0xff] }
 0xf82   : > { %4247 = vmatpush.msrb.mxu3 %v12015_v42  ;;  %4287 = vmatpush.msra.mxu2 %v12016_v10  ;;  %v12068_v42 = vld [vmem:[#allocation180_spill] sm:$0xff]  ;;  %v12069_v10 = vld [vmem:[#allocation169_spill] sm:$0xff] }
 0xf84   : > { %4248 = vmatpush.msrb.mxu3 %v12017_v24  ;;  %4288 = vmatpush.msra.mxu2 %v12018_v45  ;;  %v12070_v24 = vld [vmem:[#allocation173_spill] sm:$0xff]  ;;  %v12071_v45 = vld [vmem:[#allocation187_spill] sm:$0xff] }
 0xf86   : > { %4249 = vmatpush.msrb.mxu3 %v12019_v34  ;;  %4289 = vmatpush.msra.mxu2 %v12020_v0  ;;  %v12072_v34 = vld [vmem:[#allocation178_spill] sm:$0xff]  ;;  %v12073_v0 = vld [vmem:[#allocation191_spill] sm:$0xff] }
 0xf87   : > { %4182 = vmatmul.f32.vlgmr.msra.gmra.mxu3 %v9792_v26  ;;  %4222 = vmatmul.f32.vlgmr.msrb.gmra.mxu2 %v9792_v26 }
 0xf88   : > { %4250 = vmatpush.msrb.mxu3 %v12021_v29  ;;  %4290 = vmatpush.msra.mxu2 %v12022_v41  ;;  %v12074_v29 = vld [vmem:[#allocation182_spill] sm:$0xff]  ;;  %v12075_v41 = vld [vmem:[#allocation185_spill] sm:$0xff] }
 0xf8a   : > { %4251 = vmatpush.msrb.mxu3 %v12023_v44  ;;  %4291 = vmatpush.msra.mxu2 %v12024_v59  ;;  %v12076_v44 = vld [vmem:[#allocation198_spill] sm:$0xff] }
 0xf8c   : > { %4252 = vmatpush.msrb.mxu3 %v12025_v1  ;;  %4292 = vmatpush.msra.mxu2 %v12026_v25 }
 0xf8e   : > { %4253 = vmatpush.msrb.mxu3 %v12027_v35  ;;  %4293 = vmatpush.msra.mxu2 %v12028_v61 }
 0xf90   : > { %4254 = vmatpush.msrb.mxu3 %v12029_v13  ;;  %4294 = vmatpush.msra.mxu2 %v12030_v55 }
 0xf92   : > { %4255 = vmatpush.msrb.mxu3 %v12031_v28  ;;  %4295 = vmatpush.msra.mxu2 %v12032_v6 }
 0xf94   : > { %4256 = vmatpush.msrb.mxu3 %v12033_v63  ;;  %4296 = vmatpush.msra.mxu2 %v12034_v11 }
 0xf96   : > { %4257 = vmatpush.msrb.mxu3 %v12035_v15  ;;  %4297 = vmatpush.msra.mxu2 %v12036_v17 }
 0xf98   : > { %4258 = vmatpush.msrb.mxu3 %v12037_v23  ;;  %4298 = vmatpush.msra.mxu2 %v12038_v19 }
 0xf9a   : > { %4259 = vmatpush.msrb.mxu3 %v12039_v39  ;;  %4299 = vmatpush.msra.mxu2 %v12040_v20 }
 0xf9c   : > { %4260 = vmatpush.msrb.mxu3 %v12041_v5  ;;  %4300 = vmatpush.msra.mxu2 %v12042_v7 }
 0xf9e   : > { %4261 = vmatpush.msrb.mxu3 %v12043_v16  ;;  %4301 = vmatpush.msra.mxu2 %v12044_v33  ;;  %v3854_v33 = vpop.permute.xlu1 %3853 }
 0xf9f   : > { %4262 = vmatmul.f32.vlgmr.msrb.gmra.mxu3 %v9792_v26  ;;  %4302 = vmatmul.f32.vlgmr.msra.gmra.mxu2 %v9792_v26 }
 0xfa0   : > { %4326 = vmatpush.msra.mxu3 %v12045_v18  ;;  %4366 = vmatpush.msrb.mxu2 %v12046_v60  ;;  %v12077_v18 = vld [vmem:[#allocation18_spill] sm:$0xff]  ;;  %v12078_v60 = vld [vmem:[#allocation20_spill] sm:$0xff] }
 0xfa2   : > { %4327 = vmatpush.msra.mxu3 %v12047_v58  ;;  %4367 = vmatpush.msrb.mxu2 %v12048_v3  ;;  %v3008_v58 = vsel %vm1123_vm15, %v12078_v60, %v12077_v18  ;;  %v3023_v3 = vsel %vm1123_vm15, 0.0, %v12078_v60  ;;  %v3013_v60 = vsel %vm1123_vm15, %v9648_v51, %v9637_v2  ;;  %v12092_v51 = vld [vmem:[#allocation36_spill] sm:$0xff] }
 0xfa4   : > { %4328 = vmatpush.msra.mxu3 %v12049_v53  ;;  %4368 = vmatpush.msrb.mxu2 %v12050_v40  ;;  %v12079_v40 = vld [vmem:[#allocation33_spill] sm:$0xff] }
 0xfa6   : > { %4329 = vmatpush.msra.mxu3 %v12051_v12  ;;  %4369 = vmatpush.msrb.mxu2 %v12052_v21  ;;  %v9884_v53 = vpop.permute.xlu1 %3863  ;;  %v3042_v12 = vadd.f32 %v12079_v40, %v3023_v3  ;;  %v12080_v21 = vld [vmem:[#allocation37_spill] sm:$0xff]  ;;  %v12091_v3 = vld [vmem:[#allocation35_spill] sm:$0xff] }
 0xfa7   : > { %v3282_v40 = vadd.f32 %v12091_v3, %v3013_v60 }
 0xfa8   : > { %4330 = vmatpush.msra.mxu3 %v12053_v49  ;;  %4370 = vmatpush.msrb.mxu2 %v12054_v36  ;;  %v3082_v49 = vadd.f32 %v12080_v21, %v3008_v58  ;;  %v3880_v36 = vsel %vm808_vm0, 0.0, %v9640_v4 }
 0xfaa   : > { %4331 = vmatpush.msra.mxu3 %v12055_v37  ;;  %4371 = vmatpush.msrb.mxu2 %v12056_v43  ;;  %v3865_v37 = vsel %vm808_vm0, %v9640_v4, %v9653_v50  ;;  %v12081_v43 = vld [vmem:[#allocation22_spill] sm:$0xff]  ;;  %v9905_v4 = vpop.permute.xlu0 %3861 }
 0xfab   : > { %v3870_v21 = vsel %vm808_vm0, %v9666_v52, %v9905_v4 }
 0xfac   : > { %4332 = vmatpush.msra.mxu3 %v12057_v38  ;;  %4372 = vmatpush.msrb.mxu2 %v12058_v14  ;;  %v3062_v38 = vadd.f32 %v12081_v43, %v3042_v12  ;;  %v12082_v14 = vld [vmem:[#allocation38_spill] sm:$0xff] }
 0xfae   : > { %4333 = vmatpush.msra.mxu3 %v12059_v30  ;;  %4373 = vmatpush.msrb.mxu2 %v12060_v22  ;;  %v3102_v30 = vadd.f32 %v12082_v14, %v3082_v49  ;;  %v3881_v22 = vadd.f32 %v3880_v36, %v3062_v38  ;;  %v3302_v49 = vadd.f32 %v12092_v51, %v3282_v40 }
 0xfb0   : > { %4334 = vmatpush.msra.mxu3 %v12061_v31  ;;  %4374 = vmatpush.msrb.mxu2 %v12062_v32  ;;  %v3882_v31 = vadd.f32 %v3865_v37, %v3102_v30  ;;  %v3887_v43 = vadd.f32 %v3870_v21, %v3302_v49 }
 0xfb2   : > { %4335 = vmatpush.msra.mxu3 %v12063_v56  ;;  %4375 = vmatpush.msrb.mxu2 %v12064_v48 }
 0xfb4   : > { %4336 = vmatpush.msra.mxu3 %v12065_v57  ;;  %4376 = vmatpush.msrb.mxu2 %v12066_v54 }
 0xfb6   : > { %4337 = vmatpush.msra.mxu3 %v12067_v9  ;;  %4377 = vmatpush.msrb.mxu2 %v12068_v42  ;;  %v12084_v42 = vld [vmem:[#allocation34_spill] sm:$0xff] }
 0xfb8   : > { %4338 = vmatpush.msra.mxu3 %v12069_v10  ;;  %4378 = vmatpush.msrb.mxu2 %v12070_v24  ;;  %v12085_v10 = vld [vmem:[#allocation32_spill] sm:$0xff] }
 0xfb9   : > { %v3010_v24 = vsel %vm1123_vm15, %v12085_v10, %v12084_v42  ;;  %v4435_v42 = vld [vmem:[#allocation7] sm:$0xff] }
 0xfba   : > { %4339 = vmatpush.msra.mxu3 %v12071_v45  ;;  %4379 = vmatpush.msrb.mxu2 %v12072_v34  ;;  %v4083_v59 = vpop.f32.mrf.mxu0  ;;  %v4123_v1 = vpop.f32.mrf.mxu1  ;;  %v12086_v45 = vld [vmem:[#allocation24_spill] sm:$0xff]  ;;  %vm4567_vm12 = vcmp.le.s32.totalorder %v4435_v42, 30  ;;  %vm4476_vm3 = vcmp.ge.s32.totalorder %v4435_v42, 1 }
 0xfbb   : > { %v3162_v34 = vadd.f32 %v12086_v45, %v3010_v24  ;;  %v12093_v45 = vmov 0  }
 0xfbc   : > { %4340 = vmatpush.msra.mxu3 %v12073_v0  ;;  %4380 = vmatpush.msrb.mxu2 %v12074_v29 }
 0xfbe   : > { %4341 = vmatpush.msra.mxu3 %v12075_v41  ;;  %4381 = vmatpush.msrb.mxu2 %v12076_v44  ;;  %v3867_v41 = vsel %vm808_vm0, %v3854_v33, %v9651_v8  ;;  %v12087_v44 = vld [vmem:[#allocation39_spill] sm:$0xff]  ;;  %v3866_v8 = vsel %vm808_vm0, %v9653_v50, %v3854_v33 }
 0xfbf   : > { %4342 = vmatmul.f32.vlgmr.msra.gmra.mxu3 %v9792_v26  ;;  %4382 = vmatmul.f32.vlgmr.msrb.gmra.mxu2 %v9792_v26 }
 0xfc2   : > { %v4163_v55 = vpop.f32.mrf.mxu0  ;;  %v4203_v28 = vpop.f32.mrf.mxu1 }
 0xfda   : > { %v4243_v26 = vpop.f32.mrf.mxu0  ;;  %v4283_v39 = vpop.f32.mrf.mxu1 }
 0xffa   : > { %v4323_v5 = vpop.f32.mrf.mxu0 }
0x1002   : > { %v4103_v25 = vpop.f32.mrf.mxu3  ;;  %v4143_v35 = vpop.f32.mrf.mxu2 }
0x1003   : > { %v4104_v61 = vadd.f32 %v4103_v25, %v4083_v59  ;;  %v4144_v13 = vadd.f32 %v4143_v35, %v4123_v1  ;;  %v3182_v59 = vadd.f32 %v12087_v44, %v3162_v34  ;;  %v10064_v34 = vsel %vm4567_vm12, 1, %v12093_v45 }
0x1005   : > { %4394 = vrot.lane.b32.xlu1 %v4104_v61, %s7047_s3  ;;  %4396 = vrot.lane.b32.xlu2 %v4144_v13, %s7047_s3  ;;  %v3884_v25 = vadd.f32 %v3867_v41, %v3182_v59  ;;  %v12088_v61 = vld [vmem:[#allocation19_spill] sm:$0xff]  ;;  %v12089_v13 = vld [vmem:[#allocation21_spill] sm:$0xff]  ;;  %v4571_v41 = vperm.slane %v10064_v34, 2 }
0x1007   : > { %vm10074_vm2 = vcmp.eq.s32.totalorder %v4571_v41, 1 }
0x100a   : > { %v4183_v6 = vpop.f32.mrf.mxu3  ;;  %v4223_v63 = vpop.f32.mrf.mxu2 }
0x100b   : > { %v4184_v11 = vadd.f32 %v4183_v6, %v4163_v55  ;;  %v4224_v15 = vadd.f32 %v4223_v63, %v4203_v28  ;;  %v3122_v55 = vadd.f32 %v12089_v13, %v12088_v61  ;;  %v12090_v28 = vld [vmem:[#allocation23_spill] sm:$0xff] }
0x100d   : > { %4398 = vrot.lane.b32.xlu0 %v4184_v11, %s7047_s3  ;;  %4400 = vrot.lane.b32.xlu1 %v4224_v15, %s7047_s3  ;;  %v3142_v6 = vadd.f32 %v12090_v28, %v3122_v55 }
0x100f   : > { %v3883_v11 = vadd.f32 %v3866_v8, %v3142_v6  ;;  %v10094_v6 = vsel %vm4476_vm3, 1, %v12093_v45 }
0x1022   : > { %v4263_v17 = vpop.f32.mrf.mxu3  ;;  %v4303_v19 = vpop.f32.mrf.mxu2 }
0x1023   : > { %v4264_v23 = vadd.f32 %v4263_v17, %v4243_v26  ;;  %v4304_v20 = vadd.f32 %v4303_v19, %v4283_v39 }
0x1025   : > { %4402 = vrot.lane.b32.xlu2 %v4264_v23, %s7047_s3 }
0x102d   : > { %4404 = vrot.lane.b32.xlu2 %v4304_v20, %s7047_s3 }
0x1042   : > { %v4343_v7 = vpop.f32.mrf.mxu3 }
0x1043   : > { %v4344_v16 = vadd.f32 %v4343_v7, %v4323_v5  ;;  %v4383_v5 = vpop.f32.mrf.mxu2  ;;  %v4363_v7 = vpop.f32.mrf.mxu1 }
0x1045   : > { %4406 = vrot.lane.b32.xlu0 %v4344_v16, %s7047_s3  ;;  %v4384_v16 = vadd.f32 %v4383_v5, %v4363_v7  ;;  %v4569_v5 = vperm.slane %v10064_v34, 0 }
0x1047   : > { %vm10118_vm7 = vcmp.eq.s32.totalorder %v4569_v5, 1 }
0x105f   : > { %v4397_v32 = vpop.permute.xlu2 %4396 }
0x1077   : > { %v4395_v56 = vpop.permute.xlu1 %4394 }
0x1078   : > { %v4411_v48 = vsel %vm4410_vm11, %v4395_v56, %v4397_v32  ;;  %v4426_v57 = vsel %vm4410_vm11, 0.0, %v4395_v56 }
0x1079   : > { %v9897_v54 = vadd.f32 %v4426_v57, %v3881_v22  ;;  %v9899_v9 = vadd.f32 %v4411_v48, %v3882_v31 }
0x107b   : > { %4635 = vrot.lane.b32.xlu1 %v9899_v9, %s12083_s7  ;;  %4749 = vrot.lane.b32.xlu0 %v9899_v9, %s7048_s30 }
0x107c   : > { %4593 = vrot.lane.b32.xlu2 %v9897_v54, %s7037_s21 }
0x107f   : > { %v4399_v0 = vpop.permute.xlu0 %4398  ;;  %v4401_v29 = vpop.permute.xlu1 %4400 }
0x1080   : > { %v4413_v1 = vsel %vm4410_vm11, %v4399_v0, %v4401_v29  ;;  %v4412_v63 = vsel %vm4410_vm11, %v4397_v32, %v4399_v0  ;;  %v4403_v26 = vpop.permute.xlu2 %4402 }
0x1081   : > { %v9923_v35 = vadd.f32 %v4413_v1, %v3884_v25  ;;  %v9943_v15 = vadd.f32 %v4412_v63, %v3883_v11  ;;  %v4414_v17 = vsel %vm4410_vm11, %v4401_v29, %v4403_v26  ;;  %v4570_v29 = vperm.slane %v10064_v34, 1 }
0x1082   : > { %v9971_v23 = vadd.f32 %v4414_v17, %v9674_v46 }
0x1083   : > { %4536 = vrot.lane.b32.xlu1 %v9899_v9, %s7049_s24  ;;  %4675 = vrot.lane.b32.xlu0 %v9899_v9, %s7050_s26  ;;  %v6413_v50 = vpack.i.bf16 %v9943_v15, %v9899_v9  ;;  %vm10070_vm14 = vcmp.eq.s32.totalorder %v4570_v29, 1 }
0x1084   : > { %4446 = vrot.lane.b32.xlu2 %v9899_v9, %s7047_s3  ;;  %v6423_v19 = vpack.i.bf16 %v9971_v23, %v9923_v35 }
0x1088   : > { %v4405_v39 = vpop.permute.xlu2 %4404 }
0x1089   : > { %v4415_v20 = vsel %vm4410_vm11, %v4403_v26, %v4405_v39 }
0x108a   : > { %v9988_v46 = vadd.f32 %v4415_v20, %v9676_v47 }
0x108b   : > { %4595 = vrot.lane.b32.xlu0 %v9899_v9, %s7037_s21  ;;  %4502 = vrot.lane.b32.xlu1 %v9897_v54, %s7046_s0 }
0x108c   : > { %4753 = vrot.lane.b32.xlu2 %v9923_v35, %s7048_s30  ;;  %v6428_v33 = vpack.i.bf16 %v9988_v46, %v9897_v54  ;;  %v6433_v58 = vpack.i.bf16 %v9988_v46, %v9971_v23 }
0x1093   : > { %4444 = vrot.lane.b32.xlu1 %v9897_v54, %s7047_s3  ;;  %4534 = vrot.lane.b32.xlu0 %v9897_v54, %s7049_s24 }
0x1094   : > { %4679 = vrot.lane.b32.xlu2 %v9923_v35, %s7050_s26 }
0x109b   : > { %4751 = vrot.lane.b32.xlu1 %v9943_v15, %s7048_s30  ;;  %4639 = vrot.lane.b32.xlu0 %v9923_v35, %s12083_s7 }
0x109c   : > { %4637 = vrot.lane.b32.xlu2 %v9943_v15, %s12083_s7 }
0x10a3   : > { %6414 = vrot.lane.b32.xlu1 %v6413_v50, %s7051_s10  ;;  %4540 = vrot.lane.b32.xlu0 %v9923_v35, %s7049_s24 }
0x10a4   : > { %4599 = vrot.lane.b32.xlu2 %v9923_v35, %s7037_s21 }
0x10ab   : > { %4677 = vrot.lane.b32.xlu1 %v9943_v15, %s7050_s26  ;;  %4508 = vrot.lane.b32.xlu0 %v9923_v35, %s7046_s0 }
0x10ac   : > { %4538 = vrot.lane.b32.xlu2 %v9943_v15, %s7049_s24 }
0x10b3   : > { %4597 = vrot.lane.b32.xlu1 %v9943_v15, %s7037_s21  ;;  %4448 = vrot.lane.b32.xlu0 %v9943_v15, %s7047_s3 }
0x10b4   : > { %6419 = vrot.lane.b32.xlu2 %v6413_v50, %s7046_s0 }
0x10b7   : > { %v10018_v12 = vpop.permute.xlu0 %4406 }
0x10b8   : > { %v4416_v36 = vsel %vm4410_vm11, %v4405_v39, %v10018_v12  ;;  %v4480_v39 = vperm.slane %v10094_v6, 2 }
0x10b9   : > { %v10033_v38 = vadd.f32 %v4416_v36, %v3887_v43 }
0x10ba   : > { %vm10112_vm6 = vcmp.eq.s32.totalorder %v4480_v39, 1 }
0x10bb   : > { %4450 = vrot.lane.b32.xlu1 %v9923_v35, %s7047_s3  ;;  %4755 = vrot.lane.b32.xlu0 %v9971_v23, %s7048_s30 }
0x10bc   : > { %6424 = vrot.lane.b32.xlu2 %v6423_v19, %s7051_s10  ;;  %v4479_v19 = vperm.slane %v10094_v6, 1 }
0x10be   : > { %vm10108_vm5 = vcmp.eq.s32.totalorder %v4479_v19, 1 }
0x10c3   : > { %4641 = vrot.lane.b32.xlu1 %v9971_v23, %s12083_s7  ;;  %4681 = vrot.lane.b32.xlu0 %v9971_v23, %s7050_s26 }
0x10c4   : > { %4747 = vrot.lane.b32.xlu2 %v9897_v54, %s7048_s30 }
0x10cb   : > { %4408 = vrot.lane.b32.xlu1 %v4384_v16, %s7047_s3  ;;  %6429 = vrot.lane.b32.xlu0 %v6428_v33, %s7051_s10  ;;  %v12109_v16 = vld [vmem:[#allocation26_spill] sm:$0xff] }
0x10cc   : > { %4633 = vrot.lane.b32.xlu2 %v9897_v54, %s12083_s7 }
0x10d3   : > { %4673 = vrot.lane.b32.xlu1 %v9897_v54, %s7050_s26  ;;  %4757 = vrot.lane.b32.xlu0 %v9988_v46, %s7048_s30 }
0x10d4   : > { %4683 = vrot.lane.b32.xlu2 %v9988_v46, %s7050_s26 }
0x10d6   : > { %v10002_v47 = vpop.permute.xlu2 %4593 }
0x10db   : > { %4544 = vrot.lane.b32.xlu1 %v9988_v46, %s7049_s24  ;;  %4603 = vrot.lane.b32.xlu0 %v9988_v46, %s7037_s21 }
0x10dc   : > { %4643 = vrot.lane.b32.xlu2 %v9988_v46, %s12083_s7 }
0x10de   : > { %v10010_v18 = vpop.permute.xlu2 %4446 }
0x10e3   : > { %6434 = vrot.lane.b32.xlu1 %v6433_v58, %s7046_s0  ;;  %4542 = vrot.lane.b32.xlu0 %v9971_v23, %s7049_s24  ;;  %v4482_v58 = vperm.slane %v10094_v6, 4 }
0x10e4   : > { %4601 = vrot.lane.b32.xlu2 %v9971_v23, %s7037_s21 }
0x10e6   : > { %v10031_v37 = vpop.permute.xlu2 %4753 }
0x10eb   : > { %4759 = vrot.lane.b32.xlu1 %v10033_v38, %s7048_s30  ;;  %4452 = vrot.lane.b32.xlu0 %v9971_v23, %s7047_s3 }
0x10ed   : > { %v10039_v52 = vpop.permute.xlu1 %4635  ;;  %v4750_v14 = vpop.permute.xlu0 %4749 }
0x10ee   : > { %v10041_v30 = vpop.permute.xlu2 %4679 }
0x10f3   : > { %4726 = vrot.lane.b32.xlu0 %v10033_v38, %s7051_s10 }
0x10f5   : > { %v10045_v22 = vpop.permute.xlu1 %4536  ;;  %v10047_v31 = vpop.permute.xlu0 %4675 }
0x10f6   : > { %v4638_v32 = vpop.permute.xlu2 %4637 }
0x10f7   : > { %v4650_v49 = vsel %vm1663_vm8, %v10039_v52, %v4638_v32 }
0x10fb   : > { %4685 = vrot.lane.b32.xlu0 %v10033_v38, %s7050_s26 }
0x10fd   : > { %v10051_v56 = vpop.permute.xlu0 %4595  ;;  %v10053_v48 = vpop.permute.xlu1 %4502 }
0x10fe   : > { %v10055_v57 = vpop.permute.xlu2 %4599  ;;  %v4609_v43 = vsel %vm1123_vm15, %v10002_v47, %v10051_v56 }
0x1103   : > { %4645 = vrot.lane.b32.xlu0 %v10033_v38, %s12083_s7 }
0x1105   : > { %v10059_v10 = vpop.permute.xlu1 %4444  ;;  %v10061_v24 = vpop.permute.xlu0 %4534 }
0x1106   : > { %v10066_v0 = vpop.permute.xlu2 %4538  ;;  %v4551_v45 = vsel %vm4550_vm10, %v10061_v24, %v10045_v22 }
0x1107   : > { %v4552_v29 = vsel %vm4550_vm10, %v10045_v22, %v10066_v0 }
0x110d   : > { %v4752_v1 = vpop.permute.xlu1 %4751  ;;  %v10078_v25 = vpop.permute.xlu0 %4639 }
0x110e   : > { %v4765_v61 = vsel %vm4763_vm13, %v4750_v14, %v4752_v1  ;;  %v4766_v13 = vsel %vm4763_vm13, %v4752_v1, %v10031_v37  ;;  %v10083_v55 = vpop.permute.xlu2 %6419  ;;  %v4651_v36 = vsel %vm1663_vm8, %v4638_v32, %v10078_v25  ;;  %v4572_v1 = vperm.slane %v10064_v34, 3 }
0x110f   : > { %6196 = vmatpush.msk.msrb.mxu3 %vm10070_vm14, %v4765_v61  ;;  %6203 = vmatpush.msk.msra.mxu1 %vm10074_vm2, %v4766_v13 }
0x1110   : > { %vm10179_vm12 = vcmp.eq.s32.totalorder %v4572_v1, 1  ;;  %v4475_v1 = vsel %vm4410_vm11, 0.0, %v10059_v10 }
0x1115   : > { %v10089_v8 = vpop.permute.xlu1 %6414  ;;  %v10091_v28 = vpop.permute.xlu0 %4540 }
0x1116   : > { %v6417_v63 = vunpack.i.h.bf16 %v10089_v8  ;;  %v6416_v11 = vunpack.i.l.bf16 %v10089_v8  ;;  %v10098_v50 = vpop.permute.xlu2 %6424  ;;  %v4575_v8 = vperm.slane %v10064_v34, 6 }
0x1117   : > { %v6426_v26 = vunpack.i.l.bf16 %v10098_v50  ;;  %v6427_v22 = vunpack.i.h.bf16 %v10098_v50 }
0x1118   : > { %v4732_v17 = vsel %vm4730_vm1, %v6416_v11, %v6417_v63 }
0x1119   : > { %4827 = vmatpush.msrb.mxu3 %v4732_v17  ;;  %v4733_v20 = vsel %vm4730_vm1, %v6417_v63, %v6426_v26  ;;  %v4481_v17 = vperm.slane %v10094_v6, 3 }
0x111a   : > { %4847 = vmatpush.msra.mxu1 %v4733_v20 }
0x111d   : > { %v4678_v33 = vpop.permute.xlu1 %4677  ;;  %v10116_v60 = vpop.permute.xlu0 %4508 }
0x111e   : > { %v4691_v3 = vsel %vm4689_vm4, %v10047_v31, %v4678_v33  ;;  %v4692_v40 = vsel %vm4689_vm4, %v4678_v33, %v10041_v30  ;;  %v4748_v21 = vpop.permute.xlu2 %4747 }
0x111f   : > { %v4764_v51 = vsel %vm4763_vm13, %v4748_v21, %v4750_v14  ;;  %6197 = vmatpush.msk.msrb.mxu3 %vm10108_vm5, %v4691_v3  ;;  %6204 = vmatpush.msk.msra.mxu1 %vm10112_vm6, %v4692_v40  ;;  %v6421_v14 = vunpack.i.l.bf16 %v10083_v55 }
0x1120   : > { %6187 = vmatpush.msk.msrb.mxu0 %vm10118_vm7, %v4764_v51 }
0x1121   : > { %6198 = vmatpush.msk.msrb.mxu3 %vm10070_vm14, %v4650_v49  ;;  %6205 = vmatpush.msk.msra.mxu1 %vm10074_vm2, %v4651_v36  ;;  %v4518_v41 = vsel %vm808_vm0, %v10053_v48, %v6421_v14  ;;  %v4553_v49 = vsel %vm4550_vm10, %v10066_v0, %v10091_v28 }
0x1123   : > { %4830 = vmatpush.msrb.mxu3 %v9899_v9  ;;  %4850 = vmatpush.msra.mxu1 %v9943_v15  ;;  %v6422_v9 = vunpack.i.h.bf16 %v10083_v55 }
0x1125   : > { %v4598_v32 = vpop.permute.xlu1 %4597  ;;  %v10147_v42 = vpop.permute.xlu0 %4448  ;;  %6199 = vmatpush.msk.msrb.mxu3 %vm10108_vm5, %v4609_v43  ;;  %v4519_v44 = vsel %vm808_vm0, %v6421_v14, %v6422_v9  ;;  %v4478_v43 = vperm.slane %v10094_v6, 0 }
0x1126   : > { %v4610_v15 = vsel %vm1123_vm15, %v10051_v56, %v4598_v32  ;;  %v4460_v56 = vsel %vm4410_vm11, %v10059_v10, %v10010_v18  ;;  %v4461_v61 = vsel %vm4410_vm11, %v10010_v18, %v10147_v42  ;;  %v4734_v18 = vsel %vm4730_vm1, %v6426_v26, %v6427_v22  ;;  %v10217_v26 = vld [vmem:[%s10982_s16] sm:$0xff]  ;;  %v4634_v3 = vpop.permute.xlu2 %4633  ;;  %v5509_v10 = vld [vmem:[%s10988_s22 + $0x10] sm:$0xff] }
0x1127   : > { %6200 = vmatpush.msk.msrb.mxu3 %vm10070_vm14, %v4551_v45  ;;  %6206 = vmatpush.msk.msra.mxu1 %vm10112_vm6, %v4610_v15  ;;  %vm10198_vm14 = vcmp.eq.s32.totalorder %v4481_v17, 1  ;;  %vm10265_vm3 = vcmp.eq.s32.totalorder %v4478_v43, 1  ;;  %v4960_v15 = vld [vmem:[%s10985_s19] sm:$0xff] }
0x1129   : > { %4833 = vmatpush.msrb.mxu3 %v4518_v41  ;;  %6207 = vmatpush.msk.msra.mxu1 %vm10074_vm2, %v4552_v29  ;;  %vm4795_vm2 = vcmask 588800   ;;  %v4573_v29 = vperm.slane %v10064_v34, 4  ;;  %v4566_v41 = vsel %vm4550_vm10, 0.0, %v10061_v24 }
0x112b   : > { %6201 = vmatpush.msk.msrb.mxu3 %vm10108_vm5, %v4460_v56  ;;  %4853 = vmatpush.msra.mxu1 %v4519_v44  ;;  %vm6192_vm5 = vmneg %vm808_vm0 }
0x112c   : > { %6202 = vmatmul.msk.f32.vlgmr.msrb.gmra.mxu3 %vm4795_vm2, %v10217_v26 }
0x112d   : > { %v10183_v59 = vpop.permute.xlu1 %4450  ;;  %v10185_v55 = vpop.permute.xlu0 %4755  ;;  %6208 = vmatpush.msk.msra.mxu1 %vm10112_vm6, %v4461_v61  ;;  %vm10315_vm6 = vcmp.eq.s32.totalorder %v4573_v29, 1 }
0x112e   : > { %v4767_v63 = vsel %vm4763_vm13, %v10031_v37, %v10185_v55  ;;  %v3014_v37 = vsel %vm1123_vm15, %v9637_v2, %v9643_v27  ;;  %6209 = vmatmul.msk.f32.vlgmr.msra.gmra.mxu1 %vm4795_vm2, %v10217_v26  ;;  %v12108_v2 = vld [vmem:[#allocation25_spill] sm:$0xff]  ;;  %v4462_v0 = vsel %vm4410_vm11, %v10147_v42, %v10183_v59  ;;  %v10275_v45 = vpop.permute.xlu2 %4683  ;;  %v4649_v42 = vsel %vm1663_vm8, %v4634_v3, %v10039_v52  ;;  %v5507_v3 = vld [vmem:[%s10988_s22] sm:$0xff] }
0x112f   : > { %6210 = vmatpush.msk.msra.mxu2 %vm10179_vm12, %v4767_v63  ;;  %v3322_v27 = vadd.f32 %v12108_v2, %v3014_v37 }
0x1131   : > { %4867 = vmatpush.msra.mxu2 %v4734_v18  ;;  %v3342_v33 = vadd.f32 %v12109_v16, %v3322_v27 }
0x1135   : > { %v10202_v39 = vpop.permute.xlu1 %4641  ;;  %v10204_v20 = vpop.permute.xlu0 %4681 }
0x1136   : > { %v4693_v5 = vsel %vm4689_vm4, %v10041_v30, %v10204_v20  ;;  %v4652_v7 = vsel %vm1663_vm8, %v10078_v25, %v10202_v39  ;;  %v3871_v30 = vsel %vm808_vm0, %v9905_v4, %v9884_v53  ;;  %v4611_v25 = vsel %vm1123_vm15, %v4598_v32, %v10055_v57 }
0x1137   : > { %6211 = vmatpush.msk.msra.mxu2 %vm10198_vm14, %v4693_v5  ;;  %v3888_v40 = vadd.f32 %v3871_v30, %v3342_v33  ;;  %v4789_v30 = vld [vmem:[%s10983_s17] sm:$0xff] }
0x1139   : > { %6212 = vmatpush.msk.msra.mxu2 %vm10179_vm12, %v4652_v7 }
0x113b   : > { %4870 = vmatpush.msra.mxu2 %v9923_v35 }
0x113d   : > { %v4409_v21 = vpop.permute.xlu1 %4408  ;;  %v10236_v51 = vpop.permute.xlu0 %6429  ;;  %6213 = vmatpush.msk.msra.mxu2 %vm10198_vm14, %v4611_v25 }
0x113e   : > { %v4417_v53 = vsel %vm4410_vm11, %v10018_v12, %v4409_v21  ;;  %v6431_v4 = vunpack.i.l.bf16 %v10236_v51  ;;  %v4520_v12 = vsel %vm808_vm0, %v6422_v9, %v10116_v60 }
0x113f   : > { %v10246_v35 = vadd.f32 %v4417_v53, %v3888_v40  ;;  %6214 = vmatpush.msk.msra.mxu2 %vm10179_vm12, %v4553_v49  ;;  %v5508_v40 = vld [vmem:[%s10988_s22 + $0x8] sm:$0xff]  ;;  %v5510_v49 = vld [vmem:[%s10988_s22 + $0x18] sm:$0xff]  ;;  %v5511_v53 = vld [vmem:[%s10988_s22 + $0x20] sm:$0xff] }
0x1140   : > { %v4731_v36 = vsel %vm4730_vm1, %v6431_v4, %v6416_v11 }
0x1141   : > { %4728 = vrot.lane.b32.xlu1 %v10246_v35, %s7051_s10  ;;  %4548 = vrot.lane.b32.xlu0 %v10246_v35, %s7049_s24  ;;  %v6438_v50 = vpack.i.bf16 %v10246_v35, %v10033_v38  ;;  %s6329_s10 = sshll.u32 %s12134_s5, 9 }
0x1142   : > { %4761 = vrot.lane.b32.xlu2 %v10246_v35, %s7048_s30  ;;  %4807 = vmatpush.msrb.mxu0 %v4731_v36  ;;  %s10765_s28 = scalar_lea.vmem %s12131_s4, %s6329_s10 }
0x1143   : > { %4873 = vmatpush.msra.mxu2 %v4520_v12 }
0x1145   : > { %6215 = vmatpush.msk.msra.mxu2 %vm10198_vm14, %v4462_v0  ;;  %v4674_v11 = vpop.permute.xlu1 %4673  ;;  %v4758_v14 = vpop.permute.xlu0 %4757  ;;  %v5514_v0 = vld [vmem:[%s10988_s22 + $0x38] sm:$0xff] }
0x1146   : > { %v4690_v32 = vsel %vm4689_vm4, %v4674_v11, %v10047_v31  ;;  %6216 = vmatmul.msk.f32.vlgmr.msra.gmra.mxu2 %vm4795_vm2, %v10217_v26  ;;  %v4624_v31 = vsel %vm1123_vm15, 0.0, %v10002_v47  ;;  %v6432_v47 = vunpack.i.h.bf16 %v10236_v51  ;;  %v4768_v56 = vsel %vm4763_vm13, %v10185_v55, %v4758_v14 }
0x1147   : > { %6188 = vmatpush.msk.msrb.mxu0 %vm10265_vm3, %v4690_v32  ;;  %v4694_v55 = vsel %vm4689_vm4, %v10204_v20, %v10275_v45  ;;  %v4576_v11 = vperm.slane %v10064_v34, 7 }
0x1148   : > { %v4735_v61 = vsel %vm4730_vm1, %v6427_v22, %v6432_v47  ;;  %v4574_v22 = vperm.slane %v10064_v34, 5 }
0x1149   : > { %4687 = vrot.lane.b32.xlu1 %v10246_v35, %s7050_s26  ;;  %4458 = vrot.lane.b32.xlu0 %v10246_v35, %s7047_s3 }
0x114a   : > { %4607 = vrot.lane.b32.xlu2 %v10246_v35, %s7037_s21  ;;  %6189 = vmatpush.msk.msrb.mxu0 %vm10118_vm7, %v4649_v42  ;;  %vm10360_vm12 = vcmp.eq.s32.totalorder %v4574_v22, 1 }
0x114c   : > { %4810 = vmatpush.msrb.mxu0 %v9897_v54  ;;  %v10307_v54 = vpop.permute.xlu2 %4643 }
0x114d   : > { %v10292_v9 = vpop.permute.xlu1 %4544  ;;  %v10294_v52 = vpop.permute.xlu0 %4603  ;;  %v4653_v63 = vsel %vm1663_vm8, %v10202_v39, %v10307_v54 }
0x114e   : > { %6190 = vmatpush.msk.msrb.mxu0 %vm10265_vm3, %v4624_v31 }
0x1150   : > { %6191 = vmatpush.msk.msrb.mxu0 %vm10118_vm7, %v4566_v41  ;;  %vm10335_vm7 = vcmp.eq.s32.totalorder %v4482_v58, 1  ;;  %v4484_v41 = vperm.slane %v10094_v6, 6 }
0x1151   : > { %4647 = vrot.lane.b32.xlu1 %v10246_v35, %s12083_s7  ;;  %5488 = vperm.xlu0 %6400, %v4960_v15   ;;  %s12130_s7 = sld [smem:[#allocation225_spill]] }
0x1152   : > { %4546 = vrot.lane.b32.xlu2 %v10033_v38, %s7049_s24  ;;  %6193 = vmatpush.msk.msrb.mxu0 %vm6192_vm5, %v10053_v48  ;;  %vm10452_vm5 = vcmp.eq.s32.totalorder %v4576_v11, 1 }
0x1154   : > { %6194 = vmatpush.msk.msrb.mxu0 %vm10265_vm3, %v4475_v1  ;;  %v4602_v18 = vpop.permute.xlu2 %4601  ;;  %vm10448_vm3 = vcmp.eq.s32.totalorder %v4575_v8, 1 }
0x1155   : > { %v10328_v44 = vpop.permute.xlu1 %6434  ;;  %v10330_v48 = vpop.permute.xlu0 %4542  ;;  %6195 = vmatmul.msk.f32.vlgmr.msrb.gmra.mxu0 %vm4795_vm2, %v10217_v26  ;;  %v4612_v37 = vsel %vm1123_vm15, %v10055_v57, %v4602_v18  ;;  %v4613_v4 = vsel %vm1123_vm15, %v4602_v18, %v10294_v52 }
0x1156   : > { %6217 = vmatpush.msk.msra.mxu0 %vm10315_vm6, %v4768_v56  ;;  %v6436_v39 = vunpack.i.l.bf16 %v10328_v44  ;;  %v4554_v7 = vsel %vm4550_vm10, %v10091_v28, %v10330_v48  ;;  %v6437_v36 = vunpack.i.h.bf16 %v10328_v44  ;;  %v4555_v43 = vsel %vm4550_vm10, %v10330_v48, %v10292_v9 }
0x1158   : > { %4887 = vmatpush.msra.mxu0 %v4735_v61  ;;  %v4521_v57 = vsel %vm808_vm0, %v10116_v60, %v6436_v39  ;;  %v4959_v60 = vld [vmem:[%s10984_s18] sm:$0xff]  ;;  %v4522_v12 = vsel %vm808_vm0, %v6436_v39, %v6437_v36 }
0x1159   : > { %4605 = vrot.lane.b32.xlu1 %v10033_v38, %s7037_s21  ;;  %5527 = vperm.xlu0 %6400, %v5509_v10  }
0x115a   : > { %6218 = vmatpush.msk.msra.mxu0 %vm10335_vm7, %v4694_v55  ;;  %6439 = vrot.lane.b32.xlu2 %v6438_v50, %s7046_s0 }
0x115c   : > { %6219 = vmatpush.msk.msra.mxu0 %vm10315_vm6, %v4653_v63 }
0x115d   : > { %v4760_v19 = vpop.permute.xlu1 %4759  ;;  %v10365_v20 = vpop.permute.xlu0 %4452 }
0x115e   : > { %4890 = vmatpush.msra.mxu0 %v9971_v23  ;;  %v4769_v5 = vsel %vm4763_vm13, %v4758_v14, %v4760_v19  ;;  %v5512_v23 = vld [vmem:[%s10988_s22 + $0x28] sm:$0xff]  ;;  %v4463_v2 = vsel %vm4410_vm11, %v10183_v59, %v10365_v20  ;;  %v4483_v59 = vperm.slane %v10094_v6, 5 }
0x115f   : > { %6224 = vmatpush.msk.msra.mxu3 %vm10360_vm12, %v4769_v5 }
0x1160   : > { %6220 = vmatpush.msk.msra.mxu0 %vm10335_vm7, %v4612_v37  ;;  %vm10404_vm14 = vcmp.eq.s32.totalorder %v4483_v59, 1 }
0x1161   : > { %4454 = vrot.lane.b32.xlu1 %v9988_v46, %s7047_s3  ;;  %5542 = vperm.xlu0 %6400, %v5512_v23  }
0x1162   : > { %6221 = vmatpush.msk.msra.mxu0 %vm10315_vm6, %v4554_v7  ;;  %4456 = vrot.lane.b32.xlu2 %v10033_v38, %s7047_s3  ;;  %vm10466_vm6 = vcmp.eq.s32.totalorder %v4484_v41, 1 }
0x1164   : > { %4893 = vmatpush.msra.mxu0 %v4521_v57 }
0x1165   : > { %v4727_v28 = vpop.permute.xlu0 %4726 }
0x1166   : > { %6222 = vmatpush.msk.msra.mxu0 %vm10335_vm7, %v4463_v2  ;;  %v4736_v27 = vsel %vm4730_vm1, %v6432_v47, %v4727_v28 }
0x1167   : > { %6223 = vmatmul.msk.f32.vlgmr.msra.gmra.mxu0 %vm4795_vm2, %v10217_v26  ;;  %4907 = vmatpush.msra.mxu3 %v4736_v27 }
0x1169   : > { %4792 = vperm.xlu1 %6401, %v4789_v30  }
0x116a   : > { %5475 = vperm.xlu2 %6402, %v4959_v60  }
0x116d   : > { %v4686_v33 = vpop.permute.xlu0 %4685 }
0x116e   : > { %v4695_v25 = vsel %vm4689_vm4, %v10275_v45, %v4686_v33 }
0x116f   : > { %6225 = vmatpush.msk.msra.mxu3 %vm10404_vm14, %v4695_v25 }
0x1171   : > { %5517 = vperm.xlu1 %6401, %v5507_v3  }
0x1172   : > { %5522 = vperm.xlu2 %6402, %v5508_v40  }
0x1175   : > { %v4646_v21 = vpop.permute.xlu0 %4645 }
0x1176   : > { %v4654_v51 = vsel %vm1663_vm8, %v10307_v54, %v4646_v21  ;;  %v4485_v54 = vperm.slane %v10094_v6, 7 }
0x1177   : > { %6226 = vmatpush.msk.msra.mxu3 %vm10360_vm12, %v4654_v51 }
0x1179   : > { %5532 = vperm.xlu1 %6401, %v5510_v49   ;;  %4910 = vmatpush.msra.mxu3 %v9988_v46  ;;  %v5513_v46 = vld [vmem:[%s10988_s22 + $0x30] sm:$0xff] }
0x117a   : > { %5537 = vperm.xlu2 %6402, %v5511_v53  }
0x117b   : > { %6227 = vmatpush.msk.msra.mxu3 %vm10404_vm14, %v4613_v4 }
0x117d   : > { %6228 = vmatpush.msk.msra.mxu3 %vm10360_vm12, %v4555_v43 }
0x117f   : > { %4913 = vmatpush.msra.mxu3 %v4522_v12 }
0x1181   : > { %5547 = vperm.xlu1 %6401, %v5513_v46  }
0x1182   : > { %5552 = vperm.xlu2 %6402, %v5514_v0  }
0x119c   : > { %v4762_v45 = vpop.permute.xlu2 %4761 }
0x119d   : > { %v4770_v42 = vsel %vm4763_vm13, %v4760_v19, %v4762_v45  ;;  %v4779_v31 = vsel %vm4763_vm13, %v4762_v45, 0.0  ;;  %vm10470_vm13 = vcmp.eq.s32.totalorder %v4485_v54, 1 }
0x119e   : > { %6231 = vmatpush.msk.msrb.mxu1 %vm10448_vm3, %v4770_v42  ;;  %6238 = vmatpush.msk.msrb.mxu2 %vm10452_vm5, %v4779_v31 }
0x11a4   : > { %v4608_v34 = vpop.permute.xlu2 %4607 }
0x11ab   : > { %v4856_v57 = vpop.f32.mrf.mxu1 }
0x11ac   : > { %v4547_v58 = vpop.permute.xlu2 %4546 }
0x11ad   : > { %v4556_v17 = vsel %vm4550_vm10, %v10292_v9, %v4547_v58 }
0x11af   : > { %v4836_v7 = vpop.f32.mrf.mxu3 }
0x11b3   : > { %v4729_v15 = vpop.permute.xlu1 %4728  ;;  %v4549_v13 = vpop.permute.xlu0 %4548 }
0x11b4   : > { %6239 = vmatpush.msk.msrb.mxu2 %vm4730_vm1, %v4729_v15  ;;  %v4737_v29 = vsel %vm4730_vm1, %v4727_v28, %v4729_v15  ;;  %v6440_v10 = vpop.permute.xlu2 %6439 }
0x11b5   : > { %4927 = vmatpush.msrb.mxu1 %v4737_v29  ;;  %v6442_v50 = vunpack.i.h.bf16 %v6440_v10  ;;  %v6441_v22 = vunpack.i.l.bf16 %v6440_v10 }
0x11b7   : > { %v4524_v37 = vsel %vm808_vm0, %v6441_v22, %v6442_v50 }
0x11bb   : > { %v4688_v1 = vpop.permute.xlu1 %4687 }
0x11bc   : > { %v4696_v56 = vsel %vm4689_vm4, %v4686_v33, %v4688_v1  ;;  %v4705_v44 = vsel %vm4689_vm4, %v4688_v1, 0.0  ;;  %v4457_v19 = vpop.permute.xlu2 %4456 }
0x11bd   : > { %6232 = vmatpush.msk.msrb.mxu1 %vm10466_vm6, %v4696_v56  ;;  %6240 = vmatpush.msk.msrb.mxu2 %vm10470_vm13, %v4705_v44 }
0x11c3   : > { %v4648_v6 = vpop.permute.xlu1 %4647 }
0x11c4   : > { %v4655_v48 = vsel %vm1663_vm8, %v4646_v21, %v4648_v6  ;;  %v4664_v61 = vsel %vm1663_vm8, %v4648_v6, 0.0 }
0x11c5   : > { %6233 = vmatpush.msk.msrb.mxu1 %vm10448_vm3, %v4655_v48  ;;  %6241 = vmatpush.msk.msrb.mxu2 %vm10452_vm5, %v4664_v61 }
0x11c7   : > { %4930 = vmatpush.msrb.mxu1 %v10033_v38  ;;  %4950 = vmatpush.msrb.mxu2 %v10246_v35  ;;  %v4557_v38 = vsel %vm4550_vm10, %v4547_v58, %v4549_v13  ;;  %v4459_v35 = vpop.permute.xlu0 %4458 }
0x11c8   : > { %v4466_v39 = vsel %vm4410_vm11, %v4457_v19, %v4459_v35 }
0x11c9   : > { %v4876_v2 = vpop.f32.mrf.mxu2 }
0x11cb   : > { %v4606_v55 = vpop.permute.xlu1 %4605 }
0x11cc   : > { %v4614_v63 = vsel %vm1123_vm15, %v10294_v52, %v4606_v55  ;;  %v4615_v18 = vsel %vm1123_vm15, %v4606_v55, %v4608_v34  ;;  %v4523_v52 = vsel %vm808_vm0, %v6437_v36, %v6441_v22 }
0x11cd   : > { %6234 = vmatpush.msk.msrb.mxu1 %vm10466_vm6, %v4614_v63  ;;  %6242 = vmatpush.msk.msrb.mxu2 %vm10470_vm13, %v4615_v18 }
0x11cf   : > { %6235 = vmatpush.msk.msrb.mxu1 %vm10448_vm3, %v4556_v17  ;;  %6243 = vmatpush.msk.msrb.mxu2 %vm10452_vm5, %v4557_v38 }
0x11d1   : > { %4933 = vmatpush.msrb.mxu1 %v4523_v52  ;;  %4953 = vmatpush.msrb.mxu2 %v4524_v37 }
0x11d3   : > { %v4455_v5 = vpop.permute.xlu1 %4454  ;;  %6244 = vmatpush.msk.msrb.mxu2 %vm10470_vm13, %v4466_v39 }
0x11d4   : > { %v4464_v9 = vsel %vm4410_vm11, %v10365_v20, %v4455_v5  ;;  %v4465_v23 = vsel %vm4410_vm11, %v4455_v5, %v4457_v19  ;;  %6245 = vmatmul.msk.f32.vlgmr.msrb.gmra.mxu2 %vm4795_vm2, %v10217_v26  ;;  %v4816_v20 = vpop.f32.mrf.mxu0 }
0x11d5   : > { %6229 = vmatpush.msk.msra.mxu3 %vm10404_vm14, %v4464_v9  ;;  %6236 = vmatpush.msk.msrb.mxu1 %vm10466_vm6, %v4465_v23 }
0x11d6   : > { %6230 = vmatmul.msk.f32.vlgmr.msra.gmra.mxu3 %vm4795_vm2, %v10217_v26  ;;  %6237 = vmatmul.msk.f32.vlgmr.msrb.gmra.mxu1 %vm4795_vm2, %v10217_v26 }
0x11db   : > { %v10520_v28 = vpop.permute.xlu1 %4792 }
0x11dc   : > { %v4837_v27 = vadd.f32 %v4836_v7, %v10520_v28  ;;  %v4857_v30 = vadd.f32 %v4856_v57, %v10520_v28  ;;  %v4877_v60 = vadd.f32 %v4876_v2, %v10520_v28  ;;  %v4817_v59 = vadd.f32 %v4816_v20, %v10520_v28 }
0x11de   : > { %v4962_v16 = vmul.f32 %v4837_v27, %v4837_v27  ;;  %v4963_v33 = vmul.f32 %v4857_v30, %v4857_v30  ;;  %v4964_v25 = vmul.f32 %v4877_v60, %v4877_v60  ;;  %v4961_v3 = vmul.f32 %v4817_v59, %v4817_v59 }
0x11e0   : > { %v4970_v40 = vmul.f32 %v4962_v16, %v4837_v27  ;;  %v4971_v26 = vmul.f32 %v4963_v33, %v4857_v30  ;;  %v4972_v21 = vmul.f32 %v4964_v25, %v4877_v60  ;;  %v4969_v51 = vmul.f32 %v4961_v3, %v4817_v59 }
0x11e2   : > { %v4978_v49 = vmul.f32 0.044715, %v4970_v40  ;;  %v4979_v53 = vmul.f32 0.044715, %v4971_v26  ;;  %v4980_v4 = vmul.f32 0.044715, %v4972_v21 }
0x11e3   : > { %v4977_v43 = vmul.f32 0.044715, %v4969_v51 }
0x11e4   : > { %v4896_v36 = vpop.f32.mrf.mxu0  ;;  %v4986_v12 = vadd.f32 %v4978_v49, %v4837_v27  ;;  %v4987_v46 = vadd.f32 %v4979_v53, %v4857_v30  ;;  %v4988_v0 = vadd.f32 %v4980_v4, %v4877_v60 }
0x11e5   : > { %v4897_v8 = vadd.f32 %v4896_v36, %v10520_v28  ;;  %v4985_v11 = vadd.f32 %v4977_v43, %v4817_v59 }
0x11e6   : > { %v4994_v14 = vmul.f32 0.7978846, %v4986_v12  ;;  %v4995_v32 = vmul.f32 0.7978846, %v4987_v46  ;;  %v4996_v45 = vmul.f32 0.7978846, %v4988_v0 }
0x11e7   : > { %v4965_v42 = vmul.f32 %v4897_v8, %v4897_v8  ;;  %v4993_v31 = vmul.f32 0.7978846, %v4985_v11 }
0x11e8   : > { %6511 = vtanh.f32 %v4994_v14 }
0x11e9   : > { %v4973_v34 = vmul.f32 %v4965_v42, %v4897_v8  ;;  %6513 = vtanh.f32 %v4995_v32 }
0x11ea   : > { %6515 = vtanh.f32 %v4996_v45 }
0x11eb   : > { %v4981_v15 = vmul.f32 0.044715, %v4973_v34  ;;  %6517 = vtanh.f32 %v4993_v31 }
0x11ed   : > { %v4989_v29 = vadd.f32 %v4981_v15, %v4897_v8 }
0x11ee   : > { %v6512_v41 = vpop.eup %6511 }
0x11ef   : > { %v4997_v54 = vmul.f32 0.7978846, %v4989_v29  ;;  %v6514_v47 = vpop.eup %6513  ;;  %v5010_v24 = vadd.f32 1.0, %v6512_v41 }
0x11f0   : > { %v6516_v58 = vpop.eup %6515  ;;  %v5011_v1 = vadd.f32 1.0, %v6514_v47 }
0x11f1   : > { %6519 = vtanh.f32 %v4997_v54  ;;  %v6518_v56 = vpop.eup %6517  ;;  %v5018_v44 = vmul.f32 0.5, %v5010_v24  ;;  %v5012_v6 = vadd.f32 1.0, %v6516_v58 }
0x11f2   : > { %v5009_v48 = vadd.f32 1.0, %v6518_v56  ;;  %v5019_v61 = vmul.f32 0.5, %v5011_v1 }
0x11f3   : > { %v10527_v13 = vmul.f32 %v5018_v44, %v4837_v27  ;;  %v5020_v10 = vmul.f32 0.5, %v5012_v6 }
0x11f4   : > { %v5017_v55 = vmul.f32 0.5, %v5009_v48  ;;  %v10529_v50 = vmul.f32 %v5019_v61, %v4857_v30 }
0x11f5   : > { %5068 = vmatpush.msrb.mxu3 %v10527_v13  ;;  %v10532_v22 = vmul.f32 %v5020_v10, %v4877_v60 }
0x11f6   : > { %v5025_v18 = vmul.f32 %v5017_v55, %v4817_v59  ;;  %5088 = vmatpush.msra.mxu1 %v10529_v50  ;;  %6247 = vmatmul.msk.f32.vlgmr.msrb.gmra.mxu3 %vm2359_vm9, %v11724_v62 }
0x11f7   : > { %v6520_v63 = vpop.eup %6519  ;;  %5108 = vmatpush.msra.mxu2 %v10532_v22  ;;  %6248 = vmatmul.msk.f32.vlgmr.msra.gmra.mxu1 %vm2359_vm9, %v11724_v62 }
0x11f8   : > { %v5013_v17 = vadd.f32 1.0, %v6520_v63  ;;  %5048 = vmatpush.msrb.mxu0 %v5025_v18  ;;  %6249 = vmatmul.msk.f32.vlgmr.msra.gmra.mxu2 %vm2359_vm9, %v11724_v62 }
0x11f9   : > { %6246 = vmatmul.msk.f32.vlgmr.msrb.gmra.mxu0 %vm2359_vm9, %v11724_v62 }
0x11fa   : > { %v5021_v38 = vmul.f32 0.5, %v5013_v17 }
0x11fc   : > { %v10544_v35 = vmul.f32 %v5021_v38, %v4897_v8 }
0x11fe   : > { %5128 = vmatpush.msra.mxu0 %v10544_v35 }
0x1201   : > { %6250 = vmatmul.msk.f32.vlgmr.msra.gmra.mxu0 %vm2359_vm9, %v11724_v62 }
0x1253   : > { %v4936_v19 = vpop.f32.mrf.mxu1 }
0x1254   : > { %v4937_v52 = vadd.f32 %v4936_v19, %v10520_v28 }
0x1256   : > { %v4967_v37 = vmul.f32 %v4937_v52, %v4937_v52 }
0x1257   : > { %v4956_v39 = vpop.f32.mrf.mxu2 }
0x1258   : > { %v4975_v5 = vmul.f32 %v4967_v37, %v4937_v52  ;;  %v4957_v9 = vadd.f32 %v4956_v39, %v10520_v28 }
0x1259   : > { %v4916_v23 = vpop.f32.mrf.mxu3 }
0x125a   : > { %v4983_v7 = vmul.f32 0.044715, %v4975_v5  ;;  %v4968_v57 = vmul.f32 %v4957_v9, %v4957_v9  ;;  %v4917_v20 = vadd.f32 %v4916_v23, %v10520_v28 }
0x125c   : > { %v4991_v2 = vadd.f32 %v4983_v7, %v4937_v52  ;;  %v4976_v27 = vmul.f32 %v4968_v57, %v4957_v9  ;;  %v4966_v30 = vmul.f32 %v4917_v20, %v4917_v20 }
0x125e   : > { %v4999_v60 = vmul.f32 0.7978846, %v4991_v2  ;;  %v4984_v59 = vmul.f32 0.044715, %v4976_v27  ;;  %v4974_v16 = vmul.f32 %v4966_v30, %v4917_v20 }
0x1260   : > { %6521 = vtanh.f32 %v4999_v60  ;;  %v4992_v33 = vadd.f32 %v4984_v59, %v4957_v9  ;;  %v4982_v25 = vmul.f32 0.044715, %v4974_v16 }
0x1262   : > { %v5000_v3 = vmul.f32 0.7978846, %v4992_v33  ;;  %v4990_v40 = vadd.f32 %v4982_v25, %v4917_v20 }
0x1264   : > { %6523 = vtanh.f32 %v5000_v3  ;;  %v4998_v26 = vmul.f32 0.7978846, %v4990_v40 }
0x1266   : > { %v6522_v21 = vpop.eup %6521  ;;  %6525 = vtanh.f32 %v4998_v26 }
0x1267   : > { %v5015_v51 = vadd.f32 1.0, %v6522_v21 }
0x1269   : > { %v5023_v49 = vmul.f32 0.5, %v5015_v51 }
0x126a   : > { %v6524_v53 = vpop.eup %6523 }
0x126b   : > { %v5031_v4 = vmul.f32 %v5023_v49, %v4937_v52  ;;  %v5016_v28 = vadd.f32 1.0, %v6524_v53 }
0x126c   : > { %v6526_v36 = vpop.eup %6525 }
0x126d   : > { %5168 = vmatpush.msrb.mxu1 %v5031_v4  ;;  %v5024_v43 = vmul.f32 0.5, %v5016_v28  ;;  %v5014_v12 = vadd.f32 1.0, %v6526_v36 }
0x126e   : > { %6252 = vmatmul.msk.f32.vlgmr.msrb.gmra.mxu1 %vm2359_vm9, %v11724_v62 }
0x126f   : > { %v5032_v46 = vmul.f32 %v5024_v43, %v4957_v9  ;;  %v5022_v0 = vmul.f32 0.5, %v5014_v12 }
0x1271   : > { %5188 = vmatpush.msrb.mxu2 %v5032_v46  ;;  %v5030_v8 = vmul.f32 %v5022_v0, %v4917_v20 }
0x1272   : > { %6253 = vmatmul.msk.f32.vlgmr.msrb.gmra.mxu2 %vm2359_vm9, %v11724_v62 }
0x1273   : > { %5148 = vmatpush.msra.mxu3 %v5030_v8 }
0x1274   : > { %v5090_v11 = vpop.f32.mrf.mxu1  ;;  %6251 = vmatmul.msk.f32.vlgmr.msra.gmra.mxu3 %vm2359_vm9, %v11724_v62 }
0x1275   : > { %v5195_v14 = vperm.slane %v5090_v11, 0 }
0x1276   : > { %v5050_v32 = vpop.f32.mrf.mxu0 }
0x1277   : > { %v5193_v45 = vperm.slane %v5050_v32, 0  ;;  %v10559_v42 = vsub.f32 %v10529_v50, %v5195_v14  ;;  %v10611_v32 = vpop.permute.xlu2 %5475 }
0x1279   : > { %v10561_v31 = vsub.f32 %v5025_v18, %v5193_v45  ;;  %v5211_v34 = vmul.f32 %v10559_v42, %v10559_v42  ;;  %v5070_v15 = vpop.f32.mrf.mxu3 }
0x127a   : > { %v5194_v29 = vperm.slane %v5070_v15, 0 }
0x127b   : > { %v5209_v41 = vmul.f32 %v10561_v31, %v10561_v31  ;;  %v5110_v54 = vpop.f32.mrf.mxu2  ;;  %5272 = vmatpush.msra.mxu1 %v5211_v34 }
0x127c   : > { %v10568_v47 = vsub.f32 %v10527_v13, %v5194_v29  ;;  %v5196_v24 = vperm.slane %v5110_v54, 0  ;;  %6256 = vmatmul.msk.f32.vlgmr.msra.gmra.mxu1 %vm2359_vm9, %v11724_v62  ;;  %v10615_v54 = vpop.permute.xlu0 %5488 }
0x127d   : > { %5232 = vmatpush.msrb.mxu0 %v5209_v41 }
0x127e   : > { %v5210_v58 = vmul.f32 %v10568_v47, %v10568_v47  ;;  %v10575_v1 = vsub.f32 %v10532_v22, %v5196_v24  ;;  %v5130_v56 = vpop.f32.mrf.mxu0  ;;  %6254 = vmatmul.msk.f32.vlgmr.msrb.gmra.mxu0 %vm2359_vm9, %v11724_v62 }
0x127f   : > { %v5197_v44 = vperm.slane %v5130_v56, 0 }
0x1280   : > { %v5212_v6 = vmul.f32 %v10575_v1, %v10575_v1  ;;  %5252 = vmatpush.msrb.mxu3 %v5210_v58 }
0x1281   : > { %v10582_v48 = vsub.f32 %v10544_v35, %v5197_v44  ;;  %6255 = vmatmul.msk.f32.vlgmr.msrb.gmra.mxu3 %vm2359_vm9, %v11724_v62 }
0x1282   : > { %5292 = vmatpush.msra.mxu2 %v5212_v6 }
0x1283   : > { %v5213_v61 = vmul.f32 %v10582_v48, %v10582_v48  ;;  %6257 = vmatmul.msk.f32.vlgmr.msra.gmra.mxu2 %vm2359_vm9, %v11724_v62 }
0x1285   : > { %5312 = vmatpush.msra.mxu0 %v5213_v61 }
0x1286   : > { %6258 = vmatmul.msk.f32.vlgmr.msra.gmra.mxu0 %vm2359_vm9, %v11724_v62 }
0x12eb   : > { %v5170_v13 = vpop.f32.mrf.mxu1 }
0x12ec   : > { %v5199_v10 = vperm.slane %v5170_v13, 0 }
0x12ee   : > { %v10592_v55 = vsub.f32 %v5031_v4, %v5199_v10 }
0x12f0   : > { %v5215_v50 = vmul.f32 %v10592_v55, %v10592_v55 }
0x12f2   : > { %5352 = vmatpush.msrb.mxu1 %v5215_v50 }
0x12f3   : > { %6260 = vmatmul.msk.f32.vlgmr.msrb.gmra.mxu1 %vm2359_vm9, %v11724_v62 }
0x12f5   : > { %v5190_v22 = vpop.f32.mrf.mxu2 }
0x12f6   : > { %v5200_v63 = vperm.slane %v5190_v22, 0 }
0x12f7   : > { %v5150_v18 = vpop.f32.mrf.mxu3 }
0x12f8   : > { %v10598_v17 = vsub.f32 %v5032_v46, %v5200_v63  ;;  %v5198_v38 = vperm.slane %v5150_v18, 0 }
0x12f9   : > { %v5274_v35 = vpop.f32.mrf.mxu1 }
0x12fa   : > { %v5216_v19 = vmul.f32 %v10598_v17, %v10598_v17  ;;  %v10602_v52 = vsub.f32 %v5030_v8, %v5198_v38  ;;  %v5275_v37 = vadd.f32 1e-05, %v5274_v35 }
0x12fb   : > { %v5234_v39 = vpop.f32.mrf.mxu0 }
0x12fc   : > { %v5214_v5 = vmul.f32 %v10602_v52, %v10602_v52  ;;  %v5235_v9 = vadd.f32 1e-05, %v5234_v39  ;;  %6527 = vrsqrt.f32 %v5275_v37  ;;  %5372 = vmatpush.msrb.mxu2 %v5216_v19  ;;  %vm5403_vm0 = vweird.f32 %v5275_v37 }
0x12fd   : > { %6261 = vmatmul.msk.f32.vlgmr.msrb.gmra.mxu2 %vm2359_vm9, %v11724_v62 }
0x12fe   : > { %6529 = vrsqrt.f32 %v5235_v9  ;;  %5332 = vmatpush.msra.mxu3 %v5214_v5  ;;  %vm5383_vm8 = vweird.f32 %v5235_v9 }
0x12ff   : > { %6259 = vmatmul.msk.f32.vlgmr.msra.gmra.mxu3 %vm2359_vm9, %v11724_v62 }
0x1302   : > { %v6528_v23 = vpop.eup %6527 }
0x1303   : > { %v5398_v7 = vmul.f32 %v6528_v23, %v5275_v37  ;;  %v5314_v57 = vpop.f32.mrf.mxu0  ;;  %vm5404_vm15 = vweird.f32 %v6528_v23 }
0x1304   : > { %v6530_v20 = vpop.eup %6529  ;;  %v5315_v2 = vadd.f32 1e-05, %v5314_v57  ;;  %v5254_v27 = vpop.f32.mrf.mxu3  ;;  %vm5405_vm1 = vmor %vm5403_vm0, %vm5404_vm15 }
0x1305   : > { %v5378_v30 = vmul.f32 %v6530_v20, %v5235_v9  ;;  %v5399_v60 = vmul.f32 %v6528_v23, %v5398_v7  ;;  %v5255_v59 = vadd.f32 1e-05, %v5254_v27  ;;  %vm5384_vm11 = vweird.f32 %v6530_v20  ;;  %v10642_v7 = vld [vmem:[%s12130_s7 + $0x8] sm:$0xff] }
0x1306   : > { %6531 = vrsqrt.f32 %v5315_v2  ;;  %v5294_v16 = vpop.f32.mrf.mxu2  ;;  %vm5385_vm4 = vmor %vm5383_vm8, %vm5384_vm11  ;;  %vm5423_vm10 = vweird.f32 %v5315_v2 }
0x1307   : > { %v5379_v33 = vmul.f32 %v6530_v20, %v5378_v30  ;;  %v5400_v25 = vmul.f32 0.5, %v5399_v60  ;;  %6533 = vrsqrt.f32 %v5255_v59  ;;  %v5295_v3 = vadd.f32 1e-05, %v5294_v16  ;;  %v10672_v30 = vld [vmem:[%s12130_s7 + $0x18] sm:$0xff]  ;;  %v10685_v60 = vld [vmem:[%s12130_s7 + $0x20] sm:$0xff]  ;;  %v10711_v16 = vld [vmem:[%s12130_s7 + $0x30] sm:$0xff] }
0x1308   : > { %vm5393_vm7 = vweird.f32 %v5255_v59 }
0x1309   : > { %v5380_v40 = vmul.f32 0.5, %v5379_v33  ;;  %v5401_v62 = vsub.f32 1.5, %v5400_v25  ;;  %6535 = vrsqrt.f32 %v5295_v3  ;;  %vm5413_vm5 = vweird.f32 %v5295_v3  ;;  %v10724_v33 = vld [vmem:[%s12130_s7 + $0x38] sm:$0xff] }
0x130b   : > { %v5381_v26 = vsub.f32 1.5, %v5380_v40  ;;  %v5402_v21 = vmul.f32 %v6528_v23, %v5401_v62 }
0x130c   : > { %v6532_v51 = vpop.eup %6531 }
0x130d   : > { %v6534_v49 = vpop.eup %6533  ;;  %v5382_v53 = vmul.f32 %v6530_v20, %v5381_v26  ;;  %v5406_v4 = vsel %vm5405_vm1, %v6528_v23, %v5402_v21  ;;  %v5418_v28 = vmul.f32 %v6532_v51, %v5315_v2  ;;  %vm5424_vm2 = vweird.f32 %v6532_v51 }
0x130e   : > { %v5459_v36 = vperm.slane %v5406_v4, 0  ;;  %v5388_v43 = vmul.f32 %v6534_v49, %v5255_v59  ;;  %vm5394_vm12 = vweird.f32 %v6534_v49  ;;  %vm10617_vm14 = vmor %vm5423_vm10, %vm5424_vm2  ;;  %v10698_v59 = vld [vmem:[%s12130_s7 + $0x28] sm:$0xff] }
0x130f   : > { %v5386_v12 = vsel %vm5385_vm4, %v6530_v20, %v5382_v53  ;;  %v5419_v46 = vmul.f32 %v6532_v51, %v5418_v28  ;;  %v6536_v0 = vpop.eup %6535  ;;  %vm5395_vm3 = vmor %vm5393_vm7, %vm5394_vm12 }
0x1310   : > { %v5457_v8 = vperm.slane %v5386_v12, 0  ;;  %v5467_v11 = vmul.f32 %v5459_v36, %v10559_v42  ;;  %v5389_v14 = vmul.f32 %v6534_v49, %v5388_v43  ;;  %v5408_v34 = vmul.f32 %v6536_v0, %v5295_v3 }
0x1311   : > { %v5420_v45 = vmul.f32 0.5, %v5419_v46  ;;  %vm5414_vm6 = vweird.f32 %v6536_v0 }
0x1312   : > { %v5465_v15 = vmul.f32 %v5457_v8, %v10561_v31  ;;  %v5390_v29 = vmul.f32 0.5, %v5389_v14  ;;  %v5480_v41 = vmul.f32 %v10611_v32, %v5467_v11  ;;  %v5409_v58 = vmul.f32 %v6536_v0, %v5408_v34  ;;  %v10626_v31 = vld [vmem:[%s12130_s7] sm:$0xff]  ;;  %vm5415_vm13 = vmor %vm5413_vm5, %vm5414_vm6 }
0x1313   : > { %v5421_v24 = vsub.f32 1.5, %v5420_v45 }
0x1314   : > { %v5391_v56 = vsub.f32 1.5, %v5390_v29  ;;  %v5478_v44 = vmul.f32 %v10611_v32, %v5465_v15  ;;  %v5493_v6 = vadd.f32 %v10615_v54, %v5480_v41  ;;  %v5410_v13 = vmul.f32 0.5, %v5409_v58 }
0x1315   : > { %v5422_v61 = vmul.f32 %v6532_v51, %v5421_v24 }
0x1316   : > { %v5392_v10 = vmul.f32 %v6534_v49, %v5391_v56  ;;  %v5491_v50 = vadd.f32 %v10615_v54, %v5478_v44  ;;  %5676 = vmatpush.msra.mxu1 %v5493_v6  ;;  %v5411_v63 = vsub.f32 1.5, %v5410_v13  ;;  %v10767_v56 = vpop.permute.xlu1 %5517 }
0x1317   : > { %v5426_v22 = vsel %vm10617_vm14, %v6532_v51, %v5422_v61  ;;  %6278 = vmatmul.msk.f32.vlgmr.msra.gmra.mxu1 %vm2359_vm9, %v10626_v31 }
0x1318   : > { %v5461_v18 = vperm.slane %v5426_v22, 0  ;;  %v5396_v38 = vsel %vm5395_vm3, %v6534_v49, %v5392_v10  ;;  %5594 = vmatpush.msrb.mxu0 %v5491_v50  ;;  %v5412_v19 = vmul.f32 %v6536_v0, %v5411_v63 }
0x1319   : > { %v5458_v35 = vperm.slane %v5396_v38, 0  ;;  %6262 = vmatmul.msk.f32.vlgmr.msrb.gmra.mxu0 %vm2359_vm9, %v10626_v31 }
0x131a   : > { %v5469_v37 = vmul.f32 %v5461_v18, %v10582_v48  ;;  %v5416_v5 = vsel %vm5415_vm13, %v6536_v0, %v5412_v19 }
0x131b   : > { %v5466_v39 = vmul.f32 %v5458_v35, %v10568_v47  ;;  %v5460_v9 = vperm.slane %v5416_v5, 0  ;;  %v10780_v5 = vpop.permute.xlu2 %5522 }
0x131c   : > { %v5482_v23 = vmul.f32 %v10611_v32, %v5469_v37 }
0x131d   : > { %v5479_v57 = vmul.f32 %v10611_v32, %v5466_v39  ;;  %v5468_v20 = vmul.f32 %v5460_v9, %v10575_v1  ;;  %v10659_v1 = vld [vmem:[%s12130_s7 + $0x10] sm:$0xff] }
0x131e   : > { %v5495_v2 = vadd.f32 %v10615_v54, %v5482_v23 }
0x131f   : > { %6279 = vmatmul.msk.f32.gmra.mxu1 %vm2359_vm9, %v10642_v7  ;;  %v5492_v47 = vadd.f32 %v10615_v54, %v5479_v57  ;;  %v5481_v48 = vmul.f32 %v10611_v32, %v5468_v20 }
0x1320   : > { %5758 = vmatpush.msra.mxu0 %v5495_v2 }
0x1321   : > { %6263 = vmatmul.msk.f32.gmra.mxu0 %vm2359_vm9, %v10642_v7  ;;  %5635 = vmatpush.msrb.mxu3 %v5492_v47  ;;  %v5494_v27 = vadd.f32 %v10615_v54, %v5481_v48 }
0x1322   : > { %6270 = vmatmul.msk.f32.vlgmr.msrb.gmra.mxu3 %vm2359_vm9, %v10626_v31 }
0x1323   : > { %5717 = vmatpush.msra.mxu2 %v5494_v27 }
0x1324   : > { %6286 = vmatmul.msk.f32.vlgmr.msra.gmra.mxu2 %vm2359_vm9, %v10626_v31 }
0x1327   : > { %6280 = vmatmul.msk.f32.gmra.mxu1 %vm2359_vm9, %v10659_v1 }
0x1329   : > { %6264 = vmatmul.msk.f32.gmra.mxu0 %vm2359_vm9, %v10659_v1 }
0x132a   : > { %6271 = vmatmul.msk.f32.gmra.mxu3 %vm2359_vm9, %v10642_v7 }
0x132c   : > { %6287 = vmatmul.msk.f32.gmra.mxu2 %vm2359_vm9, %v10642_v7 }
0x132f   : > { %6281 = vmatmul.msk.f32.gmra.mxu1 %vm2359_vm9, %v10672_v30 }
0x1331   : > { %6265 = vmatmul.msk.f32.gmra.mxu0 %vm2359_vm9, %v10672_v30 }
0x1332   : > { %6272 = vmatmul.msk.f32.gmra.mxu3 %vm2359_vm9, %v10659_v1 }
0x1334   : > { %6288 = vmatmul.msk.f32.gmra.mxu2 %vm2359_vm9, %v10659_v1 }
0x1337   : > { %6282 = vmatmul.msk.f32.gmra.mxu1 %vm2359_vm9, %v10685_v60 }
0x1339   : > { %6266 = vmatmul.msk.f32.gmra.mxu0 %vm2359_vm9, %v10685_v60 }
0x133a   : > { %6273 = vmatmul.msk.f32.gmra.mxu3 %vm2359_vm9, %v10672_v30 }
0x133c   : > { %6289 = vmatmul.msk.f32.gmra.mxu2 %vm2359_vm9, %v10672_v30 }
0x133f   : > { %6283 = vmatmul.msk.f32.gmra.mxu1 %vm2359_vm9, %v10698_v59 }
0x1341   : > { %6267 = vmatmul.msk.f32.gmra.mxu0 %vm2359_vm9, %v10698_v59 }
0x1342   : > { %6274 = vmatmul.msk.f32.gmra.mxu3 %vm2359_vm9, %v10685_v60 }
0x1344   : > { %6290 = vmatmul.msk.f32.gmra.mxu2 %vm2359_vm9, %v10685_v60 }
0x1347   : > { %6284 = vmatmul.msk.f32.gmra.mxu1 %vm2359_vm9, %v10711_v16 }
0x1349   : > { %6268 = vmatmul.msk.f32.gmra.mxu0 %vm2359_vm9, %v10711_v16 }
0x134a   : > { %6275 = vmatmul.msk.f32.gmra.mxu3 %vm2359_vm9, %v10698_v59 }
0x134c   : > { %6291 = vmatmul.msk.f32.gmra.mxu2 %vm2359_vm9, %v10698_v59 }
0x134f   : > { %6285 = vmatmul.msk.f32.gmra.mxu1 %vm2359_vm9, %v10724_v33 }
0x1351   : > { %6269 = vmatmul.msk.f32.gmra.mxu0 %vm2359_vm9, %v10724_v33 }
0x1352   : > { %6276 = vmatmul.msk.f32.gmra.mxu3 %vm2359_vm9, %v10711_v16 }
0x1354   : > { %6292 = vmatmul.msk.f32.gmra.mxu2 %vm2359_vm9, %v10711_v16 }
0x1359   : > { %6294 = vmatmul.msk.f32.vlgmr.msra.gmra.mxu0 %vm2359_vm9, %v10626_v31 }
0x135a   : > { %6277 = vmatmul.msk.f32.gmra.mxu3 %vm2359_vm9, %v10724_v33 }
0x135c   : > { %6293 = vmatmul.msk.f32.gmra.mxu2 %vm2359_vm9, %v10724_v33 }
0x1361   : > { %6295 = vmatmul.msk.f32.gmra.mxu0 %vm2359_vm9, %v10642_v7 }
0x1369   : > { %6296 = vmatmul.msk.f32.gmra.mxu0 %vm2359_vm9, %v10659_v1 }
0x1370   : > { %v5354_v25 = vpop.f32.mrf.mxu1 }
0x1371   : > { %6297 = vmatmul.msk.f32.gmra.mxu0 %vm2359_vm9, %v10672_v30  ;;  %v5355_v3 = vadd.f32 1e-05, %v5354_v25 }
0x1373   : > { %6537 = vrsqrt.f32 %v5355_v3  ;;  %vm5443_vm0 = vweird.f32 %v5355_v3 }
0x1379   : > { %v6538_v40 = vpop.eup %6537  ;;  %6298 = vmatmul.msk.f32.gmra.mxu0 %vm2359_vm9, %v10685_v60 }
0x137a   : > { %v5438_v62 = vmul.f32 %v6538_v40, %v5355_v3  ;;  %vm5444_vm15 = vweird.f32 %v6538_v40  ;;  %v10809_v3 = vpop.permute.xlu1 %5532 }
0x137b   : > { %vm5445_vm8 = vmor %vm5443_vm0, %vm5444_vm15 }
0x137c   : > { %v5439_v26 = vmul.f32 %v6538_v40, %v5438_v62 }
0x137e   : > { %v5440_v21 = vmul.f32 0.5, %v5439_v26 }
0x1380   : > { %v5441_v51 = vsub.f32 1.5, %v5440_v21  ;;  %v5374_v49 = vpop.f32.mrf.mxu2 }
0x1381   : > { %6299 = vmatmul.msk.f32.gmra.mxu0 %vm2359_vm9, %v10698_v59  ;;  %v5375_v53 = vadd.f32 1e-05, %v5374_v49 }
0x1382   : > { %v5442_v4 = vmul.f32 %v6538_v40, %v5441_v51  ;;  %v5334_v28 = vpop.f32.mrf.mxu3 }
0x1383   : > { %6539 = vrsqrt.f32 %v5375_v53  ;;  %v5335_v36 = vadd.f32 1e-05, %v5334_v28  ;;  %vm5453_vm1 = vweird.f32 %v5375_v53 }
0x1384   : > { %v5446_v43 = vsel %vm5445_vm8, %v6538_v40, %v5442_v4  ;;  %v10825_v4 = vpop.permute.xlu2 %5537 }
0x1385   : > { %v5463_v12 = vperm.slane %v5446_v43, 0  ;;  %6541 = vrsqrt.f32 %v5335_v36  ;;  %vm5433_vm2 = vweird.f32 %v5335_v36 }
0x1387   : > { %v5471_v46 = vmul.f32 %v5463_v12, %v10592_v55 }
0x1389   : > { %v6540_v0 = vpop.eup %6539  ;;  %6300 = vmatmul.msk.f32.gmra.mxu0 %vm2359_vm9, %v10711_v16  ;;  %v5484_v8 = vmul.f32 %v10611_v32, %v5471_v46 }
0x138a   : > { %v5448_v11 = vmul.f32 %v6540_v0, %v5375_v53  ;;  %vm5454_vm11 = vweird.f32 %v6540_v0 }
0x138b   : > { %v6542_v14 = vpop.eup %6541  ;;  %v5497_v45 = vadd.f32 %v10615_v54, %v5484_v8  ;;  %vm5455_vm10 = vmor %vm5453_vm1, %vm5454_vm11 }
0x138c   : > { %v5449_v34 = vmul.f32 %v6540_v0, %v5448_v11  ;;  %v5428_v15 = vmul.f32 %v6542_v14, %v5335_v36  ;;  %vm5434_vm4 = vweird.f32 %v6542_v14 }
0x138d   : > { %5840 = vmatpush.msrb.mxu1 %v5497_v45  ;;  %vm5435_vm7 = vmor %vm5433_vm2, %vm5434_vm4 }
0x138e   : > { %v5450_v29 = vmul.f32 0.5, %v5449_v34  ;;  %v5429_v41 = vmul.f32 %v6542_v14, %v5428_v15  ;;  %6310 = vmatmul.msk.f32.vlgmr.msrb.gmra.mxu1 %vm2359_vm9, %v10626_v31 }
0x1390   : > { %v5451_v55 = vsub.f32 1.5, %v5450_v29  ;;  %v5430_v24 = vmul.f32 0.5, %v5429_v41 }
0x1391   : > { %6301 = vmatmul.msk.f32.gmra.mxu0 %vm2359_vm9, %v10724_v33 }
0x1392   : > { %v5452_v58 = vmul.f32 %v6540_v0, %v5451_v55  ;;  %v5431_v42 = vsub.f32 1.5, %v5430_v24  ;;  %v10857_v24 = vpop.permute.xlu1 %5547 }
0x1394   : > { %v5456_v44 = vsel %vm5455_vm10, %v6540_v0, %v5452_v58  ;;  %v5432_v6 = vmul.f32 %v6542_v14, %v5431_v42  ;;  %v5678_v61 = vpop.f32.mrf.mxu1 }
0x1395   : > { %v5464_v13 = vperm.slane %v5456_v44, 0  ;;  %v5679_v10 = vadd.f32 %v5678_v61, %v10767_v56 }
0x1396   : > { %v5436_v50 = vsel %vm5435_vm7, %v6542_v14, %v5432_v6  ;;  %v5596_v22 = vpop.f32.mrf.mxu0  ;;  %6311 = vmatmul.msk.f32.gmra.mxu1 %vm2359_vm9, %v10642_v7 }
0x1397   : > { %v5472_v63 = vmul.f32 %v5464_v13, %v10598_v17  ;;  %v5462_v18 = vperm.slane %v5436_v50, 0  ;;  %v5597_v38 = vadd.f32 %v5596_v22, %v10767_v56  ;;  %5909 = vst [vmem:[%s10765_s28 + $0x10] sm:$0xff] %v5679_v10  ;;  %v10873_v50 = vpop.permute.xlu2 %5552 }
0x1399   : > { %v5470_v35 = vmul.f32 %v5462_v18, %v10602_v52  ;;  %5907 = vst [vmem:[%s10765_s28] sm:$0xff] %v5597_v38  ;;  %v5485_v19 = vmul.f32 %v10611_v32, %v5472_v63 }
0x139b   : > { %v5498_v37 = vadd.f32 %v10615_v54, %v5485_v19  ;;  %v5483_v39 = vmul.f32 %v10611_v32, %v5470_v35  ;;  %v10793_v32 = vpop.permute.xlu0 %5527 }
0x139c   : > { %v5681_v9 = vpop.f32.mrf.mxu1 }
0x139d   : > { %v5682_v17 = vadd.f32 %v5681_v9, %v10780_v5  ;;  %5881 = vmatpush.msrb.mxu2 %v5498_v37  ;;  %v5496_v23 = vadd.f32 %v10615_v54, %v5483_v39 }
0x139e   : > { %v5599_v57 = vpop.f32.mrf.mxu0  ;;  %6312 = vmatmul.msk.f32.gmra.mxu1 %vm2359_vm9, %v10659_v1  ;;  %6318 = vmatmul.msk.f32.vlgmr.msrb.gmra.mxu2 %vm2359_vm9, %v10626_v31 }
0x139f   : > { %v5600_v52 = vadd.f32 %v5599_v57, %v10780_v5  ;;  %5917 = vst [vmem:[%s10765_s28 + $0x50] sm:$0xff] %v5682_v17  ;;  %5799 = vmatpush.msra.mxu3 %v5496_v23 }
0x13a0   : > { %6302 = vmatmul.msk.f32.vlgmr.msra.gmra.mxu3 %vm2359_vm9, %v10626_v31 }
0x13a1   : > { %5915 = vst [vmem:[%s10765_s28 + $0x40] sm:$0xff] %v5600_v52 }
0x13a3   : > { %v10841_v11 = vpop.permute.xlu0 %5542 }
0x13a4   : > { %v5684_v54 = vpop.f32.mrf.mxu1 }
0x13a5   : > { %v5685_v20 = vadd.f32 %v5684_v54, %v10793_v32  ;;  %v5637_v2 = vpop.f32.mrf.mxu3 }
0x13a6   : > { %v5602_v47 = vpop.f32.mrf.mxu0  ;;  %v5638_v48 = vadd.f32 %v5637_v2, %v10767_v56  ;;  %6313 = vmatmul.msk.f32.gmra.mxu1 %vm2359_vm9, %v10672_v30  ;;  %6319 = vmatmul.msk.f32.gmra.mxu2 %vm2359_vm9, %v10642_v7 }
0x13a7   : > { %v5603_v27 = vadd.f32 %v5602_v47, %v10793_v32  ;;  %5925 = vst [vmem:[%s10765_s28 + $0x90] sm:$0xff] %v5685_v20  ;;  %v5719_v31 = vpop.f32.mrf.mxu2 }
0x13a8   : > { %5908 = vst [vmem:[%s10765_s28 + $0x8] sm:$0xff] %v5638_v48  ;;  %6303 = vmatmul.msk.f32.gmra.mxu3 %vm2359_vm9, %v10642_v7  ;;  %v5720_v25 = vadd.f32 %v5719_v31, %v10767_v56 }
0x13a9   : > { %5923 = vst [vmem:[%s10765_s28 + $0x80] sm:$0xff] %v5603_v27 }
0x13aa   : > { %5910 = vst [vmem:[%s10765_s28 + $0x18] sm:$0xff] %v5720_v25 }
0x13ac   : > { %v5687_v40 = vpop.f32.mrf.mxu1 }
0x13ad   : > { %v5688_v62 = vadd.f32 %v5687_v40, %v10809_v3  ;;  %v5640_v26 = vpop.f32.mrf.mxu3 }
0x13ae   : > { %v5605_v21 = vpop.f32.mrf.mxu0  ;;  %v5641_v51 = vadd.f32 %v5640_v26, %v10780_v5  ;;  %6314 = vmatmul.msk.f32.gmra.mxu1 %vm2359_vm9, %v10685_v60  ;;  %6320 = vmatmul.msk.f32.gmra.mxu2 %vm2359_vm9, %v10659_v1 }
0x13af   : > { %v5606_v7 = vadd.f32 %v5605_v21, %v10809_v3  ;;  %5933 = vst [vmem:[%s10765_s28 + $0xd0] sm:$0xff] %v5688_v62  ;;  %v5722_v49 = vpop.f32.mrf.mxu2 }
0x13b0   : > { %5916 = vst [vmem:[%s10765_s28 + $0x48] sm:$0xff] %v5641_v51  ;;  %6304 = vmatmul.msk.f32.gmra.mxu3 %vm2359_vm9, %v10659_v1  ;;  %v5723_v53 = vadd.f32 %v5722_v49, %v10780_v5 }
0x13b1   : > { %5931 = vst [vmem:[%s10765_s28 + $0xc0] sm:$0xff] %v5606_v7 }
0x13b2   : > { %5918 = vst [vmem:[%s10765_s28 + $0x58] sm:$0xff] %v5723_v53 }
0x13b4   : > { %v5690_v28 = vpop.f32.mrf.mxu1 }
0x13b5   : > { %v5691_v36 = vadd.f32 %v5690_v28, %v10825_v4  ;;  %v5643_v43 = vpop.f32.mrf.mxu3 }
0x13b6   : > { %v5608_v12 = vpop.f32.mrf.mxu0  ;;  %v5644_v46 = vadd.f32 %v5643_v43, %v10793_v32  ;;  %6315 = vmatmul.msk.f32.gmra.mxu1 %vm2359_vm9, %v10698_v59  ;;  %6321 = vmatmul.msk.f32.gmra.mxu2 %vm2359_vm9, %v10672_v30 }
0x13b7   : > { %v5609_v1 = vadd.f32 %v5608_v12, %v10825_v4  ;;  %5941 = vst [vmem:[%s10765_s28 + $0x110] sm:$0xff] %v5691_v36  ;;  %v5725_v0 = vpop.f32.mrf.mxu2 }
0x13b8   : > { %5924 = vst [vmem:[%s10765_s28 + $0x88] sm:$0xff] %v5644_v46  ;;  %6305 = vmatmul.msk.f32.gmra.mxu3 %vm2359_vm9, %v10672_v30  ;;  %v5726_v8 = vadd.f32 %v5725_v0, %v10793_v32 }
0x13b9   : > { %5939 = vst [vmem:[%s10765_s28 + $0x100] sm:$0xff] %v5609_v1 }
0x13ba   : > { %5926 = vst [vmem:[%s10765_s28 + $0x98] sm:$0xff] %v5726_v8 }
0x13bc   : > { %v5693_v14 = vpop.f32.mrf.mxu1 }
0x13bd   : > { %v5694_v45 = vadd.f32 %v5693_v14, %v10841_v11  ;;  %v5646_v34 = vpop.f32.mrf.mxu3 }
0x13be   : > { %v5611_v15 = vpop.f32.mrf.mxu0  ;;  %v5647_v29 = vadd.f32 %v5646_v34, %v10809_v3  ;;  %6316 = vmatmul.msk.f32.gmra.mxu1 %vm2359_vm9, %v10711_v16  ;;  %6322 = vmatmul.msk.f32.gmra.mxu2 %vm2359_vm9, %v10685_v60 }
0x13bf   : > { %v5612_v30 = vadd.f32 %v5611_v15, %v10841_v11  ;;  %5949 = vst [vmem:[%s10765_s28 + $0x150] sm:$0xff] %v5694_v45  ;;  %v5728_v41 = vpop.f32.mrf.mxu2 }
0x13c0   : > { %5932 = vst [vmem:[%s10765_s28 + $0xc8] sm:$0xff] %v5647_v29  ;;  %6306 = vmatmul.msk.f32.gmra.mxu3 %vm2359_vm9, %v10685_v60  ;;  %v5729_v55 = vadd.f32 %v5728_v41, %v10809_v3 }
0x13c1   : > { %5947 = vst [vmem:[%s10765_s28 + $0x140] sm:$0xff] %v5612_v30 }
0x13c2   : > { %5934 = vst [vmem:[%s10765_s28 + $0xd8] sm:$0xff] %v5729_v55 }
0x13c4   : > { %v5696_v58 = vpop.f32.mrf.mxu1 }
0x13c5   : > { %v5697_v42 = vadd.f32 %v5696_v58, %v10857_v24  ;;  %v5649_v44 = vpop.f32.mrf.mxu3 }
0x13c6   : > { %v5614_v6 = vpop.f32.mrf.mxu0  ;;  %v5650_v61 = vadd.f32 %v5649_v44, %v10825_v4  ;;  %6317 = vmatmul.msk.f32.gmra.mxu1 %vm2359_vm9, %v10724_v33  ;;  %6323 = vmatmul.msk.f32.gmra.mxu2 %vm2359_vm9, %v10698_v59 }
0x13c7   : > { %v5615_v60 = vadd.f32 %v5614_v6, %v10857_v24  ;;  %5957 = vst [vmem:[%s10765_s28 + $0x190] sm:$0xff] %v5697_v42  ;;  %v5731_v13 = vpop.f32.mrf.mxu2 }
0x13c8   : > { %5940 = vst [vmem:[%s10765_s28 + $0x108] sm:$0xff] %v5650_v61  ;;  %6307 = vmatmul.msk.f32.gmra.mxu3 %vm2359_vm9, %v10698_v59  ;;  %v5732_v10 = vadd.f32 %v5731_v13, %v10825_v4 }
0x13c9   : > { %5955 = vst [vmem:[%s10765_s28 + $0x180] sm:$0xff] %v5615_v60 }
0x13ca   : > { %5942 = vst [vmem:[%s10765_s28 + $0x118] sm:$0xff] %v5732_v10 }
0x13cc   : > { %v5699_v22 = vpop.f32.mrf.mxu1 }
0x13cd   : > { %v5700_v63 = vadd.f32 %v5699_v22, %v10873_v50  ;;  %v5652_v18 = vpop.f32.mrf.mxu3 }
0x13ce   : > { %v5617_v38 = vpop.f32.mrf.mxu0  ;;  %v5653_v35 = vadd.f32 %v5652_v18, %v10841_v11  ;;  %6324 = vmatmul.msk.f32.gmra.mxu2 %vm2359_vm9, %v10711_v16 }
0x13cf   : > { %v5618_v59 = vadd.f32 %v5617_v38, %v10873_v50  ;;  %5965 = vst [vmem:[%s10765_s28 + $0x1d0] sm:$0xff] %v5700_v63  ;;  %v5734_v19 = vpop.f32.mrf.mxu2 }
0x13d0   : > { %5948 = vst [vmem:[%s10765_s28 + $0x148] sm:$0xff] %v5653_v35  ;;  %6308 = vmatmul.msk.f32.gmra.mxu3 %vm2359_vm9, %v10711_v16  ;;  %v5735_v37 = vadd.f32 %v5734_v19, %v10841_v11 }
0x13d1   : > { %5963 = vst [vmem:[%s10765_s28 + $0x1c0] sm:$0xff] %v5618_v59 }
0x13d2   : > { %5950 = vst [vmem:[%s10765_s28 + $0x158] sm:$0xff] %v5735_v37 }
0x13d5   : > { %v5655_v39 = vpop.f32.mrf.mxu3 }
0x13d6   : > { %v5760_v9 = vpop.f32.mrf.mxu0  ;;  %v5656_v17 = vadd.f32 %v5655_v39, %v10857_v24  ;;  %6325 = vmatmul.msk.f32.gmra.mxu2 %vm2359_vm9, %v10724_v33 }
0x13d7   : > { %v5761_v23 = vadd.f32 %v5760_v9, %v10767_v56  ;;  %v5737_v57 = vpop.f32.mrf.mxu2 }
0x13d8   : > { %5956 = vst [vmem:[%s10765_s28 + $0x188] sm:$0xff] %v5656_v17  ;;  %6309 = vmatmul.msk.f32.gmra.mxu3 %vm2359_vm9, %v10724_v33  ;;  %v5738_v16 = vadd.f32 %v5737_v57, %v10857_v24 }
0x13d9   : > { %5911 = vst [vmem:[%s10765_s28 + $0x20] sm:$0xff] %v5761_v23 }
0x13da   : > { %5958 = vst [vmem:[%s10765_s28 + $0x198] sm:$0xff] %v5738_v16 }
0x13dd   : > { %v5658_v52 = vpop.f32.mrf.mxu3 }
0x13de   : > { %v5763_v54 = vpop.f32.mrf.mxu0  ;;  %v5659_v20 = vadd.f32 %v5658_v52, %v10873_v50 }
0x13df   : > { %v5764_v2 = vadd.f32 %v5763_v54, %v10780_v5  ;;  %v5740_v47 = vpop.f32.mrf.mxu2 }
0x13e0   : > { %5964 = vst [vmem:[%s10765_s28 + $0x1c8] sm:$0xff] %v5659_v20  ;;  %v5741_v48 = vadd.f32 %v5740_v47, %v10873_v50 }
0x13e1   : > { %5919 = vst [vmem:[%s10765_s28 + $0x60] sm:$0xff] %v5764_v2 }
0x13e2   : > { %5966 = vst [vmem:[%s10765_s28 + $0x1d8] sm:$0xff] %v5741_v48 }
0x13e6   : > { %v5766_v33 = vpop.f32.mrf.mxu0 }
0x13e7   : > { %v5767_v27 = vadd.f32 %v5766_v33, %v10793_v32 }
0x13e9   : > { %5927 = vst [vmem:[%s10765_s28 + $0xa0] sm:$0xff] %v5767_v27 }
0x13ee   : > { %v5769_v31 = vpop.f32.mrf.mxu0 }
0x13ef   : > { %v5770_v25 = vadd.f32 %v5769_v31, %v10809_v3 }
0x13f1   : > { %5935 = vst [vmem:[%s10765_s28 + $0xe0] sm:$0xff] %v5770_v25 }
0x13f6   : > { %v5772_v40 = vpop.f32.mrf.mxu0 }
0x13f7   : > { %v5773_v62 = vadd.f32 %v5772_v40, %v10825_v4 }
0x13f9   : > { %5943 = vst [vmem:[%s10765_s28 + $0x120] sm:$0xff] %v5773_v62 }
0x13fe   : > { %v5775_v26 = vpop.f32.mrf.mxu0 }
0x13ff   : > { %v5776_v21 = vadd.f32 %v5775_v26, %v10841_v11 }
0x1401   : > { %5951 = vst [vmem:[%s10765_s28 + $0x160] sm:$0xff] %v5776_v21 }
0x1406   : > { %v5778_v51 = vpop.f32.mrf.mxu0 }
0x1407   : > { %v5779_v7 = vadd.f32 %v5778_v51, %v10857_v24 }
0x1409   : > { %5959 = vst [vmem:[%s10765_s28 + $0x1a0] sm:$0xff] %v5779_v7 }
0x140b   : > { %v5842_v49 = vpop.f32.mrf.mxu1 }
0x140c   : > { %v5843_v53 = vadd.f32 %v5842_v49, %v10767_v56 }
0x140e   : > { %v5781_v28 = vpop.f32.mrf.mxu0  ;;  %5913 = vst [vmem:[%s10765_s28 + $0x30] sm:$0xff] %v5843_v53 }
0x140f   : > { %v5782_v36 = vadd.f32 %v5781_v28, %v10873_v50 }
0x1411   : > { %5967 = vst [vmem:[%s10765_s28 + $0x1e0] sm:$0xff] %v5782_v36 }
0x1413   : > { %v5845_v43 = vpop.f32.mrf.mxu1 }
0x1414   : > { %v5846_v12 = vadd.f32 %v5845_v43, %v10780_v5 }
0x1416   : > { %5921 = vst [vmem:[%s10765_s28 + $0x70] sm:$0xff] %v5846_v12 }
0x141b   : > { %v5848_v46 = vpop.f32.mrf.mxu1 }
0x141c   : > { %v5849_v1 = vadd.f32 %v5848_v46, %v10793_v32 }
0x141e   : > { %5929 = vst [vmem:[%s10765_s28 + $0xb0] sm:$0xff] %v5849_v1 }
0x1421   : > { %v5883_v0 = vpop.f32.mrf.mxu2 }
0x1422   : > { %v5884_v8 = vadd.f32 %v5883_v0, %v10767_v56 }
0x1423   : > { %v5801_v14 = vpop.f32.mrf.mxu3  ;;  %v5851_v45 = vpop.f32.mrf.mxu1 }
0x1424   : > { %5914 = vst [vmem:[%s10765_s28 + $0x38] sm:$0xff] %v5884_v8  ;;  %v5802_v34 = vadd.f32 %v5801_v14, %v10767_v56  ;;  %v5852_v15 = vadd.f32 %v5851_v45, %v10809_v3 }
0x1426   : > { %5912 = vst [vmem:[%s10765_s28 + $0x28] sm:$0xff] %v5802_v34 }
0x1427   : > { %5937 = vst [vmem:[%s10765_s28 + $0xf0] sm:$0xff] %v5852_v15 }
0x1429   : > { %v5886_v29 = vpop.f32.mrf.mxu2 }
0x142a   : > { %v5887_v30 = vadd.f32 %v5886_v29, %v10780_v5 }
0x142b   : > { %v5804_v41 = vpop.f32.mrf.mxu3  ;;  %v5854_v55 = vpop.f32.mrf.mxu1 }
0x142c   : > { %5922 = vst [vmem:[%s10765_s28 + $0x78] sm:$0xff] %v5887_v30  ;;  %v5805_v58 = vadd.f32 %v5804_v41, %v10780_v5  ;;  %v5855_v42 = vadd.f32 %v5854_v55, %v10825_v4 }
0x142e   : > { %5920 = vst [vmem:[%s10765_s28 + $0x68] sm:$0xff] %v5805_v58 }
0x142f   : > { %5945 = vst [vmem:[%s10765_s28 + $0x130] sm:$0xff] %v5855_v42 }
0x1431   : > { %v5889_v56 = vpop.f32.mrf.mxu2 }
0x1432   : > { %v5890_v44 = vadd.f32 %v5889_v56, %v10793_v32 }
0x1433   : > { %v5807_v6 = vpop.f32.mrf.mxu3  ;;  %v5857_v61 = vpop.f32.mrf.mxu1 }
0x1434   : > { %5930 = vst [vmem:[%s10765_s28 + $0xb8] sm:$0xff] %v5890_v44  ;;  %v5808_v60 = vadd.f32 %v5807_v6, %v10793_v32  ;;  %v5858_v13 = vadd.f32 %v5857_v61, %v10841_v11 }
0x1436   : > { %5928 = vst [vmem:[%s10765_s28 + $0xa8] sm:$0xff] %v5808_v60 }
0x1437   : > { %5953 = vst [vmem:[%s10765_s28 + $0x170] sm:$0xff] %v5858_v13 }
0x1439   : > { %v5892_v5 = vpop.f32.mrf.mxu2 }
0x143a   : > { %v5893_v10 = vadd.f32 %v5892_v5, %v10809_v3 }
0x143b   : > { %v5810_v22 = vpop.f32.mrf.mxu3  ;;  %v5860_v63 = vpop.f32.mrf.mxu1 }
0x143c   : > { %5938 = vst [vmem:[%s10765_s28 + $0xf8] sm:$0xff] %v5893_v10  ;;  %v5811_v18 = vadd.f32 %v5810_v22, %v10809_v3  ;;  %v5861_v38 = vadd.f32 %v5860_v63, %v10857_v24 }
0x143e   : > { %5936 = vst [vmem:[%s10765_s28 + $0xe8] sm:$0xff] %v5811_v18 }
0x143f   : > { %5961 = vst [vmem:[%s10765_s28 + $0x1b0] sm:$0xff] %v5861_v38 }
0x1441   : > { %v5895_v32 = vpop.f32.mrf.mxu2 }
0x1442   : > { %v5896_v35 = vadd.f32 %v5895_v32, %v10825_v4 }
0x1443   : > { %v5813_v59 = vpop.f32.mrf.mxu3  ;;  %v5863_v19 = vpop.f32.mrf.mxu1 }
0x1444   : > { %5946 = vst [vmem:[%s10765_s28 + $0x138] sm:$0xff] %v5896_v35  ;;  %v5814_v37 = vadd.f32 %v5813_v59, %v10825_v4  ;;  %v5864_v39 = vadd.f32 %v5863_v19, %v10873_v50 }
0x1446   : > { %5944 = vst [vmem:[%s10765_s28 + $0x128] sm:$0xff] %v5814_v37 }
0x1447   : > { %5969 = vst [vmem:[%s10765_s28 + $0x1f0] sm:$0xff] %v5864_v39 }
0x1449   : > { %v5898_v3 = vpop.f32.mrf.mxu2 }
0x144a   : > { %v5899_v9 = vadd.f32 %v5898_v3, %v10841_v11 }
0x144b   : > { %v5816_v17 = vpop.f32.mrf.mxu3 }
0x144c   : > { %5954 = vst [vmem:[%s10765_s28 + $0x178] sm:$0xff] %v5899_v9  ;;  %v5817_v23 = vadd.f32 %v5816_v17, %v10841_v11 }
0x144e   : > { %5952 = vst [vmem:[%s10765_s28 + $0x168] sm:$0xff] %v5817_v23 }
0x1451   : > { %v5901_v57 = vpop.f32.mrf.mxu2 }
0x1452   : > { %v5902_v16 = vadd.f32 %v5901_v57, %v10857_v24 }
0x1453   : > { %v5819_v52 = vpop.f32.mrf.mxu3 }
0x1454   : > { %5962 = vst [vmem:[%s10765_s28 + $0x1b8] sm:$0xff] %v5902_v16  ;;  %v5820_v4 = vadd.f32 %v5819_v52, %v10857_v24 }
0x1456   : > { %5960 = vst [vmem:[%s10765_s28 + $0x1a8] sm:$0xff] %v5820_v4 }
0x1459   : > { %v5904_v54 = vpop.f32.mrf.mxu2 }
0x145a   : > { %v5905_v20 = vadd.f32 %v5904_v54, %v10873_v50 }
0x145b   : > { %v5822_v2 = vpop.f32.mrf.mxu3 }
0x145c   : > { %5970 = vst [vmem:[%s10765_s28 + $0x1f8] sm:$0xff] %v5905_v20  ;;  %v5823_v47 = vadd.f32 %v5822_v2, %v10873_v50 }
0x145e   : > { %5968 = vst [vmem:[%s10765_s28 + $0x1e8] sm:$0xff] %v5823_v47 }
0x145f PF: > { %s12132_s5 = sld [smem:[#allocation12_spill]] }
0x1465   : > { %s36_s4 = sadd.s32 1, %s12132_s5  }
0x1466   : > { %p33_p7 = scmp.ge.s32.totalorder %s36_s4, 4  }
0x1468   :  { %35 = sbr.rel (!%p33_p7) target bundleno = 15 (0xf), region = 165 }
0x146d   :  { %5992 = vsyncpa [#allocation3], 1 }
0x146e   :  { %5994 = vsyncpa [#allocation3 + $0x1], 1 }
0x146f   :  { %5995 = vsyncpa [#allocation5], 1 }
0x1470   :  { %5996 = vsyncpa [#allocation8], 1 }

</bundles_post_ra>
